<compile_context>
chip_gen: v6e
topology: v6e:2x2x1
jax: 0.10.0
libtpu: 0.0.40
codegen_flags: <defaults>
</compile_context>

<pallas_src>
import jax
import jax.numpy as jnp
from jax.experimental import pallas as pl
from jax.experimental.pallas import tpu as pltpu

BN_EPS = 1e-5
HIDDEN = 128
MAX_TILE_ROWS = 512          # row tile for conv / projection / classifier
MAX_GRU_UNROLL = 16          # timesteps unrolled per GRU grid step
VMEM_LIMIT = 32 * 1024 * 1024

# v6e/v7x fast path (perf feedback): set to jnp.bfloat16 to feed all MXU dots
# bf16 operands (accumulation stays f32, gate/BN math stays f32).  Kept f32 by
# default so the strict 1e-2 self-check against the pure-f32 reference passes
# tightly on every generation.
MXU_DTYPE = jnp.float32


def _mxu(x):
    return x.astype(MXU_DTYPE)


# --------------------------------------------------------------------------
# Pallas kernels
# --------------------------------------------------------------------------
def _conv_stats_kernel(pe_ref, po_ref, w_ref, b_ref, stats_ref):
    """Conv1d (im2col matmul) + ReLU; accumulate per-channel sum / sumsq of the
    pre-pool activation into a (2, Cout) accumulator resident across the
    'arbitrary' row-tile axis (exact BatchNorm batch statistics under tiling)."""
    ye = jnp.maximum(
        jnp.dot(_mxu(pe_ref[...]), _mxu(w_ref[...]),
                preferred_element_type=jnp.float32) + b_ref[...], 0.0)
    yo = jnp.maximum(
        jnp.dot(_mxu(po_ref[...]), _mxu(w_ref[...]),
                preferred_element_type=jnp.float32) + b_ref[...], 0.0)

    @pl.when(pl.program_id(0) == 0)
    def _():
        stats_ref[...] = jnp.zeros_like(stats_ref)

    s1 = jnp.sum(ye, axis=0, keepdims=True) + jnp.sum(yo, axis=0, keepdims=True)
    s2 = (jnp.sum(ye * ye, axis=0, keepdims=True)
          + jnp.sum(yo * yo, axis=0, keepdims=True))
    stats_ref[...] += jnp.concatenate([s1, s2], axis=0)


def _conv_apply_kernel(pe_ref, po_ref, w_ref, b_ref, scale_ref, shift_ref, out_ref):
    """Fused Conv1d + ReLU + BatchNorm affine (precomputed scale/shift) +
    MaxPool1d(2) (pooling = max of the even/odd conv streams)."""
    ye = jnp.maximum(
        jnp.dot(_mxu(pe_ref[...]), _mxu(w_ref[...]),
                preferred_element_type=jnp.float32) + b_ref[...], 0.0)
    yo = jnp.maximum(
        jnp.dot(_mxu(po_ref[...]), _mxu(w_ref[...]),
                preferred_element_type=jnp.float32) + b_ref[...], 0.0)
    out_ref[...] = jnp.maximum(ye * scale_ref[...] + shift_ref[...],
                               yo * scale_ref[...] + shift_ref[...])


def _matmul_bias_kernel(x_ref, w_ref, b_ref, o_ref):
    o_ref[...] = jnp.dot(_mxu(x_ref[...]), _mxu(w_ref[...]),
                         preferred_element_type=jnp.float32) + b_ref[...]


def _gru_kernel(gx_ref, whh_ref, bhh_ref, out_ref, h_ref):
    """Bidirectional GRU recurrence.  grid = (direction, time_block).

    The backward direction (d == 1) gets the time-reversed gx / output blocks
    through the index_map and runs its statically unrolled inner loop
    back-to-front, so no sequence reversal is ever materialised in HBM.
    h_ref (VMEM scratch) carries the hidden state across the 'arbitrary'
    time-block axis and is reset at the first block of each direction."""
    H = h_ref.shape[-1]
    U = gx_ref.shape[1]
    d = pl.program_id(0)
    s = pl.program_id(1)
    fwd = d == 0

    @pl.when(s == 0)
    def _():
        h_ref[...] = jnp.zeros_like(h_ref)

    whh = _mxu(whh_ref[0])                               # (H, 3H)
    bhh = bhh_ref[0]                                     # (1, 3H)
    h = h_ref[...]
    for u in range(U):                                   # static unroll
        gx = jnp.where(fwd, gx_ref[:, u, :], gx_ref[:, U - 1 - u, :])   # (B, 3H)
        gh = jnp.dot(_mxu(h), whh, preferred_element_type=jnp.float32) + bhh
        r = jax.nn.sigmoid(gx[:, :H] + gh[:, :H])
        z = jax.nn.sigmoid(gx[:, H:2 * H] + gh[:, H:2 * H])
        n = jnp.tanh(gx[:, 2 * H:] + r * gh[:, 2 * H:])
        h = (1.0 - z) * n + z * h

        @pl.when(fwd)
        def _():
            out_ref[:, u, :] = h

        @pl.when(jnp.logical_not(fwd))
        def _():
            out_ref[:, U - 1 - u, :] = h

    h_ref[...] = h


def _linear_logsoftmax_kernel(x_ref, w_ref, b_ref, o_ref):
    logits = jnp.dot(_mxu(x_ref[...]), _mxu(w_ref[...]),
                     preferred_element_type=jnp.float32) + b_ref[...]
    m = jnp.max(logits, axis=-1, keepdims=True)
    lse = jnp.log(jnp.sum(jnp.exp(logits - m), axis=-1, keepdims=True)) + m
    o_ref[...] = logits - lse


# --------------------------------------------------------------------------
# Tiling helpers
# --------------------------------------------------------------------------
def _pick_tile(m, max_tile=MAX_TILE_ROWS):
    """Largest row tile <= max_tile dividing m that obeys the (8,128) rule."""
    if m <= max_tile:
        return m
    t = (max_tile // 8) * 8
    while t >= 8:
        if m % t == 0:
            return t
        t -= 8
    return m


def _pick_unroll(t, max_u=MAX_GRU_UNROLL):
    """Timesteps per GRU grid step: multiple of 8 dividing t, or the whole t."""
    if t <= max_u:
        return t
    u = (max_u // 8) * 8
    while u >= 8:
        if t % u == 0:
            return u
        u -= 8
    return t


# --------------------------------------------------------------------------
# Wrappers
# --------------------------------------------------------------------------
def _im2col_1d(x, k, pad):
    # x: (B, L, C) -> (B, L, k*C), kernel-tap major / channel minor ordering.
    B, L, C = x.shape
    xp = jnp.pad(x, ((0, 0), (pad, pad), (0, 0)))
    return jnp.concatenate([xp[:, i:i + L, :] for i in range(k)], axis=-1)


def conv_bn_pool_block(x, w, b, gamma, beta):
    # x: (B, L, Cin); w: (Cout, Cin, k) in PyTorch layout
    B, L, Cin = x.shape
    Cout, _, k = w.shape
    assert L % 2 == 0, "MaxPool1d(2) requires an even length"
    pad = k // 2
    patches = _im2col_1d(x, k, pad)                              # (B, L, k*Cin)
    w_mat = jnp.transpose(w, (2, 1, 0)).reshape(k * Cin, Cout)
    kc = patches.shape[-1]
    kpad = (-kc) % 8
    if kpad:
        patches = jnp.pad(patches, ((0, 0), (0, 0), (0, kpad)))
        w_mat = jnp.pad(w_mat, ((0, kpad), (0, 0)))
    kc2 = patches.shape[-1]
    lout = L // 2
    M = B * lout
    pe = patches[:, 0::2, :].reshape(M, kc2)                     # even positions
    po = patches[:, 1::2, :].reshape(M, kc2)                     # odd positions

    tile_m = _pick_tile(M)
    nt = M // tile_m
    in_specs = [
        pl.BlockSpec((tile_m, kc2), lambda i: (i, 0)),
        pl.BlockSpec((tile_m, kc2), lambda i: (i, 0)),
        pl.BlockSpec((kc2, Cout), lambda i: (0, 0)),
        pl.BlockSpec((1, Cout), lambda i: (0, 0)),
    ]

    # Pass 1: exact BatchNorm batch statistics (sum / sumsq accumulator).
    stats = pl.pallas_call(
        _conv_stats_kernel,
        out_shape=jax.ShapeDtypeStruct((2, Cout), jnp.float32),
        grid=(nt,),
        in_specs=in_specs,
        out_specs=pl.BlockSpec((2, Cout), lambda i: (0, 0)),
        compiler_params=pltpu.CompilerParams(
            dimension_semantics=("arbitrary",), vmem_limit_bytes=VMEM_LIMIT),
    )(pe, po, w_mat, b.reshape(1, -1))

    count = jnp.float32(2 * M)                                   # positions = B*L
    mean = stats[0] / count
    var = stats[1] / count - mean * mean
    scale = gamma * jax.lax.rsqrt(var + BN_EPS)
    shift = beta - mean * scale

    # Pass 2: fused conv + ReLU + BN affine + pool, parallel over row tiles.
    out = pl.pallas_call(
        _conv_apply_kernel,
        out_shape=jax.ShapeDtypeStruct((M, Cout), jnp.float32),
        grid=(nt,),
        in_specs=in_specs + [
            pl.BlockSpec((1, Cout), lambda i: (0, 0)),
            pl.BlockSpec((1, Cout), lambda i: (0, 0)),
        ],
        out_specs=pl.BlockSpec((tile_m, Cout), lambda i: (i, 0)),
        compiler_params=pltpu.CompilerParams(
            dimension_semantics=("parallel",), vmem_limit_bytes=VMEM_LIMIT),
    )(pe, po, w_mat, b.reshape(1, -1), scale.reshape(1, -1), shift.reshape(1, -1))
    return out.reshape(B, lout, Cout)


def _matmul_bias(x, w, b, tile_m):
    # x: (M, K), w: (K, N), b: (N,)
    M, K = x.shape
    N = w.shape[1]
    nt = M // tile_m
    return pl.pallas_call(
        _matmul_bias_kernel,
        out_shape=jax.ShapeDtypeStruct((M, N), jnp.float32),
        grid=(nt,),
        in_specs=[pl.BlockSpec((tile_m, K), lambda i: (i, 0)),
                  pl.BlockSpec((K, N), lambda i: (0, 0)),
                  pl.BlockSpec((1, N), lambda i: (0, 0))],
        out_specs=pl.BlockSpec((tile_m, N), lambda i: (i, 0)),
        compiler_params=pltpu.CompilerParams(
            dimension_semantics=("parallel",), vmem_limit_bytes=VMEM_LIMIT),
    )(x, w, b.reshape(1, -1))


def _gru_layer(h_in, params_f, params_b):
    """One bidirectional GRU layer.  Returns (B, T, 2H) = [fwd | bwd] hidden."""
    B, T, Cin = h_in.shape
    w_ih_f, w_hh_f, b_ih_f, b_hh_f = params_f
    w_ih_b, w_hh_b, b_ih_b, b_hh_b = params_b
    H = w_hh_f.shape[1]

    # Fused input projection for both directions (no sequence reversal needed —
    # per-timestep matmul commutes with time reversal): (Cin, 6H), lane-dense.
    w_ih_cat = jnp.concatenate([w_ih_f.T, w_ih_b.T], axis=1)     # (Cin, 6H)
    b_ih_cat = jnp.concatenate([b_ih_f, b_ih_b], axis=0)         # (6H,)
    gx = _matmul_bias(h_in.reshape(B * T, Cin), w_ih_cat, b_ih_cat,
                      _pick_tile(B * T))
    gx = gx.reshape(B, T, 6 * H)                                 # free reshape

    whh = jnp.stack([w_hh_f.T, w_hh_b.T], axis=0)                # (2, H, 3H)
    bhh = jnp.stack([b_hh_f, b_hh_b], axis=0).reshape(2, 1, 3 * H)

    U = _pick_unroll(T)
    nb = T // U
    # time-block index: s for the forward direction, nb-1-s for the backward one
    tblk = lambda d, s: s + d * (nb - 1 - 2 * s)

    out = pl.pallas_call(
        _gru_kernel,
        out_shape=jax.ShapeDtypeStruct((B, T, 2 * H), jnp.float32),
        grid=(2, nb),
        in_specs=[
            pl.BlockSpec((B, U, 3 * H), lambda d, s: (0, tblk(d, s), d)),
            pl.BlockSpec((1, H, 3 * H), lambda d, s: (d, 0, 0)),
            pl.BlockSpec((1, 1, 3 * H), lambda d, s: (d, 0, 0)),
        ],
        out_specs=pl.BlockSpec((B, U, H), lambda d, s: (0, tblk(d, s), d)),
        scratch_shapes=[pltpu.VMEM((B, H), jnp.float32)],
        compiler_params=pltpu.CompilerParams(
            dimension_semantics=("parallel", "arbitrary"),
            vmem_limit_bytes=VMEM_LIMIT),
    )(gx, whh, bhh)
    return out


def _linear_logsoftmax(x, w_pad, b_pad, tile_m):
    M, K = x.shape
    N = w_pad.shape[1]
    nt = M // tile_m
    return pl.pallas_call(
        _linear_logsoftmax_kernel,
        out_shape=jax.ShapeDtypeStruct((M, N), jnp.float32),
        grid=(nt,),
        in_specs=[pl.BlockSpec((tile_m, K), lambda i: (i, 0)),
                  pl.BlockSpec((K, N), lambda i: (0, 0)),
                  pl.BlockSpec((1, N), lambda i: (0, 0))],
        out_specs=pl.BlockSpec((tile_m, N), lambda i: (i, 0)),
        compiler_params=pltpu.CompilerParams(
            dimension_semantics=("parallel",), vmem_limit_bytes=VMEM_LIMIT),
    )(x, w_pad, b_pad.reshape(1, -1))


def morse_net_forward(x_ncl, params):
    # x_ncl: (B, 1, L) as in PyTorch
    B, Cin, L = x_ncl.shape
    assert Cin == 1 and L % 4 == 0, "MorseNet needs a single channel and L % 4 == 0"
    x = jnp.transpose(x_ncl, (0, 2, 1)).astype(jnp.float32)      # (B, L, 1)
    x = conv_bn_pool_block(x, *params["conv1"])                  # (B, L/2, 32)
    x = conv_bn_pool_block(x, *params["conv2"])                  # (B, L/4, 64)

    h = x
    for layer in range(2):
        h = _gru_layer(h, params["gru"][(layer, 0)], params["gru"][(layer, 1)])
    B_, T, _ = h.shape

    # Classifier + log_softmax, output padded to a lane-dense multiple of 128.
    w_c, b_c = params["classifier"]
    ncls = w_c.shape[0]
    npad = ((ncls + 127) // 128) * 128
    w_pad = jnp.zeros((w_c.shape[1], npad), jnp.float32).at[:, :ncls].set(w_c.T)
    b_pad = jnp.full((npad,), -1e30, jnp.float32).at[:ncls].set(b_c)
    out = _linear_logsoftmax(h.reshape(B_ * T, -1), w_pad, b_pad,
                             _pick_tile(B_ * T))
    return out[:, :ncls].reshape(B_, T, ncls)


# --------------------------------------------------------------------------
# Pure-JAX reference (same math, no Pallas) for the correctness check
# --------------------------------------------------------------------------
def reference_forward(x_ncl, params):
    x = jnp.transpose(x_ncl, (0, 2, 1)).astype(jnp.float32)
    for name in ("conv1", "conv2"):
        w, b, g, beta = params[name]
        Cout, Cin, k = w.shape
        patches = _im2col_1d(x, k, k // 2)
        w_mat = jnp.transpose(w, (2, 1, 0)).reshape(k * Cin, Cout)
        y = jnp.maximum(patches @ w_mat + b, 0.0)
        mean = jnp.mean(y, axis=(0, 1), keepdims=True)
        var = jnp.mean((y - mean) ** 2, axis=(0, 1), keepdims=True)
        y = (y - mean) / jnp.sqrt(var + BN_EPS) * g + beta
        B, L, C = y.shape
        x = jnp.max(y.reshape(B, L // 2, 2, C), axis=2)
    B, T, _ = x.shape
    H = HIDDEN
    h_in = x
    for layer in range(2):
        outs = []
        for direction in range(2):
            w_ih, w_hh, b_ih, b_hh = params["gru"][(layer, direction)]
            seq = h_in if direction == 0 else h_in[:, ::-1, :]
            h = jnp.zeros((B, H), jnp.float32)
            hs = []
            for t in range(T):
                xt = seq[:, t, :]
                gi = xt @ w_ih.T + b_ih
                gh = h @ w_hh.T + b_hh
                r = jax.nn.sigmoid(gi[:, :H] + gh[:, :H])
                z = jax.nn.sigmoid(gi[:, H:2 * H] + gh[:, H:2 * H])
                cand = jnp.tanh(gi[:, 2 * H:] + r * gh[:, 2 * H:])
                h = (1.0 - z) * cand + z * h
                hs.append(h)
            hseq = jnp.stack(hs, axis=1)
            if direction == 1:
                hseq = hseq[:, ::-1, :]
            outs.append(hseq)
        h_in = jnp.concatenate(outs, axis=-1)
    w_c, b_c = params["classifier"]
    logits = h_in @ w_c.T + b_c
    return jax.nn.log_softmax(logits, axis=-1)


# --------------------------------------------------------------------------
# Deterministic parameter init (shapes from MorseNet.__init__)
# --------------------------------------------------------------------------
def init_params(num_classes, key):
    ks = iter(jax.random.split(key, 64))

    def nrm(shape, scale):
        return scale * jax.random.normal(next(ks), shape, jnp.float32)

    params = {}
    params["conv1"] = (nrm((32, 1, 5), 0.3), nrm((32,), 0.1),
                       1.0 + nrm((32,), 0.05), nrm((32,), 0.05))
    params["conv2"] = (nrm((64, 32, 3), 0.1), nrm((64,), 0.1),
                       1.0 + nrm((64,), 0.05), nrm((64,), 0.05))
    gru = {}
    in_sizes = (64, 2 * HIDDEN)
    for layer in range(2):
        for direction in range(2):
            gru[(layer, direction)] = (
                nrm((3 * HIDDEN, in_sizes[layer]), 0.08),   # weight_ih
                nrm((3 * HIDDEN, HIDDEN), 0.08),            # weight_hh
                nrm((3 * HIDDEN,), 0.08),                   # bias_ih
                nrm((3 * HIDDEN,), 0.08),                   # bias_hh
            )
    params["gru"] = gru
    params["classifier"] = (nrm((num_classes + 1, 2 * HIDDEN), 0.05),
                            nrm((num_classes + 1,), 0.05))
    return params


if __name__ == "__main__":
    num_classes = 5
    B, L = 2, 128                                   # T = L // 4 = 32
    key = jax.random.PRNGKey(0)
    kp, kx = jax.random.split(key)
    params = init_params(num_classes, kp)
    x = jax.random.normal(kx, (B, 1, L), jnp.float32)

    fwd = jax.jit(morse_net_forward)
    ref_fn = jax.jit(reference_forward)
    out = jax.block_until_ready(fwd(x, params))
    ref = jax.block_until_ready(ref_fn(x, params))

    assert out.shape == (B, L // 4, num_classes + 1), out.shape
    if not jnp.allclose(out, ref, atol=1e-2, rtol=1e-2):
        max_err = float(jnp.max(jnp.abs(out - ref)))
        raise AssertionError(f"mismatch vs pure-JAX reference, max abs err = {max_err}")
    print("KERNEL_OK")
</pallas_src>

<mosaic_0001>
module attributes {stable_mosaic.version = 11 : i64} {
  func.func @_conv_stats_kernel(%arg0: i32, %arg1: memref<128x8xf32, #tpu.memory_space<vmem>>, %arg2: memref<128x8xf32, #tpu.memory_space<vmem>>, %arg3: memref<8x32xf32, #tpu.memory_space<vmem>>, %arg4: memref<1x32xf32, #tpu.memory_space<vmem>>, %arg5: memref<2x32xf32, #tpu.memory_space<vmem>>) attributes {dimension_semantics = [#tpu.dimension_semantics<arbitrary>], iteration_bounds = array<i64: 1>, scalar_prefetch = 0 : i64, scratch_operands = 0 : i64, tpu.core_type = #tpu.core_type<tc>, window_params = [{transform_indices = @transform_0, window_bounds = array<i64: 128, 8>}, {transform_indices = @transform_1, window_bounds = array<i64: 128, 8>}, {pipeline_mode = #tpu.pipeline_mode<synchronous>, transform_indices = @transform_2, window_bounds = array<i64: 8, 32>}, {pipeline_mode = #tpu.pipeline_mode<synchronous>, transform_indices = @transform_3, window_bounds = array<i64: 1, 32>}, {pipeline_mode = #tpu.pipeline_mode<synchronous>, transform_indices = @transform_4, window_bounds = array<i64: 2, 32>}]} {
    %c0 = arith.constant 0 : index
    %c0_0 = arith.constant 0 : index
    %0 = vector.load %arg1[%c0, %c0_0] : memref<128x8xf32, #tpu.memory_space<vmem>>, vector<128x8xf32>
    %c0_1 = arith.constant 0 : index
    %c0_2 = arith.constant 0 : index
    %1 = vector.load %arg3[%c0_1, %c0_2] : memref<8x32xf32, #tpu.memory_space<vmem>>, vector<8x32xf32>
    %cst = arith.constant dense<0.000000e+00> : vector<128x32xf32>
    %2 = tpu.matmul %0, %1, %cst {dimension_numbers = #tpu.dot_dimension_numbers<[1], [0], [0], [1], [0, 0, 1, 1], [], []>} : vector<128x8xf32>, vector<8x32xf32>, vector<128x32xf32> -> vector<128x32xf32>
    %c0_3 = arith.constant 0 : index
    %c0_4 = arith.constant 0 : index
    %3 = vector.load %arg4[%c0_3, %c0_4] : memref<1x32xf32, #tpu.memory_space<vmem>>, vector<1x32xf32>
    %4 = vector.broadcast %3 : vector<1x32xf32> to vector<128x32xf32>
    %5 = arith.addf %2, %4 : vector<128x32xf32>
    %cst_5 = arith.constant 0.000000e+00 : f32
    %6 = vector.broadcast %cst_5 : f32 to vector<128x32xf32>
    %7 = arith.maximumf %5, %6 : vector<128x32xf32>
    %c0_6 = arith.constant 0 : index
    %c0_7 = arith.constant 0 : index
    %8 = vector.load %arg2[%c0_6, %c0_7] : memref<128x8xf32, #tpu.memory_space<vmem>>, vector<128x8xf32>
    %c0_8 = arith.constant 0 : index
    %c0_9 = arith.constant 0 : index
    %9 = vector.load %arg3[%c0_8, %c0_9] : memref<8x32xf32, #tpu.memory_space<vmem>>, vector<8x32xf32>
    %cst_10 = arith.constant dense<0.000000e+00> : vector<128x32xf32>
    %10 = tpu.matmul %8, %9, %cst_10 {dimension_numbers = #tpu.dot_dimension_numbers<[1], [0], [0], [1], [0, 0, 1, 1], [], []>} : vector<128x8xf32>, vector<8x32xf32>, vector<128x32xf32> -> vector<128x32xf32>
    %c0_11 = arith.constant 0 : index
    %c0_12 = arith.constant 0 : index
    %11 = vector.load %arg4[%c0_11, %c0_12] : memref<1x32xf32, #tpu.memory_space<vmem>>, vector<1x32xf32>
    %12 = vector.broadcast %11 : vector<1x32xf32> to vector<128x32xf32>
    %13 = arith.addf %10, %12 : vector<128x32xf32>
    %cst_13 = arith.constant 0.000000e+00 : f32
    %14 = vector.broadcast %cst_13 : f32 to vector<128x32xf32>
    %15 = arith.maximumf %13, %14 : vector<128x32xf32>
    %c0_i32 = arith.constant 0 : i32
    %16 = arith.cmpi eq, %arg0, %c0_i32 : i32
    %17 = arith.extui %16 : i1 to i32
    %c0_i32_14 = arith.constant 0 : i32
    %18 = arith.cmpi ne, %17, %c0_i32_14 : i32
    scf.if %18 {
      %cst_23 = arith.constant 0.000000e+00 : f32
      %35 = vector.broadcast %cst_23 : f32 to vector<2x32xf32>
      %c0_24 = arith.constant 0 : index
      %c0_25 = arith.constant 0 : index
      %36 = vector.load %arg5[%c0_24, %c0_25] : memref<2x32xf32, #tpu.memory_space<vmem>>, vector<2x32xf32>
      tpu.vector_store %arg5[%c0_24, %c0_25], %35 {strides = array<i32>} : memref<2x32xf32, #tpu.memory_space<vmem>>, vector<2x32xf32>,
    } else {
    }
    %cst_15 = arith.constant dense<0.000000e+00> : vector<32xf32>
    %19 = vector.multi_reduction <add>, %7, %cst_15 [0] : vector<128x32xf32> to vector<32xf32>
    %20 = vector.shape_cast %19 : vector<32xf32> to vector<1x32xf32>
    %cst_16 = arith.constant dense<0.000000e+00> : vector<32xf32>
    %21 = vector.multi_reduction <add>, %15, %cst_16 [0] : vector<128x32xf32> to vector<32xf32>
    %22 = vector.shape_cast %21 : vector<32xf32> to vector<1x32xf32>
    %23 = arith.addf %20, %22 : vector<1x32xf32>
    %24 = arith.mulf %7, %7 : vector<128x32xf32>
    %cst_17 = arith.constant dense<0.000000e+00> : vector<32xf32>
    %25 = vector.multi_reduction <add>, %24, %cst_17 [0] : vector<128x32xf32> to vector<32xf32>
    %26 = vector.shape_cast %25 : vector<32xf32> to vector<1x32xf32>
    %27 = arith.mulf %15, %15 : vector<128x32xf32>
    %cst_18 = arith.constant dense<0.000000e+00> : vector<32xf32>
    %28 = vector.multi_reduction <add>, %27, %cst_18 [0] : vector<128x32xf32> to vector<32xf32>
    %29 = vector.shape_cast %28 : vector<32xf32> to vector<1x32xf32>
    %30 = arith.addf %26, %29 : vector<1x32xf32>
    %c0_19 = arith.constant 0 : index
    %c0_20 = arith.constant 0 : index
    %31 = vector.load %arg5[%c0_19, %c0_20] : memref<2x32xf32, #tpu.memory_space<vmem>>, vector<2x32xf32>
    %32 = tpu.concatenate %23, %30 in 0 : vector<1x32xf32>, vector<1x32xf32> -> vector<2x32xf32>
    %33 = arith.addf %31, %32 : vector<2x32xf32>
    %c0_21 = arith.constant 0 : index
    %c0_22 = arith.constant 0 : index
    %34 = vector.load %arg5[%c0_21, %c0_22] : memref<2x32xf32, #tpu.memory_space<vmem>>, vector<2x32xf32>
    tpu.vector_store %arg5[%c0_21, %c0_22], %33 {strides = array<i32>} : memref<2x32xf32, #tpu.memory_space<vmem>>, vector<2x32xf32>,
    return
  }
  func.func @transform_0(%arg0: i32) -> (i32, i32) {
    %c0_i32 = arith.constant 0 : i32
    %c0_i32_0 = arith.constant 0 : i32
    return %arg0, %c0_i32 : i32, i32
  }
  func.func @transform_1(%arg0: i32) -> (i32, i32) {
    %c0_i32 = arith.constant 0 : i32
    %c0_i32_0 = arith.constant 0 : i32
    return %arg0, %c0_i32 : i32, i32
  }
  func.func @transform_2(%arg0: i32) -> (i32, i32) {
    %c0_i32 = arith.constant 0 : i32
    %c0_i32_0 = arith.constant 0 : i32
    %c0_i32_1 = arith.constant 0 : i32
    return %c0_i32, %c0_i32_0 : i32, i32
  }
  func.func @transform_3(%arg0: i32) -> (i32, i32) {
    %c0_i32 = arith.constant 0 : i32
    %c0_i32_0 = arith.constant 0 : i32
    %c0_i32_1 = arith.constant 0 : i32
    return %c0_i32, %c0_i32_0 : i32, i32
  }
  func.func @transform_4(%arg0: i32) -> (i32, i32) {
    %c0_i32 = arith.constant 0 : i32
    %c0_i32_0 = arith.constant 0 : i32
    %c0_i32_1 = arith.constant 0 : i32
    return %c0_i32, %c0_i32_0 : i32, i32
  }
}

module attributes {stable_mosaic.version = 11 : i64} {
  func.func @_conv_apply_kernel(%arg0: i32, %arg1: memref<128x8xf32, #tpu.memory_space<vmem>>, %arg2: memref<128x8xf32, #tpu.memory_space<vmem>>, %arg3: memref<8x32xf32, #tpu.memory_space<vmem>>, %arg4: memref<1x32xf32, #tpu.memory_space<vmem>>, %arg5: memref<1x32xf32, #tpu.memory_space<vmem>>, %arg6: memref<1x32xf32, #tpu.memory_space<vmem>>, %arg7: memref<128x32xf32, #tpu.memory_space<vmem>>) attributes {dimension_semantics = [#tpu.dimension_semantics<parallel>], iteration_bounds = array<i64: 1>, scalar_prefetch = 0 : i64, scratch_operands = 0 : i64, tpu.core_type = #tpu.core_type<tc>, window_params = [{transform_indices = @transform_0, window_bounds = array<i64: 128, 8>}, {transform_indices = @transform_1, window_bounds = array<i64: 128, 8>}, {pipeline_mode = #tpu.pipeline_mode<synchronous>, transform_indices = @transform_2, window_bounds = array<i64: 8, 32>}, {pipeline_mode = #tpu.pipeline_mode<synchronous>, transform_indices = @transform_3, window_bounds = array<i64: 1, 32>}, {pipeline_mode = #tpu.pipeline_mode<synchronous>, transform_indices = @transform_4, window_bounds = array<i64: 1, 32>}, {pipeline_mode = #tpu.pipeline_mode<synchronous>, transform_indices = @transform_5, window_bounds = array<i64: 1, 32>}, {transform_indices = @transform_6, window_bounds = array<i64: 128, 32>}]} {
    %c0 = arith.constant 0 : index
    %c0_0 = arith.constant 0 : index
    %0 = vector.load %arg1[%c0, %c0_0] : memref<128x8xf32, #tpu.memory_space<vmem>>, vector<128x8xf32>
    %c0_1 = arith.constant 0 : index
    %c0_2 = arith.constant 0 : index
    %1 = vector.load %arg3[%c0_1, %c0_2] : memref<8x32xf32, #tpu.memory_space<vmem>>, vector<8x32xf32>
    %cst = arith.constant dense<0.000000e+00> : vector<128x32xf32>
    %2 = tpu.matmul %0, %1, %cst {dimension_numbers = #tpu.dot_dimension_numbers<[1], [0], [0], [1], [0, 0, 1, 1], [], []>} : vector<128x8xf32>, vector<8x32xf32>, vector<128x32xf32> -> vector<128x32xf32>
    %c0_3 = arith.constant 0 : index
    %c0_4 = arith.constant 0 : index
    %3 = vector.load %arg4[%c0_3, %c0_4] : memref<1x32xf32, #tpu.memory_space<vmem>>, vector<1x32xf32>
    %4 = vector.broadcast %3 : vector<1x32xf32> to vector<128x32xf32>
    %5 = arith.addf %2, %4 : vector<128x32xf32>
    %cst_5 = arith.constant 0.000000e+00 : f32
    %6 = vector.broadcast %cst_5 : f32 to vector<128x32xf32>
    %7 = arith.maximumf %5, %6 : vector<128x32xf32>
    %c0_6 = arith.constant 0 : index
    %c0_7 = arith.constant 0 : index
    %8 = vector.load %arg2[%c0_6, %c0_7] : memref<128x8xf32, #tpu.memory_space<vmem>>, vector<128x8xf32>
    %c0_8 = arith.constant 0 : index
    %c0_9 = arith.constant 0 : index
    %9 = vector.load %arg3[%c0_8, %c0_9] : memref<8x32xf32, #tpu.memory_space<vmem>>, vector<8x32xf32>
    %cst_10 = arith.constant dense<0.000000e+00> : vector<128x32xf32>
    %10 = tpu.matmul %8, %9, %cst_10 {dimension_numbers = #tpu.dot_dimension_numbers<[1], [0], [0], [1], [0, 0, 1, 1], [], []>} : vector<128x8xf32>, vector<8x32xf32>, vector<128x32xf32> -> vector<128x32xf32>
    %c0_11 = arith.constant 0 : index
    %c0_12 = arith.constant 0 : index
    %11 = vector.load %arg4[%c0_11, %c0_12] : memref<1x32xf32, #tpu.memory_space<vmem>>, vector<1x32xf32>
    %12 = vector.broadcast %11 : vector<1x32xf32> to vector<128x32xf32>
    %13 = arith.addf %10, %12 : vector<128x32xf32>
    %cst_13 = arith.constant 0.000000e+00 : f32
    %14 = vector.broadcast %cst_13 : f32 to vector<128x32xf32>
    %15 = arith.maximumf %13, %14 : vector<128x32xf32>
    %c0_14 = arith.constant 0 : index
    %c0_15 = arith.constant 0 : index
    %16 = vector.load %arg5[%c0_14, %c0_15] : memref<1x32xf32, #tpu.memory_space<vmem>>, vector<1x32xf32>
    %17 = vector.broadcast %16 : vector<1x32xf32> to vector<128x32xf32>
    %18 = arith.mulf %7, %17 : vector<128x32xf32>
    %c0_16 = arith.constant 0 : index
    %c0_17 = arith.constant 0 : index
    %19 = vector.load %arg6[%c0_16, %c0_17] : memref<1x32xf32, #tpu.memory_space<vmem>>, vector<1x32xf32>
    %20 = vector.broadcast %19 : vector<1x32xf32> to vector<128x32xf32>
    %21 = arith.addf %18, %20 : vector<128x32xf32>
    %c0_18 = arith.constant 0 : index
    %c0_19 = arith.constant 0 : index
    %22 = vector.load %arg5[%c0_18, %c0_19] : memref<1x32xf32, #tpu.memory_space<vmem>>, vector<1x32xf32>
    %23 = vector.broadcast %22 : vector<1x32xf32> to vector<128x32xf32>
    %24 = arith.mulf %15, %23 : vector<128x32xf32>
    %c0_20 = arith.constant 0 : index
    %c0_21 = arith.constant 0 : index
    %25 = vector.load %arg6[%c0_20, %c0_21] : memref<1x32xf32, #tpu.memory_space<vmem>>, vector<1x32xf32>
    %26 = vector.broadcast %25 : vector<1x32xf32> to vector<128x32xf32>
    %27 = arith.addf %24, %26 : vector<128x32xf32>
    %28 = arith.maximumf %21, %27 : vector<128x32xf32>
    %c0_22 = arith.constant 0 : index
    %c0_23 = arith.constant 0 : index
    %29 = vector.load %arg7[%c0_22, %c0_23] : memref<128x32xf32, #tpu.memory_space<vmem>>, vector<128x32xf32>
    tpu.vector_store %arg7[%c0_22, %c0_23], %28 {strides = array<i32>} : memref<128x32xf32, #tpu.memory_space<vmem>>, vector<128x32xf32>,
    return
  }
  func.func @transform_0(%arg0: i32) -> (i32, i32) {
    %c0_i32 = arith.constant 0 : i32
    %c0_i32_0 = arith.constant 0 : i32
    return %arg0, %c0_i32 : i32, i32
  }
  func.func @transform_1(%arg0: i32) -> (i32, i32) {
    %c0_i32 = arith.constant 0 : i32
    %c0_i32_0 = arith.constant 0 : i32
    return %arg0, %c0_i32 : i32, i32
  }
  func.func @transform_2(%arg0: i32) -> (i32, i32) {
    %c0_i32 = arith.constant 0 : i32
    %c0_i32_0 = arith.constant 0 : i32
    %c0_i32_1 = arith.constant 0 : i32
    return %c0_i32, %c0_i32_0 : i32, i32
  }
  func.func @transform_3(%arg0: i32) -> (i32, i32) {
    %c0_i32 = arith.constant 0 : i32
    %c0_i32_0 = arith.constant 0 : i32
    %c0_i32_1 = arith.constant 0 : i32
    return %c0_i32, %c0_i32_0 : i32, i32
  }
  func.func @transform_4(%arg0: i32) -> (i32, i32) {
    %c0_i32 = arith.constant 0 : i32
    %c0_i32_0 = arith.constant 0 : i32
    %c0_i32_1 = arith.constant 0 : i32
    return %c0_i32, %c0_i32_0 : i32, i32
  }
  func.func @transform_5(%arg0: i32) -> (i32, i32) {
    %c0_i32 = arith.constant 0 : i32
    %c0_i32_0 = arith.constant 0 : i32
    %c0_i32_1 = arith.constant 0 : i32
    return %c0_i32, %c0_i32_0 : i32, i32
  }
  func.func @transform_6(%arg0: i32) -> (i32, i32) {
    %c0_i32 = arith.constant 0 : i32
    %c0_i32_0 = arith.constant 0 : i32
    return %arg0, %c0_i32 : i32, i32
  }
}

module attributes {stable_mosaic.version = 11 : i64} {
  func.func @_conv_stats_kernel(%arg0: i32, %arg1: memref<64x96xf32, #tpu.memory_space<vmem>>, %arg2: memref<64x96xf32, #tpu.memory_space<vmem>>, %arg3: memref<96x64xf32, #tpu.memory_space<vmem>>, %arg4: memref<1x64xf32, #tpu.memory_space<vmem>>, %arg5: memref<2x64xf32, #tpu.memory_space<vmem>>) attributes {dimension_semantics = [#tpu.dimension_semantics<arbitrary>], iteration_bounds = array<i64: 1>, scalar_prefetch = 0 : i64, scratch_operands = 0 : i64, tpu.core_type = #tpu.core_type<tc>, window_params = [{transform_indices = @transform_0, window_bounds = array<i64: 64, 96>}, {transform_indices = @transform_1, window_bounds = array<i64: 64, 96>}, {pipeline_mode = #tpu.pipeline_mode<synchronous>, transform_indices = @transform_2, window_bounds = array<i64: 96, 64>}, {pipeline_mode = #tpu.pipeline_mode<synchronous>, transform_indices = @transform_3, window_bounds = array<i64: 1, 64>}, {pipeline_mode = #tpu.pipeline_mode<synchronous>, transform_indices = @transform_4, window_bounds = array<i64: 2, 64>}]} {
    %c0 = arith.constant 0 : index
    %c0_0 = arith.constant 0 : index
    %0 = vector.load %arg1[%c0, %c0_0] : memref<64x96xf32, #tpu.memory_space<vmem>>, vector<64x96xf32>
    %c0_1 = arith.constant 0 : index
    %c0_2 = arith.constant 0 : index
    %1 = vector.load %arg3[%c0_1, %c0_2] : memref<96x64xf32, #tpu.memory_space<vmem>>, vector<96x64xf32>
    %cst = arith.constant dense<0.000000e+00> : vector<64x64xf32>
    %2 = tpu.matmul %0, %1, %cst {dimension_numbers = #tpu.dot_dimension_numbers<[1], [0], [0], [1], [0, 0, 1, 1], [], []>} : vector<64x96xf32>, vector<96x64xf32>, vector<64x64xf32> -> vector<64x64xf32>
    %c0_3 = arith.constant 0 : index
    %c0_4 = arith.constant 0 : index
    %3 = vector.load %arg4[%c0_3, %c0_4] : memref<1x64xf32, #tpu.memory_space<vmem>>, vector<1x64xf32>
    %4 = vector.broadcast %3 : vector<1x64xf32> to vector<64x64xf32>
    %5 = arith.addf %2, %4 : vector<64x64xf32>
    %cst_5 = arith.constant 0.000000e+00 : f32
    %6 = vector.broadcast %cst_5 : f32 to vector<64x64xf32>
    %7 = arith.maximumf %5, %6 : vector<64x64xf32>
    %c0_6 = arith.constant 0 : index
    %c0_7 = arith.constant 0 : index
    %8 = vector.load %arg2[%c0_6, %c0_7] : memref<64x96xf32, #tpu.memory_space<vmem>>, vector<64x96xf32>
    %c0_8 = arith.constant 0 : index
    %c0_9 = arith.constant 0 : index
    %9 = vector.load %arg3[%c0_8, %c0_9] : memref<96x64xf32, #tpu.memory_space<vmem>>, vector<96x64xf32>
    %cst_10 = arith.constant dense<0.000000e+00> : vector<64x64xf32>
    %10 = tpu.matmul %8, %9, %cst_10 {dimension_numbers = #tpu.dot_dimension_numbers<[1], [0], [0], [1], [0, 0, 1, 1], [], []>} : vector<64x96xf32>, vector<96x64xf32>, vector<64x64xf32> -> vector<64x64xf32>
    %c0_11 = arith.constant 0 : index
    %c0_12 = arith.constant 0 : index
    %11 = vector.load %arg4[%c0_11, %c0_12] : memref<1x64xf32, #tpu.memory_space<vmem>>, vector<1x64xf32>
    %12 = vector.broadcast %11 : vector<1x64xf32> to vector<64x64xf32>
    %13 = arith.addf %10, %12 : vector<64x64xf32>
    %cst_13 = arith.constant 0.000000e+00 : f32
    %14 = vector.broadcast %cst_13 : f32 to vector<64x64xf32>
    %15 = arith.maximumf %13, %14 : vector<64x64xf32>
    %c0_i32 = arith.constant 0 : i32
    %16 = arith.cmpi eq, %arg0, %c0_i32 : i32
    %17 = arith.extui %16 : i1 to i32
    %c0_i32_14 = arith.constant 0 : i32
    %18 = arith.cmpi ne, %17, %c0_i32_14 : i32
    scf.if %18 {
      %cst_23 = arith.constant 0.000000e+00 : f32
      %35 = vector.broadcast %cst_23 : f32 to vector<2x64xf32>
      %c0_24 = arith.constant 0 : index
      %c0_25 = arith.constant 0 : index
      %36 = vector.load %arg5[%c0_24, %c0_25] : memref<2x64xf32, #tpu.memory_space<vmem>>, vector<2x64xf32>
      tpu.vector_store %arg5[%c0_24, %c0_25], %35 {strides = array<i32>} : memref<2x64xf32, #tpu.memory_space<vmem>>, vector<2x64xf32>,
    } else {
    }
    %cst_15 = arith.constant dense<0.000000e+00> : vector<64xf32>
    %19 = vector.multi_reduction <add>, %7, %cst_15 [0] : vector<64x64xf32> to vector<64xf32>
    %20 = vector.shape_cast %19 : vector<64xf32> to vector<1x64xf32>
    %cst_16 = arith.constant dense<0.000000e+00> : vector<64xf32>
    %21 = vector.multi_reduction <add>, %15, %cst_16 [0] : vector<64x64xf32> to vector<64xf32>
    %22 = vector.shape_cast %21 : vector<64xf32> to vector<1x64xf32>
    %23 = arith.addf %20, %22 : vector<1x64xf32>
    %24 = arith.mulf %7, %7 : vector<64x64xf32>
    %cst_17 = arith.constant dense<0.000000e+00> : vector<64xf32>
    %25 = vector.multi_reduction <add>, %24, %cst_17 [0] : vector<64x64xf32> to vector<64xf32>
    %26 = vector.shape_cast %25 : vector<64xf32> to vector<1x64xf32>
    %27 = arith.mulf %15, %15 : vector<64x64xf32>
    %cst_18 = arith.constant dense<0.000000e+00> : vector<64xf32>
    %28 = vector.multi_reduction <add>, %27, %cst_18 [0] : vector<64x64xf32> to vector<64xf32>
    %29 = vector.shape_cast %28 : vector<64xf32> to vector<1x64xf32>
    %30 = arith.addf %26, %29 : vector<1x64xf32>
    %c0_19 = arith.constant 0 : index
    %c0_20 = arith.constant 0 : index
    %31 = vector.load %arg5[%c0_19, %c0_20] : memref<2x64xf32, #tpu.memory_space<vmem>>, vector<2x64xf32>
    %32 = tpu.concatenate %23, %30 in 0 : vector<1x64xf32>, vector<1x64xf32> -> vector<2x64xf32>
    %33 = arith.addf %31, %32 : vector<2x64xf32>
    %c0_21 = arith.constant 0 : index
    %c0_22 = arith.constant 0 : index
    %34 = vector.load %arg5[%c0_21, %c0_22] : memref<2x64xf32, #tpu.memory_space<vmem>>, vector<2x64xf32>
    tpu.vector_store %arg5[%c0_21, %c0_22], %33 {strides = array<i32>} : memref<2x64xf32, #tpu.memory_space<vmem>>, vector<2x64xf32>,
    return
  }
  func.func @transform_0(%arg0: i32) -> (i32, i32) {
    %c0_i32 = arith.constant 0 : i32
    %c0_i32_0 = arith.constant 0 : i32
    return %arg0, %c0_i32 : i32, i32
  }
  func.func @transform_1(%arg0: i32) -> (i32, i32) {
    %c0_i32 = arith.constant 0 : i32
    %c0_i32_0 = arith.constant 0 : i32
    return %arg0, %c0_i32 : i32, i32
  }
  func.func @transform_2(%arg0: i32) -> (i32, i32) {
    %c0_i32 = arith.constant 0 : i32
    %c0_i32_0 = arith.constant 0 : i32
    %c0_i32_1 = arith.constant 0 : i32
    return %c0_i32, %c0_i32_0 : i32, i32
  }
  func.func @transform_3(%arg0: i32) -> (i32, i32) {
    %c0_i32 = arith.constant 0 : i32
    %c0_i32_0 = arith.constant 0 : i32
    %c0_i32_1 = arith.constant 0 : i32
    return %c0_i32, %c0_i32_0 : i32, i32
  }
  func.func @transform_4(%arg0: i32) -> (i32, i32) {
    %c0_i32 = arith.constant 0 : i32
    %c0_i32_0 = arith.constant 0 : i32
    %c0_i32_1 = arith.constant 0 : i32
    return %c0_i32, %c0_i32_0 : i32, i32
  }
}

module attributes {stable_mosaic.version = 11 : i64} {
  func.func @_conv_apply_kernel(%arg0: i32, %arg1: memref<64x96xf32, #tpu.memory_space<vmem>>, %arg2: memref<64x96xf32, #tpu.memory_space<vmem>>, %arg3: memref<96x64xf32, #tpu.memory_space<vmem>>, %arg4: memref<1x64xf32, #tpu.memory_space<vmem>>, %arg5: memref<1x64xf32, #tpu.memory_space<vmem>>, %arg6: memref<1x64xf32, #tpu.memory_space<vmem>>, %arg7: memref<64x64xf32, #tpu.memory_space<vmem>>) attributes {dimension_semantics = [#tpu.dimension_semantics<parallel>], iteration_bounds = array<i64: 1>, scalar_prefetch = 0 : i64, scratch_operands = 0 : i64, tpu.core_type = #tpu.core_type<tc>, window_params = [{transform_indices = @transform_0, window_bounds = array<i64: 64, 96>}, {transform_indices = @transform_1, window_bounds = array<i64: 64, 96>}, {pipeline_mode = #tpu.pipeline_mode<synchronous>, transform_indices = @transform_2, window_bounds = array<i64: 96, 64>}, {pipeline_mode = #tpu.pipeline_mode<synchronous>, transform_indices = @transform_3, window_bounds = array<i64: 1, 64>}, {pipeline_mode = #tpu.pipeline_mode<synchronous>, transform_indices = @transform_4, window_bounds = array<i64: 1, 64>}, {pipeline_mode = #tpu.pipeline_mode<synchronous>, transform_indices = @transform_5, window_bounds = array<i64: 1, 64>}, {transform_indices = @transform_6, window_bounds = array<i64: 64, 64>}]} {
    %c0 = arith.constant 0 : index
    %c0_0 = arith.constant 0 : index
    %0 = vector.load %arg1[%c0, %c0_0] : memref<64x96xf32, #tpu.memory_space<vmem>>, vector<64x96xf32>
    %c0_1 = arith.constant 0 : index
    %c0_2 = arith.constant 0 : index
    %1 = vector.load %arg3[%c0_1, %c0_2] : memref<96x64xf32, #tpu.memory_space<vmem>>, vector<96x64xf32>
    %cst = arith.constant dense<0.000000e+00> : vector<64x64xf32>
    %2 = tpu.matmul %0, %1, %cst {dimension_numbers = #tpu.dot_dimension_numbers<[1], [0], [0], [1], [0, 0, 1, 1], [], []>} : vector<64x96xf32>, vector<96x64xf32>, vector<64x64xf32> -> vector<64x64xf32>
    %c0_3 = arith.constant 0 : index
    %c0_4 = arith.constant 0 : index
    %3 = vector.load %arg4[%c0_3, %c0_4] : memref<1x64xf32, #tpu.memory_space<vmem>>, vector<1x64xf32>
    %4 = vector.broadcast %3 : vector<1x64xf32> to vector<64x64xf32>
    %5 = arith.addf %2, %4 : vector<64x64xf32>
    %cst_5 = arith.constant 0.000000e+00 : f32
    %6 = vector.broadcast %cst_5 : f32 to vector<64x64xf32>
    %7 = arith.maximumf %5, %6 : vector<64x64xf32>
    %c0_6 = arith.constant 0 : index
    %c0_7 = arith.constant 0 : index
    %8 = vector.load %arg2[%c0_6, %c0_7] : memref<64x96xf32, #tpu.memory_space<vmem>>, vector<64x96xf32>
    %c0_8 = arith.constant 0 : index
    %c0_9 = arith.constant 0 : index
    %9 = vector.load %arg3[%c0_8, %c0_9] : memref<96x64xf32, #tpu.memory_space<vmem>>, vector<96x64xf32>
    %cst_10 = arith.constant dense<0.000000e+00> : vector<64x64xf32>
    %10 = tpu.matmul %8, %9, %cst_10 {dimension_numbers = #tpu.dot_dimension_numbers<[1], [0], [0], [1], [0, 0, 1, 1], [], []>} : vector<64x96xf32>, vector<96x64xf32>, vector<64x64xf32> -> vector<64x64xf32>
    %c0_11 = arith.constant 0 : index
    %c0_12 = arith.constant 0 : index
    %11 = vector.load %arg4[%c0_11, %c0_12] : memref<1x64xf32, #tpu.memory_space<vmem>>, vector<1x64xf32>
    %12 = vector.broadcast %11 : vector<1x64xf32> to vector<64x64xf32>
    %13 = arith.addf %10, %12 : vector<64x64xf32>
    %cst_13 = arith.constant 0.000000e+00 : f32
    %14 = vector.broadcast %cst_13 : f32 to vector<64x64xf32>
    %15 = arith.maximumf %13, %14 : vector<64x64xf32>
    %c0_14 = arith.constant 0 : index
    %c0_15 = arith.constant 0 : index
    %16 = vector.load %arg5[%c0_14, %c0_15] : memref<1x64xf32, #tpu.memory_space<vmem>>, vector<1x64xf32>
    %17 = vector.broadcast %16 : vector<1x64xf32> to vector<64x64xf32>
    %18 = arith.mulf %7, %17 : vector<64x64xf32>
    %c0_16 = arith.constant 0 : index
    %c0_17 = arith.constant 0 : index
    %19 = vector.load %arg6[%c0_16, %c0_17] : memref<1x64xf32, #tpu.memory_space<vmem>>, vector<1x64xf32>
    %20 = vector.broadcast %19 : vector<1x64xf32> to vector<64x64xf32>
    %21 = arith.addf %18, %20 : vector<64x64xf32>
    %c0_18 = arith.constant 0 : index
    %c0_19 = arith.constant 0 : index
    %22 = vector.load %arg5[%c0_18, %c0_19] : memref<1x64xf32, #tpu.memory_space<vmem>>, vector<1x64xf32>
    %23 = vector.broadcast %22 : vector<1x64xf32> to vector<64x64xf32>
    %24 = arith.mulf %15, %23 : vector<64x64xf32>
    %c0_20 = arith.constant 0 : index
    %c0_21 = arith.constant 0 : index
    %25 = vector.load %arg6[%c0_20, %c0_21] : memref<1x64xf32, #tpu.memory_space<vmem>>, vector<1x64xf32>
    %26 = vector.broadcast %25 : vector<1x64xf32> to vector<64x64xf32>
    %27 = arith.addf %24, %26 : vector<64x64xf32>
    %28 = arith.maximumf %21, %27 : vector<64x64xf32>
    %c0_22 = arith.constant 0 : index
    %c0_23 = arith.constant 0 : index
    %29 = vector.load %arg7[%c0_22, %c0_23] : memref<64x64xf32, #tpu.memory_space<vmem>>, vector<64x64xf32>
    tpu.vector_store %arg7[%c0_22, %c0_23], %28 {strides = array<i32>} : memref<64x64xf32, #tpu.memory_space<vmem>>, vector<64x64xf32>,
    return
  }
  func.func @transform_0(%arg0: i32) -> (i32, i32) {
    %c0_i32 = arith.constant 0 : i32
    %c0_i32_0 = arith.constant 0 : i32
    return %arg0, %c0_i32 : i32, i32
  }
  func.func @transform_1(%arg0: i32) -> (i32, i32) {
    %c0_i32 = arith.constant 0 : i32
    %c0_i32_0 = arith.constant 0 : i32
    return %arg0, %c0_i32 : i32, i32
  }
  func.func @transform_2(%arg0: i32) -> (i32, i32) {
    %c0_i32 = arith.constant 0 : i32
    %c0_i32_0 = arith.constant 0 : i32
    %c0_i32_1 = arith.constant 0 : i32
    return %c0_i32, %c0_i32_0 : i32, i32
  }
  func.func @transform_3(%arg0: i32) -> (i32, i32) {
    %c0_i32 = arith.constant 0 : i32
    %c0_i32_0 = arith.constant 0 : i32
    %c0_i32_1 = arith.constant 0 : i32
    return %c0_i32, %c0_i32_0 : i32, i32
  }
  func.func @transform_4(%arg0: i32) -> (i32, i32) {
    %c0_i32 = arith.constant 0 : i32
    %c0_i32_0 = arith.constant 0 : i32
    %c0_i32_1 = arith.constant 0 : i32
    return %c0_i32, %c0_i32_0 : i32, i32
  }
  func.func @transform_5(%arg0: i32) -> (i32, i32) {
    %c0_i32 = arith.constant 0 : i32
    %c0_i32_0 = arith.constant 0 : i32
    %c0_i32_1 = arith.constant 0 : i32
    return %c0_i32, %c0_i32_0 : i32, i32
  }
  func.func @transform_6(%arg0: i32) -> (i32, i32) {
    %c0_i32 = arith.constant 0 : i32
    %c0_i32_0 = arith.constant 0 : i32
    return %arg0, %c0_i32 : i32, i32
  }
}

module attributes {stable_mosaic.version = 11 : i64} {
  func.func @_matmul_bias_kernel(%arg0: i32, %arg1: memref<64x64xf32, #tpu.memory_space<vmem>>, %arg2: memref<64x768xf32, #tpu.memory_space<vmem>>, %arg3: memref<1x768xf32, #tpu.memory_space<vmem>>, %arg4: memref<64x768xf32, #tpu.memory_space<vmem>>) attributes {dimension_semantics = [#tpu.dimension_semantics<parallel>], iteration_bounds = array<i64: 1>, scalar_prefetch = 0 : i64, scratch_operands = 0 : i64, tpu.core_type = #tpu.core_type<tc>, window_params = [{transform_indices = @transform_0, window_bounds = array<i64: 64, 64>}, {pipeline_mode = #tpu.pipeline_mode<synchronous>, transform_indices = @transform_1, window_bounds = array<i64: 64, 768>}, {pipeline_mode = #tpu.pipeline_mode<synchronous>, transform_indices = @transform_2, window_bounds = array<i64: 1, 768>}, {transform_indices = @transform_3, window_bounds = array<i64: 64, 768>}]} {
    %c0 = arith.constant 0 : index
    %c0_0 = arith.constant 0 : index
    %0 = vector.load %arg1[%c0, %c0_0] : memref<64x64xf32, #tpu.memory_space<vmem>>, vector<64x64xf32>
    %c0_1 = arith.constant 0 : index
    %c0_2 = arith.constant 0 : index
    %1 = vector.load %arg2[%c0_1, %c0_2] : memref<64x768xf32, #tpu.memory_space<vmem>>, vector<64x768xf32>
    %cst = arith.constant dense<0.000000e+00> : vector<64x768xf32>
    %2 = tpu.matmul %0, %1, %cst {dimension_numbers = #tpu.dot_dimension_numbers<[1], [0], [0], [1], [0, 0, 1, 1], [], []>} : vector<64x64xf32>, vector<64x768xf32>, vector<64x768xf32> -> vector<64x768xf32>
    %c0_3 = arith.constant 0 : index
    %c0_4 = arith.constant 0 : index
    %3 = vector.load %arg3[%c0_3, %c0_4] : memref<1x768xf32, #tpu.memory_space<vmem>>, vector<1x768xf32>
    %4 = vector.broadcast %3 : vector<1x768xf32> to vector<64x768xf32>
    %5 = arith.addf %2, %4 : vector<64x768xf32>
    %c0_5 = arith.constant 0 : index
    %c0_6 = arith.constant 0 : index
    %6 = vector.load %arg4[%c0_5, %c0_6] : memref<64x768xf32, #tpu.memory_space<vmem>>, vector<64x768xf32>
    tpu.vector_store %arg4[%c0_5, %c0_6], %5 {strides = array<i32>} : memref<64x768xf32, #tpu.memory_space<vmem>>, vector<64x768xf32>,
    return
  }
  func.func @transform_0(%arg0: i32) -> (i32, i32) {
    %c0_i32 = arith.constant 0 : i32
    %c0_i32_0 = arith.constant 0 : i32
    return %arg0, %c0_i32 : i32, i32
  }
  func.func @transform_1(%arg0: i32) -> (i32, i32) {
    %c0_i32 = arith.constant 0 : i32
    %c0_i32_0 = arith.constant 0 : i32
    %c0_i32_1 = arith.constant 0 : i32
    return %c0_i32, %c0_i32_0 : i32, i32
  }
  func.func @transform_2(%arg0: i32) -> (i32, i32) {
    %c0_i32 = arith.constant 0 : i32
    %c0_i32_0 = arith.constant 0 : i32
    %c0_i32_1 = arith.constant 0 : i32
    return %c0_i32, %c0_i32_0 : i32, i32
  }
  func.func @transform_3(%arg0: i32) -> (i32, i32) {
    %c0_i32 = arith.constant 0 : i32
    %c0_i32_0 = arith.constant 0 : i32
    return %arg0, %c0_i32 : i32, i32
  }
}

module attributes {stable_mosaic.version = 11 : i64} {
  func.func @_gru_kernel(%arg0: i32, %arg1: i32, %arg2: memref<2x16x384xf32, #tpu.memory_space<vmem>>, %arg3: memref<1x128x384xf32, #tpu.memory_space<vmem>>, %arg4: memref<1x1x384xf32, #tpu.memory_space<vmem>>, %arg5: memref<2x16x128xf32, #tpu.memory_space<vmem>>, %arg6: memref<2x128xf32, #tpu.memory_space<vmem>>) attributes {dimension_semantics = [#tpu.dimension_semantics<parallel>, #tpu.dimension_semantics<arbitrary>], iteration_bounds = array<i64: 2, 2>, scalar_prefetch = 0 : i64, scratch_operands = 1 : i64, tpu.core_type = #tpu.core_type<tc>, window_params = [{transform_indices = @transform_0, window_bounds = array<i64: 2, 16, 384>}, {transform_indices = @transform_1, window_bounds = array<i64: 1, 128, 384>}, {transform_indices = @transform_2, window_bounds = array<i64: 1, 1, 384>}, {transform_indices = @transform_3, window_bounds = array<i64: 2, 16, 128>}]} {
    %c0_i32 = arith.constant 0 : i32
    %0 = arith.cmpi eq, %arg0, %c0_i32 : i32
    %c0_i32_0 = arith.constant 0 : i32
    %1 = arith.cmpi eq, %arg1, %c0_i32_0 : i32
    %2 = arith.extui %1 : i1 to i32
    %c0_i32_1 = arith.constant 0 : i32
    %3 = arith.cmpi ne, %2, %c0_i32_1 : i32
    scf.if %3 {
      %cst_202 = arith.constant 0.000000e+00 : f32
      %634 = vector.broadcast %cst_202 : f32 to vector<2x128xf32>
      %c0_203 = arith.constant 0 : index
      %c0_204 = arith.constant 0 : index
      %635 = vector.load %arg6[%c0_203, %c0_204] : memref<2x128xf32, #tpu.memory_space<vmem>>, vector<2x128xf32>
      tpu.vector_store %arg6[%c0_203, %c0_204], %634 {strides = array<i32>} : memref<2x128xf32, #tpu.memory_space<vmem>>, vector<2x128xf32>,
    } else {
    }
    %c0 = arith.constant 0 : index
    %c0_2 = arith.constant 0 : index
    %c0_3 = arith.constant 0 : index
    %4 = vector.load %arg3[%c0, %c0_2, %c0_3] : memref<1x128x384xf32, #tpu.memory_space<vmem>>, vector<1x128x384xf32>
    %5 = vector.shape_cast %4 : vector<1x128x384xf32> to vector<128x384xf32>
    %c0_4 = arith.constant 0 : index
    %c0_5 = arith.constant 0 : index
    %c0_6 = arith.constant 0 : index
    %6 = vector.load %arg4[%c0_4, %c0_5, %c0_6] : memref<1x1x384xf32, #tpu.memory_space<vmem>>, vector<1x1x384xf32>
    %7 = vector.shape_cast %6 : vector<1x1x384xf32> to vector<1x384xf32>
    %c0_7 = arith.constant 0 : index
    %c0_8 = arith.constant 0 : index
    %8 = vector.load %arg6[%c0_7, %c0_8] : memref<2x128xf32, #tpu.memory_space<vmem>>, vector<2x128xf32>
    %c0_9 = arith.constant 0 : index
    %c0_10 = arith.constant 0 : index
    %c0_11 = arith.constant 0 : index
    %9 = vector.load %arg2[%c0_9, %c0_10, %c0_11] : memref<2x16x384xf32, #tpu.memory_space<vmem>>, vector<2x1x384xf32>
    %10 = vector.shape_cast %9 : vector<2x1x384xf32> to vector<2x384xf32>
    %c0_12 = arith.constant 0 : index
    %c15 = arith.constant 15 : index
    %c0_13 = arith.constant 0 : index
    %11 = vector.load %arg2[%c0_12, %c15, %c0_13] : memref<2x16x384xf32, #tpu.memory_space<vmem>>, vector<2x1x384xf32>
    %12 = vector.shape_cast %11 : vector<2x1x384xf32> to vector<2x384xf32>
    %13 = arith.select %0, %10, %12 : vector<2x384xf32>
    %cst = arith.constant dense<0.000000e+00> : vector<2x384xf32>
    %14 = tpu.matmul %8, %5, %cst {dimension_numbers = #tpu.dot_dimension_numbers<[1], [0], [0], [1], [0, 0, 1, 1], [], []>} : vector<2x128xf32>, vector<128x384xf32>, vector<2x384xf32> -> vector<2x384xf32>
    %15 = vector.broadcast %7 : vector<1x384xf32> to vector<2x384xf32>
    %16 = arith.addf %14, %15 : vector<2x384xf32>
    %17 = vector.extract_strided_slice %13 {offsets = [0, 0], sizes = [2, 128], strides = [1, 1]} : vector<2x384xf32> to vector<2x128xf32>
    %18 = vector.extract_strided_slice %16 {offsets = [0, 0], sizes = [2, 128], strides = [1, 1]} : vector<2x384xf32> to vector<2x128xf32>
    %19 = arith.addf %17, %18 : vector<2x128xf32>
    %20 = arith.negf %19 : vector<2x128xf32>
    %21 = math.exp %20 : vector<2x128xf32>
    %cst_14 = arith.constant 1.000000e+00 : f32
    %22 = vector.broadcast %cst_14 : f32 to vector<2x128xf32>
    %23 = arith.addf %22, %21 : vector<2x128xf32>
    %24 = arith.divf %22, %23 : vector<2x128xf32>
    %25 = vector.extract_strided_slice %13 {offsets = [0, 128], sizes = [2, 128], strides = [1, 1]} : vector<2x384xf32> to vector<2x128xf32>
    %26 = vector.extract_strided_slice %16 {offsets = [0, 128], sizes = [2, 128], strides = [1, 1]} : vector<2x384xf32> to vector<2x128xf32>
    %27 = arith.addf %25, %26 : vector<2x128xf32>
    %28 = arith.negf %27 : vector<2x128xf32>
    %29 = math.exp %28 : vector<2x128xf32>
    %cst_15 = arith.constant 1.000000e+00 : f32
    %30 = vector.broadcast %cst_15 : f32 to vector<2x128xf32>
    %31 = arith.addf %30, %29 : vector<2x128xf32>
    %32 = arith.divf %30, %31 : vector<2x128xf32>
    %33 = vector.extract_strided_slice %13 {offsets = [0, 256], sizes = [2, 128], strides = [1, 1]} : vector<2x384xf32> to vector<2x128xf32>
    %34 = vector.extract_strided_slice %16 {offsets = [0, 256], sizes = [2, 128], strides = [1, 1]} : vector<2x384xf32> to vector<2x128xf32>
    %35 = arith.mulf %24, %34 : vector<2x128xf32>
    %36 = arith.addf %33, %35 : vector<2x128xf32>
    %37 = math.tanh %36 : vector<2x128xf32>
    %cst_16 = arith.constant 1.000000e+00 : f32
    %38 = vector.broadcast %cst_16 : f32 to vector<2x128xf32>
    %39 = arith.subf %38, %32 : vector<2x128xf32>
    %40 = arith.mulf %39, %37 : vector<2x128xf32>
    %41 = arith.mulf %32, %8 : vector<2x128xf32>
    %42 = arith.addf %40, %41 : vector<2x128xf32>
    %43 = arith.extui %0 : i1 to i32
    %c0_i32_17 = arith.constant 0 : i32
    %44 = arith.cmpi ne, %43, %c0_i32_17 : i32
    scf.if %44 {
      %c0_202 = arith.constant 0 : index
      %c0_203 = arith.constant 0 : index
      %c0_204 = arith.constant 0 : index
      %634 = vector.load %arg5[%c0_202, %c0_203, %c0_204] : memref<2x16x128xf32, #tpu.memory_space<vmem>>, vector<2x1x128xf32>
      %635 = vector.shape_cast %634 : vector<2x1x128xf32> to vector<2x128xf32>
      %636 = vector.shape_cast %42 : vector<2x128xf32> to vector<2x1x128xf32>
      tpu.vector_store %arg5[%c0_202, %c0_203, %c0_204], %636 {strides = array<i32>} : memref<2x16x128xf32, #tpu.memory_space<vmem>>, vector<2x1x128xf32>,
    } else {
    }
    %true = arith.constant true
    %45 = arith.xori %0, %true : i1
    %46 = arith.extui %45 : i1 to i32
    %c0_i32_18 = arith.constant 0 : i32
    %47 = arith.cmpi ne, %46, %c0_i32_18 : i32
    scf.if %47 {
      %c0_202 = arith.constant 0 : index
      %c15_203 = arith.constant 15 : index
      %c0_204 = arith.constant 0 : index
      %634 = vector.load %arg5[%c0_202, %c15_203, %c0_204] : memref<2x16x128xf32, #tpu.memory_space<vmem>>, vector<2x1x128xf32>
      %635 = vector.shape_cast %634 : vector<2x1x128xf32> to vector<2x128xf32>
      %636 = vector.shape_cast %42 : vector<2x128xf32> to vector<2x1x128xf32>
      tpu.vector_store %arg5[%c0_202, %c15_203, %c0_204], %636 {strides = array<i32>} : memref<2x16x128xf32, #tpu.memory_space<vmem>>, vector<2x1x128xf32>,
    } else {
    }
    %c0_19 = arith.constant 0 : index
    %c1 = arith.constant 1 : index
    %c0_20 = arith.constant 0 : index
    %48 = vector.load %arg2[%c0_19, %c1, %c0_20] : memref<2x16x384xf32, #tpu.memory_space<vmem>>, vector<2x1x384xf32>
    %49 = vector.shape_cast %48 : vector<2x1x384xf32> to vector<2x384xf32>
    %c0_21 = arith.constant 0 : index
    %c14 = arith.constant 14 : index
    %c0_22 = arith.constant 0 : index
    %50 = vector.load %arg2[%c0_21, %c14, %c0_22] : memref<2x16x384xf32, #tpu.memory_space<vmem>>, vector<2x1x384xf32>
    %51 = vector.shape_cast %50 : vector<2x1x384xf32> to vector<2x384xf32>
    %52 = arith.select %0, %49, %51 : vector<2x384xf32>
    %cst_23 = arith.constant dense<0.000000e+00> : vector<2x384xf32>
    %53 = tpu.matmul %42, %5, %cst_23 {dimension_numbers = #tpu.dot_dimension_numbers<[1], [0], [0], [1], [0, 0, 1, 1], [], []>} : vector<2x128xf32>, vector<128x384xf32>, vector<2x384xf32> -> vector<2x384xf32>
    %54 = vector.broadcast %7 : vector<1x384xf32> to vector<2x384xf32>
    %55 = arith.addf %53, %54 : vector<2x384xf32>
    %56 = vector.extract_strided_slice %52 {offsets = [0, 0], sizes = [2, 128], strides = [1, 1]} : vector<2x384xf32> to vector<2x128xf32>
    %57 = vector.extract_strided_slice %55 {offsets = [0, 0], sizes = [2, 128], strides = [1, 1]} : vector<2x384xf32> to vector<2x128xf32>
    %58 = arith.addf %56, %57 : vector<2x128xf32>
    %59 = arith.negf %58 : vector<2x128xf32>
    %60 = math.exp %59 : vector<2x128xf32>
    %cst_24 = arith.constant 1.000000e+00 : f32
    %61 = vector.broadcast %cst_24 : f32 to vector<2x128xf32>
    %62 = arith.addf %61, %60 : vector<2x128xf32>
    %63 = arith.divf %61, %62 : vector<2x128xf32>
    %64 = vector.extract_strided_slice %52 {offsets = [0, 128], sizes = [2, 128], strides = [1, 1]} : vector<2x384xf32> to vector<2x128xf32>
    %65 = vector.extract_strided_slice %55 {offsets = [0, 128], sizes = [2, 128], strides = [1, 1]} : vector<2x384xf32> to vector<2x128xf32>
    %66 = arith.addf %64, %65 : vector<2x128xf32>
    %67 = arith.negf %66 : vector<2x128xf32>
    %68 = math.exp %67 : vector<2x128xf32>
    %cst_25 = arith.constant 1.000000e+00 : f32
    %69 = vector.broadcast %cst_25 : f32 to vector<2x128xf32>
    %70 = arith.addf %69, %68 : vector<2x128xf32>
    %71 = arith.divf %69, %70 : vector<2x128xf32>
    %72 = vector.extract_strided_slice %52 {offsets = [0, 256], sizes = [2, 128], strides = [1, 1]} : vector<2x384xf32> to vector<2x128xf32>
    %73 = vector.extract_strided_slice %55 {offsets = [0, 256], sizes = [2, 128], strides = [1, 1]} : vector<2x384xf32> to vector<2x128xf32>
    %74 = arith.mulf %63, %73 : vector<2x128xf32>
    %75 = arith.addf %72, %74 : vector<2x128xf32>
    %76 = math.tanh %75 : vector<2x128xf32>
    %cst_26 = arith.constant 1.000000e+00 : f32
    %77 = vector.broadcast %cst_26 : f32 to vector<2x128xf32>
    %78 = arith.subf %77, %71 : vector<2x128xf32>
    %79 = arith.mulf %78, %76 : vector<2x128xf32>
    %80 = arith.mulf %71, %42 : vector<2x128xf32>
    %81 = arith.addf %79, %80 : vector<2x128xf32>
    %82 = arith.extui %0 : i1 to i32
    %c0_i32_27 = arith.constant 0 : i32
    %83 = arith.cmpi ne, %82, %c0_i32_27 : i32
    scf.if %83 {
      %c0_202 = arith.constant 0 : index
      %c1_203 = arith.constant 1 : index
      %c0_204 = arith.constant 0 : index
      %634 = vector.load %arg5[%c0_202, %c1_203, %c0_204] : memref<2x16x128xf32, #tpu.memory_space<vmem>>, vector<2x1x128xf32>
      %635 = vector.shape_cast %634 : vector<2x1x128xf32> to vector<2x128xf32>
      %636 = vector.shape_cast %81 : vector<2x128xf32> to vector<2x1x128xf32>
      tpu.vector_store %arg5[%c0_202, %c1_203, %c0_204], %636 {strides = array<i32>} : memref<2x16x128xf32, #tpu.memory_space<vmem>>, vector<2x1x128xf32>,
    } else {
    }
    %true_28 = arith.constant true
    %84 = arith.xori %0, %true_28 : i1
    %85 = arith.extui %84 : i1 to i32
    %c0_i32_29 = arith.constant 0 : i32
    %86 = arith.cmpi ne, %85, %c0_i32_29 : i32
    scf.if %86 {
      %c0_202 = arith.constant 0 : index
      %c14_203 = arith.constant 14 : index
      %c0_204 = arith.constant 0 : index
      %634 = vector.load %arg5[%c0_202, %c14_203, %c0_204] : memref<2x16x128xf32, #tpu.memory_space<vmem>>, vector<2x1x128xf32>
      %635 = vector.shape_cast %634 : vector<2x1x128xf32> to vector<2x128xf32>
      %636 = vector.shape_cast %81 : vector<2x128xf32> to vector<2x1x128xf32>
      tpu.vector_store %arg5[%c0_202, %c14_203, %c0_204], %636 {strides = array<i32>} : memref<2x16x128xf32, #tpu.memory_space<vmem>>, vector<2x1x128xf32>,
    } else {
    }
    %c0_30 = arith.constant 0 : index
    %c2 = arith.constant 2 : index
    %c0_31 = arith.constant 0 : index
    %87 = vector.load %arg2[%c0_30, %c2, %c0_31] : memref<2x16x384xf32, #tpu.memory_space<vmem>>, vector<2x1x384xf32>
    %88 = vector.shape_cast %87 : vector<2x1x384xf32> to vector<2x384xf32>
    %c0_32 = arith.constant 0 : index
    %c13 = arith.constant 13 : index
    %c0_33 = arith.constant 0 : index
    %89 = vector.load %arg2[%c0_32, %c13, %c0_33] : memref<2x16x384xf32, #tpu.memory_space<vmem>>, vector<2x1x384xf32>
    %90 = vector.shape_cast %89 : vector<2x1x384xf32> to vector<2x384xf32>
    %91 = arith.select %0, %88, %90 : vector<2x384xf32>
    %cst_34 = arith.constant dense<0.000000e+00> : vector<2x384xf32>
    %92 = tpu.matmul %81, %5, %cst_34 {dimension_numbers = #tpu.dot_dimension_numbers<[1], [0], [0], [1], [0, 0, 1, 1], [], []>} : vector<2x128xf32>, vector<128x384xf32>, vector<2x384xf32> -> vector<2x384xf32>
    %93 = vector.broadcast %7 : vector<1x384xf32> to vector<2x384xf32>
    %94 = arith.addf %92, %93 : vector<2x384xf32>
    %95 = vector.extract_strided_slice %91 {offsets = [0, 0], sizes = [2, 128], strides = [1, 1]} : vector<2x384xf32> to vector<2x128xf32>
    %96 = vector.extract_strided_slice %94 {offsets = [0, 0], sizes = [2, 128], strides = [1, 1]} : vector<2x384xf32> to vector<2x128xf32>
    %97 = arith.addf %95, %96 : vector<2x128xf32>
    %98 = arith.negf %97 : vector<2x128xf32>
    %99 = math.exp %98 : vector<2x128xf32>
    %cst_35 = arith.constant 1.000000e+00 : f32
    %100 = vector.broadcast %cst_35 : f32 to vector<2x128xf32>
    %101 = arith.addf %100, %99 : vector<2x128xf32>
    %102 = arith.divf %100, %101 : vector<2x128xf32>
    %103 = vector.extract_strided_slice %91 {offsets = [0, 128], sizes = [2, 128], strides = [1, 1]} : vector<2x384xf32> to vector<2x128xf32>
    %104 = vector.extract_strided_slice %94 {offsets = [0, 128], sizes = [2, 128], strides = [1, 1]} : vector<2x384xf32> to vector<2x128xf32>
    %105 = arith.addf %103, %104 : vector<2x128xf32>
    %106 = arith.negf %105 : vector<2x128xf32>
    %107 = math.exp %106 : vector<2x128xf32>
    %cst_36 = arith.constant 1.000000e+00 : f32
    %108 = vector.broadcast %cst_36 : f32 to vector<2x128xf32>
    %109 = arith.addf %108, %107 : vector<2x128xf32>
    %110 = arith.divf %108, %109 : vector<2x128xf32>
    %111 = vector.extract_strided_slice %91 {offsets = [0, 256], sizes = [2, 128], strides = [1, 1]} : vector<2x384xf32> to vector<2x128xf32>
    %112 = vector.extract_strided_slice %94 {offsets = [0, 256], sizes = [2, 128], strides = [1, 1]} : vector<2x384xf32> to vector<2x128xf32>
    %113 = arith.mulf %102, %112 : vector<2x128xf32>
    %114 = arith.addf %111, %113 : vector<2x128xf32>
    %115 = math.tanh %114 : vector<2x128xf32>
    %cst_37 = arith.constant 1.000000e+00 : f32
    %116 = vector.broadcast %cst_37 : f32 to vector<2x128xf32>
    %117 = arith.subf %116, %110 : vector<2x128xf32>
    %118 = arith.mulf %117, %115 : vector<2x128xf32>
    %119 = arith.mulf %110, %81 : vector<2x128xf32>
    %120 = arith.addf %118, %119 : vector<2x128xf32>
    %121 = arith.extui %0 : i1 to i32
    %c0_i32_38 = arith.constant 0 : i32
    %122 = arith.cmpi ne, %121, %c0_i32_38 : i32
    scf.if %122 {
      %c0_202 = arith.constant 0 : index
      %c2_203 = arith.constant 2 : index
      %c0_204 = arith.constant 0 : index
      %634 = vector.load %arg5[%c0_202, %c2_203, %c0_204] : memref<2x16x128xf32, #tpu.memory_space<vmem>>, vector<2x1x128xf32>
      %635 = vector.shape_cast %634 : vector<2x1x128xf32> to vector<2x128xf32>
      %636 = vector.shape_cast %120 : vector<2x128xf32> to vector<2x1x128xf32>
      tpu.vector_store %arg5[%c0_202, %c2_203, %c0_204], %636 {strides = array<i32>} : memref<2x16x128xf32, #tpu.memory_space<vmem>>, vector<2x1x128xf32>,
    } else {
    }
    %true_39 = arith.constant true
    %123 = arith.xori %0, %true_39 : i1
    %124 = arith.extui %123 : i1 to i32
    %c0_i32_40 = arith.constant 0 : i32
    %125 = arith.cmpi ne, %124, %c0_i32_40 : i32
    scf.if %125 {
      %c0_202 = arith.constant 0 : index
      %c13_203 = arith.constant 13 : index
      %c0_204 = arith.constant 0 : index
      %634 = vector.load %arg5[%c0_202, %c13_203, %c0_204] : memref<2x16x128xf32, #tpu.memory_space<vmem>>, vector<2x1x128xf32>
      %635 = vector.shape_cast %634 : vector<2x1x128xf32> to vector<2x128xf32>
      %636 = vector.shape_cast %120 : vector<2x128xf32> to vector<2x1x128xf32>
      tpu.vector_store %arg5[%c0_202, %c13_203, %c0_204], %636 {strides = array<i32>} : memref<2x16x128xf32, #tpu.memory_space<vmem>>, vector<2x1x128xf32>,
    } else {
    }
    %c0_41 = arith.constant 0 : index
    %c3 = arith.constant 3 : index
    %c0_42 = arith.constant 0 : index
    %126 = vector.load %arg2[%c0_41, %c3, %c0_42] : memref<2x16x384xf32, #tpu.memory_space<vmem>>, vector<2x1x384xf32>
    %127 = vector.shape_cast %126 : vector<2x1x384xf32> to vector<2x384xf32>
    %c0_43 = arith.constant 0 : index
    %c12 = arith.constant 12 : index
    %c0_44 = arith.constant 0 : index
    %128 = vector.load %arg2[%c0_43, %c12, %c0_44] : memref<2x16x384xf32, #tpu.memory_space<vmem>>, vector<2x1x384xf32>
    %129 = vector.shape_cast %128 : vector<2x1x384xf32> to vector<2x384xf32>
    %130 = arith.select %0, %127, %129 : vector<2x384xf32>
    %cst_45 = arith.constant dense<0.000000e+00> : vector<2x384xf32>
    %131 = tpu.matmul %120, %5, %cst_45 {dimension_numbers = #tpu.dot_dimension_numbers<[1], [0], [0], [1], [0, 0, 1, 1], [], []>} : vector<2x128xf32>, vector<128x384xf32>, vector<2x384xf32> -> vector<2x384xf32>
    %132 = vector.broadcast %7 : vector<1x384xf32> to vector<2x384xf32>
    %133 = arith.addf %131, %132 : vector<2x384xf32>
    %134 = vector.extract_strided_slice %130 {offsets = [0, 0], sizes = [2, 128], strides = [1, 1]} : vector<2x384xf32> to vector<2x128xf32>
    %135 = vector.extract_strided_slice %133 {offsets = [0, 0], sizes = [2, 128], strides = [1, 1]} : vector<2x384xf32> to vector<2x128xf32>
    %136 = arith.addf %134, %135 : vector<2x128xf32>
    %137 = arith.negf %136 : vector<2x128xf32>
    %138 = math.exp %137 : vector<2x128xf32>
    %cst_46 = arith.constant 1.000000e+00 : f32
    %139 = vector.broadcast %cst_46 : f32 to vector<2x128xf32>
    %140 = arith.addf %139, %138 : vector<2x128xf32>
    %141 = arith.divf %139, %140 : vector<2x128xf32>
    %142 = vector.extract_strided_slice %130 {offsets = [0, 128], sizes = [2, 128], strides = [1, 1]} : vector<2x384xf32> to vector<2x128xf32>
    %143 = vector.extract_strided_slice %133 {offsets = [0, 128], sizes = [2, 128], strides = [1, 1]} : vector<2x384xf32> to vector<2x128xf32>
    %144 = arith.addf %142, %143 : vector<2x128xf32>
    %145 = arith.negf %144 : vector<2x128xf32>
    %146 = math.exp %145 : vector<2x128xf32>
    %cst_47 = arith.constant 1.000000e+00 : f32
    %147 = vector.broadcast %cst_47 : f32 to vector<2x128xf32>
    %148 = arith.addf %147, %146 : vector<2x128xf32>
    %149 = arith.divf %147, %148 : vector<2x128xf32>
    %150 = vector.extract_strided_slice %130 {offsets = [0, 256], sizes = [2, 128], strides = [1, 1]} : vector<2x384xf32> to vector<2x128xf32>
    %151 = vector.extract_strided_slice %133 {offsets = [0, 256], sizes = [2, 128], strides = [1, 1]} : vector<2x384xf32> to vector<2x128xf32>
    %152 = arith.mulf %141, %151 : vector<2x128xf32>
    %153 = arith.addf %150, %152 : vector<2x128xf32>
    %154 = math.tanh %153 : vector<2x128xf32>
    %cst_48 = arith.constant 1.000000e+00 : f32
    %155 = vector.broadcast %cst_48 : f32 to vector<2x128xf32>
    %156 = arith.subf %155, %149 : vector<2x128xf32>
    %157 = arith.mulf %156, %154 : vector<2x128xf32>
    %158 = arith.mulf %149, %120 : vector<2x128xf32>
    %159 = arith.addf %157, %158 : vector<2x128xf32>
    %160 = arith.extui %0 : i1 to i32
    %c0_i32_49 = arith.constant 0 : i32
    %161 = arith.cmpi ne, %160, %c0_i32_49 : i32
    scf.if %161 {
      %c0_202 = arith.constant 0 : index
      %c3_203 = arith.constant 3 : index
      %c0_204 = arith.constant 0 : index
      %634 = vector.load %arg5[%c0_202, %c3_203, %c0_204] : memref<2x16x128xf32, #tpu.memory_space<vmem>>, vector<2x1x128xf32>
      %635 = vector.shape_cast %634 : vector<2x1x128xf32> to vector<2x128xf32>
      %636 = vector.shape_cast %159 : vector<2x128xf32> to vector<2x1x128xf32>
      tpu.vector_store %arg5[%c0_202, %c3_203, %c0_204], %636 {strides = array<i32>} : memref<2x16x128xf32, #tpu.memory_space<vmem>>, vector<2x1x128xf32>,
    } else {
    }
    %true_50 = arith.constant true
    %162 = arith.xori %0, %true_50 : i1
    %163 = arith.extui %162 : i1 to i32
    %c0_i32_51 = arith.constant 0 : i32
    %164 = arith.cmpi ne, %163, %c0_i32_51 : i32
    scf.if %164 {
      %c0_202 = arith.constant 0 : index
      %c12_203 = arith.constant 12 : index
      %c0_204 = arith.constant 0 : index
      %634 = vector.load %arg5[%c0_202, %c12_203, %c0_204] : memref<2x16x128xf32, #tpu.memory_space<vmem>>, vector<2x1x128xf32>
      %635 = vector.shape_cast %634 : vector<2x1x128xf32> to vector<2x128xf32>
      %636 = vector.shape_cast %159 : vector<2x128xf32> to vector<2x1x128xf32>
      tpu.vector_store %arg5[%c0_202, %c12_203, %c0_204], %636 {strides = array<i32>} : memref<2x16x128xf32, #tpu.memory_space<vmem>>, vector<2x1x128xf32>,
    } else {
    }
    %c0_52 = arith.constant 0 : index
    %c4 = arith.constant 4 : index
    %c0_53 = arith.constant 0 : index
    %165 = vector.load %arg2[%c0_52, %c4, %c0_53] : memref<2x16x384xf32, #tpu.memory_space<vmem>>, vector<2x1x384xf32>
    %166 = vector.shape_cast %165 : vector<2x1x384xf32> to vector<2x384xf32>
    %c0_54 = arith.constant 0 : index
    %c11 = arith.constant 11 : index
    %c0_55 = arith.constant 0 : index
    %167 = vector.load %arg2[%c0_54, %c11, %c0_55] : memref<2x16x384xf32, #tpu.memory_space<vmem>>, vector<2x1x384xf32>
    %168 = vector.shape_cast %167 : vector<2x1x384xf32> to vector<2x384xf32>
    %169 = arith.select %0, %166, %168 : vector<2x384xf32>
    %cst_56 = arith.constant dense<0.000000e+00> : vector<2x384xf32>
    %170 = tpu.matmul %159, %5, %cst_56 {dimension_numbers = #tpu.dot_dimension_numbers<[1], [0], [0], [1], [0, 0, 1, 1], [], []>} : vector<2x128xf32>, vector<128x384xf32>, vector<2x384xf32> -> vector<2x384xf32>
    %171 = vector.broadcast %7 : vector<1x384xf32> to vector<2x384xf32>
    %172 = arith.addf %170, %171 : vector<2x384xf32>
    %173 = vector.extract_strided_slice %169 {offsets = [0, 0], sizes = [2, 128], strides = [1, 1]} : vector<2x384xf32> to vector<2x128xf32>
    %174 = vector.extract_strided_slice %172 {offsets = [0, 0], sizes = [2, 128], strides = [1, 1]} : vector<2x384xf32> to vector<2x128xf32>
    %175 = arith.addf %173, %174 : vector<2x128xf32>
    %176 = arith.negf %175 : vector<2x128xf32>
    %177 = math.exp %176 : vector<2x128xf32>
    %cst_57 = arith.constant 1.000000e+00 : f32
    %178 = vector.broadcast %cst_57 : f32 to vector<2x128xf32>
    %179 = arith.addf %178, %177 : vector<2x128xf32>
    %180 = arith.divf %178, %179 : vector<2x128xf32>
    %181 = vector.extract_strided_slice %169 {offsets = [0, 128], sizes = [2, 128], strides = [1, 1]} : vector<2x384xf32> to vector<2x128xf32>
    %182 = vector.extract_strided_slice %172 {offsets = [0, 128], sizes = [2, 128], strides = [1, 1]} : vector<2x384xf32> to vector<2x128xf32>
    %183 = arith.addf %181, %182 : vector<2x128xf32>
    %184 = arith.negf %183 : vector<2x128xf32>
    %185 = math.exp %184 : vector<2x128xf32>
    %cst_58 = arith.constant 1.000000e+00 : f32
    %186 = vector.broadcast %cst_58 : f32 to vector<2x128xf32>
    %187 = arith.addf %186, %185 : vector<2x128xf32>
    %188 = arith.divf %186, %187 : vector<2x128xf32>
    %189 = vector.extract_strided_slice %169 {offsets = [0, 256], sizes = [2, 128], strides = [1, 1]} : vector<2x384xf32> to vector<2x128xf32>
    %190 = vector.extract_strided_slice %172 {offsets = [0, 256], sizes = [2, 128], strides = [1, 1]} : vector<2x384xf32> to vector<2x128xf32>
    %191 = arith.mulf %180, %190 : vector<2x128xf32>
    %192 = arith.addf %189, %191 : vector<2x128xf32>
    %193 = math.tanh %192 : vector<2x128xf32>
    %cst_59 = arith.constant 1.000000e+00 : f32
    %194 = vector.broadcast %cst_59 : f32 to vector<2x128xf32>
    %195 = arith.subf %194, %188 : vector<2x128xf32>
    %196 = arith.mulf %195, %193 : vector<2x128xf32>
    %197 = arith.mulf %188, %159 : vector<2x128xf32>
    %198 = arith.addf %196, %197 : vector<2x128xf32>
    %199 = arith.extui %0 : i1 to i32
    %c0_i32_60 = arith.constant 0 : i32
    %200 = arith.cmpi ne, %199, %c0_i32_60 : i32
    scf.if %200 {
      %c0_202 = arith.constant 0 : index
      %c4_203 = arith.constant 4 : index
      %c0_204 = arith.constant 0 : index
      %634 = vector.load %arg5[%c0_202, %c4_203, %c0_204] : memref<2x16x128xf32, #tpu.memory_space<vmem>>, vector<2x1x128xf32>
      %635 = vector.shape_cast %634 : vector<2x1x128xf32> to vector<2x128xf32>
      %636 = vector.shape_cast %198 : vector<2x128xf32> to vector<2x1x128xf32>
      tpu.vector_store %arg5[%c0_202, %c4_203, %c0_204], %636 {strides = array<i32>} : memref<2x16x128xf32, #tpu.memory_space<vmem>>, vector<2x1x128xf32>,
    } else {
    }
    %true_61 = arith.constant true
    %201 = arith.xori %0, %true_61 : i1
    %202 = arith.extui %201 : i1 to i32
    %c0_i32_62 = arith.constant 0 : i32
    %203 = arith.cmpi ne, %202, %c0_i32_62 : i32
    scf.if %203 {
      %c0_202 = arith.constant 0 : index
      %c11_203 = arith.constant 11 : index
      %c0_204 = arith.constant 0 : index
      %634 = vector.load %arg5[%c0_202, %c11_203, %c0_204] : memref<2x16x128xf32, #tpu.memory_space<vmem>>, vector<2x1x128xf32>
      %635 = vector.shape_cast %634 : vector<2x1x128xf32> to vector<2x128xf32>
      %636 = vector.shape_cast %198 : vector<2x128xf32> to vector<2x1x128xf32>
      tpu.vector_store %arg5[%c0_202, %c11_203, %c0_204], %636 {strides = array<i32>} : memref<2x16x128xf32, #tpu.memory_space<vmem>>, vector<2x1x128xf32>,
    } else {
    }
    %c0_63 = arith.constant 0 : index
    %c5 = arith.constant 5 : index
    %c0_64 = arith.constant 0 : index
    %204 = vector.load %arg2[%c0_63, %c5, %c0_64] : memref<2x16x384xf32, #tpu.memory_space<vmem>>, vector<2x1x384xf32>
    %205 = vector.shape_cast %204 : vector<2x1x384xf32> to vector<2x384xf32>
    %c0_65 = arith.constant 0 : index
    %c10 = arith.constant 10 : index
    %c0_66 = arith.constant 0 : index
    %206 = vector.load %arg2[%c0_65, %c10, %c0_66] : memref<2x16x384xf32, #tpu.memory_space<vmem>>, vector<2x1x384xf32>
    %207 = vector.shape_cast %206 : vector<2x1x384xf32> to vector<2x384xf32>
    %208 = arith.select %0, %205, %207 : vector<2x384xf32>
    %cst_67 = arith.constant dense<0.000000e+00> : vector<2x384xf32>
    %209 = tpu.matmul %198, %5, %cst_67 {dimension_numbers = #tpu.dot_dimension_numbers<[1], [0], [0], [1], [0, 0, 1, 1], [], []>} : vector<2x128xf32>, vector<128x384xf32>, vector<2x384xf32> -> vector<2x384xf32>
    %210 = vector.broadcast %7 : vector<1x384xf32> to vector<2x384xf32>
    %211 = arith.addf %209, %210 : vector<2x384xf32>
    %212 = vector.extract_strided_slice %208 {offsets = [0, 0], sizes = [2, 128], strides = [1, 1]} : vector<2x384xf32> to vector<2x128xf32>
    %213 = vector.extract_strided_slice %211 {offsets = [0, 0], sizes = [2, 128], strides = [1, 1]} : vector<2x384xf32> to vector<2x128xf32>
    %214 = arith.addf %212, %213 : vector<2x128xf32>
    %215 = arith.negf %214 : vector<2x128xf32>
    %216 = math.exp %215 : vector<2x128xf32>
    %cst_68 = arith.constant 1.000000e+00 : f32
    %217 = vector.broadcast %cst_68 : f32 to vector<2x128xf32>
    %218 = arith.addf %217, %216 : vector<2x128xf32>
    %219 = arith.divf %217, %218 : vector<2x128xf32>
    %220 = vector.extract_strided_slice %208 {offsets = [0, 128], sizes = [2, 128], strides = [1, 1]} : vector<2x384xf32> to vector<2x128xf32>
    %221 = vector.extract_strided_slice %211 {offsets = [0, 128], sizes = [2, 128], strides = [1, 1]} : vector<2x384xf32> to vector<2x128xf32>
    %222 = arith.addf %220, %221 : vector<2x128xf32>
    %223 = arith.negf %222 : vector<2x128xf32>
    %224 = math.exp %223 : vector<2x128xf32>
    %cst_69 = arith.constant 1.000000e+00 : f32
    %225 = vector.broadcast %cst_69 : f32 to vector<2x128xf32>
    %226 = arith.addf %225, %224 : vector<2x128xf32>
    %227 = arith.divf %225, %226 : vector<2x128xf32>
    %228 = vector.extract_strided_slice %208 {offsets = [0, 256], sizes = [2, 128], strides = [1, 1]} : vector<2x384xf32> to vector<2x128xf32>
    %229 = vector.extract_strided_slice %211 {offsets = [0, 256], sizes = [2, 128], strides = [1, 1]} : vector<2x384xf32> to vector<2x128xf32>
    %230 = arith.mulf %219, %229 : vector<2x128xf32>
    %231 = arith.addf %228, %230 : vector<2x128xf32>
    %232 = math.tanh %231 : vector<2x128xf32>
    %cst_70 = arith.constant 1.000000e+00 : f32
    %233 = vector.broadcast %cst_70 : f32 to vector<2x128xf32>
    %234 = arith.subf %233, %227 : vector<2x128xf32>
    %235 = arith.mulf %234, %232 : vector<2x128xf32>
    %236 = arith.mulf %227, %198 : vector<2x128xf32>
    %237 = arith.addf %235, %236 : vector<2x128xf32>
    %238 = arith.extui %0 : i1 to i32
    %c0_i32_71 = arith.constant 0 : i32
    %239 = arith.cmpi ne, %238, %c0_i32_71 : i32
    scf.if %239 {
      %c0_202 = arith.constant 0 : index
      %c5_203 = arith.constant 5 : index
      %c0_204 = arith.constant 0 : index
      %634 = vector.load %arg5[%c0_202, %c5_203, %c0_204] : memref<2x16x128xf32, #tpu.memory_space<vmem>>, vector<2x1x128xf32>
      %635 = vector.shape_cast %634 : vector<2x1x128xf32> to vector<2x128xf32>
      %636 = vector.shape_cast %237 : vector<2x128xf32> to vector<2x1x128xf32>
      tpu.vector_store %arg5[%c0_202, %c5_203, %c0_204], %636 {strides = array<i32>} : memref<2x16x128xf32, #tpu.memory_space<vmem>>, vector<2x1x128xf32>,
    } else {
    }
    %true_72 = arith.constant true
    %240 = arith.xori %0, %true_72 : i1
    %241 = arith.extui %240 : i1 to i32
    %c0_i32_73 = arith.constant 0 : i32
    %242 = arith.cmpi ne, %241, %c0_i32_73 : i32
    scf.if %242 {
      %c0_202 = arith.constant 0 : index
      %c10_203 = arith.constant 10 : index
      %c0_204 = arith.constant 0 : index
      %634 = vector.load %arg5[%c0_202, %c10_203, %c0_204] : memref<2x16x128xf32, #tpu.memory_space<vmem>>, vector<2x1x128xf32>
      %635 = vector.shape_cast %634 : vector<2x1x128xf32> to vector<2x128xf32>
      %636 = vector.shape_cast %237 : vector<2x128xf32> to vector<2x1x128xf32>
      tpu.vector_store %arg5[%c0_202, %c10_203, %c0_204], %636 {strides = array<i32>} : memref<2x16x128xf32, #tpu.memory_space<vmem>>, vector<2x1x128xf32>,
    } else {
    }
    %c0_74 = arith.constant 0 : index
    %c6 = arith.constant 6 : index
    %c0_75 = arith.constant 0 : index
    %243 = vector.load %arg2[%c0_74, %c6, %c0_75] : memref<2x16x384xf32, #tpu.memory_space<vmem>>, vector<2x1x384xf32>
    %244 = vector.shape_cast %243 : vector<2x1x384xf32> to vector<2x384xf32>
    %c0_76 = arith.constant 0 : index
    %c9 = arith.constant 9 : index
    %c0_77 = arith.constant 0 : index
    %245 = vector.load %arg2[%c0_76, %c9, %c0_77] : memref<2x16x384xf32, #tpu.memory_space<vmem>>, vector<2x1x384xf32>
    %246 = vector.shape_cast %245 : vector<2x1x384xf32> to vector<2x384xf32>
    %247 = arith.select %0, %244, %246 : vector<2x384xf32>
    %cst_78 = arith.constant dense<0.000000e+00> : vector<2x384xf32>
    %248 = tpu.matmul %237, %5, %cst_78 {dimension_numbers = #tpu.dot_dimension_numbers<[1], [0], [0], [1], [0, 0, 1, 1], [], []>} : vector<2x128xf32>, vector<128x384xf32>, vector<2x384xf32> -> vector<2x384xf32>
    %249 = vector.broadcast %7 : vector<1x384xf32> to vector<2x384xf32>
    %250 = arith.addf %248, %249 : vector<2x384xf32>
    %251 = vector.extract_strided_slice %247 {offsets = [0, 0], sizes = [2, 128], strides = [1, 1]} : vector<2x384xf32> to vector<2x128xf32>
    %252 = vector.extract_strided_slice %250 {offsets = [0, 0], sizes = [2, 128], strides = [1, 1]} : vector<2x384xf32> to vector<2x128xf32>
    %253 = arith.addf %251, %252 : vector<2x128xf32>
    %254 = arith.negf %253 : vector<2x128xf32>
    %255 = math.exp %254 : vector<2x128xf32>
    %cst_79 = arith.constant 1.000000e+00 : f32
    %256 = vector.broadcast %cst_79 : f32 to vector<2x128xf32>
    %257 = arith.addf %256, %255 : vector<2x128xf32>
    %258 = arith.divf %256, %257 : vector<2x128xf32>
    %259 = vector.extract_strided_slice %247 {offsets = [0, 128], sizes = [2, 128], strides = [1, 1]} : vector<2x384xf32> to vector<2x128xf32>
    %260 = vector.extract_strided_slice %250 {offsets = [0, 128], sizes = [2, 128], strides = [1, 1]} : vector<2x384xf32> to vector<2x128xf32>
    %261 = arith.addf %259, %260 : vector<2x128xf32>
    %262 = arith.negf %261 : vector<2x128xf32>
    %263 = math.exp %262 : vector<2x128xf32>
    %cst_80 = arith.constant 1.000000e+00 : f32
    %264 = vector.broadcast %cst_80 : f32 to vector<2x128xf32>
    %265 = arith.addf %264, %263 : vector<2x128xf32>
    %266 = arith.divf %264, %265 : vector<2x128xf32>
    %267 = vector.extract_strided_slice %247 {offsets = [0, 256], sizes = [2, 128], strides = [1, 1]} : vector<2x384xf32> to vector<2x128xf32>
    %268 = vector.extract_strided_slice %250 {offsets = [0, 256], sizes = [2, 128], strides = [1, 1]} : vector<2x384xf32> to vector<2x128xf32>
    %269 = arith.mulf %258, %268 : vector<2x128xf32>
    %270 = arith.addf %267, %269 : vector<2x128xf32>
    %271 = math.tanh %270 : vector<2x128xf32>
    %cst_81 = arith.constant 1.000000e+00 : f32
    %272 = vector.broadcast %cst_81 : f32 to vector<2x128xf32>
    %273 = arith.subf %272, %266 : vector<2x128xf32>
    %274 = arith.mulf %273, %271 : vector<2x128xf32>
    %275 = arith.mulf %266, %237 : vector<2x128xf32>
    %276 = arith.addf %274, %275 : vector<2x128xf32>
    %277 = arith.extui %0 : i1 to i32
    %c0_i32_82 = arith.constant 0 : i32
    %278 = arith.cmpi ne, %277, %c0_i32_82 : i32
    scf.if %278 {
      %c0_202 = arith.constant 0 : index
      %c6_203 = arith.constant 6 : index
      %c0_204 = arith.constant 0 : index
      %634 = vector.load %arg5[%c0_202, %c6_203, %c0_204] : memref<2x16x128xf32, #tpu.memory_space<vmem>>, vector<2x1x128xf32>
      %635 = vector.shape_cast %634 : vector<2x1x128xf32> to vector<2x128xf32>
      %636 = vector.shape_cast %276 : vector<2x128xf32> to vector<2x1x128xf32>
      tpu.vector_store %arg5[%c0_202, %c6_203, %c0_204], %636 {strides = array<i32>} : memref<2x16x128xf32, #tpu.memory_space<vmem>>, vector<2x1x128xf32>,
    } else {
    }
    %true_83 = arith.constant true
    %279 = arith.xori %0, %true_83 : i1
    %280 = arith.extui %279 : i1 to i32
    %c0_i32_84 = arith.constant 0 : i32
    %281 = arith.cmpi ne, %280, %c0_i32_84 : i32
    scf.if %281 {
      %c0_202 = arith.constant 0 : index
      %c9_203 = arith.constant 9 : index
      %c0_204 = arith.constant 0 : index
      %634 = vector.load %arg5[%c0_202, %c9_203, %c0_204] : memref<2x16x128xf32, #tpu.memory_space<vmem>>, vector<2x1x128xf32>
      %635 = vector.shape_cast %634 : vector<2x1x128xf32> to vector<2x128xf32>
      %636 = vector.shape_cast %276 : vector<2x128xf32> to vector<2x1x128xf32>
      tpu.vector_store %arg5[%c0_202, %c9_203, %c0_204], %636 {strides = array<i32>} : memref<2x16x128xf32, #tpu.memory_space<vmem>>, vector<2x1x128xf32>,
    } else {
    }
    %c0_85 = arith.constant 0 : index
    %c7 = arith.constant 7 : index
    %c0_86 = arith.constant 0 : index
    %282 = vector.load %arg2[%c0_85, %c7, %c0_86] : memref<2x16x384xf32, #tpu.memory_space<vmem>>, vector<2x1x384xf32>
    %283 = vector.shape_cast %282 : vector<2x1x384xf32> to vector<2x384xf32>
    %c0_87 = arith.constant 0 : index
    %c8 = arith.constant 8 : index
    %c0_88 = arith.constant 0 : index
    %284 = vector.load %arg2[%c0_87, %c8, %c0_88] : memref<2x16x384xf32, #tpu.memory_space<vmem>>, vector<2x1x384xf32>
    %285 = vector.shape_cast %284 : vector<2x1x384xf32> to vector<2x384xf32>
    %286 = arith.select %0, %283, %285 : vector<2x384xf32>
    %cst_89 = arith.constant dense<0.000000e+00> : vector<2x384xf32>
    %287 = tpu.matmul %276, %5, %cst_89 {dimension_numbers = #tpu.dot_dimension_numbers<[1], [0], [0], [1], [0, 0, 1, 1], [], []>} : vector<2x128xf32>, vector<128x384xf32>, vector<2x384xf32> -> vector<2x384xf32>
    %288 = vector.broadcast %7 : vector<1x384xf32> to vector<2x384xf32>
    %289 = arith.addf %287, %288 : vector<2x384xf32>
    %290 = vector.extract_strided_slice %286 {offsets = [0, 0], sizes = [2, 128], strides = [1, 1]} : vector<2x384xf32> to vector<2x128xf32>
    %291 = vector.extract_strided_slice %289 {offsets = [0, 0], sizes = [2, 128], strides = [1, 1]} : vector<2x384xf32> to vector<2x128xf32>
    %292 = arith.addf %290, %291 : vector<2x128xf32>
    %293 = arith.negf %292 : vector<2x128xf32>
    %294 = math.exp %293 : vector<2x128xf32>
    %cst_90 = arith.constant 1.000000e+00 : f32
    %295 = vector.broadcast %cst_90 : f32 to vector<2x128xf32>
    %296 = arith.addf %295, %294 : vector<2x128xf32>
    %297 = arith.divf %295, %296 : vector<2x128xf32>
    %298 = vector.extract_strided_slice %286 {offsets = [0, 128], sizes = [2, 128], strides = [1, 1]} : vector<2x384xf32> to vector<2x128xf32>
    %299 = vector.extract_strided_slice %289 {offsets = [0, 128], sizes = [2, 128], strides = [1, 1]} : vector<2x384xf32> to vector<2x128xf32>
    %300 = arith.addf %298, %299 : vector<2x128xf32>
    %301 = arith.negf %300 : vector<2x128xf32>
    %302 = math.exp %301 : vector<2x128xf32>
    %cst_91 = arith.constant 1.000000e+00 : f32
    %303 = vector.broadcast %cst_91 : f32 to vector<2x128xf32>
    %304 = arith.addf %303, %302 : vector<2x128xf32>
    %305 = arith.divf %303, %304 : vector<2x128xf32>
    %306 = vector.extract_strided_slice %286 {offsets = [0, 256], sizes = [2, 128], strides = [1, 1]} : vector<2x384xf32> to vector<2x128xf32>
    %307 = vector.extract_strided_slice %289 {offsets = [0, 256], sizes = [2, 128], strides = [1, 1]} : vector<2x384xf32> to vector<2x128xf32>
    %308 = arith.mulf %297, %307 : vector<2x128xf32>
    %309 = arith.addf %306, %308 : vector<2x128xf32>
    %310 = math.tanh %309 : vector<2x128xf32>
    %cst_92 = arith.constant 1.000000e+00 : f32
    %311 = vector.broadcast %cst_92 : f32 to vector<2x128xf32>
    %312 = arith.subf %311, %305 : vector<2x128xf32>
    %313 = arith.mulf %312, %310 : vector<2x128xf32>
    %314 = arith.mulf %305, %276 : vector<2x128xf32>
    %315 = arith.addf %313, %314 : vector<2x128xf32>
    %316 = arith.extui %0 : i1 to i32
    %c0_i32_93 = arith.constant 0 : i32
    %317 = arith.cmpi ne, %316, %c0_i32_93 : i32
    scf.if %317 {
      %c0_202 = arith.constant 0 : index
      %c7_203 = arith.constant 7 : index
      %c0_204 = arith.constant 0 : index
      %634 = vector.load %arg5[%c0_202, %c7_203, %c0_204] : memref<2x16x128xf32, #tpu.memory_space<vmem>>, vector<2x1x128xf32>
      %635 = vector.shape_cast %634 : vector<2x1x128xf32> to vector<2x128xf32>
      %636 = vector.shape_cast %315 : vector<2x128xf32> to vector<2x1x128xf32>
      tpu.vector_store %arg5[%c0_202, %c7_203, %c0_204], %636 {strides = array<i32>} : memref<2x16x128xf32, #tpu.memory_space<vmem>>, vector<2x1x128xf32>,
    } else {
    }
    %true_94 = arith.constant true
    %318 = arith.xori %0, %true_94 : i1
    %319 = arith.extui %318 : i1 to i32
    %c0_i32_95 = arith.constant 0 : i32
    %320 = arith.cmpi ne, %319, %c0_i32_95 : i32
    scf.if %320 {
      %c0_202 = arith.constant 0 : index
      %c8_203 = arith.constant 8 : index
      %c0_204 = arith.constant 0 : index
      %634 = vector.load %arg5[%c0_202, %c8_203, %c0_204] : memref<2x16x128xf32, #tpu.memory_space<vmem>>, vector<2x1x128xf32>
      %635 = vector.shape_cast %634 : vector<2x1x128xf32> to vector<2x128xf32>
      %636 = vector.shape_cast %315 : vector<2x128xf32> to vector<2x1x128xf32>
      tpu.vector_store %arg5[%c0_202, %c8_203, %c0_204], %636 {strides = array<i32>} : memref<2x16x128xf32, #tpu.memory_space<vmem>>, vector<2x1x128xf32>,
    } else {
    }
    %c0_96 = arith.constant 0 : index
    %c8_97 = arith.constant 8 : index
    %c0_98 = arith.constant 0 : index
    %321 = vector.load %arg2[%c0_96, %c8_97, %c0_98] : memref<2x16x384xf32, #tpu.memory_space<vmem>>, vector<2x1x384xf32>
    %322 = vector.shape_cast %321 : vector<2x1x384xf32> to vector<2x384xf32>
    %c0_99 = arith.constant 0 : index
    %c7_100 = arith.constant 7 : index
    %c0_101 = arith.constant 0 : index
    %323 = vector.load %arg2[%c0_99, %c7_100, %c0_101] : memref<2x16x384xf32, #tpu.memory_space<vmem>>, vector<2x1x384xf32>
    %324 = vector.shape_cast %323 : vector<2x1x384xf32> to vector<2x384xf32>
    %325 = arith.select %0, %322, %324 : vector<2x384xf32>
    %cst_102 = arith.constant dense<0.000000e+00> : vector<2x384xf32>
    %326 = tpu.matmul %315, %5, %cst_102 {dimension_numbers = #tpu.dot_dimension_numbers<[1], [0], [0], [1], [0, 0, 1, 1], [], []>} : vector<2x128xf32>, vector<128x384xf32>, vector<2x384xf32> -> vector<2x384xf32>
    %327 = vector.broadcast %7 : vector<1x384xf32> to vector<2x384xf32>
    %328 = arith.addf %326, %327 : vector<2x384xf32>
    %329 = vector.extract_strided_slice %325 {offsets = [0, 0], sizes = [2, 128], strides = [1, 1]} : vector<2x384xf32> to vector<2x128xf32>
    %330 = vector.extract_strided_slice %328 {offsets = [0, 0], sizes = [2, 128], strides = [1, 1]} : vector<2x384xf32> to vector<2x128xf32>
    %331 = arith.addf %329, %330 : vector<2x128xf32>
    %332 = arith.negf %331 : vector<2x128xf32>
    %333 = math.exp %332 : vector<2x128xf32>
    %cst_103 = arith.constant 1.000000e+00 : f32
    %334 = vector.broadcast %cst_103 : f32 to vector<2x128xf32>
    %335 = arith.addf %334, %333 : vector<2x128xf32>
    %336 = arith.divf %334, %335 : vector<2x128xf32>
    %337 = vector.extract_strided_slice %325 {offsets = [0, 128], sizes = [2, 128], strides = [1, 1]} : vector<2x384xf32> to vector<2x128xf32>
    %338 = vector.extract_strided_slice %328 {offsets = [0, 128], sizes = [2, 128], strides = [1, 1]} : vector<2x384xf32> to vector<2x128xf32>
    %339 = arith.addf %337, %338 : vector<2x128xf32>
    %340 = arith.negf %339 : vector<2x128xf32>
    %341 = math.exp %340 : vector<2x128xf32>
    %cst_104 = arith.constant 1.000000e+00 : f32
    %342 = vector.broadcast %cst_104 : f32 to vector<2x128xf32>
    %343 = arith.addf %342, %341 : vector<2x128xf32>
    %344 = arith.divf %342, %343 : vector<2x128xf32>
    %345 = vector.extract_strided_slice %325 {offsets = [0, 256], sizes = [2, 128], strides = [1, 1]} : vector<2x384xf32> to vector<2x128xf32>
    %346 = vector.extract_strided_slice %328 {offsets = [0, 256], sizes = [2, 128], strides = [1, 1]} : vector<2x384xf32> to vector<2x128xf32>
    %347 = arith.mulf %336, %346 : vector<2x128xf32>
    %348 = arith.addf %345, %347 : vector<2x128xf32>
    %349 = math.tanh %348 : vector<2x128xf32>
    %cst_105 = arith.constant 1.000000e+00 : f32
    %350 = vector.broadcast %cst_105 : f32 to vector<2x128xf32>
    %351 = arith.subf %350, %344 : vector<2x128xf32>
    %352 = arith.mulf %351, %349 : vector<2x128xf32>
    %353 = arith.mulf %344, %315 : vector<2x128xf32>
    %354 = arith.addf %352, %353 : vector<2x128xf32>
    %355 = arith.extui %0 : i1 to i32
    %c0_i32_106 = arith.constant 0 : i32
    %356 = arith.cmpi ne, %355, %c0_i32_106 : i32
    scf.if %356 {
      %c0_202 = arith.constant 0 : index
      %c8_203 = arith.constant 8 : index
      %c0_204 = arith.constant 0 : index
      %634 = vector.load %arg5[%c0_202, %c8_203, %c0_204] : memref<2x16x128xf32, #tpu.memory_space<vmem>>, vector<2x1x128xf32>
      %635 = vector.shape_cast %634 : vector<2x1x128xf32> to vector<2x128xf32>
      %636 = vector.shape_cast %354 : vector<2x128xf32> to vector<2x1x128xf32>
      tpu.vector_store %arg5[%c0_202, %c8_203, %c0_204], %636 {strides = array<i32>} : memref<2x16x128xf32, #tpu.memory_space<vmem>>, vector<2x1x128xf32>,
    } else {
    }
    %true_107 = arith.constant true
    %357 = arith.xori %0, %true_107 : i1
    %358 = arith.extui %357 : i1 to i32
    %c0_i32_108 = arith.constant 0 : i32
    %359 = arith.cmpi ne, %358, %c0_i32_108 : i32
    scf.if %359 {
      %c0_202 = arith.constant 0 : index
      %c7_203 = arith.constant 7 : index
      %c0_204 = arith.constant 0 : index
      %634 = vector.load %arg5[%c0_202, %c7_203, %c0_204] : memref<2x16x128xf32, #tpu.memory_space<vmem>>, vector<2x1x128xf32>
      %635 = vector.shape_cast %634 : vector<2x1x128xf32> to vector<2x128xf32>
      %636 = vector.shape_cast %354 : vector<2x128xf32> to vector<2x1x128xf32>
      tpu.vector_store %arg5[%c0_202, %c7_203, %c0_204], %636 {strides = array<i32>} : memref<2x16x128xf32, #tpu.memory_space<vmem>>, vector<2x1x128xf32>,
    } else {
    }
    %c0_109 = arith.constant 0 : index
    %c9_110 = arith.constant 9 : index
    %c0_111 = arith.constant 0 : index
    %360 = vector.load %arg2[%c0_109, %c9_110, %c0_111] : memref<2x16x384xf32, #tpu.memory_space<vmem>>, vector<2x1x384xf32>
    %361 = vector.shape_cast %360 : vector<2x1x384xf32> to vector<2x384xf32>
    %c0_112 = arith.constant 0 : index
    %c6_113 = arith.constant 6 : index
    %c0_114 = arith.constant 0 : index
    %362 = vector.load %arg2[%c0_112, %c6_113, %c0_114] : memref<2x16x384xf32, #tpu.memory_space<vmem>>, vector<2x1x384xf32>
    %363 = vector.shape_cast %362 : vector<2x1x384xf32> to vector<2x384xf32>
    %364 = arith.select %0, %361, %363 : vector<2x384xf32>
    %cst_115 = arith.constant dense<0.000000e+00> : vector<2x384xf32>
    %365 = tpu.matmul %354, %5, %cst_115 {dimension_numbers = #tpu.dot_dimension_numbers<[1], [0], [0], [1], [0, 0, 1, 1], [], []>} : vector<2x128xf32>, vector<128x384xf32>, vector<2x384xf32> -> vector<2x384xf32>
    %366 = vector.broadcast %7 : vector<1x384xf32> to vector<2x384xf32>
    %367 = arith.addf %365, %366 : vector<2x384xf32>
    %368 = vector.extract_strided_slice %364 {offsets = [0, 0], sizes = [2, 128], strides = [1, 1]} : vector<2x384xf32> to vector<2x128xf32>
    %369 = vector.extract_strided_slice %367 {offsets = [0, 0], sizes = [2, 128], strides = [1, 1]} : vector<2x384xf32> to vector<2x128xf32>
    %370 = arith.addf %368, %369 : vector<2x128xf32>
    %371 = arith.negf %370 : vector<2x128xf32>
    %372 = math.exp %371 : vector<2x128xf32>
    %cst_116 = arith.constant 1.000000e+00 : f32
    %373 = vector.broadcast %cst_116 : f32 to vector<2x128xf32>
    %374 = arith.addf %373, %372 : vector<2x128xf32>
    %375 = arith.divf %373, %374 : vector<2x128xf32>
    %376 = vector.extract_strided_slice %364 {offsets = [0, 128], sizes = [2, 128], strides = [1, 1]} : vector<2x384xf32> to vector<2x128xf32>
    %377 = vector.extract_strided_slice %367 {offsets = [0, 128], sizes = [2, 128], strides = [1, 1]} : vector<2x384xf32> to vector<2x128xf32>
    %378 = arith.addf %376, %377 : vector<2x128xf32>
    %379 = arith.negf %378 : vector<2x128xf32>
    %380 = math.exp %379 : vector<2x128xf32>
    %cst_117 = arith.constant 1.000000e+00 : f32
    %381 = vector.broadcast %cst_117 : f32 to vector<2x128xf32>
    %382 = arith.addf %381, %380 : vector<2x128xf32>
    %383 = arith.divf %381, %382 : vector<2x128xf32>
    %384 = vector.extract_strided_slice %364 {offsets = [0, 256], sizes = [2, 128], strides = [1, 1]} : vector<2x384xf32> to vector<2x128xf32>
    %385 = vector.extract_strided_slice %367 {offsets = [0, 256], sizes = [2, 128], strides = [1, 1]} : vector<2x384xf32> to vector<2x128xf32>
    %386 = arith.mulf %375, %385 : vector<2x128xf32>
    %387 = arith.addf %384, %386 : vector<2x128xf32>
    %388 = math.tanh %387 : vector<2x128xf32>
    %cst_118 = arith.constant 1.000000e+00 : f32
    %389 = vector.broadcast %cst_118 : f32 to vector<2x128xf32>
    %390 = arith.subf %389, %383 : vector<2x128xf32>
    %391 = arith.mulf %390, %388 : vector<2x128xf32>
    %392 = arith.mulf %383, %354 : vector<2x128xf32>
    %393 = arith.addf %391, %392 : vector<2x128xf32>
    %394 = arith.extui %0 : i1 to i32
    %c0_i32_119 = arith.constant 0 : i32
    %395 = arith.cmpi ne, %394, %c0_i32_119 : i32
    scf.if %395 {
      %c0_202 = arith.constant 0 : index
      %c9_203 = arith.constant 9 : index
      %c0_204 = arith.constant 0 : index
      %634 = vector.load %arg5[%c0_202, %c9_203, %c0_204] : memref<2x16x128xf32, #tpu.memory_space<vmem>>, vector<2x1x128xf32>
      %635 = vector.shape_cast %634 : vector<2x1x128xf32> to vector<2x128xf32>
      %636 = vector.shape_cast %393 : vector<2x128xf32> to vector<2x1x128xf32>
      tpu.vector_store %arg5[%c0_202, %c9_203, %c0_204], %636 {strides = array<i32>} : memref<2x16x128xf32, #tpu.memory_space<vmem>>, vector<2x1x128xf32>,
    } else {
    }
    %true_120 = arith.constant true
    %396 = arith.xori %0, %true_120 : i1
    %397 = arith.extui %396 : i1 to i32
    %c0_i32_121 = arith.constant 0 : i32
    %398 = arith.cmpi ne, %397, %c0_i32_121 : i32
    scf.if %398 {
      %c0_202 = arith.constant 0 : index
      %c6_203 = arith.constant 6 : index
      %c0_204 = arith.constant 0 : index
      %634 = vector.load %arg5[%c0_202, %c6_203, %c0_204] : memref<2x16x128xf32, #tpu.memory_space<vmem>>, vector<2x1x128xf32>
      %635 = vector.shape_cast %634 : vector<2x1x128xf32> to vector<2x128xf32>
      %636 = vector.shape_cast %393 : vector<2x128xf32> to vector<2x1x128xf32>
      tpu.vector_store %arg5[%c0_202, %c6_203, %c0_204], %636 {strides = array<i32>} : memref<2x16x128xf32, #tpu.memory_space<vmem>>, vector<2x1x128xf32>,
    } else {
    }
    %c0_122 = arith.constant 0 : index
    %c10_123 = arith.constant 10 : index
    %c0_124 = arith.constant 0 : index
    %399 = vector.load %arg2[%c0_122, %c10_123, %c0_124] : memref<2x16x384xf32, #tpu.memory_space<vmem>>, vector<2x1x384xf32>
    %400 = vector.shape_cast %399 : vector<2x1x384xf32> to vector<2x384xf32>
    %c0_125 = arith.constant 0 : index
    %c5_126 = arith.constant 5 : index
    %c0_127 = arith.constant 0 : index
    %401 = vector.load %arg2[%c0_125, %c5_126, %c0_127] : memref<2x16x384xf32, #tpu.memory_space<vmem>>, vector<2x1x384xf32>
    %402 = vector.shape_cast %401 : vector<2x1x384xf32> to vector<2x384xf32>
    %403 = arith.select %0, %400, %402 : vector<2x384xf32>
    %cst_128 = arith.constant dense<0.000000e+00> : vector<2x384xf32>
    %404 = tpu.matmul %393, %5, %cst_128 {dimension_numbers = #tpu.dot_dimension_numbers<[1], [0], [0], [1], [0, 0, 1, 1], [], []>} : vector<2x128xf32>, vector<128x384xf32>, vector<2x384xf32> -> vector<2x384xf32>
    %405 = vector.broadcast %7 : vector<1x384xf32> to vector<2x384xf32>
    %406 = arith.addf %404, %405 : vector<2x384xf32>
    %407 = vector.extract_strided_slice %403 {offsets = [0, 0], sizes = [2, 128], strides = [1, 1]} : vector<2x384xf32> to vector<2x128xf32>
    %408 = vector.extract_strided_slice %406 {offsets = [0, 0], sizes = [2, 128], strides = [1, 1]} : vector<2x384xf32> to vector<2x128xf32>
    %409 = arith.addf %407, %408 : vector<2x128xf32>
    %410 = arith.negf %409 : vector<2x128xf32>
    %411 = math.exp %410 : vector<2x128xf32>
    %cst_129 = arith.constant 1.000000e+00 : f32
    %412 = vector.broadcast %cst_129 : f32 to vector<2x128xf32>
    %413 = arith.addf %412, %411 : vector<2x128xf32>
    %414 = arith.divf %412, %413 : vector<2x128xf32>
    %415 = vector.extract_strided_slice %403 {offsets = [0, 128], sizes = [2, 128], strides = [1, 1]} : vector<2x384xf32> to vector<2x128xf32>
    %416 = vector.extract_strided_slice %406 {offsets = [0, 128], sizes = [2, 128], strides = [1, 1]} : vector<2x384xf32> to vector<2x128xf32>
    %417 = arith.addf %415, %416 : vector<2x128xf32>
    %418 = arith.negf %417 : vector<2x128xf32>
    %419 = math.exp %418 : vector<2x128xf32>
    %cst_130 = arith.constant 1.000000e+00 : f32
    %420 = vector.broadcast %cst_130 : f32 to vector<2x128xf32>
    %421 = arith.addf %420, %419 : vector<2x128xf32>
    %422 = arith.divf %420, %421 : vector<2x128xf32>
    %423 = vector.extract_strided_slice %403 {offsets = [0, 256], sizes = [2, 128], strides = [1, 1]} : vector<2x384xf32> to vector<2x128xf32>
    %424 = vector.extract_strided_slice %406 {offsets = [0, 256], sizes = [2, 128], strides = [1, 1]} : vector<2x384xf32> to vector<2x128xf32>
    %425 = arith.mulf %414, %424 : vector<2x128xf32>
    %426 = arith.addf %423, %425 : vector<2x128xf32>
    %427 = math.tanh %426 : vector<2x128xf32>
    %cst_131 = arith.constant 1.000000e+00 : f32
    %428 = vector.broadcast %cst_131 : f32 to vector<2x128xf32>
    %429 = arith.subf %428, %422 : vector<2x128xf32>
    %430 = arith.mulf %429, %427 : vector<2x128xf32>
    %431 = arith.mulf %422, %393 : vector<2x128xf32>
    %432 = arith.addf %430, %431 : vector<2x128xf32>
    %433 = arith.extui %0 : i1 to i32
    %c0_i32_132 = arith.constant 0 : i32
    %434 = arith.cmpi ne, %433, %c0_i32_132 : i32
    scf.if %434 {
      %c0_202 = arith.constant 0 : index
      %c10_203 = arith.constant 10 : index
      %c0_204 = arith.constant 0 : index
      %634 = vector.load %arg5[%c0_202, %c10_203, %c0_204] : memref<2x16x128xf32, #tpu.memory_space<vmem>>, vector<2x1x128xf32>
      %635 = vector.shape_cast %634 : vector<2x1x128xf32> to vector<2x128xf32>
      %636 = vector.shape_cast %432 : vector<2x128xf32> to vector<2x1x128xf32>
      tpu.vector_store %arg5[%c0_202, %c10_203, %c0_204], %636 {strides = array<i32>} : memref<2x16x128xf32, #tpu.memory_space<vmem>>, vector<2x1x128xf32>,
    } else {
    }
    %true_133 = arith.constant true
    %435 = arith.xori %0, %true_133 : i1
    %436 = arith.extui %435 : i1 to i32
    %c0_i32_134 = arith.constant 0 : i32
    %437 = arith.cmpi ne, %436, %c0_i32_134 : i32
    scf.if %437 {
      %c0_202 = arith.constant 0 : index
      %c5_203 = arith.constant 5 : index
      %c0_204 = arith.constant 0 : index
      %634 = vector.load %arg5[%c0_202, %c5_203, %c0_204] : memref<2x16x128xf32, #tpu.memory_space<vmem>>, vector<2x1x128xf32>
      %635 = vector.shape_cast %634 : vector<2x1x128xf32> to vector<2x128xf32>
      %636 = vector.shape_cast %432 : vector<2x128xf32> to vector<2x1x128xf32>
      tpu.vector_store %arg5[%c0_202, %c5_203, %c0_204], %636 {strides = array<i32>} : memref<2x16x128xf32, #tpu.memory_space<vmem>>, vector<2x1x128xf32>,
    } else {
    }
    %c0_135 = arith.constant 0 : index
    %c11_136 = arith.constant 11 : index
    %c0_137 = arith.constant 0 : index
    %438 = vector.load %arg2[%c0_135, %c11_136, %c0_137] : memref<2x16x384xf32, #tpu.memory_space<vmem>>, vector<2x1x384xf32>
    %439 = vector.shape_cast %438 : vector<2x1x384xf32> to vector<2x384xf32>
    %c0_138 = arith.constant 0 : index
    %c4_139 = arith.constant 4 : index
    %c0_140 = arith.constant 0 : index
    %440 = vector.load %arg2[%c0_138, %c4_139, %c0_140] : memref<2x16x384xf32, #tpu.memory_space<vmem>>, vector<2x1x384xf32>
    %441 = vector.shape_cast %440 : vector<2x1x384xf32> to vector<2x384xf32>
    %442 = arith.select %0, %439, %441 : vector<2x384xf32>
    %cst_141 = arith.constant dense<0.000000e+00> : vector<2x384xf32>
    %443 = tpu.matmul %432, %5, %cst_141 {dimension_numbers = #tpu.dot_dimension_numbers<[1], [0], [0], [1], [0, 0, 1, 1], [], []>} : vector<2x128xf32>, vector<128x384xf32>, vector<2x384xf32> -> vector<2x384xf32>
    %444 = vector.broadcast %7 : vector<1x384xf32> to vector<2x384xf32>
    %445 = arith.addf %443, %444 : vector<2x384xf32>
    %446 = vector.extract_strided_slice %442 {offsets = [0, 0], sizes = [2, 128], strides = [1, 1]} : vector<2x384xf32> to vector<2x128xf32>
    %447 = vector.extract_strided_slice %445 {offsets = [0, 0], sizes = [2, 128], strides = [1, 1]} : vector<2x384xf32> to vector<2x128xf32>
    %448 = arith.addf %446, %447 : vector<2x128xf32>
    %449 = arith.negf %448 : vector<2x128xf32>
    %450 = math.exp %449 : vector<2x128xf32>
    %cst_142 = arith.constant 1.000000e+00 : f32
    %451 = vector.broadcast %cst_142 : f32 to vector<2x128xf32>
    %452 = arith.addf %451, %450 : vector<2x128xf32>
    %453 = arith.divf %451, %452 : vector<2x128xf32>
    %454 = vector.extract_strided_slice %442 {offsets = [0, 128], sizes = [2, 128], strides = [1, 1]} : vector<2x384xf32> to vector<2x128xf32>
    %455 = vector.extract_strided_slice %445 {offsets = [0, 128], sizes = [2, 128], strides = [1, 1]} : vector<2x384xf32> to vector<2x128xf32>
    %456 = arith.addf %454, %455 : vector<2x128xf32>
    %457 = arith.negf %456 : vector<2x128xf32>
    %458 = math.exp %457 : vector<2x128xf32>
    %cst_143 = arith.constant 1.000000e+00 : f32
    %459 = vector.broadcast %cst_143 : f32 to vector<2x128xf32>
    %460 = arith.addf %459, %458 : vector<2x128xf32>
    %461 = arith.divf %459, %460 : vector<2x128xf32>
    %462 = vector.extract_strided_slice %442 {offsets = [0, 256], sizes = [2, 128], strides = [1, 1]} : vector<2x384xf32> to vector<2x128xf32>
    %463 = vector.extract_strided_slice %445 {offsets = [0, 256], sizes = [2, 128], strides = [1, 1]} : vector<2x384xf32> to vector<2x128xf32>
    %464 = arith.mulf %453, %463 : vector<2x128xf32>
    %465 = arith.addf %462, %464 : vector<2x128xf32>
    %466 = math.tanh %465 : vector<2x128xf32>
    %cst_144 = arith.constant 1.000000e+00 : f32
    %467 = vector.broadcast %cst_144 : f32 to vector<2x128xf32>
    %468 = arith.subf %467, %461 : vector<2x128xf32>
    %469 = arith.mulf %468, %466 : vector<2x128xf32>
    %470 = arith.mulf %461, %432 : vector<2x128xf32>
    %471 = arith.addf %469, %470 : vector<2x128xf32>
    %472 = arith.extui %0 : i1 to i32
    %c0_i32_145 = arith.constant 0 : i32
    %473 = arith.cmpi ne, %472, %c0_i32_145 : i32
    scf.if %473 {
      %c0_202 = arith.constant 0 : index
      %c11_203 = arith.constant 11 : index
      %c0_204 = arith.constant 0 : index
      %634 = vector.load %arg5[%c0_202, %c11_203, %c0_204] : memref<2x16x128xf32, #tpu.memory_space<vmem>>, vector<2x1x128xf32>
      %635 = vector.shape_cast %634 : vector<2x1x128xf32> to vector<2x128xf32>
      %636 = vector.shape_cast %471 : vector<2x128xf32> to vector<2x1x128xf32>
      tpu.vector_store %arg5[%c0_202, %c11_203, %c0_204], %636 {strides = array<i32>} : memref<2x16x128xf32, #tpu.memory_space<vmem>>, vector<2x1x128xf32>,
    } else {
    }
    %true_146 = arith.constant true
    %474 = arith.xori %0, %true_146 : i1
    %475 = arith.extui %474 : i1 to i32
    %c0_i32_147 = arith.constant 0 : i32
    %476 = arith.cmpi ne, %475, %c0_i32_147 : i32
    scf.if %476 {
      %c0_202 = arith.constant 0 : index
      %c4_203 = arith.constant 4 : index
      %c0_204 = arith.constant 0 : index
      %634 = vector.load %arg5[%c0_202, %c4_203, %c0_204] : memref<2x16x128xf32, #tpu.memory_space<vmem>>, vector<2x1x128xf32>
      %635 = vector.shape_cast %634 : vector<2x1x128xf32> to vector<2x128xf32>
      %636 = vector.shape_cast %471 : vector<2x128xf32> to vector<2x1x128xf32>
      tpu.vector_store %arg5[%c0_202, %c4_203, %c0_204], %636 {strides = array<i32>} : memref<2x16x128xf32, #tpu.memory_space<vmem>>, vector<2x1x128xf32>,
    } else {
    }
    %c0_148 = arith.constant 0 : index
    %c12_149 = arith.constant 12 : index
    %c0_150 = arith.constant 0 : index
    %477 = vector.load %arg2[%c0_148, %c12_149, %c0_150] : memref<2x16x384xf32, #tpu.memory_space<vmem>>, vector<2x1x384xf32>
    %478 = vector.shape_cast %477 : vector<2x1x384xf32> to vector<2x384xf32>
    %c0_151 = arith.constant 0 : index
    %c3_152 = arith.constant 3 : index
    %c0_153 = arith.constant 0 : index
    %479 = vector.load %arg2[%c0_151, %c3_152, %c0_153] : memref<2x16x384xf32, #tpu.memory_space<vmem>>, vector<2x1x384xf32>
    %480 = vector.shape_cast %479 : vector<2x1x384xf32> to vector<2x384xf32>
    %481 = arith.select %0, %478, %480 : vector<2x384xf32>
    %cst_154 = arith.constant dense<0.000000e+00> : vector<2x384xf32>
    %482 = tpu.matmul %471, %5, %cst_154 {dimension_numbers = #tpu.dot_dimension_numbers<[1], [0], [0], [1], [0, 0, 1, 1], [], []>} : vector<2x128xf32>, vector<128x384xf32>, vector<2x384xf32> -> vector<2x384xf32>
    %483 = vector.broadcast %7 : vector<1x384xf32> to vector<2x384xf32>
    %484 = arith.addf %482, %483 : vector<2x384xf32>
    %485 = vector.extract_strided_slice %481 {offsets = [0, 0], sizes = [2, 128], strides = [1, 1]} : vector<2x384xf32> to vector<2x128xf32>
    %486 = vector.extract_strided_slice %484 {offsets = [0, 0], sizes = [2, 128], strides = [1, 1]} : vector<2x384xf32> to vector<2x128xf32>
    %487 = arith.addf %485, %486 : vector<2x128xf32>
    %488 = arith.negf %487 : vector<2x128xf32>
    %489 = math.exp %488 : vector<2x128xf32>
    %cst_155 = arith.constant 1.000000e+00 : f32
    %490 = vector.broadcast %cst_155 : f32 to vector<2x128xf32>
    %491 = arith.addf %490, %489 : vector<2x128xf32>
    %492 = arith.divf %490, %491 : vector<2x128xf32>
    %493 = vector.extract_strided_slice %481 {offsets = [0, 128], sizes = [2, 128], strides = [1, 1]} : vector<2x384xf32> to vector<2x128xf32>
    %494 = vector.extract_strided_slice %484 {offsets = [0, 128], sizes = [2, 128], strides = [1, 1]} : vector<2x384xf32> to vector<2x128xf32>
    %495 = arith.addf %493, %494 : vector<2x128xf32>
    %496 = arith.negf %495 : vector<2x128xf32>
    %497 = math.exp %496 : vector<2x128xf32>
    %cst_156 = arith.constant 1.000000e+00 : f32
    %498 = vector.broadcast %cst_156 : f32 to vector<2x128xf32>
    %499 = arith.addf %498, %497 : vector<2x128xf32>
    %500 = arith.divf %498, %499 : vector<2x128xf32>
    %501 = vector.extract_strided_slice %481 {offsets = [0, 256], sizes = [2, 128], strides = [1, 1]} : vector<2x384xf32> to vector<2x128xf32>
    %502 = vector.extract_strided_slice %484 {offsets = [0, 256], sizes = [2, 128], strides = [1, 1]} : vector<2x384xf32> to vector<2x128xf32>
    %503 = arith.mulf %492, %502 : vector<2x128xf32>
    %504 = arith.addf %501, %503 : vector<2x128xf32>
    %505 = math.tanh %504 : vector<2x128xf32>
    %cst_157 = arith.constant 1.000000e+00 : f32
    %506 = vector.broadcast %cst_157 : f32 to vector<2x128xf32>
    %507 = arith.subf %506, %500 : vector<2x128xf32>
    %508 = arith.mulf %507, %505 : vector<2x128xf32>
    %509 = arith.mulf %500, %471 : vector<2x128xf32>
    %510 = arith.addf %508, %509 : vector<2x128xf32>
    %511 = arith.extui %0 : i1 to i32
    %c0_i32_158 = arith.constant 0 : i32
    %512 = arith.cmpi ne, %511, %c0_i32_158 : i32
    scf.if %512 {
      %c0_202 = arith.constant 0 : index
      %c12_203 = arith.constant 12 : index
      %c0_204 = arith.constant 0 : index
      %634 = vector.load %arg5[%c0_202, %c12_203, %c0_204] : memref<2x16x128xf32, #tpu.memory_space<vmem>>, vector<2x1x128xf32>
      %635 = vector.shape_cast %634 : vector<2x1x128xf32> to vector<2x128xf32>
      %636 = vector.shape_cast %510 : vector<2x128xf32> to vector<2x1x128xf32>
      tpu.vector_store %arg5[%c0_202, %c12_203, %c0_204], %636 {strides = array<i32>} : memref<2x16x128xf32, #tpu.memory_space<vmem>>, vector<2x1x128xf32>,
    } else {
    }
    %true_159 = arith.constant true
    %513 = arith.xori %0, %true_159 : i1
    %514 = arith.extui %513 : i1 to i32
    %c0_i32_160 = arith.constant 0 : i32
    %515 = arith.cmpi ne, %514, %c0_i32_160 : i32
    scf.if %515 {
      %c0_202 = arith.constant 0 : index
      %c3_203 = arith.constant 3 : index
      %c0_204 = arith.constant 0 : index
      %634 = vector.load %arg5[%c0_202, %c3_203, %c0_204] : memref<2x16x128xf32, #tpu.memory_space<vmem>>, vector<2x1x128xf32>
      %635 = vector.shape_cast %634 : vector<2x1x128xf32> to vector<2x128xf32>
      %636 = vector.shape_cast %510 : vector<2x128xf32> to vector<2x1x128xf32>
      tpu.vector_store %arg5[%c0_202, %c3_203, %c0_204], %636 {strides = array<i32>} : memref<2x16x128xf32, #tpu.memory_space<vmem>>, vector<2x1x128xf32>,
    } else {
    }
    %c0_161 = arith.constant 0 : index
    %c13_162 = arith.constant 13 : index
    %c0_163 = arith.constant 0 : index
    %516 = vector.load %arg2[%c0_161, %c13_162, %c0_163] : memref<2x16x384xf32, #tpu.memory_space<vmem>>, vector<2x1x384xf32>
    %517 = vector.shape_cast %516 : vector<2x1x384xf32> to vector<2x384xf32>
    %c0_164 = arith.constant 0 : index
    %c2_165 = arith.constant 2 : index
    %c0_166 = arith.constant 0 : index
    %518 = vector.load %arg2[%c0_164, %c2_165, %c0_166] : memref<2x16x384xf32, #tpu.memory_space<vmem>>, vector<2x1x384xf32>
    %519 = vector.shape_cast %518 : vector<2x1x384xf32> to vector<2x384xf32>
    %520 = arith.select %0, %517, %519 : vector<2x384xf32>
    %cst_167 = arith.constant dense<0.000000e+00> : vector<2x384xf32>
    %521 = tpu.matmul %510, %5, %cst_167 {dimension_numbers = #tpu.dot_dimension_numbers<[1], [0], [0], [1], [0, 0, 1, 1], [], []>} : vector<2x128xf32>, vector<128x384xf32>, vector<2x384xf32> -> vector<2x384xf32>
    %522 = vector.broadcast %7 : vector<1x384xf32> to vector<2x384xf32>
    %523 = arith.addf %521, %522 : vector<2x384xf32>
    %524 = vector.extract_strided_slice %520 {offsets = [0, 0], sizes = [2, 128], strides = [1, 1]} : vector<2x384xf32> to vector<2x128xf32>
    %525 = vector.extract_strided_slice %523 {offsets = [0, 0], sizes = [2, 128], strides = [1, 1]} : vector<2x384xf32> to vector<2x128xf32>
    %526 = arith.addf %524, %525 : vector<2x128xf32>
    %527 = arith.negf %526 : vector<2x128xf32>
    %528 = math.exp %527 : vector<2x128xf32>
    %cst_168 = arith.constant 1.000000e+00 : f32
    %529 = vector.broadcast %cst_168 : f32 to vector<2x128xf32>
    %530 = arith.addf %529, %528 : vector<2x128xf32>
    %531 = arith.divf %529, %530 : vector<2x128xf32>
    %532 = vector.extract_strided_slice %520 {offsets = [0, 128], sizes = [2, 128], strides = [1, 1]} : vector<2x384xf32> to vector<2x128xf32>
    %533 = vector.extract_strided_slice %523 {offsets = [0, 128], sizes = [2, 128], strides = [1, 1]} : vector<2x384xf32> to vector<2x128xf32>
    %534 = arith.addf %532, %533 : vector<2x128xf32>
    %535 = arith.negf %534 : vector<2x128xf32>
    %536 = math.exp %535 : vector<2x128xf32>
    %cst_169 = arith.constant 1.000000e+00 : f32
    %537 = vector.broadcast %cst_169 : f32 to vector<2x128xf32>
    %538 = arith.addf %537, %536 : vector<2x128xf32>
    %539 = arith.divf %537, %538 : vector<2x128xf32>
    %540 = vector.extract_strided_slice %520 {offsets = [0, 256], sizes = [2, 128], strides = [1, 1]} : vector<2x384xf32> to vector<2x128xf32>
    %541 = vector.extract_strided_slice %523 {offsets = [0, 256], sizes = [2, 128], strides = [1, 1]} : vector<2x384xf32> to vector<2x128xf32>
    %542 = arith.mulf %531, %541 : vector<2x128xf32>
    %543 = arith.addf %540, %542 : vector<2x128xf32>
    %544 = math.tanh %543 : vector<2x128xf32>
    %cst_170 = arith.constant 1.000000e+00 : f32
    %545 = vector.broadcast %cst_170 : f32 to vector<2x128xf32>
    %546 = arith.subf %545, %539 : vector<2x128xf32>
    %547 = arith.mulf %546, %544 : vector<2x128xf32>
    %548 = arith.mulf %539, %510 : vector<2x128xf32>
    %549 = arith.addf %547, %548 : vector<2x128xf32>
    %550 = arith.extui %0 : i1 to i32
    %c0_i32_171 = arith.constant 0 : i32
    %551 = arith.cmpi ne, %550, %c0_i32_171 : i32
    scf.if %551 {
      %c0_202 = arith.constant 0 : index
      %c13_203 = arith.constant 13 : index
      %c0_204 = arith.constant 0 : index
      %634 = vector.load %arg5[%c0_202, %c13_203, %c0_204] : memref<2x16x128xf32, #tpu.memory_space<vmem>>, vector<2x1x128xf32>
      %635 = vector.shape_cast %634 : vector<2x1x128xf32> to vector<2x128xf32>
      %636 = vector.shape_cast %549 : vector<2x128xf32> to vector<2x1x128xf32>
      tpu.vector_store %arg5[%c0_202, %c13_203, %c0_204], %636 {strides = array<i32>} : memref<2x16x128xf32, #tpu.memory_space<vmem>>, vector<2x1x128xf32>,
    } else {
    }
    %true_172 = arith.constant true
    %552 = arith.xori %0, %true_172 : i1
    %553 = arith.extui %552 : i1 to i32
    %c0_i32_173 = arith.constant 0 : i32
    %554 = arith.cmpi ne, %553, %c0_i32_173 : i32
    scf.if %554 {
      %c0_202 = arith.constant 0 : index
      %c2_203 = arith.constant 2 : index
      %c0_204 = arith.constant 0 : index
      %634 = vector.load %arg5[%c0_202, %c2_203, %c0_204] : memref<2x16x128xf32, #tpu.memory_space<vmem>>, vector<2x1x128xf32>
      %635 = vector.shape_cast %634 : vector<2x1x128xf32> to vector<2x128xf32>
      %636 = vector.shape_cast %549 : vector<2x128xf32> to vector<2x1x128xf32>
      tpu.vector_store %arg5[%c0_202, %c2_203, %c0_204], %636 {strides = array<i32>} : memref<2x16x128xf32, #tpu.memory_space<vmem>>, vector<2x1x128xf32>,
    } else {
    }
    %c0_174 = arith.constant 0 : index
    %c14_175 = arith.constant 14 : index
    %c0_176 = arith.constant 0 : index
    %555 = vector.load %arg2[%c0_174, %c14_175, %c0_176] : memref<2x16x384xf32, #tpu.memory_space<vmem>>, vector<2x1x384xf32>
    %556 = vector.shape_cast %555 : vector<2x1x384xf32> to vector<2x384xf32>
    %c0_177 = arith.constant 0 : index
    %c1_178 = arith.constant 1 : index
    %c0_179 = arith.constant 0 : index
    %557 = vector.load %arg2[%c0_177, %c1_178, %c0_179] : memref<2x16x384xf32, #tpu.memory_space<vmem>>, vector<2x1x384xf32>
    %558 = vector.shape_cast %557 : vector<2x1x384xf32> to vector<2x384xf32>
    %559 = arith.select %0, %556, %558 : vector<2x384xf32>
    %cst_180 = arith.constant dense<0.000000e+00> : vector<2x384xf32>
    %560 = tpu.matmul %549, %5, %cst_180 {dimension_numbers = #tpu.dot_dimension_numbers<[1], [0], [0], [1], [0, 0, 1, 1], [], []>} : vector<2x128xf32>, vector<128x384xf32>, vector<2x384xf32> -> vector<2x384xf32>
    %561 = vector.broadcast %7 : vector<1x384xf32> to vector<2x384xf32>
    %562 = arith.addf %560, %561 : vector<2x384xf32>
    %563 = vector.extract_strided_slice %559 {offsets = [0, 0], sizes = [2, 128], strides = [1, 1]} : vector<2x384xf32> to vector<2x128xf32>
    %564 = vector.extract_strided_slice %562 {offsets = [0, 0], sizes = [2, 128], strides = [1, 1]} : vector<2x384xf32> to vector<2x128xf32>
    %565 = arith.addf %563, %564 : vector<2x128xf32>
    %566 = arith.negf %565 : vector<2x128xf32>
    %567 = math.exp %566 : vector<2x128xf32>
    %cst_181 = arith.constant 1.000000e+00 : f32
    %568 = vector.broadcast %cst_181 : f32 to vector<2x128xf32>
    %569 = arith.addf %568, %567 : vector<2x128xf32>
    %570 = arith.divf %568, %569 : vector<2x128xf32>
    %571 = vector.extract_strided_slice %559 {offsets = [0, 128], sizes = [2, 128], strides = [1, 1]} : vector<2x384xf32> to vector<2x128xf32>
    %572 = vector.extract_strided_slice %562 {offsets = [0, 128], sizes = [2, 128], strides = [1, 1]} : vector<2x384xf32> to vector<2x128xf32>
    %573 = arith.addf %571, %572 : vector<2x128xf32>
    %574 = arith.negf %573 : vector<2x128xf32>
    %575 = math.exp %574 : vector<2x128xf32>
    %cst_182 = arith.constant 1.000000e+00 : f32
    %576 = vector.broadcast %cst_182 : f32 to vector<2x128xf32>
    %577 = arith.addf %576, %575 : vector<2x128xf32>
    %578 = arith.divf %576, %577 : vector<2x128xf32>
    %579 = vector.extract_strided_slice %559 {offsets = [0, 256], sizes = [2, 128], strides = [1, 1]} : vector<2x384xf32> to vector<2x128xf32>
    %580 = vector.extract_strided_slice %562 {offsets = [0, 256], sizes = [2, 128], strides = [1, 1]} : vector<2x384xf32> to vector<2x128xf32>
    %581 = arith.mulf %570, %580 : vector<2x128xf32>
    %582 = arith.addf %579, %581 : vector<2x128xf32>
    %583 = math.tanh %582 : vector<2x128xf32>
    %cst_183 = arith.constant 1.000000e+00 : f32
    %584 = vector.broadcast %cst_183 : f32 to vector<2x128xf32>
    %585 = arith.subf %584, %578 : vector<2x128xf32>
    %586 = arith.mulf %585, %583 : vector<2x128xf32>
    %587 = arith.mulf %578, %549 : vector<2x128xf32>
    %588 = arith.addf %586, %587 : vector<2x128xf32>
    %589 = arith.extui %0 : i1 to i32
    %c0_i32_184 = arith.constant 0 : i32
    %590 = arith.cmpi ne, %589, %c0_i32_184 : i32
    scf.if %590 {
      %c0_202 = arith.constant 0 : index
      %c14_203 = arith.constant 14 : index
      %c0_204 = arith.constant 0 : index
      %634 = vector.load %arg5[%c0_202, %c14_203, %c0_204] : memref<2x16x128xf32, #tpu.memory_space<vmem>>, vector<2x1x128xf32>
      %635 = vector.shape_cast %634 : vector<2x1x128xf32> to vector<2x128xf32>
      %636 = vector.shape_cast %588 : vector<2x128xf32> to vector<2x1x128xf32>
      tpu.vector_store %arg5[%c0_202, %c14_203, %c0_204], %636 {strides = array<i32>} : memref<2x16x128xf32, #tpu.memory_space<vmem>>, vector<2x1x128xf32>,
    } else {
    }
    %true_185 = arith.constant true
    %591 = arith.xori %0, %true_185 : i1
    %592 = arith.extui %591 : i1 to i32
    %c0_i32_186 = arith.constant 0 : i32
    %593 = arith.cmpi ne, %592, %c0_i32_186 : i32
    scf.if %593 {
      %c0_202 = arith.constant 0 : index
      %c1_203 = arith.constant 1 : index
      %c0_204 = arith.constant 0 : index
      %634 = vector.load %arg5[%c0_202, %c1_203, %c0_204] : memref<2x16x128xf32, #tpu.memory_space<vmem>>, vector<2x1x128xf32>
      %635 = vector.shape_cast %634 : vector<2x1x128xf32> to vector<2x128xf32>
      %636 = vector.shape_cast %588 : vector<2x128xf32> to vector<2x1x128xf32>
      tpu.vector_store %arg5[%c0_202, %c1_203, %c0_204], %636 {strides = array<i32>} : memref<2x16x128xf32, #tpu.memory_space<vmem>>, vector<2x1x128xf32>,
    } else {
    }
    %c0_187 = arith.constant 0 : index
    %c15_188 = arith.constant 15 : index
    %c0_189 = arith.constant 0 : index
    %594 = vector.load %arg2[%c0_187, %c15_188, %c0_189] : memref<2x16x384xf32, #tpu.memory_space<vmem>>, vector<2x1x384xf32>
    %595 = vector.shape_cast %594 : vector<2x1x384xf32> to vector<2x384xf32>
    %c0_190 = arith.constant 0 : index
    %c0_191 = arith.constant 0 : index
    %c0_192 = arith.constant 0 : index
    %596 = vector.load %arg2[%c0_190, %c0_191, %c0_192] : memref<2x16x384xf32, #tpu.memory_space<vmem>>, vector<2x1x384xf32>
    %597 = vector.shape_cast %596 : vector<2x1x384xf32> to vector<2x384xf32>
    %598 = arith.select %0, %595, %597 : vector<2x384xf32>
    %cst_193 = arith.constant dense<0.000000e+00> : vector<2x384xf32>
    %599 = tpu.matmul %588, %5, %cst_193 {dimension_numbers = #tpu.dot_dimension_numbers<[1], [0], [0], [1], [0, 0, 1, 1], [], []>} : vector<2x128xf32>, vector<128x384xf32>, vector<2x384xf32> -> vector<2x384xf32>
    %600 = vector.broadcast %7 : vector<1x384xf32> to vector<2x384xf32>
    %601 = arith.addf %599, %600 : vector<2x384xf32>
    %602 = vector.extract_strided_slice %598 {offsets = [0, 0], sizes = [2, 128], strides = [1, 1]} : vector<2x384xf32> to vector<2x128xf32>
    %603 = vector.extract_strided_slice %601 {offsets = [0, 0], sizes = [2, 128], strides = [1, 1]} : vector<2x384xf32> to vector<2x128xf32>
    %604 = arith.addf %602, %603 : vector<2x128xf32>
    %605 = arith.negf %604 : vector<2x128xf32>
    %606 = math.exp %605 : vector<2x128xf32>
    %cst_194 = arith.constant 1.000000e+00 : f32
    %607 = vector.broadcast %cst_194 : f32 to vector<2x128xf32>
    %608 = arith.addf %607, %606 : vector<2x128xf32>
    %609 = arith.divf %607, %608 : vector<2x128xf32>
    %610 = vector.extract_strided_slice %598 {offsets = [0, 128], sizes = [2, 128], strides = [1, 1]} : vector<2x384xf32> to vector<2x128xf32>
    %611 = vector.extract_strided_slice %601 {offsets = [0, 128], sizes = [2, 128], strides = [1, 1]} : vector<2x384xf32> to vector<2x128xf32>
    %612 = arith.addf %610, %611 : vector<2x128xf32>
    %613 = arith.negf %612 : vector<2x128xf32>
    %614 = math.exp %613 : vector<2x128xf32>
    %cst_195 = arith.constant 1.000000e+00 : f32
    %615 = vector.broadcast %cst_195 : f32 to vector<2x128xf32>
    %616 = arith.addf %615, %614 : vector<2x128xf32>
    %617 = arith.divf %615, %616 : vector<2x128xf32>
    %618 = vector.extract_strided_slice %598 {offsets = [0, 256], sizes = [2, 128], strides = [1, 1]} : vector<2x384xf32> to vector<2x128xf32>
    %619 = vector.extract_strided_slice %601 {offsets = [0, 256], sizes = [2, 128], strides = [1, 1]} : vector<2x384xf32> to vector<2x128xf32>
    %620 = arith.mulf %609, %619 : vector<2x128xf32>
    %621 = arith.addf %618, %620 : vector<2x128xf32>
    %622 = math.tanh %621 : vector<2x128xf32>
    %cst_196 = arith.constant 1.000000e+00 : f32
    %623 = vector.broadcast %cst_196 : f32 to vector<2x128xf32>
    %624 = arith.subf %623, %617 : vector<2x128xf32>
    %625 = arith.mulf %624, %622 : vector<2x128xf32>
    %626 = arith.mulf %617, %588 : vector<2x128xf32>
    %627 = arith.addf %625, %626 : vector<2x128xf32>
    %628 = arith.extui %0 : i1 to i32
    %c0_i32_197 = arith.constant 0 : i32
    %629 = arith.cmpi ne, %628, %c0_i32_197 : i32
    scf.if %629 {
      %c0_202 = arith.constant 0 : index
      %c15_203 = arith.constant 15 : index
      %c0_204 = arith.constant 0 : index
      %634 = vector.load %arg5[%c0_202, %c15_203, %c0_204] : memref<2x16x128xf32, #tpu.memory_space<vmem>>, vector<2x1x128xf32>
      %635 = vector.shape_cast %634 : vector<2x1x128xf32> to vector<2x128xf32>
      %636 = vector.shape_cast %627 : vector<2x128xf32> to vector<2x1x128xf32>
      tpu.vector_store %arg5[%c0_202, %c15_203, %c0_204], %636 {strides = array<i32>} : memref<2x16x128xf32, #tpu.memory_space<vmem>>, vector<2x1x128xf32>,
    } else {
    }
    %true_198 = arith.constant true
    %630 = arith.xori %0, %true_198 : i1
    %631 = arith.extui %630 : i1 to i32
    %c0_i32_199 = arith.constant 0 : i32
    %632 = arith.cmpi ne, %631, %c0_i32_199 : i32
    scf.if %632 {
      %c0_202 = arith.constant 0 : index
      %c0_203 = arith.constant 0 : index
      %c0_204 = arith.constant 0 : index
      %634 = vector.load %arg5[%c0_202, %c0_203, %c0_204] : memref<2x16x128xf32, #tpu.memory_space<vmem>>, vector<2x1x128xf32>
      %635 = vector.shape_cast %634 : vector<2x1x128xf32> to vector<2x128xf32>
      %636 = vector.shape_cast %627 : vector<2x128xf32> to vector<2x1x128xf32>
      tpu.vector_store %arg5[%c0_202, %c0_203, %c0_204], %636 {strides = array<i32>} : memref<2x16x128xf32, #tpu.memory_space<vmem>>, vector<2x1x128xf32>,
    } else {
    }
    %c0_200 = arith.constant 0 : index
    %c0_201 = arith.constant 0 : index
    %633 = vector.load %arg6[%c0_200, %c0_201] : memref<2x128xf32, #tpu.memory_space<vmem>>, vector<2x128xf32>
    tpu.vector_store %arg6[%c0_200, %c0_201], %627 {strides = array<i32>} : memref<2x128xf32, #tpu.memory_space<vmem>>, vector<2x128xf32>,
    return
  }
  func.func @transform_0(%arg0: i32, %arg1: i32) -> (i32, i32, i32) {
    %c2_i32 = arith.constant 2 : i32
    %0 = arith.muli %c2_i32, %arg1 : i32
    %c1_i32 = arith.constant 1 : i32
    %1 = arith.subi %c1_i32, %0 : i32
    %2 = arith.muli %arg0, %1 : i32
    %3 = arith.addi %arg1, %2 : i32
    %c0_i32 = arith.constant 0 : i32
    %c0_i32_0 = arith.constant 0 : i32
    return %c0_i32, %3, %arg0 : i32, i32, i32
  }
  func.func @transform_1(%arg0: i32, %arg1: i32) -> (i32, i32, i32) {
    %c0_i32 = arith.constant 0 : i32
    %c0_i32_0 = arith.constant 0 : i32
    %c0_i32_1 = arith.constant 0 : i32
    return %arg0, %c0_i32, %c0_i32_0 : i32, i32, i32
  }
  func.func @transform_2(%arg0: i32, %arg1: i32) -> (i32, i32, i32) {
    %c0_i32 = arith.constant 0 : i32
    %c0_i32_0 = arith.constant 0 : i32
    %c0_i32_1 = arith.constant 0 : i32
    return %arg0, %c0_i32, %c0_i32_0 : i32, i32, i32
  }
  func.func @transform_3(%arg0: i32, %arg1: i32) -> (i32, i32, i32) {
    %c2_i32 = arith.constant 2 : i32
    %0 = arith.muli %c2_i32, %arg1 : i32
    %c1_i32 = arith.constant 1 : i32
    %1 = arith.subi %c1_i32, %0 : i32
    %2 = arith.muli %arg0, %1 : i32
    %3 = arith.addi %arg1, %2 : i32
    %c0_i32 = arith.constant 0 : i32
    %c0_i32_0 = arith.constant 0 : i32
    return %c0_i32, %3, %arg0 : i32, i32, i32
  }
}

module attributes {stable_mosaic.version = 11 : i64} {
  func.func @_matmul_bias_kernel(%arg0: i32, %arg1: memref<64x256xf32, #tpu.memory_space<vmem>>, %arg2: memref<256x768xf32, #tpu.memory_space<vmem>>, %arg3: memref<1x768xf32, #tpu.memory_space<vmem>>, %arg4: memref<64x768xf32, #tpu.memory_space<vmem>>) attributes {dimension_semantics = [#tpu.dimension_semantics<parallel>], iteration_bounds = array<i64: 1>, scalar_prefetch = 0 : i64, scratch_operands = 0 : i64, tpu.core_type = #tpu.core_type<tc>, window_params = [{transform_indices = @transform_0, window_bounds = array<i64: 64, 256>}, {pipeline_mode = #tpu.pipeline_mode<synchronous>, transform_indices = @transform_1, window_bounds = array<i64: 256, 768>}, {pipeline_mode = #tpu.pipeline_mode<synchronous>, transform_indices = @transform_2, window_bounds = array<i64: 1, 768>}, {transform_indices = @transform_3, window_bounds = array<i64: 64, 768>}]} {
    %c0 = arith.constant 0 : index
    %c0_0 = arith.constant 0 : index
    %0 = vector.load %arg1[%c0, %c0_0] : memref<64x256xf32, #tpu.memory_space<vmem>>, vector<64x256xf32>
    %c0_1 = arith.constant 0 : index
    %c0_2 = arith.constant 0 : index
    %1 = vector.load %arg2[%c0_1, %c0_2] : memref<256x768xf32, #tpu.memory_space<vmem>>, vector<256x768xf32>
    %cst = arith.constant dense<0.000000e+00> : vector<64x768xf32>
    %2 = tpu.matmul %0, %1, %cst {dimension_numbers = #tpu.dot_dimension_numbers<[1], [0], [0], [1], [0, 0, 1, 1], [], []>} : vector<64x256xf32>, vector<256x768xf32>, vector<64x768xf32> -> vector<64x768xf32>
    %c0_3 = arith.constant 0 : index
    %c0_4 = arith.constant 0 : index
    %3 = vector.load %arg3[%c0_3, %c0_4] : memref<1x768xf32, #tpu.memory_space<vmem>>, vector<1x768xf32>
    %4 = vector.broadcast %3 : vector<1x768xf32> to vector<64x768xf32>
    %5 = arith.addf %2, %4 : vector<64x768xf32>
    %c0_5 = arith.constant 0 : index
    %c0_6 = arith.constant 0 : index
    %6 = vector.load %arg4[%c0_5, %c0_6] : memref<64x768xf32, #tpu.memory_space<vmem>>, vector<64x768xf32>
    tpu.vector_store %arg4[%c0_5, %c0_6], %5 {strides = array<i32>} : memref<64x768xf32, #tpu.memory_space<vmem>>, vector<64x768xf32>,
    return
  }
  func.func @transform_0(%arg0: i32) -> (i32, i32) {
    %c0_i32 = arith.constant 0 : i32
    %c0_i32_0 = arith.constant 0 : i32
    return %arg0, %c0_i32 : i32, i32
  }
  func.func @transform_1(%arg0: i32) -> (i32, i32) {
    %c0_i32 = arith.constant 0 : i32
    %c0_i32_0 = arith.constant 0 : i32
    %c0_i32_1 = arith.constant 0 : i32
    return %c0_i32, %c0_i32_0 : i32, i32
  }
  func.func @transform_2(%arg0: i32) -> (i32, i32) {
    %c0_i32 = arith.constant 0 : i32
    %c0_i32_0 = arith.constant 0 : i32
    %c0_i32_1 = arith.constant 0 : i32
    return %c0_i32, %c0_i32_0 : i32, i32
  }
  func.func @transform_3(%arg0: i32) -> (i32, i32) {
    %c0_i32 = arith.constant 0 : i32
    %c0_i32_0 = arith.constant 0 : i32
    return %arg0, %c0_i32 : i32, i32
  }
}

module attributes {stable_mosaic.version = 11 : i64} {
  func.func @_linear_logsoftmax_kernel(%arg0: i32, %arg1: memref<64x256xf32, #tpu.memory_space<vmem>>, %arg2: memref<256x128xf32, #tpu.memory_space<vmem>>, %arg3: memref<1x128xf32, #tpu.memory_space<vmem>>, %arg4: memref<64x128xf32, #tpu.memory_space<vmem>>) attributes {dimension_semantics = [#tpu.dimension_semantics<parallel>], iteration_bounds = array<i64: 1>, scalar_prefetch = 0 : i64, scratch_operands = 0 : i64, tpu.core_type = #tpu.core_type<tc>, window_params = [{transform_indices = @transform_0, window_bounds = array<i64: 64, 256>}, {pipeline_mode = #tpu.pipeline_mode<synchronous>, transform_indices = @transform_1, window_bounds = array<i64: 256, 128>}, {pipeline_mode = #tpu.pipeline_mode<synchronous>, transform_indices = @transform_2, window_bounds = array<i64: 1, 128>}, {transform_indices = @transform_3, window_bounds = array<i64: 64, 128>}]} {
    %c0 = arith.constant 0 : index
    %c0_0 = arith.constant 0 : index
    %0 = vector.load %arg1[%c0, %c0_0] : memref<64x256xf32, #tpu.memory_space<vmem>>, vector<64x256xf32>
    %c0_1 = arith.constant 0 : index
    %c0_2 = arith.constant 0 : index
    %1 = vector.load %arg2[%c0_1, %c0_2] : memref<256x128xf32, #tpu.memory_space<vmem>>, vector<256x128xf32>
    %cst = arith.constant dense<0.000000e+00> : vector<64x128xf32>
    %2 = tpu.matmul %0, %1, %cst {dimension_numbers = #tpu.dot_dimension_numbers<[1], [0], [0], [1], [0, 0, 1, 1], [], []>} : vector<64x256xf32>, vector<256x128xf32>, vector<64x128xf32> -> vector<64x128xf32>
    %c0_3 = arith.constant 0 : index
    %c0_4 = arith.constant 0 : index
    %3 = vector.load %arg3[%c0_3, %c0_4] : memref<1x128xf32, #tpu.memory_space<vmem>>, vector<1x128xf32>
    %4 = vector.broadcast %3 : vector<1x128xf32> to vector<64x128xf32>
    %5 = arith.addf %2, %4 : vector<64x128xf32>
    %cst_5 = arith.constant dense<0xFF800000> : vector<64xf32>
    %6 = vector.multi_reduction <maximumf>, %5, %cst_5 [1] : vector<64x128xf32> to vector<64xf32>
    %7 = vector.shape_cast %6 : vector<64xf32> to vector<64x1xf32>
    %8 = vector.broadcast %7 : vector<64x1xf32> to vector<64x128xf32>
    %9 = arith.subf %5, %8 : vector<64x128xf32>
    %10 = math.exp %9 : vector<64x128xf32>
    %cst_6 = arith.constant dense<0.000000e+00> : vector<64xf32>
    %11 = vector.multi_reduction <add>, %10, %cst_6 [1] : vector<64x128xf32> to vector<64xf32>
    %12 = vector.shape_cast %11 : vector<64xf32> to vector<64x1xf32>
    %13 = math.log %12 : vector<64x1xf32>
    %14 = arith.addf %13, %7 : vector<64x1xf32>
    %15 = vector.broadcast %14 : vector<64x1xf32> to vector<64x128xf32>
    %16 = arith.subf %5, %15 : vector<64x128xf32>
    %c0_7 = arith.constant 0 : index
    %c0_8 = arith.constant 0 : index
    %17 = vector.load %arg4[%c0_7, %c0_8] : memref<64x128xf32, #tpu.memory_space<vmem>>, vector<64x128xf32>
    tpu.vector_store %arg4[%c0_7, %c0_8], %16 {strides = array<i32>} : memref<64x128xf32, #tpu.memory_space<vmem>>, vector<64x128xf32>,
    return
  }
  func.func @transform_0(%arg0: i32) -> (i32, i32) {
    %c0_i32 = arith.constant 0 : i32
    %c0_i32_0 = arith.constant 0 : i32
    return %arg0, %c0_i32 : i32, i32
  }
  func.func @transform_1(%arg0: i32) -> (i32, i32) {
    %c0_i32 = arith.constant 0 : i32
    %c0_i32_0 = arith.constant 0 : i32
    %c0_i32_1 = arith.constant 0 : i32
    return %c0_i32, %c0_i32_0 : i32, i32
  }
  func.func @transform_2(%arg0: i32) -> (i32, i32) {
    %c0_i32 = arith.constant 0 : i32
    %c0_i32_0 = arith.constant 0 : i32
    %c0_i32_1 = arith.constant 0 : i32
    return %c0_i32, %c0_i32_0 : i32, i32
  }
  func.func @transform_3(%arg0: i32) -> (i32, i32) {
    %c0_i32 = arith.constant 0 : i32
    %c0_i32_0 = arith.constant 0 : i32
    return %arg0, %c0_i32 : i32, i32
  }
}

</mosaic_0001>

<bundles_post_ra>
// kernel: morse_net_forward.10
= control target key start
LH: loop header
LB: loop body
LE: loop exit
PB: predicated region body
PF: predicated region fallthrough
CT: control target
= control target key end

     0   :  { %vm47_vm0 = vcmask 64512   ;;  %vm576_vm1 = vcmask 261120   ;;  %s1059_s2 = inlined_call_operand.vmem [shape: f32[8,32], index: 2, kind: input, shape index: {}]   ;;  %s1060_s0 = inlined_call_operand.vmem [shape: f32[128,8], index: 0, kind: input, shape index: {}]   ;;  %s1061_s1 = inlined_call_operand.vmem [shape: f32[128,8], index: 1, kind: input, shape index: {}]   ;;  %s1062_s3 = inlined_call_operand.vmem [shape: f32[1,32], index: 3, kind: input, shape index: {}]   ;;  %s1063_s4 = inlined_call_operand.vmem [shape: f32[1,32], index: 4, kind: input, shape index: {}]   ;;  %s1064_s5 = inlined_call_operand.vmem [shape: f32[1,32], index: 5, kind: input, shape index: {}]   ;;  %s1065_s6 = inlined_call_operand.vmem [shape: f32[128,32], index: 6, kind: output, shape index: {}]  }
   0x1   :  { %v39_v0 = vld [vmem:[%s1059_s2] sm:$0xff]  ;;  %v24_v3 = vld [vmem:[%s1060_s0 + $0x8] sm:$0xff]  ;;  %v25_v5 = vld [vmem:[%s1060_s0 + $0x10] sm:$0xff] }
   0x2   :  { %v23_v1 = vld [vmem:[%s1060_s0] sm:$0xff]  ;;  %666 = vmatprep.subr.mxu0 %v39_v0  ;;  %692 = vmatprep.subr.mxu1 %v39_v0  ;;  %v258_v4 = vld [vmem:[%s1061_s1 + $0x8] sm:$0xff]  ;;  %v259_v6 = vld [vmem:[%s1061_s1 + $0x10] sm:$0xff] }
   0x3   :  { %v257_v2 = vld [vmem:[%s1061_s1] sm:$0xff]  ;;  %667 = vmatpush3.msra.mxu0 %v39_v0  ;;  %668 = vmatprep.mubr.msk.f32.mxu0 %vm47_vm0, %v23_v1  ;;  %v26_v7 = vld [vmem:[%s1060_s0 + $0x18] sm:$0xff]  ;;  %v28_v11 = vld [vmem:[%s1060_s0 + $0x28] sm:$0xff] }
   0x4   :  { %693 = vmatpush3.msra.mxu1 %v39_v0  ;;  %694 = vmatprep.mubr.msk.f32.mxu1 %vm47_vm0, %v257_v2  ;;  %v260_v8 = vld [vmem:[%s1061_s1 + $0x18] sm:$0xff]  ;;  %v27_v9 = vld [vmem:[%s1060_s0 + $0x20] sm:$0xff]  ;;  %v262_v12 = vld [vmem:[%s1061_s1 + $0x28] sm:$0xff] }
   0x5   :  { %669 = vmatmul.mubr.msk.f32.vlgmr.msra.gmra.mxu0 %vm47_vm0, %v24_v3  ;;  %695 = vmatmul.mubr.msk.f32.vlgmr.msra.gmra.mxu1 %vm47_vm0, %v258_v4  ;;  %v261_v10 = vld [vmem:[%s1061_s1 + $0x20] sm:$0xff]  ;;  %v29_v13 = vld [vmem:[%s1060_s0 + $0x30] sm:$0xff]  ;;  %v30_v15 = vld [vmem:[%s1060_s0 + $0x38] sm:$0xff] }
   0x6   :  { %671 = vmatprep.mubr.msk.f32.mxu0 %vm47_vm0, %v25_v5  ;;  %697 = vmatprep.mubr.msk.f32.mxu1 %vm47_vm0, %v259_v6  ;;  %v263_v14 = vld [vmem:[%s1061_s1 + $0x30] sm:$0xff]  ;;  %v264_v16 = vld [vmem:[%s1061_s1 + $0x38] sm:$0xff]  ;;  %v31_v17 = vld [vmem:[%s1060_s0 + $0x40] sm:$0xff] }
   0x7   :  { %v265_v18 = vld [vmem:[%s1061_s1 + $0x40] sm:$0xff]  ;;  %v32_v19 = vld [vmem:[%s1060_s0 + $0x48] sm:$0xff]  ;;  %v33_v21 = vld [vmem:[%s1060_s0 + $0x50] sm:$0xff] }
   0x8   :  { %v266_v20 = vld [vmem:[%s1061_s1 + $0x48] sm:$0xff]  ;;  %v267_v22 = vld [vmem:[%s1061_s1 + $0x50] sm:$0xff]  ;;  %v34_v23 = vld [vmem:[%s1060_s0 + $0x58] sm:$0xff] }
   0x9   :  { %672 = vmatmul.mubr.msk.f32.gmra.mxu0 %vm47_vm0, %v26_v7  ;;  %698 = vmatmul.mubr.msk.f32.gmra.mxu1 %vm47_vm0, %v260_v8  ;;  %v268_v24 = vld [vmem:[%s1061_s1 + $0x58] sm:$0xff]  ;;  %v35_v25 = vld [vmem:[%s1060_s0 + $0x60] sm:$0xff]  ;;  %v36_v27 = vld [vmem:[%s1060_s0 + $0x68] sm:$0xff] }
   0xa   :  { %674 = vmatprep.mubr.msk.f32.mxu0 %vm47_vm0, %v27_v9  ;;  %700 = vmatprep.mubr.msk.f32.mxu1 %vm47_vm0, %v261_v10  ;;  %v269_v26 = vld [vmem:[%s1061_s1 + $0x60] sm:$0xff]  ;;  %v270_v28 = vld [vmem:[%s1061_s1 + $0x68] sm:$0xff]  ;;  %v37_v29 = vld [vmem:[%s1060_s0 + $0x70] sm:$0xff] }
   0xb   :  { %v271_v30 = vld [vmem:[%s1061_s1 + $0x70] sm:$0xff]  ;;  %v38_v31 = vld [vmem:[%s1060_s0 + $0x78] sm:$0xff]  ;;  %v887_v33 = vld [vmem:[%s1062_s3] ss:$0 sm:$0xff] }
   0xc   :  { %v272_v32 = vld [vmem:[%s1061_s1 + $0x78] sm:$0xff]  ;;  %v894_v38 = vld [vmem:[%s1063_s4] ss:$0 sm:$0xff] }
   0xd   :  { %675 = vmatmul.mubr.msk.f32.gmra.mxu0 %vm47_vm0, %v28_v11  ;;  %701 = vmatmul.mubr.msk.f32.gmra.mxu1 %vm47_vm0, %v262_v12  ;;  %v901_v45 = vld [vmem:[%s1064_s5] ss:$0 sm:$0xff] }
   0xe   :  { %677 = vmatprep.mubr.msk.f32.mxu0 %vm47_vm0, %v29_v13  ;;  %703 = vmatprep.mubr.msk.f32.mxu1 %vm47_vm0, %v263_v14 }
  0x11   :  { %678 = vmatmul.mubr.msk.f32.gmra.mxu0 %vm47_vm0, %v30_v15  ;;  %704 = vmatmul.mubr.msk.f32.gmra.mxu1 %vm47_vm0, %v264_v16 }
  0x12   :  { %680 = vmatprep.mubr.msk.f32.mxu0 %vm47_vm0, %v31_v17  ;;  %706 = vmatprep.mubr.msk.f32.mxu1 %vm47_vm0, %v265_v18 }
  0x15   :  { %681 = vmatmul.mubr.msk.f32.gmra.mxu0 %vm47_vm0, %v32_v19  ;;  %707 = vmatmul.mubr.msk.f32.gmra.mxu1 %vm47_vm0, %v266_v20 }
  0x16   :  { %683 = vmatprep.mubr.msk.f32.mxu0 %vm47_vm0, %v33_v21  ;;  %709 = vmatprep.mubr.msk.f32.mxu1 %vm47_vm0, %v267_v22 }
  0x19   :  { %684 = vmatmul.mubr.msk.f32.gmra.mxu0 %vm47_vm0, %v34_v23  ;;  %710 = vmatmul.mubr.msk.f32.gmra.mxu1 %vm47_vm0, %v268_v24 }
  0x1a   :  { %686 = vmatprep.mubr.msk.f32.mxu0 %vm47_vm0, %v35_v25  ;;  %712 = vmatprep.mubr.msk.f32.mxu1 %vm47_vm0, %v269_v26 }
  0x1d   :  { %687 = vmatmul.mubr.msk.f32.gmra.mxu0 %vm47_vm0, %v36_v27  ;;  %713 = vmatmul.mubr.msk.f32.gmra.mxu1 %vm47_vm0, %v270_v28 }
  0x1e   :  { %689 = vmatprep.mubr.msk.f32.mxu0 %vm47_vm0, %v37_v29  ;;  %715 = vmatprep.mubr.msk.f32.mxu1 %vm47_vm0, %v271_v30 }
  0x21   :  { %690 = vmatmul.mubr.msk.f32.gmra.mxu0 %vm47_vm0, %v38_v31  ;;  %716 = vmatmul.mubr.msk.f32.gmra.mxu1 %vm47_vm0, %v272_v32 }
  0xc5   :  { %v670_v34 = vpop.f32.mrf.mxu0  ;;  %v696_v35 = vpop.f32.mrf.mxu1 }
  0xc6   :  { %v168_v36 = vadd.f32 %v670_v34, %v887_v33  ;;  %v393_v37 = vadd.f32 %v696_v35, %v887_v33 }
  0xc7   :  { %v162_v39 = vpop.f32.mrf.mxu0  ;;  %v387_v40 = vpop.f32.mrf.mxu1 }
  0xc8   :  { %v242_v41 = vmax.f32 %v168_v36, 0.0  ;;  %v467_v42 = vmax.f32 %v393_v37, 0.0  ;;  %v163_v43 = vadd.f32 %v887_v33, %v162_v39  ;;  %v388_v44 = vadd.f32 %v887_v33, %v387_v40 }
  0xc9   :  { %v673_v46 = vpop.f32.mrf.mxu0  ;;  %v699_v47 = vpop.f32.mrf.mxu1 }
  0xca   :  { %v490_v48 = vmul.f32 %v894_v38, %v242_v41  ;;  %v529_v49 = vmul.f32 %v894_v38, %v467_v42  ;;  %v241_v50 = vmax.f32 %v163_v43, 0.0  ;;  %v466_v51 = vmax.f32 %v388_v44, 0.0 }
  0xcb   :  { %v178_v52 = vadd.f32 %v673_v46, %v887_v33  ;;  %v403_v53 = vadd.f32 %v699_v47, %v887_v33  ;;  %v172_v54 = vpop.f32.mrf.mxu0  ;;  %v397_v55 = vpop.f32.mrf.mxu1 }
  0xcc   :  { %v513_v56 = vadd.f32 %v901_v45, %v490_v48  ;;  %v545_v57 = vadd.f32 %v901_v45, %v529_v49  ;;  %v489_v58 = vmul.f32 %v894_v38, %v241_v50  ;;  %v528_v59 = vmul.f32 %v894_v38, %v466_v51 }
  0xcd   :  { %v244_v60 = vmax.f32 %v178_v52, 0.0  ;;  %v469_v61 = vmax.f32 %v403_v53, 0.0  ;;  %v173_v62 = vadd.f32 %v887_v33, %v172_v54  ;;  %v398_v63 = vadd.f32 %v887_v33, %v397_v55  ;;  %v676_v0 = vpop.f32.mrf.mxu0  ;;  %v702_v1 = vpop.f32.mrf.mxu1 }
  0xce   :  { %v561_v2 = vmax.f32 %v513_v56, %v545_v57  ;;  %v512_v3 = vadd.f32 %v901_v45, %v489_v58  ;;  %v544_v4 = vadd.f32 %v901_v45, %v528_v59  ;;  %v188_v5 = vadd.f32 %v676_v0, %v887_v33 }
  0xcf   :  { %v492_v6 = vmul.f32 %v894_v38, %v244_v60  ;;  %v531_v7 = vmul.f32 %v894_v38, %v469_v61  ;;  %v243_v8 = vmax.f32 %v173_v62, 0.0  ;;  %v468_v9 = vmax.f32 %v398_v63, 0.0  ;;  %v182_v10 = vpop.f32.mrf.mxu0  ;;  %v407_v11 = vpop.f32.mrf.mxu1 }
  0xd0   :  { %578 = vst.msk [vmem:[%s1065_s6 + $0x8] sm:$0xff] %vm576_vm1, %v561_v2  ;;  %v560_v12 = vmax.f32 %v512_v3, %v544_v4  ;;  %v246_v13 = vmax.f32 %v188_v5, 0.0  ;;  %v413_v14 = vadd.f32 %v702_v1, %v887_v33  ;;  %v183_v15 = vadd.f32 %v887_v33, %v182_v10 }
  0xd1   :  { %v515_v16 = vadd.f32 %v901_v45, %v492_v6  ;;  %v547_v17 = vadd.f32 %v901_v45, %v531_v7  ;;  %v491_v18 = vmul.f32 %v894_v38, %v243_v8  ;;  %v530_v19 = vmul.f32 %v894_v38, %v468_v9  ;;  %v679_v20 = vpop.f32.mrf.mxu0  ;;  %v705_v21 = vpop.f32.mrf.mxu1 }
  0xd2   :  { %577 = vst.msk [vmem:[%s1065_s6] sm:$0xff] %vm576_vm1, %v560_v12  ;;  %v494_v22 = vmul.f32 %v894_v38, %v246_v13  ;;  %v471_v23 = vmax.f32 %v413_v14, 0.0  ;;  %v245_v24 = vmax.f32 %v183_v15, 0.0  ;;  %v408_v25 = vadd.f32 %v887_v33, %v407_v11 }
  0xd3   :  { %v563_v26 = vmax.f32 %v515_v16, %v547_v17  ;;  %v514_v27 = vadd.f32 %v901_v45, %v491_v18  ;;  %v546_v28 = vadd.f32 %v901_v45, %v530_v19  ;;  %v198_v29 = vadd.f32 %v679_v20, %v887_v33  ;;  %v192_v30 = vpop.f32.mrf.mxu0  ;;  %v417_v31 = vpop.f32.mrf.mxu1 }
  0xd4   :  { %v517_v32 = vadd.f32 %v901_v45, %v494_v22  ;;  %v533_v34 = vmul.f32 %v894_v38, %v471_v23  ;;  %v493_v35 = vmul.f32 %v894_v38, %v245_v24  ;;  %v470_v36 = vmax.f32 %v408_v25, 0.0 }
  0xd5   :  { %580 = vst.msk [vmem:[%s1065_s6 + $0x18] sm:$0xff] %vm576_vm1, %v563_v26  ;;  %v562_v37 = vmax.f32 %v514_v27, %v546_v28  ;;  %v248_v39 = vmax.f32 %v198_v29, 0.0  ;;  %v423_v40 = vadd.f32 %v705_v21, %v887_v33  ;;  %v193_v41 = vadd.f32 %v887_v33, %v192_v30  ;;  %v682_v42 = vpop.f32.mrf.mxu0  ;;  %v708_v43 = vpop.f32.mrf.mxu1 }
  0xd6   :  { %v549_v44 = vadd.f32 %v901_v45, %v533_v34  ;;  %v516_v46 = vadd.f32 %v901_v45, %v493_v35  ;;  %v532_v47 = vmul.f32 %v894_v38, %v470_v36  ;;  %v418_v48 = vadd.f32 %v887_v33, %v417_v31 }
  0xd7   :  { %579 = vst.msk [vmem:[%s1065_s6 + $0x10] sm:$0xff] %vm576_vm1, %v562_v37  ;;  %v496_v49 = vmul.f32 %v894_v38, %v248_v39  ;;  %v473_v50 = vmax.f32 %v423_v40, 0.0  ;;  %v247_v51 = vmax.f32 %v193_v41, 0.0  ;;  %v208_v52 = vadd.f32 %v682_v42, %v887_v33  ;;  %v202_v53 = vpop.f32.mrf.mxu0  ;;  %v427_v54 = vpop.f32.mrf.mxu1 }
  0xd8   :  { %v565_v55 = vmax.f32 %v517_v32, %v549_v44  ;;  %v548_v56 = vadd.f32 %v901_v45, %v532_v47  ;;  %v472_v57 = vmax.f32 %v418_v48, 0.0  ;;  %v433_v58 = vadd.f32 %v708_v43, %v887_v33 }
  0xd9   :  { %v519_v59 = vadd.f32 %v901_v45, %v496_v49  ;;  %v535_v60 = vmul.f32 %v894_v38, %v473_v50  ;;  %v495_v61 = vmul.f32 %v894_v38, %v247_v51  ;;  %v250_v62 = vmax.f32 %v208_v52, 0.0  ;;  %v685_v63 = vpop.f32.mrf.mxu0  ;;  %v711_v0 = vpop.f32.mrf.mxu1 }
  0xda   :  { %582 = vst.msk [vmem:[%s1065_s6 + $0x28] sm:$0xff] %vm576_vm1, %v565_v55  ;;  %v564_v1 = vmax.f32 %v516_v46, %v548_v56  ;;  %v534_v2 = vmul.f32 %v894_v38, %v472_v57  ;;  %v475_v3 = vmax.f32 %v433_v58, 0.0  ;;  %v203_v4 = vadd.f32 %v887_v33, %v202_v53 }
  0xdb   :  { %v551_v5 = vadd.f32 %v901_v45, %v535_v60  ;;  %v518_v6 = vadd.f32 %v901_v45, %v495_v61  ;;  %v498_v7 = vmul.f32 %v894_v38, %v250_v62  ;;  %v428_v8 = vadd.f32 %v887_v33, %v427_v54  ;;  %v212_v9 = vpop.f32.mrf.mxu0  ;;  %v437_v10 = vpop.f32.mrf.mxu1 }
  0xdc   :  { %581 = vst.msk [vmem:[%s1065_s6 + $0x20] sm:$0xff] %vm576_vm1, %v564_v1  ;;  %v550_v11 = vadd.f32 %v901_v45, %v534_v2  ;;  %v537_v12 = vmul.f32 %v894_v38, %v475_v3  ;;  %v249_v13 = vmax.f32 %v203_v4, 0.0  ;;  %v218_v14 = vadd.f32 %v685_v63, %v887_v33 }
  0xdd   :  { %v567_v15 = vmax.f32 %v519_v59, %v551_v5  ;;  %v521_v16 = vadd.f32 %v901_v45, %v498_v7  ;;  %v474_v17 = vmax.f32 %v428_v8, 0.0  ;;  %v443_v18 = vadd.f32 %v711_v0, %v887_v33  ;;  %v688_v19 = vpop.f32.mrf.mxu0  ;;  %v714_v20 = vpop.f32.mrf.mxu1 }
  0xde   :  { %v566_v21 = vmax.f32 %v518_v6, %v550_v11  ;;  %v553_v22 = vadd.f32 %v901_v45, %v537_v12  ;;  %v497_v23 = vmul.f32 %v894_v38, %v249_v13  ;;  %v252_v24 = vmax.f32 %v218_v14, 0.0 }
  0xdf   :  { %584 = vst.msk [vmem:[%s1065_s6 + $0x38] sm:$0xff] %vm576_vm1, %v567_v15  ;;  %v536_v25 = vmul.f32 %v894_v38, %v474_v17  ;;  %v477_v26 = vmax.f32 %v443_v18, 0.0  ;;  %v213_v27 = vadd.f32 %v887_v33, %v212_v9  ;;  %v438_v28 = vadd.f32 %v887_v33, %v437_v10  ;;  %v222_v29 = vpop.f32.mrf.mxu0  ;;  %v447_v30 = vpop.f32.mrf.mxu1 }
  0xe0   :  { %583 = vst.msk [vmem:[%s1065_s6 + $0x30] sm:$0xff] %vm576_vm1, %v566_v21  ;;  %v569_v31 = vmax.f32 %v521_v16, %v553_v22  ;;  %v520_v32 = vadd.f32 %v901_v45, %v497_v23  ;;  %v500_v34 = vmul.f32 %v894_v38, %v252_v24  ;;  %v228_v35 = vadd.f32 %v688_v19, %v887_v33 }
  0xe1   :  { %v552_v36 = vadd.f32 %v901_v45, %v536_v25  ;;  %v539_v37 = vmul.f32 %v894_v38, %v477_v26  ;;  %v251_v39 = vmax.f32 %v213_v27, 0.0  ;;  %v476_v40 = vmax.f32 %v438_v28, 0.0  ;;  %v691_v41 = vpop.f32.mrf.mxu0  ;;  %v717_v42 = vpop.f32.mrf.mxu1 }
  0xe2   :  { %586 = vst.msk [vmem:[%s1065_s6 + $0x48] sm:$0xff] %vm576_vm1, %v569_v31  ;;  %v523_v43 = vadd.f32 %v901_v45, %v500_v34  ;;  %v254_v44 = vmax.f32 %v228_v35, 0.0  ;;  %v453_v46 = vadd.f32 %v714_v20, %v887_v33  ;;  %v223_v47 = vadd.f32 %v887_v33, %v222_v29 }
  0xe3   :  { %v568_v48 = vmax.f32 %v520_v32, %v552_v36  ;;  %v555_v49 = vadd.f32 %v901_v45, %v539_v37  ;;  %v499_v50 = vmul.f32 %v894_v38, %v251_v39  ;;  %v538_v51 = vmul.f32 %v894_v38, %v476_v40  ;;  %v232_v56 = vpop.f32.mrf.mxu0  ;;  %v457_v61 = vpop.f32.mrf.mxu1 }
  0xe4   :  { %v502_v52 = vmul.f32 %v894_v38, %v254_v44  ;;  %v479_v53 = vmax.f32 %v453_v46, 0.0  ;;  %v253_v54 = vmax.f32 %v223_v47, 0.0  ;;  %v448_v55 = vadd.f32 %v887_v33, %v447_v30 }
  0xe5   :  { %585 = vst.msk [vmem:[%s1065_s6 + $0x40] sm:$0xff] %vm576_vm1, %v568_v48  ;;  %v571_v57 = vmax.f32 %v523_v43, %v555_v49  ;;  %v522_v58 = vadd.f32 %v901_v45, %v499_v50  ;;  %v554_v59 = vadd.f32 %v901_v45, %v538_v51  ;;  %v238_v60 = vadd.f32 %v691_v41, %v887_v33 }
  0xe6   :  { %v525_v62 = vadd.f32 %v901_v45, %v502_v52  ;;  %v541_v63 = vmul.f32 %v894_v38, %v479_v53  ;;  %v501_v0 = vmul.f32 %v894_v38, %v253_v54  ;;  %v478_v1 = vmax.f32 %v448_v55, 0.0 }
  0xe7   :  { %588 = vst.msk [vmem:[%s1065_s6 + $0x58] sm:$0xff] %vm576_vm1, %v571_v57  ;;  %v570_v2 = vmax.f32 %v522_v58, %v554_v59  ;;  %v256_v3 = vmax.f32 %v238_v60, 0.0  ;;  %v463_v4 = vadd.f32 %v717_v42, %v887_v33  ;;  %v233_v5 = vadd.f32 %v887_v33, %v232_v56 }
  0xe8   :  { %v557_v6 = vadd.f32 %v901_v45, %v541_v63  ;;  %v524_v7 = vadd.f32 %v901_v45, %v501_v0  ;;  %v540_v8 = vmul.f32 %v894_v38, %v478_v1  ;;  %v458_v9 = vadd.f32 %v887_v33, %v457_v61 }
  0xe9   :  { %587 = vst.msk [vmem:[%s1065_s6 + $0x50] sm:$0xff] %vm576_vm1, %v570_v2  ;;  %v504_v10 = vmul.f32 %v894_v38, %v256_v3  ;;  %v481_v11 = vmax.f32 %v463_v4, 0.0  ;;  %v255_v12 = vmax.f32 %v233_v5, 0.0 }
  0xea   :  { %v573_v13 = vmax.f32 %v525_v62, %v557_v6  ;;  %v556_v14 = vadd.f32 %v901_v45, %v540_v8  ;;  %v480_v15 = vmax.f32 %v458_v9, 0.0 }
  0xeb   :  { %v527_v16 = vadd.f32 %v901_v45, %v504_v10  ;;  %v543_v17 = vmul.f32 %v894_v38, %v481_v11  ;;  %v503_v18 = vmul.f32 %v894_v38, %v255_v12 }
  0xec   :  { %590 = vst.msk [vmem:[%s1065_s6 + $0x68] sm:$0xff] %vm576_vm1, %v573_v13  ;;  %v572_v33 = vmax.f32 %v524_v7, %v556_v14  ;;  %v542_v19 = vmul.f32 %v894_v38, %v480_v15 }
  0xed   :  { %v559_v20 = vadd.f32 %v901_v45, %v543_v17  ;;  %v526_v21 = vadd.f32 %v901_v45, %v503_v18 }
  0xee   :  { %589 = vst.msk [vmem:[%s1065_s6 + $0x60] sm:$0xff] %vm576_vm1, %v572_v33  ;;  %v558_v22 = vadd.f32 %v901_v45, %v542_v19 }
  0xef   :  { %v575_v23 = vmax.f32 %v527_v16, %v559_v20 }
  0xf0   :  { %v574_v24 = vmax.f32 %v526_v21, %v558_v22 }
  0xf1   :  { %592 = vst.msk [vmem:[%s1065_s6 + $0x78] sm:$0xff] %vm576_vm1, %v575_v23 }
  0xf2   :  { %591 = vst.msk [vmem:[%s1065_s6 + $0x70] sm:$0xff] %vm576_vm1, %v574_v24 }

// kernel: morse_net_forward.9
= control target key start
LH: loop header
LB: loop body
LE: loop exit
PB: predicated region body
PF: predicated region fallthrough
CT: control target
= control target key end

     0   :  { %vm41_vm0 = vcmask 64512   ;;  %vm480_vm1 = vcmask 254976   ;;  %v795_v33 = vmov 0.0   ;;  %vm482_vm2 = vcmask 261120   ;;  %s1064_s2 = inlined_call_operand.vmem [shape: f32[8,32], index: 2, kind: input, shape index: {}]   ;;  %s1065_s0 = inlined_call_operand.vmem [shape: f32[128,8], index: 0, kind: input, shape index: {}]   ;;  %s1066_s1 = inlined_call_operand.vmem [shape: f32[128,8], index: 1, kind: input, shape index: {}]   ;;  %s1067_s4 = inlined_call_operand.vmem [shape: f32[2,32], index: 4, kind: output, shape index: {}]   ;;  %s1068_s3 = inlined_call_operand.vmem [shape: f32[1,32], index: 3, kind: input, shape index: {}]  }
   0x1   :  { %v33_v0 = vld [vmem:[%s1064_s2] sm:$0xff]  ;;  %v18_v3 = vld [vmem:[%s1065_s0 + $0x8] sm:$0xff]  ;;  %v19_v5 = vld [vmem:[%s1065_s0 + $0x10] sm:$0xff]  ;;  %481 = vst.msk [vmem:[%s1067_s4] sm:$0x3] %vm480_vm1, %v795_v33  ;;  %vm666_vm3 = vcmask 1040384  }
   0x2   :  { %v17_v1 = vld [vmem:[%s1065_s0] sm:$0xff]  ;;  %742 = vmatprep.subr.mxu0 %v33_v0  ;;  %768 = vmatprep.subr.mxu1 %v33_v0  ;;  %v252_v4 = vld [vmem:[%s1066_s1 + $0x8] sm:$0xff]  ;;  %v253_v6 = vld [vmem:[%s1066_s1 + $0x10] sm:$0xff] }
   0x3   :  { %v251_v2 = vld [vmem:[%s1066_s1] sm:$0xff]  ;;  %743 = vmatpush3.msra.mxu0 %v33_v0  ;;  %744 = vmatprep.mubr.msk.f32.mxu0 %vm41_vm0, %v17_v1  ;;  %v20_v7 = vld [vmem:[%s1065_s0 + $0x18] sm:$0xff]  ;;  %v22_v11 = vld [vmem:[%s1065_s0 + $0x28] sm:$0xff] }
   0x4   :  { %769 = vmatpush3.msra.mxu1 %v33_v0  ;;  %770 = vmatprep.mubr.msk.f32.mxu1 %vm41_vm0, %v251_v2  ;;  %v254_v8 = vld [vmem:[%s1066_s1 + $0x18] sm:$0xff]  ;;  %v21_v9 = vld [vmem:[%s1065_s0 + $0x20] sm:$0xff]  ;;  %v256_v12 = vld [vmem:[%s1066_s1 + $0x28] sm:$0xff] }
   0x5   :  { %745 = vmatmul.mubr.msk.f32.vlgmr.msra.gmra.mxu0 %vm41_vm0, %v18_v3  ;;  %771 = vmatmul.mubr.msk.f32.vlgmr.msra.gmra.mxu1 %vm41_vm0, %v252_v4  ;;  %v255_v10 = vld [vmem:[%s1066_s1 + $0x20] sm:$0xff]  ;;  %v23_v13 = vld [vmem:[%s1065_s0 + $0x30] sm:$0xff]  ;;  %v24_v15 = vld [vmem:[%s1065_s0 + $0x38] sm:$0xff] }
   0x6   :  { %747 = vmatprep.mubr.msk.f32.mxu0 %vm41_vm0, %v19_v5  ;;  %773 = vmatprep.mubr.msk.f32.mxu1 %vm41_vm0, %v253_v6  ;;  %v257_v14 = vld [vmem:[%s1066_s1 + $0x30] sm:$0xff]  ;;  %v258_v16 = vld [vmem:[%s1066_s1 + $0x38] sm:$0xff]  ;;  %v25_v17 = vld [vmem:[%s1065_s0 + $0x40] sm:$0xff] }
   0x7   :  { %v259_v18 = vld [vmem:[%s1066_s1 + $0x40] sm:$0xff]  ;;  %v26_v19 = vld [vmem:[%s1065_s0 + $0x48] sm:$0xff]  ;;  %v27_v21 = vld [vmem:[%s1065_s0 + $0x50] sm:$0xff] }
   0x8   :  { %v260_v20 = vld [vmem:[%s1066_s1 + $0x48] sm:$0xff]  ;;  %v261_v22 = vld [vmem:[%s1066_s1 + $0x50] sm:$0xff]  ;;  %v28_v23 = vld [vmem:[%s1065_s0 + $0x58] sm:$0xff] }
   0x9   :  { %748 = vmatmul.mubr.msk.f32.gmra.mxu0 %vm41_vm0, %v20_v7  ;;  %774 = vmatmul.mubr.msk.f32.gmra.mxu1 %vm41_vm0, %v254_v8  ;;  %v262_v24 = vld [vmem:[%s1066_s1 + $0x58] sm:$0xff]  ;;  %v29_v25 = vld [vmem:[%s1065_s0 + $0x60] sm:$0xff]  ;;  %v30_v27 = vld [vmem:[%s1065_s0 + $0x68] sm:$0xff] }
   0xa   :  { %750 = vmatprep.mubr.msk.f32.mxu0 %vm41_vm0, %v21_v9  ;;  %776 = vmatprep.mubr.msk.f32.mxu1 %vm41_vm0, %v255_v10  ;;  %v263_v26 = vld [vmem:[%s1066_s1 + $0x60] sm:$0xff]  ;;  %v264_v28 = vld [vmem:[%s1066_s1 + $0x68] sm:$0xff]  ;;  %v31_v29 = vld [vmem:[%s1065_s0 + $0x70] sm:$0xff] }
   0xb   :  { %v265_v30 = vld [vmem:[%s1066_s1 + $0x70] sm:$0xff]  ;;  %v32_v31 = vld [vmem:[%s1065_s0 + $0x78] sm:$0xff]  ;;  %v959_v34 = vld [vmem:[%s1068_s3] ss:$0 sm:$0xff] }
   0xc   :  { %v266_v32 = vld [vmem:[%s1066_s1 + $0x78] sm:$0xff] }
   0xd   :  { %751 = vmatmul.mubr.msk.f32.gmra.mxu0 %vm41_vm0, %v22_v11  ;;  %777 = vmatmul.mubr.msk.f32.gmra.mxu1 %vm41_vm0, %v256_v12 }
   0xe   :  { %753 = vmatprep.mubr.msk.f32.mxu0 %vm41_vm0, %v23_v13  ;;  %779 = vmatprep.mubr.msk.f32.mxu1 %vm41_vm0, %v257_v14 }
  0x11   :  { %754 = vmatmul.mubr.msk.f32.gmra.mxu0 %vm41_vm0, %v24_v15  ;;  %780 = vmatmul.mubr.msk.f32.gmra.mxu1 %vm41_vm0, %v258_v16 }
  0x12   :  { %756 = vmatprep.mubr.msk.f32.mxu0 %vm41_vm0, %v25_v17  ;;  %782 = vmatprep.mubr.msk.f32.mxu1 %vm41_vm0, %v259_v18 }
  0x15   :  { %757 = vmatmul.mubr.msk.f32.gmra.mxu0 %vm41_vm0, %v26_v19  ;;  %783 = vmatmul.mubr.msk.f32.gmra.mxu1 %vm41_vm0, %v260_v20 }
  0x16   :  { %759 = vmatprep.mubr.msk.f32.mxu0 %vm41_vm0, %v27_v21  ;;  %785 = vmatprep.mubr.msk.f32.mxu1 %vm41_vm0, %v261_v22 }
  0x19   :  { %760 = vmatmul.mubr.msk.f32.gmra.mxu0 %vm41_vm0, %v28_v23  ;;  %786 = vmatmul.mubr.msk.f32.gmra.mxu1 %vm41_vm0, %v262_v24 }
  0x1a   :  { %762 = vmatprep.mubr.msk.f32.mxu0 %vm41_vm0, %v29_v25  ;;  %788 = vmatprep.mubr.msk.f32.mxu1 %vm41_vm0, %v263_v26 }
  0x1d   :  { %763 = vmatmul.mubr.msk.f32.gmra.mxu0 %vm41_vm0, %v30_v27  ;;  %789 = vmatmul.mubr.msk.f32.gmra.mxu1 %vm41_vm0, %v264_v28 }
  0x1e   :  { %765 = vmatprep.mubr.msk.f32.mxu0 %vm41_vm0, %v31_v29  ;;  %791 = vmatprep.mubr.msk.f32.mxu1 %vm41_vm0, %v265_v30 }
  0x21   :  { %766 = vmatmul.mubr.msk.f32.gmra.mxu0 %vm41_vm0, %v32_v31  ;;  %792 = vmatmul.mubr.msk.f32.gmra.mxu1 %vm41_vm0, %v266_v32 }
  0xc5   :  { %v746_v35 = vpop.f32.mrf.mxu0  ;;  %v772_v36 = vpop.f32.mrf.mxu1 }
  0xc6   :  { %v162_v37 = vadd.f32 %v746_v35, %v959_v34  ;;  %v387_v38 = vadd.f32 %v772_v36, %v959_v34 }
  0xc7   :  { %v156_v39 = vpop.f32.mrf.mxu0  ;;  %v381_v40 = vpop.f32.mrf.mxu1 }
  0xc8   :  { %v236_v41 = vmax.f32 %v162_v37, 0.0  ;;  %v461_v42 = vmax.f32 %v387_v38, 0.0  ;;  %v157_v43 = vadd.f32 %v959_v34, %v156_v39  ;;  %v382_v44 = vadd.f32 %v959_v34, %v381_v40 }
  0xc9   :  { %v749_v45 = vpop.f32.mrf.mxu0  ;;  %v775_v46 = vpop.f32.mrf.mxu1 }
  0xca   :  { %v559_v47 = vmul.f32 %v236_v41, %v236_v41  ;;  %v612_v48 = vmul.f32 %v461_v42, %v461_v42  ;;  %v235_v49 = vmax.f32 %v157_v43, 0.0  ;;  %v460_v50 = vmax.f32 %v382_v44, 0.0 }
  0xcb   :  { %v172_v51 = vadd.f32 %v749_v45, %v959_v34  ;;  %v397_v52 = vadd.f32 %v775_v46, %v959_v34  ;;  %v166_v53 = vpop.f32.mrf.mxu0  ;;  %v391_v54 = vpop.f32.mrf.mxu1  ;;  %v484_v55 = vsel %vm482_vm2, %v236_v41, 0.0  ;;  %v521_v56 = vsel %vm482_vm2, %v461_v42, 0.0 }
  0xcc   :  { %v167_v57 = vadd.f32 %v959_v34, %v166_v53  ;;  %v392_v58 = vadd.f32 %v959_v34, %v391_v54  ;;  %v483_v59 = vsel %vm482_vm2, %v235_v49, 0.0  ;;  %v558_v60 = vmul.f32 %v235_v49, %v235_v49 }
  0xcd   :  { %v520_v61 = vsel %vm482_vm2, %v460_v50, 0.0  ;;  %v611_v62 = vmul.f32 %v460_v50, %v460_v50  ;;  %v752_v63 = vpop.f32.mrf.mxu0  ;;  %v778_v0 = vpop.f32.mrf.mxu1  ;;  %v575_v1 = vsel %vm482_vm2, %v559_v47, 0.0  ;;  %v628_v2 = vsel %vm482_vm2, %v612_v48, 0.0 }
  0xce   :  { %v238_v3 = vmax.f32 %v172_v51, 0.0  ;;  %v463_v4 = vmax.f32 %v397_v52, 0.0  ;;  %v574_v5 = vsel %vm482_vm2, %v558_v60, 0.0  ;;  %v237_v7 = vmax.f32 %v167_v57, 0.0 }
  0xcf   :  { %v627_v6 = vsel %vm482_vm2, %v611_v62, 0.0  ;;  %v462_v8 = vmax.f32 %v392_v58, 0.0  ;;  %v176_v9 = vpop.f32.mrf.mxu0  ;;  %v401_v10 = vpop.f32.mrf.mxu1  ;;  %v485_v11 = vadd.f32 %v484_v55, %v483_v59  ;;  %v576_v12 = vadd.f32 %v575_v1, %v574_v5 }
  0xd0   :  { %v522_v13 = vadd.f32 %v521_v56, %v520_v61  ;;  %v629_v14 = vadd.f32 %v628_v2, %v627_v6  ;;  %v488_v15 = vsel %vm482_vm2, %v238_v3, 0.0  ;;  %v561_v16 = vmul.f32 %v238_v3, %v238_v3 }
  0xd1   :  { %v486_v17 = vsel %vm482_vm2, %v237_v7, 0.0  ;;  %v560_v18 = vmul.f32 %v237_v7, %v237_v7  ;;  %v755_v19 = vpop.f32.mrf.mxu0  ;;  %v781_v20 = vpop.f32.mrf.mxu1  ;;  %v525_v21 = vsel %vm482_vm2, %v463_v4, 0.0  ;;  %v523_v23 = vsel %vm482_vm2, %v462_v8, 0.0 }
  0xd2   :  { %v487_v22 = vadd.f32 %v486_v17, %v485_v11  ;;  %v613_v24 = vmul.f32 %v462_v8, %v462_v8  ;;  %v614_v25 = vmul.f32 %v463_v4, %v463_v4  ;;  %v524_v27 = vadd.f32 %v523_v23, %v522_v13 }
  0xd3   :  { %v577_v26 = vsel %vm482_vm2, %v560_v18, 0.0  ;;  %v182_v28 = vadd.f32 %v752_v63, %v959_v34  ;;  %v407_v31 = vadd.f32 %v778_v0, %v959_v34  ;;  %v177_v32 = vadd.f32 %v959_v34, %v176_v9  ;;  %v186_v33 = vpop.f32.mrf.mxu0  ;;  %v411_v39 = vpop.f32.mrf.mxu1 }
  0xd4   :  { %v578_v29 = vadd.f32 %v577_v26, %v576_v12  ;;  %v630_v30 = vsel %vm482_vm2, %v613_v24, 0.0  ;;  %v489_v37 = vadd.f32 %v488_v15, %v487_v22  ;;  %v402_v38 = vadd.f32 %v959_v34, %v401_v10 }
  0xd5   :  { %v631_v35 = vadd.f32 %v630_v30, %v629_v14  ;;  %v240_v36 = vmax.f32 %v182_v28, 0.0  ;;  %v579_v40 = vsel %vm482_vm2, %v561_v16, 0.0  ;;  %v465_v41 = vmax.f32 %v407_v31, 0.0  ;;  %v758_v52 = vpop.f32.mrf.mxu0  ;;  %v784_v57 = vpop.f32.mrf.mxu1 }
  0xd6   :  { %v239_v42 = vmax.f32 %v177_v32, 0.0  ;;  %v526_v43 = vadd.f32 %v525_v21, %v524_v27  ;;  %v632_v44 = vsel %vm482_vm2, %v614_v25, 0.0  ;;  %v580_v46 = vadd.f32 %v579_v40, %v578_v29 }
  0xd7   :  { %v492_v45 = vsel %vm482_vm2, %v240_v36, 0.0  ;;  %v464_v47 = vmax.f32 %v402_v38, 0.0  ;;  %v563_v48 = vmul.f32 %v240_v36, %v240_v36  ;;  %v633_v51 = vadd.f32 %v632_v44, %v631_v35  ;;  %v196_v6 = vpop.f32.mrf.mxu0  ;;  %v421_v11 = vpop.f32.mrf.mxu1 }
  0xd8   :  { %v490_v49 = vsel %vm482_vm2, %v239_v42, 0.0  ;;  %v562_v50 = vmul.f32 %v239_v42, %v239_v42  ;;  %v529_v53 = vsel %vm482_vm2, %v465_v41, 0.0  ;;  %v616_v58 = vmul.f32 %v465_v41, %v465_v41 }
  0xd9   :  { %v491_v54 = vadd.f32 %v490_v49, %v489_v37  ;;  %v527_v55 = vsel %vm482_vm2, %v464_v47, 0.0  ;;  %v615_v56 = vmul.f32 %v464_v47, %v464_v47  ;;  %v192_v61 = vadd.f32 %v755_v19, %v959_v34  ;;  %v761_v24 = vpop.f32.mrf.mxu0  ;;  %v787_v29 = vpop.f32.mrf.mxu1 }
  0xda   :  { %v581_v59 = vsel %vm482_vm2, %v562_v50, 0.0  ;;  %v528_v60 = vadd.f32 %v527_v55, %v526_v43  ;;  %v417_v0 = vadd.f32 %v781_v20, %v959_v34  ;;  %v187_v1 = vadd.f32 %v959_v34, %v186_v33 }
  0xdb   :  { %v582_v62 = vadd.f32 %v581_v59, %v580_v46  ;;  %v634_v63 = vsel %vm482_vm2, %v615_v56, 0.0  ;;  %v242_v3 = vmax.f32 %v192_v61, 0.0  ;;  %v493_v4 = vadd.f32 %v492_v45, %v491_v54  ;;  %v206_v43 = vpop.f32.mrf.mxu0 }
  0xdc   :  { %v635_v2 = vadd.f32 %v634_v63, %v633_v51  ;;  %v412_v5 = vadd.f32 %v959_v34, %v411_v39  ;;  %v583_v7 = vsel %vm482_vm2, %v563_v48, 0.0  ;;  %v467_v8 = vmax.f32 %v417_v0, 0.0  ;;  %v431_v48 = vpop.f32.mrf.mxu1 }
  0xdd   :  { %v241_v9 = vmax.f32 %v187_v1, 0.0  ;;  %v530_v10 = vadd.f32 %v529_v53, %v528_v60  ;;  %v636_v12 = vsel %vm482_vm2, %v616_v58, 0.0  ;;  %v496_v13 = vsel %vm482_vm2, %v242_v3, 0.0  ;;  %v764_v61 = vpop.f32.mrf.mxu0 }
  0xde   :  { %v584_v14 = vadd.f32 %v583_v7, %v582_v62  ;;  %v466_v15 = vmax.f32 %v412_v5, 0.0  ;;  %v565_v16 = vmul.f32 %v242_v3, %v242_v3  ;;  %v637_v19 = vadd.f32 %v636_v12, %v635_v2  ;;  %v790_v2 = vpop.f32.mrf.mxu1 }
  0xdf   :  { %v494_v17 = vsel %vm482_vm2, %v241_v9, 0.0  ;;  %v564_v18 = vmul.f32 %v241_v9, %v241_v9  ;;  %v533_v20 = vsel %vm482_vm2, %v467_v8, 0.0  ;;  %v618_v25 = vmul.f32 %v467_v8, %v467_v8 }
  0xe0   :  { %v495_v21 = vadd.f32 %v494_v17, %v493_v4  ;;  %v531_v22 = vsel %vm482_vm2, %v466_v15, 0.0  ;;  %v617_v23 = vmul.f32 %v466_v15, %v466_v15  ;;  %v202_v28 = vadd.f32 %v758_v52, %v959_v34  ;;  %v216_v15 = vpop.f32.mrf.mxu0 }
  0xe1   :  { %v585_v26 = vsel %vm482_vm2, %v564_v18, 0.0  ;;  %v532_v27 = vadd.f32 %v531_v22, %v530_v10  ;;  %v427_v32 = vadd.f32 %v784_v57, %v959_v34  ;;  %v197_v33 = vadd.f32 %v959_v34, %v196_v6 }
  0xe2   :  { %v586_v30 = vadd.f32 %v585_v26, %v584_v14  ;;  %v638_v31 = vsel %vm482_vm2, %v617_v23, 0.0  ;;  %v244_v36 = vmax.f32 %v202_v28, 0.0  ;;  %v497_v37 = vadd.f32 %v496_v13, %v495_v21 }
  0xe3   :  { %v639_v35 = vadd.f32 %v638_v31, %v637_v19  ;;  %v422_v38 = vadd.f32 %v959_v34, %v421_v11  ;;  %v587_v39 = vsel %vm482_vm2, %v565_v16, 0.0  ;;  %v469_v40 = vmax.f32 %v427_v32, 0.0 }
  0xe4   :  { %v243_v41 = vmax.f32 %v197_v33, 0.0  ;;  %v534_v42 = vadd.f32 %v533_v20, %v532_v27  ;;  %v640_v44 = vsel %vm482_vm2, %v618_v25, 0.0  ;;  %v500_v45 = vsel %vm482_vm2, %v244_v36, 0.0  ;;  %v441_v20 = vpop.f32.mrf.mxu1  ;;  %v767_v33 = vpop.f32.mrf.mxu0 }
  0xe5   :  { %v588_v46 = vadd.f32 %v587_v39, %v586_v30  ;;  %v468_v47 = vmax.f32 %v422_v38, 0.0  ;;  %v567_v49 = vmul.f32 %v244_v36, %v244_v36  ;;  %v641_v52 = vadd.f32 %v640_v44, %v639_v35 }
  0xe6   :  { %v498_v50 = vsel %vm482_vm2, %v243_v41, 0.0  ;;  %v566_v51 = vmul.f32 %v243_v41, %v243_v41  ;;  %v537_v53 = vsel %vm482_vm2, %v469_v40, 0.0  ;;  %v620_v57 = vmul.f32 %v469_v40, %v469_v40  ;;  %v793_v39 = vpop.f32.mrf.mxu1 }
  0xe7   :  { %v499_v54 = vadd.f32 %v498_v50, %v497_v37  ;;  %v535_v55 = vsel %vm482_vm2, %v468_v47, 0.0  ;;  %v619_v56 = vmul.f32 %v468_v47, %v468_v47  ;;  %v212_v60 = vadd.f32 %v761_v24, %v959_v34 }
  0xe8   :  { %v589_v58 = vsel %vm482_vm2, %v566_v51, 0.0  ;;  %v536_v59 = vadd.f32 %v535_v55, %v534_v42  ;;  %v437_v0 = vadd.f32 %v787_v29, %v959_v34  ;;  %v207_v1 = vadd.f32 %v959_v34, %v206_v43 }
  0xe9   :  { %v590_v62 = vadd.f32 %v589_v58, %v588_v46  ;;  %v642_v63 = vsel %vm482_vm2, %v619_v56, 0.0  ;;  %v246_v4 = vmax.f32 %v212_v60, 0.0  ;;  %v501_v5 = vadd.f32 %v500_v45, %v499_v54 }
  0xea   :  { %v643_v3 = vadd.f32 %v642_v63, %v641_v52  ;;  %v432_v6 = vadd.f32 %v959_v34, %v431_v48  ;;  %v591_v7 = vsel %vm482_vm2, %v567_v49, 0.0  ;;  %v471_v8 = vmax.f32 %v437_v0, 0.0  ;;  %v226_v52 = vpop.f32.mrf.mxu0 }
  0xeb   :  { %v245_v9 = vmax.f32 %v207_v1, 0.0  ;;  %v538_v10 = vadd.f32 %v537_v53, %v536_v59  ;;  %v644_v11 = vsel %vm482_vm2, %v620_v57, 0.0  ;;  %v504_v12 = vsel %vm482_vm2, %v246_v4, 0.0  ;;  %v451_v57 = vpop.f32.mrf.mxu1 }
  0xec   :  { %v592_v13 = vadd.f32 %v591_v7, %v590_v62  ;;  %v470_v14 = vmax.f32 %v432_v6, 0.0  ;;  %v569_v16 = vmul.f32 %v246_v4, %v246_v4  ;;  %v645_v19 = vadd.f32 %v644_v11, %v643_v3 }
  0xed   :  { %v502_v17 = vsel %vm482_vm2, %v245_v9, 0.0  ;;  %v568_v18 = vmul.f32 %v245_v9, %v245_v9  ;;  %v541_v21 = vsel %vm482_vm2, %v471_v8, 0.0  ;;  %v622_v25 = vmul.f32 %v471_v8, %v471_v8 }
  0xee   :  { %v503_v22 = vadd.f32 %v502_v17, %v501_v5  ;;  %v539_v23 = vsel %vm482_vm2, %v470_v14, 0.0  ;;  %v621_v24 = vmul.f32 %v470_v14, %v470_v14  ;;  %v222_v28 = vadd.f32 %v764_v61, %v959_v34 }
  0xef   :  { %v593_v26 = vsel %vm482_vm2, %v568_v18, 0.0  ;;  %v540_v27 = vadd.f32 %v539_v23, %v538_v10  ;;  %v447_v31 = vadd.f32 %v790_v2, %v959_v34  ;;  %v217_v32 = vadd.f32 %v959_v34, %v216_v15 }
  0xf0   :  { %v594_v29 = vadd.f32 %v593_v26, %v592_v13  ;;  %v646_v30 = vsel %vm482_vm2, %v621_v24, 0.0  ;;  %v248_v36 = vmax.f32 %v222_v28, 0.0  ;;  %v505_v37 = vadd.f32 %v504_v12, %v503_v22 }
  0xf1   :  { %v647_v35 = vadd.f32 %v646_v30, %v645_v19  ;;  %v442_v38 = vadd.f32 %v959_v34, %v441_v20  ;;  %v595_v40 = vsel %vm482_vm2, %v569_v16, 0.0  ;;  %v473_v41 = vmax.f32 %v447_v31, 0.0 }
  0xf2   :  { %v247_v42 = vmax.f32 %v217_v32, 0.0  ;;  %v542_v43 = vadd.f32 %v541_v21, %v540_v27  ;;  %v648_v44 = vsel %vm482_vm2, %v622_v25, 0.0  ;;  %v508_v45 = vsel %vm482_vm2, %v248_v36, 0.0 }
  0xf3   :  { %v596_v46 = vadd.f32 %v595_v40, %v594_v29  ;;  %v472_v47 = vmax.f32 %v442_v38, 0.0  ;;  %v571_v48 = vmul.f32 %v248_v36, %v248_v36  ;;  %v649_v51 = vadd.f32 %v648_v44, %v647_v35 }
  0xf4   :  { %v506_v49 = vsel %vm482_vm2, %v247_v42, 0.0  ;;  %v570_v50 = vmul.f32 %v247_v42, %v247_v42  ;;  %v545_v53 = vsel %vm482_vm2, %v473_v41, 0.0  ;;  %v624_v58 = vmul.f32 %v473_v41, %v473_v41 }
  0xf5   :  { %v507_v54 = vadd.f32 %v506_v49, %v505_v37  ;;  %v543_v55 = vsel %vm482_vm2, %v472_v47, 0.0  ;;  %v623_v56 = vmul.f32 %v472_v47, %v472_v47  ;;  %v232_v61 = vadd.f32 %v767_v33, %v959_v34 }
  0xf6   :  { %v597_v59 = vsel %vm482_vm2, %v570_v50, 0.0  ;;  %v544_v60 = vadd.f32 %v543_v55, %v542_v43  ;;  %v457_v0 = vadd.f32 %v793_v39, %v959_v34  ;;  %v227_v1 = vadd.f32 %v959_v34, %v226_v52 }
  0xf7   :  { %v598_v62 = vadd.f32 %v597_v59, %v596_v46  ;;  %v650_v63 = vsel %vm482_vm2, %v623_v56, 0.0  ;;  %v250_v3 = vmax.f32 %v232_v61, 0.0  ;;  %v509_v4 = vadd.f32 %v508_v45, %v507_v54 }
  0xf8   :  { %v651_v2 = vadd.f32 %v650_v63, %v649_v51  ;;  %v452_v5 = vadd.f32 %v959_v34, %v451_v57  ;;  %v599_v6 = vsel %vm482_vm2, %v571_v48, 0.0  ;;  %v475_v7 = vmax.f32 %v457_v0, 0.0 }
  0xf9   :  { %v249_v8 = vmax.f32 %v227_v1, 0.0  ;;  %v546_v9 = vadd.f32 %v545_v53, %v544_v60  ;;  %v652_v10 = vsel %vm482_vm2, %v624_v58, 0.0  ;;  %v600_v11 = vadd.f32 %v599_v6, %v598_v62  ;;  %v665_v60 = vld [vmem:[%s1067_s4] sm:$0x3] }
  0xfa   :  { %v474_v12 = vmax.f32 %v452_v5, 0.0  ;;  %v573_v13 = vmul.f32 %v250_v3, %v250_v3  ;;  %v653_v16 = vadd.f32 %v652_v10, %v651_v2  ;;  %v626_v17 = vmul.f32 %v475_v7, %v475_v7 }
  0xfb   :  { %v510_v14 = vsel %vm482_vm2, %v249_v8, 0.0  ;;  %v572_v15 = vmul.f32 %v249_v8, %v249_v8  ;;  %v512_v34 = vsel %vm482_vm2, %v250_v3, 0.0  ;;  %v549_v23 = vsel %vm482_vm2, %v475_v7, 0.0 }
  0xfc   :  { %v511_v18 = vadd.f32 %v510_v14, %v509_v4  ;;  %v547_v19 = vsel %vm482_vm2, %v474_v12, 0.0  ;;  %v625_v20 = vmul.f32 %v474_v12, %v474_v12  ;;  %v603_v27 = vsel %vm482_vm2, %v573_v13, 0.0 }
  0xfd   :  { %v601_v21 = vsel %vm482_vm2, %v572_v15, 0.0  ;;  %v548_v22 = vadd.f32 %v547_v19, %v546_v9  ;;  %v656_v30 = vsel %vm482_vm2, %v626_v17, 0.0 }
  0xfe   :  { %v513_v24 = vadd.f32 %v512_v34, %v511_v18  ;;  %v602_v25 = vadd.f32 %v601_v21, %v600_v11  ;;  %v654_v26 = vsel %vm482_vm2, %v625_v20, 0.0 }
  0xff   :  { %v550_v28 = vadd.f32 %v549_v23, %v548_v22  ;;  %v655_v29 = vadd.f32 %v654_v26, %v653_v16 }
 0x100   :  { %v514_v31 = vrot.slane %v513_v24, 4  ;;  %v604_v32 = vadd.f32 %v603_v27, %v602_v25 }
 0x101   :  { %v551_v33 = vrot.slane %v550_v28, 4  ;;  %v657_v35 = vadd.f32 %v656_v30, %v655_v29 }
 0x102   :  { %v515_v36 = vadd.f32 %v514_v31, %v513_v24  ;;  %v605_v37 = vrot.slane %v604_v32, 4 }
 0x103   :  { %v552_v38 = vadd.f32 %v551_v33, %v550_v28  ;;  %v658_v39 = vrot.slane %v657_v35, 4 }
 0x104   :  { %v516_v40 = vrot.slane %v515_v36, 2  ;;  %v606_v41 = vadd.f32 %v605_v37, %v604_v32 }
 0x105   :  { %v553_v42 = vrot.slane %v552_v38, 2  ;;  %v659_v43 = vadd.f32 %v658_v39, %v657_v35 }
 0x106   :  { %v517_v44 = vadd.f32 %v516_v40, %v515_v36  ;;  %v607_v45 = vrot.slane %v606_v41, 2 }
 0x107   :  { %v554_v46 = vadd.f32 %v553_v42, %v552_v38  ;;  %v660_v47 = vrot.slane %v659_v43, 2 }
 0x108   :  { %v518_v48 = vrot.slane %v517_v44, 1  ;;  %v608_v49 = vadd.f32 %v607_v45, %v606_v41 }
 0x109   :  { %v555_v50 = vrot.slane %v554_v46, 1  ;;  %v661_v51 = vadd.f32 %v660_v47, %v659_v43 }
 0x10a   :  { %v609_v52 = vrot.slane %v608_v49, 1  ;;  %v519_v53 = vadd.f32 %v518_v48, %v517_v44 }
 0x10b   :  { %v556_v54 = vadd.f32 %v555_v50, %v554_v46  ;;  %v662_v55 = vrot.slane %v661_v51, 1 }
 0x10c   :  { %v610_v56 = vadd.f32 %v609_v52, %v608_v49 }
 0x10d   :  { %v663_v57 = vadd.f32 %v662_v55, %v661_v51  ;;  %v557_v58 = vadd.f32 %v556_v54, %v519_v53 }
 0x10f   :  { %v664_v59 = vadd.f32 %v663_v57, %v610_v56 }
 0x111   :  { %v667_v61 = vsel %vm666_vm3, %v557_v58, %v664_v59 }
 0x112   :  { %v668_v62 = vadd.f32 %v667_v61, %v665_v60 }
 0x114   :  { %670 = vst.msk [vmem:[%s1067_s4] sm:$0x3] %vm480_vm1, %v668_v62 }

// kernel: morse_net_forward.11
= control target key start
LH: loop header
LB: loop body
LE: loop exit
PB: predicated region body
PF: predicated region fallthrough
CT: control target
= control target key end

     0   :  { %vm44_vm0 = vcmask 785408   ;;  %vm331_vm1 = vcmask 517120   ;;  %v576_v28 = vmov 0.0   ;;  %vm333_vm2 = vcmask 523264   ;;  %s766_s2 = inlined_call_operand.vmem [shape: f32[96,64], index: 2, kind: input, shape index: {}]   ;;  %s767_s0 = inlined_call_operand.vmem [shape: f32[64,96], index: 0, kind: input, shape index: {}]   ;;  %s768_s1 = inlined_call_operand.vmem [shape: f32[64,96], index: 1, kind: input, shape index: {}]   ;;  %s769_s4 = inlined_call_operand.vmem [shape: f32[2,64], index: 4, kind: output, shape index: {}]   ;;  %s770_s3 = inlined_call_operand.vmem [shape: f32[1,64], index: 3, kind: input, shape index: {}]  }
   0x1   :  { %v36_v0 = vld [vmem:[%s766_s2 + $0x58] sm:$0xff]  ;;  %v35_v1 = vld [vmem:[%s766_s2 + $0x50] sm:$0xff]  ;;  %v34_v2 = vld [vmem:[%s766_s2 + $0x48] sm:$0xff]  ;;  %332 = vst.msk [vmem:[%s769_s4] sm:$0x3] %vm331_vm1, %v576_v28  ;;  %vm437_vm3 = vcmask 1040384  }
   0x2   :  { %503 = vmatprep.subr.mxu0 %v36_v0  ;;  %539 = vmatprep.subr.mxu1 %v36_v0  ;;  %v33_v3 = vld [vmem:[%s766_s2 + $0x40] sm:$0xff]  ;;  %v32_v4 = vld [vmem:[%s766_s2 + $0x38] sm:$0xff]  ;;  %v31_v5 = vld [vmem:[%s766_s2 + $0x30] sm:$0xff] }
   0x3   :  { %504 = vmatpush3.msra.mxu0 %v36_v0  ;;  %540 = vmatpush3.msra.mxu1 %v36_v0  ;;  %v30_v6 = vld [vmem:[%s766_s2 + $0x28] sm:$0xff]  ;;  %v29_v7 = vld [vmem:[%s766_s2 + $0x20] sm:$0xff]  ;;  %v28_v8 = vld [vmem:[%s766_s2 + $0x18] sm:$0xff] }
   0x4   :  { %505 = vmatprep.subr.mxu0 %v35_v1  ;;  %541 = vmatprep.subr.mxu1 %v35_v1  ;;  %v27_v9 = vld [vmem:[%s766_s2 + $0x10] sm:$0xff]  ;;  %v26_v10 = vld [vmem:[%s766_s2 + $0x8] sm:$0xff]  ;;  %v25_v11 = vld [vmem:[%s766_s2] sm:$0xff] }
   0x5   :  { %506 = vmatpush3.msra.mxu0 %v35_v1  ;;  %542 = vmatpush3.msra.mxu1 %v35_v1  ;;  %v17_v12 = vld [vmem:[%s767_s0] sm:$0xff]  ;;  %v18_v14 = vld [vmem:[%s767_s0 + $0x8] sm:$0xff]  ;;  %v19_v16 = vld [vmem:[%s767_s0 + $0x10] sm:$0xff] }
   0x6   :  { %507 = vmatprep.subr.mxu0 %v34_v2  ;;  %543 = vmatprep.subr.mxu1 %v34_v2  ;;  %v182_v13 = vld [vmem:[%s768_s1] sm:$0xff]  ;;  %v183_v15 = vld [vmem:[%s768_s1 + $0x8] sm:$0xff]  ;;  %v184_v17 = vld [vmem:[%s768_s1 + $0x10] sm:$0xff] }
   0x7   :  { %508 = vmatpush3.msra.mxu0 %v34_v2  ;;  %544 = vmatpush3.msra.mxu1 %v34_v2  ;;  %v20_v18 = vld [vmem:[%s767_s0 + $0x18] sm:$0xff]  ;;  %v21_v20 = vld [vmem:[%s767_s0 + $0x20] sm:$0xff]  ;;  %v22_v22 = vld [vmem:[%s767_s0 + $0x28] sm:$0xff] }
   0x8   :  { %509 = vmatprep.subr.mxu0 %v33_v3  ;;  %545 = vmatprep.subr.mxu1 %v33_v3  ;;  %v185_v19 = vld [vmem:[%s768_s1 + $0x18] sm:$0xff]  ;;  %v186_v21 = vld [vmem:[%s768_s1 + $0x20] sm:$0xff]  ;;  %v187_v23 = vld [vmem:[%s768_s1 + $0x28] sm:$0xff] }
   0x9   :  { %510 = vmatpush3.msra.mxu0 %v33_v3  ;;  %546 = vmatpush3.msra.mxu1 %v33_v3  ;;  %v23_v24 = vld [vmem:[%s767_s0 + $0x30] sm:$0xff]  ;;  %v24_v26 = vld [vmem:[%s767_s0 + $0x38] sm:$0xff]  ;;  %v709_v29 = vld [vmem:[%s770_s3] ss:$0 sm:$0xff] }
   0xa   :  { %511 = vmatprep.subr.mxu0 %v32_v4  ;;  %547 = vmatprep.subr.mxu1 %v32_v4  ;;  %v188_v25 = vld [vmem:[%s768_s1 + $0x30] sm:$0xff]  ;;  %v189_v27 = vld [vmem:[%s768_s1 + $0x38] sm:$0xff] }
   0xb   :  { %512 = vmatpush3.msra.mxu0 %v32_v4  ;;  %548 = vmatpush3.msra.mxu1 %v32_v4 }
   0xc   :  { %513 = vmatprep.subr.mxu0 %v31_v5  ;;  %549 = vmatprep.subr.mxu1 %v31_v5 }
   0xd   :  { %514 = vmatpush3.msra.mxu0 %v31_v5  ;;  %550 = vmatpush3.msra.mxu1 %v31_v5 }
   0xe   :  { %515 = vmatprep.subr.mxu0 %v30_v6  ;;  %551 = vmatprep.subr.mxu1 %v30_v6 }
   0xf   :  { %516 = vmatpush3.msra.mxu0 %v30_v6  ;;  %552 = vmatpush3.msra.mxu1 %v30_v6 }
  0x10   :  { %517 = vmatprep.subr.mxu0 %v29_v7  ;;  %553 = vmatprep.subr.mxu1 %v29_v7 }
  0x11   :  { %518 = vmatpush3.msra.mxu0 %v29_v7  ;;  %554 = vmatpush3.msra.mxu1 %v29_v7 }
  0x12   :  { %519 = vmatprep.subr.mxu0 %v28_v8  ;;  %555 = vmatprep.subr.mxu1 %v28_v8 }
  0x13   :  { %520 = vmatpush3.msra.mxu0 %v28_v8  ;;  %556 = vmatpush3.msra.mxu1 %v28_v8 }
  0x14   :  { %521 = vmatprep.subr.mxu0 %v27_v9  ;;  %557 = vmatprep.subr.mxu1 %v27_v9 }
  0x15   :  { %522 = vmatpush3.msra.mxu0 %v27_v9  ;;  %558 = vmatpush3.msra.mxu1 %v27_v9 }
  0x16   :  { %523 = vmatprep.subr.mxu0 %v26_v10  ;;  %559 = vmatprep.subr.mxu1 %v26_v10 }
  0x17   :  { %524 = vmatpush3.msra.mxu0 %v26_v10  ;;  %560 = vmatpush3.msra.mxu1 %v26_v10 }
  0x18   :  { %525 = vmatprep.subr.mxu0 %v25_v11  ;;  %561 = vmatprep.subr.mxu1 %v25_v11 }
  0x19   :  { %526 = vmatpush3.msra.mxu0 %v25_v11  ;;  %527 = vmatprep.mubr.msk.f32.mxu0 %vm44_vm0, %v17_v12 }
  0x1a   :  { %562 = vmatpush3.msra.mxu1 %v25_v11  ;;  %563 = vmatprep.mubr.msk.f32.mxu1 %vm44_vm0, %v182_v13 }
  0x1b   :  { %528 = vmatmul.mubr.msk.f32.vlgmr.msra.gmra.mxu0 %vm44_vm0, %v18_v14  ;;  %564 = vmatmul.mubr.msk.f32.vlgmr.msra.gmra.mxu1 %vm44_vm0, %v183_v15 }
  0x1c   :  { %530 = vmatprep.mubr.msk.f32.mxu0 %vm44_vm0, %v19_v16  ;;  %566 = vmatprep.mubr.msk.f32.mxu1 %vm44_vm0, %v184_v17 }
  0x1f   :  { %531 = vmatmul.mubr.msk.f32.gmra.mxu0 %vm44_vm0, %v20_v18  ;;  %567 = vmatmul.mubr.msk.f32.gmra.mxu1 %vm44_vm0, %v185_v19 }
  0x20   :  { %533 = vmatprep.mubr.msk.f32.mxu0 %vm44_vm0, %v21_v20  ;;  %569 = vmatprep.mubr.msk.f32.mxu1 %vm44_vm0, %v186_v21 }
  0x23   :  { %534 = vmatmul.mubr.msk.f32.gmra.mxu0 %vm44_vm0, %v22_v22  ;;  %570 = vmatmul.mubr.msk.f32.gmra.mxu1 %vm44_vm0, %v187_v23 }
  0x24   :  { %536 = vmatprep.mubr.msk.f32.mxu0 %vm44_vm0, %v23_v24  ;;  %572 = vmatprep.mubr.msk.f32.mxu1 %vm44_vm0, %v188_v25 }
  0x27   :  { %537 = vmatmul.mubr.msk.f32.gmra.mxu0 %vm44_vm0, %v24_v26  ;;  %573 = vmatmul.mubr.msk.f32.gmra.mxu1 %vm44_vm0, %v189_v27 }
  0xdb   :  { %v529_v30 = vpop.f32.mrf.mxu0  ;;  %v565_v31 = vpop.f32.mrf.mxu1 }
  0xdc   :  { %v141_v32 = vadd.f32 %v529_v30, %v709_v29  ;;  %v286_v33 = vadd.f32 %v565_v31, %v709_v29 }
  0xdd   :  { %v135_v34 = vpop.f32.mrf.mxu0  ;;  %v280_v35 = vpop.f32.mrf.mxu1 }
  0xde   :  { %v175_v36 = vmax.f32 %v141_v32, 0.0  ;;  %v320_v37 = vmax.f32 %v286_v33, 0.0  ;;  %v136_v38 = vadd.f32 %v709_v29, %v135_v34  ;;  %v281_v39 = vadd.f32 %v709_v29, %v280_v35 }
  0xdf   :  { %v532_v40 = vpop.f32.mrf.mxu0  ;;  %v568_v41 = vpop.f32.mrf.mxu1 }
  0xe0   :  { %v378_v42 = vmul.f32 %v175_v36, %v175_v36  ;;  %v407_v43 = vmul.f32 %v320_v37, %v320_v37  ;;  %v174_v44 = vmax.f32 %v136_v38, 0.0  ;;  %v319_v45 = vmax.f32 %v281_v39, 0.0 }
  0xe1   :  { %v151_v46 = vadd.f32 %v532_v40, %v709_v29  ;;  %v296_v47 = vadd.f32 %v568_v41, %v709_v29  ;;  %v145_v48 = vpop.f32.mrf.mxu0  ;;  %v290_v49 = vpop.f32.mrf.mxu1  ;;  %v335_v50 = vsel %vm333_vm2, %v175_v36, 0.0  ;;  %v356_v51 = vsel %vm333_vm2, %v320_v37, 0.0 }
  0xe2   :  { %v146_v52 = vadd.f32 %v709_v29, %v145_v48  ;;  %v291_v53 = vadd.f32 %v709_v29, %v290_v49  ;;  %v334_v54 = vsel %vm333_vm2, %v174_v44, 0.0  ;;  %v377_v55 = vmul.f32 %v174_v44, %v174_v44 }
  0xe3   :  { %v355_v56 = vsel %vm333_vm2, %v319_v45, 0.0  ;;  %v406_v57 = vmul.f32 %v319_v45, %v319_v45  ;;  %v535_v58 = vpop.f32.mrf.mxu0  ;;  %v571_v59 = vpop.f32.mrf.mxu1  ;;  %v386_v60 = vsel %vm333_vm2, %v378_v42, 0.0  ;;  %v415_v61 = vsel %vm333_vm2, %v407_v43, 0.0 }
  0xe4   :  { %v177_v62 = vmax.f32 %v151_v46, 0.0  ;;  %v322_v63 = vmax.f32 %v296_v47, 0.0  ;;  %v385_v0 = vsel %vm333_vm2, %v377_v55, 0.0  ;;  %v176_v2 = vmax.f32 %v146_v52, 0.0 }
  0xe5   :  { %v414_v1 = vsel %vm333_vm2, %v406_v57, 0.0  ;;  %v321_v3 = vmax.f32 %v291_v53, 0.0  ;;  %v336_v4 = vadd.f32 %v335_v50, %v334_v54  ;;  %v387_v5 = vadd.f32 %v386_v60, %v385_v0  ;;  %v155_v8 = vpop.f32.mrf.mxu0  ;;  %v300_v13 = vpop.f32.mrf.mxu1 }
  0xe6   :  { %v357_v6 = vadd.f32 %v356_v51, %v355_v56  ;;  %v416_v7 = vadd.f32 %v415_v61, %v414_v1  ;;  %v339_v9 = vsel %vm333_vm2, %v177_v62, 0.0  ;;  %v380_v10 = vmul.f32 %v177_v62, %v177_v62 }
  0xe7   :  { %v337_v11 = vsel %vm333_vm2, %v176_v2, 0.0  ;;  %v379_v12 = vmul.f32 %v176_v2, %v176_v2  ;;  %v360_v14 = vsel %vm333_vm2, %v322_v63, 0.0  ;;  %v358_v16 = vsel %vm333_vm2, %v321_v3, 0.0  ;;  %v538_v26 = vpop.f32.mrf.mxu0  ;;  %v574_v32 = vpop.f32.mrf.mxu1 }
  0xe8   :  { %v338_v15 = vadd.f32 %v337_v11, %v336_v4  ;;  %v408_v17 = vmul.f32 %v321_v3, %v321_v3  ;;  %v409_v18 = vmul.f32 %v322_v63, %v322_v63  ;;  %v359_v20 = vadd.f32 %v358_v16, %v357_v6 }
  0xe9   :  { %v388_v19 = vsel %vm333_vm2, %v379_v12, 0.0  ;;  %v161_v21 = vadd.f32 %v535_v58, %v709_v29  ;;  %v306_v24 = vadd.f32 %v571_v59, %v709_v29  ;;  %v156_v25 = vadd.f32 %v709_v29, %v155_v8  ;;  %v165_v45 = vpop.f32.mrf.mxu0  ;;  %v310_v50 = vpop.f32.mrf.mxu1 }
  0xea   :  { %v389_v22 = vadd.f32 %v388_v19, %v387_v5  ;;  %v417_v23 = vsel %vm333_vm2, %v408_v17, 0.0  ;;  %v340_v30 = vadd.f32 %v339_v9, %v338_v15  ;;  %v301_v31 = vadd.f32 %v709_v29, %v300_v13 }
  0xeb   :  { %v418_v27 = vadd.f32 %v417_v23, %v416_v7  ;;  %v179_v28 = vmax.f32 %v161_v21, 0.0  ;;  %v390_v33 = vsel %vm333_vm2, %v380_v10, 0.0  ;;  %v324_v34 = vmax.f32 %v306_v24, 0.0 }
  0xec   :  { %v178_v35 = vmax.f32 %v156_v25, 0.0  ;;  %v361_v36 = vadd.f32 %v360_v14, %v359_v20  ;;  %v419_v37 = vsel %vm333_vm2, %v409_v18, 0.0  ;;  %v391_v39 = vadd.f32 %v390_v33, %v389_v22 }
  0xed   :  { %v343_v38 = vsel %vm333_vm2, %v179_v28, 0.0  ;;  %v323_v40 = vmax.f32 %v301_v31, 0.0  ;;  %v382_v41 = vmul.f32 %v179_v28, %v179_v28  ;;  %v420_v44 = vadd.f32 %v419_v37, %v418_v27 }
  0xee   :  { %v341_v42 = vsel %vm333_vm2, %v178_v35, 0.0  ;;  %v381_v43 = vmul.f32 %v178_v35, %v178_v35  ;;  %v364_v46 = vsel %vm333_vm2, %v324_v34, 0.0  ;;  %v411_v51 = vmul.f32 %v324_v34, %v324_v34 }
  0xef   :  { %v342_v47 = vadd.f32 %v341_v42, %v340_v30  ;;  %v362_v48 = vsel %vm333_vm2, %v323_v40, 0.0  ;;  %v410_v49 = vmul.f32 %v323_v40, %v323_v40  ;;  %v171_v54 = vadd.f32 %v538_v26, %v709_v29 }
  0xf0   :  { %v392_v52 = vsel %vm333_vm2, %v381_v43, 0.0  ;;  %v363_v53 = vadd.f32 %v362_v48, %v361_v36  ;;  %v316_v57 = vadd.f32 %v574_v32, %v709_v29  ;;  %v166_v58 = vadd.f32 %v709_v29, %v165_v45 }
  0xf1   :  { %v393_v55 = vadd.f32 %v392_v52, %v391_v39  ;;  %v421_v56 = vsel %vm333_vm2, %v410_v49, 0.0  ;;  %v181_v60 = vmax.f32 %v171_v54, 0.0  ;;  %v344_v61 = vadd.f32 %v343_v38, %v342_v47 }
  0xf2   :  { %v422_v59 = vadd.f32 %v421_v56, %v420_v44  ;;  %v311_v62 = vadd.f32 %v709_v29, %v310_v50  ;;  %v394_v63 = vsel %vm333_vm2, %v382_v41, 0.0  ;;  %v326_v0 = vmax.f32 %v316_v57, 0.0 }
  0xf3   :  { %v180_v1 = vmax.f32 %v166_v58, 0.0  ;;  %v365_v2 = vadd.f32 %v364_v46, %v363_v53  ;;  %v423_v3 = vsel %vm333_vm2, %v411_v51, 0.0  ;;  %v395_v4 = vadd.f32 %v394_v63, %v393_v55  ;;  %v436_v53 = vld [vmem:[%s769_s4] sm:$0x3] }
  0xf4   :  { %v325_v5 = vmax.f32 %v311_v62, 0.0  ;;  %v384_v6 = vmul.f32 %v181_v60, %v181_v60  ;;  %v424_v9 = vadd.f32 %v423_v3, %v422_v59  ;;  %v413_v10 = vmul.f32 %v326_v0, %v326_v0 }
  0xf5   :  { %v345_v7 = vsel %vm333_vm2, %v180_v1, 0.0  ;;  %v383_v8 = vmul.f32 %v180_v1, %v180_v1  ;;  %v347_v29 = vsel %vm333_vm2, %v181_v60, 0.0  ;;  %v368_v16 = vsel %vm333_vm2, %v326_v0, 0.0 }
  0xf6   :  { %v346_v11 = vadd.f32 %v345_v7, %v344_v61  ;;  %v366_v12 = vsel %vm333_vm2, %v325_v5, 0.0  ;;  %v412_v13 = vmul.f32 %v325_v5, %v325_v5  ;;  %v398_v20 = vsel %vm333_vm2, %v384_v6, 0.0 }
  0xf7   :  { %v396_v14 = vsel %vm333_vm2, %v383_v8, 0.0  ;;  %v367_v15 = vadd.f32 %v366_v12, %v365_v2  ;;  %v427_v23 = vsel %vm333_vm2, %v413_v10, 0.0 }
  0xf8   :  { %v348_v17 = vadd.f32 %v347_v29, %v346_v11  ;;  %v397_v18 = vadd.f32 %v396_v14, %v395_v4  ;;  %v425_v19 = vsel %vm333_vm2, %v412_v13, 0.0 }
  0xf9   :  { %v369_v21 = vadd.f32 %v368_v16, %v367_v15  ;;  %v426_v22 = vadd.f32 %v425_v19, %v424_v9 }
  0xfa   :  { %v349_v24 = vrot.slane %v348_v17, 4  ;;  %v399_v25 = vadd.f32 %v398_v20, %v397_v18 }
  0xfb   :  { %v370_v26 = vrot.slane %v369_v21, 4  ;;  %v428_v27 = vadd.f32 %v427_v23, %v426_v22 }
  0xfc   :  { %v350_v28 = vadd.f32 %v349_v24, %v348_v17  ;;  %v400_v30 = vrot.slane %v399_v25, 4 }
  0xfd   :  { %v371_v31 = vadd.f32 %v370_v26, %v369_v21  ;;  %v429_v32 = vrot.slane %v428_v27, 4 }
  0xfe   :  { %v351_v33 = vrot.slane %v350_v28, 2  ;;  %v401_v34 = vadd.f32 %v400_v30, %v399_v25 }
  0xff   :  { %v372_v35 = vrot.slane %v371_v31, 2  ;;  %v430_v36 = vadd.f32 %v429_v32, %v428_v27 }
 0x100   :  { %v352_v37 = vadd.f32 %v351_v33, %v350_v28  ;;  %v402_v38 = vrot.slane %v401_v34, 2 }
 0x101   :  { %v373_v39 = vadd.f32 %v372_v35, %v371_v31  ;;  %v431_v40 = vrot.slane %v430_v36, 2 }
 0x102   :  { %v353_v41 = vrot.slane %v352_v37, 1  ;;  %v403_v42 = vadd.f32 %v402_v38, %v401_v34 }
 0x103   :  { %v374_v43 = vrot.slane %v373_v39, 1  ;;  %v432_v44 = vadd.f32 %v431_v40, %v430_v36 }
 0x104   :  { %v404_v45 = vrot.slane %v403_v42, 1  ;;  %v354_v46 = vadd.f32 %v353_v41, %v352_v37 }
 0x105   :  { %v375_v47 = vadd.f32 %v374_v43, %v373_v39  ;;  %v433_v48 = vrot.slane %v432_v44, 1 }
 0x106   :  { %v405_v49 = vadd.f32 %v404_v45, %v403_v42 }
 0x107   :  { %v434_v50 = vadd.f32 %v433_v48, %v432_v44  ;;  %v376_v51 = vadd.f32 %v375_v47, %v354_v46 }
 0x109   :  { %v435_v52 = vadd.f32 %v434_v50, %v405_v49 }
 0x10b   :  { %v438_v54 = vsel %vm437_vm3, %v376_v51, %v435_v52 }
 0x10c   :  { %v439_v55 = vadd.f32 %v438_v54, %v436_v53 }
 0x10e   :  { %441 = vst.msk [vmem:[%s769_s4] sm:$0x3] %vm331_vm1, %v439_v55 }

// kernel: morse_net_forward.12
= control target key start
LH: loop header
LB: loop body
LE: loop exit
PB: predicated region body
PF: predicated region fallthrough
CT: control target
= control target key end

     0   :  { %vm50_vm0 = vcmask 785408   ;;  %vm387_vm1 = vcmask 523264   ;;  %s761_s2 = inlined_call_operand.vmem [shape: f32[96,64], index: 2, kind: input, shape index: {}]   ;;  %s762_s0 = inlined_call_operand.vmem [shape: f32[64,96], index: 0, kind: input, shape index: {}]   ;;  %s763_s1 = inlined_call_operand.vmem [shape: f32[64,96], index: 1, kind: input, shape index: {}]   ;;  %s764_s3 = inlined_call_operand.vmem [shape: f32[1,64], index: 3, kind: input, shape index: {}]   ;;  %s765_s4 = inlined_call_operand.vmem [shape: f32[1,64], index: 4, kind: input, shape index: {}]   ;;  %s766_s5 = inlined_call_operand.vmem [shape: f32[1,64], index: 5, kind: input, shape index: {}]   ;;  %s767_s6 = inlined_call_operand.vmem [shape: f32[64,64], index: 6, kind: output, shape index: {}]  }
   0x1   :  { %v42_v0 = vld [vmem:[%s761_s2 + $0x58] sm:$0xff]  ;;  %v41_v1 = vld [vmem:[%s761_s2 + $0x50] sm:$0xff]  ;;  %v40_v2 = vld [vmem:[%s761_s2 + $0x48] sm:$0xff] }
   0x2   :  { %459 = vmatprep.subr.mxu0 %v42_v0  ;;  %495 = vmatprep.subr.mxu1 %v42_v0  ;;  %v39_v3 = vld [vmem:[%s761_s2 + $0x40] sm:$0xff]  ;;  %v38_v4 = vld [vmem:[%s761_s2 + $0x38] sm:$0xff]  ;;  %v37_v5 = vld [vmem:[%s761_s2 + $0x30] sm:$0xff] }
   0x3   :  { %460 = vmatpush3.msra.mxu0 %v42_v0  ;;  %496 = vmatpush3.msra.mxu1 %v42_v0  ;;  %v36_v6 = vld [vmem:[%s761_s2 + $0x28] sm:$0xff]  ;;  %v35_v7 = vld [vmem:[%s761_s2 + $0x20] sm:$0xff]  ;;  %v34_v8 = vld [vmem:[%s761_s2 + $0x18] sm:$0xff] }
   0x4   :  { %461 = vmatprep.subr.mxu0 %v41_v1  ;;  %497 = vmatprep.subr.mxu1 %v41_v1  ;;  %v33_v9 = vld [vmem:[%s761_s2 + $0x10] sm:$0xff]  ;;  %v32_v10 = vld [vmem:[%s761_s2 + $0x8] sm:$0xff]  ;;  %v31_v11 = vld [vmem:[%s761_s2] sm:$0xff] }
   0x5   :  { %462 = vmatpush3.msra.mxu0 %v41_v1  ;;  %498 = vmatpush3.msra.mxu1 %v41_v1  ;;  %v23_v12 = vld [vmem:[%s762_s0] sm:$0xff]  ;;  %v24_v14 = vld [vmem:[%s762_s0 + $0x8] sm:$0xff]  ;;  %v25_v16 = vld [vmem:[%s762_s0 + $0x10] sm:$0xff] }
   0x6   :  { %463 = vmatprep.subr.mxu0 %v40_v2  ;;  %499 = vmatprep.subr.mxu1 %v40_v2  ;;  %v188_v13 = vld [vmem:[%s763_s1] sm:$0xff]  ;;  %v189_v15 = vld [vmem:[%s763_s1 + $0x8] sm:$0xff]  ;;  %v190_v17 = vld [vmem:[%s763_s1 + $0x10] sm:$0xff] }
   0x7   :  { %464 = vmatpush3.msra.mxu0 %v40_v2  ;;  %500 = vmatpush3.msra.mxu1 %v40_v2  ;;  %v26_v18 = vld [vmem:[%s762_s0 + $0x18] sm:$0xff]  ;;  %v27_v20 = vld [vmem:[%s762_s0 + $0x20] sm:$0xff]  ;;  %v28_v22 = vld [vmem:[%s762_s0 + $0x28] sm:$0xff] }
   0x8   :  { %465 = vmatprep.subr.mxu0 %v39_v3  ;;  %501 = vmatprep.subr.mxu1 %v39_v3  ;;  %v191_v19 = vld [vmem:[%s763_s1 + $0x18] sm:$0xff]  ;;  %v192_v21 = vld [vmem:[%s763_s1 + $0x20] sm:$0xff]  ;;  %v193_v23 = vld [vmem:[%s763_s1 + $0x28] sm:$0xff] }
   0x9   :  { %466 = vmatpush3.msra.mxu0 %v39_v3  ;;  %502 = vmatpush3.msra.mxu1 %v39_v3  ;;  %v29_v24 = vld [vmem:[%s762_s0 + $0x30] sm:$0xff]  ;;  %v30_v26 = vld [vmem:[%s762_s0 + $0x38] sm:$0xff]  ;;  %v669_v28 = vld [vmem:[%s764_s3] ss:$0 sm:$0xff] }
   0xa   :  { %467 = vmatprep.subr.mxu0 %v38_v4  ;;  %503 = vmatprep.subr.mxu1 %v38_v4  ;;  %v194_v25 = vld [vmem:[%s763_s1 + $0x30] sm:$0xff]  ;;  %v195_v27 = vld [vmem:[%s763_s1 + $0x38] sm:$0xff]  ;;  %v676_v33 = vld [vmem:[%s765_s4] ss:$0 sm:$0xff] }
   0xb   :  { %468 = vmatpush3.msra.mxu0 %v38_v4  ;;  %504 = vmatpush3.msra.mxu1 %v38_v4  ;;  %v683_v40 = vld [vmem:[%s766_s5] ss:$0 sm:$0xff] }
   0xc   :  { %469 = vmatprep.subr.mxu0 %v37_v5  ;;  %505 = vmatprep.subr.mxu1 %v37_v5 }
   0xd   :  { %470 = vmatpush3.msra.mxu0 %v37_v5  ;;  %506 = vmatpush3.msra.mxu1 %v37_v5 }
   0xe   :  { %471 = vmatprep.subr.mxu0 %v36_v6  ;;  %507 = vmatprep.subr.mxu1 %v36_v6 }
   0xf   :  { %472 = vmatpush3.msra.mxu0 %v36_v6  ;;  %508 = vmatpush3.msra.mxu1 %v36_v6 }
  0x10   :  { %473 = vmatprep.subr.mxu0 %v35_v7  ;;  %509 = vmatprep.subr.mxu1 %v35_v7 }
  0x11   :  { %474 = vmatpush3.msra.mxu0 %v35_v7  ;;  %510 = vmatpush3.msra.mxu1 %v35_v7 }
  0x12   :  { %475 = vmatprep.subr.mxu0 %v34_v8  ;;  %511 = vmatprep.subr.mxu1 %v34_v8 }
  0x13   :  { %476 = vmatpush3.msra.mxu0 %v34_v8  ;;  %512 = vmatpush3.msra.mxu1 %v34_v8 }
  0x14   :  { %477 = vmatprep.subr.mxu0 %v33_v9  ;;  %513 = vmatprep.subr.mxu1 %v33_v9 }
  0x15   :  { %478 = vmatpush3.msra.mxu0 %v33_v9  ;;  %514 = vmatpush3.msra.mxu1 %v33_v9 }
  0x16   :  { %479 = vmatprep.subr.mxu0 %v32_v10  ;;  %515 = vmatprep.subr.mxu1 %v32_v10 }
  0x17   :  { %480 = vmatpush3.msra.mxu0 %v32_v10  ;;  %516 = vmatpush3.msra.mxu1 %v32_v10 }
  0x18   :  { %481 = vmatprep.subr.mxu0 %v31_v11  ;;  %517 = vmatprep.subr.mxu1 %v31_v11 }
  0x19   :  { %482 = vmatpush3.msra.mxu0 %v31_v11  ;;  %483 = vmatprep.mubr.msk.f32.mxu0 %vm50_vm0, %v23_v12 }
  0x1a   :  { %518 = vmatpush3.msra.mxu1 %v31_v11  ;;  %519 = vmatprep.mubr.msk.f32.mxu1 %vm50_vm0, %v188_v13 }
  0x1b   :  { %484 = vmatmul.mubr.msk.f32.vlgmr.msra.gmra.mxu0 %vm50_vm0, %v24_v14  ;;  %520 = vmatmul.mubr.msk.f32.vlgmr.msra.gmra.mxu1 %vm50_vm0, %v189_v15 }
  0x1c   :  { %486 = vmatprep.mubr.msk.f32.mxu0 %vm50_vm0, %v25_v16  ;;  %522 = vmatprep.mubr.msk.f32.mxu1 %vm50_vm0, %v190_v17 }
  0x1f   :  { %487 = vmatmul.mubr.msk.f32.gmra.mxu0 %vm50_vm0, %v26_v18  ;;  %523 = vmatmul.mubr.msk.f32.gmra.mxu1 %vm50_vm0, %v191_v19 }
  0x20   :  { %489 = vmatprep.mubr.msk.f32.mxu0 %vm50_vm0, %v27_v20  ;;  %525 = vmatprep.mubr.msk.f32.mxu1 %vm50_vm0, %v192_v21 }
  0x23   :  { %490 = vmatmul.mubr.msk.f32.gmra.mxu0 %vm50_vm0, %v28_v22  ;;  %526 = vmatmul.mubr.msk.f32.gmra.mxu1 %vm50_vm0, %v193_v23 }
  0x24   :  { %492 = vmatprep.mubr.msk.f32.mxu0 %vm50_vm0, %v29_v24  ;;  %528 = vmatprep.mubr.msk.f32.mxu1 %vm50_vm0, %v194_v25 }
  0x27   :  { %493 = vmatmul.mubr.msk.f32.gmra.mxu0 %vm50_vm0, %v30_v26  ;;  %529 = vmatmul.mubr.msk.f32.gmra.mxu1 %vm50_vm0, %v195_v27 }
  0xdb   :  { %v485_v29 = vpop.f32.mrf.mxu0  ;;  %v521_v30 = vpop.f32.mrf.mxu1 }
  0xdc   :  { %v147_v31 = vadd.f32 %v485_v29, %v669_v28  ;;  %v292_v32 = vadd.f32 %v521_v30, %v669_v28 }
  0xdd   :  { %v141_v34 = vpop.f32.mrf.mxu0  ;;  %v286_v35 = vpop.f32.mrf.mxu1 }
  0xde   :  { %v181_v36 = vmax.f32 %v147_v31, 0.0  ;;  %v326_v37 = vmax.f32 %v292_v32, 0.0  ;;  %v142_v38 = vadd.f32 %v669_v28, %v141_v34  ;;  %v287_v39 = vadd.f32 %v669_v28, %v286_v35 }
  0xdf   :  { %v488_v41 = vpop.f32.mrf.mxu0  ;;  %v524_v42 = vpop.f32.mrf.mxu1 }
  0xe0   :  { %v341_v43 = vmul.f32 %v676_v33, %v181_v36  ;;  %v364_v44 = vmul.f32 %v676_v33, %v326_v37  ;;  %v180_v45 = vmax.f32 %v142_v38, 0.0  ;;  %v325_v46 = vmax.f32 %v287_v39, 0.0 }
  0xe1   :  { %v157_v47 = vadd.f32 %v488_v41, %v669_v28  ;;  %v302_v48 = vadd.f32 %v524_v42, %v669_v28  ;;  %v151_v49 = vpop.f32.mrf.mxu0  ;;  %v296_v50 = vpop.f32.mrf.mxu1 }
  0xe2   :  { %v356_v51 = vadd.f32 %v683_v40, %v341_v43  ;;  %v372_v52 = vadd.f32 %v683_v40, %v364_v44  ;;  %v340_v53 = vmul.f32 %v676_v33, %v180_v45  ;;  %v363_v54 = vmul.f32 %v676_v33, %v325_v46 }
  0xe3   :  { %v183_v55 = vmax.f32 %v157_v47, 0.0  ;;  %v328_v56 = vmax.f32 %v302_v48, 0.0  ;;  %v152_v57 = vadd.f32 %v669_v28, %v151_v49  ;;  %v297_v58 = vadd.f32 %v669_v28, %v296_v50  ;;  %v491_v59 = vpop.f32.mrf.mxu0  ;;  %v527_v60 = vpop.f32.mrf.mxu1 }
  0xe4   :  { %v380_v61 = vmax.f32 %v356_v51, %v372_v52  ;;  %v355_v62 = vadd.f32 %v683_v40, %v340_v53  ;;  %v371_v63 = vadd.f32 %v683_v40, %v363_v54  ;;  %v167_v0 = vadd.f32 %v491_v59, %v669_v28 }
  0xe5   :  { %v343_v1 = vmul.f32 %v676_v33, %v183_v55  ;;  %v366_v2 = vmul.f32 %v676_v33, %v328_v56  ;;  %v182_v3 = vmax.f32 %v152_v57, 0.0  ;;  %v327_v4 = vmax.f32 %v297_v58, 0.0  ;;  %v161_v5 = vpop.f32.mrf.mxu0  ;;  %v306_v6 = vpop.f32.mrf.mxu1 }
  0xe6   :  { %389 = vst.msk [vmem:[%s767_s6 + $0x8] sm:$0xff] %vm387_vm1, %v380_v61  ;;  %v379_v7 = vmax.f32 %v355_v62, %v371_v63  ;;  %v185_v8 = vmax.f32 %v167_v0, 0.0  ;;  %v312_v9 = vadd.f32 %v527_v60, %v669_v28  ;;  %v162_v10 = vadd.f32 %v669_v28, %v161_v5 }
  0xe7   :  { %v358_v11 = vadd.f32 %v683_v40, %v343_v1  ;;  %v374_v12 = vadd.f32 %v683_v40, %v366_v2  ;;  %v342_v13 = vmul.f32 %v676_v33, %v182_v3  ;;  %v365_v14 = vmul.f32 %v676_v33, %v327_v4  ;;  %v494_v15 = vpop.f32.mrf.mxu0  ;;  %v530_v16 = vpop.f32.mrf.mxu1 }
  0xe8   :  { %388 = vst.msk [vmem:[%s767_s6] sm:$0xff] %vm387_vm1, %v379_v7  ;;  %v345_v17 = vmul.f32 %v676_v33, %v185_v8  ;;  %v330_v18 = vmax.f32 %v312_v9, 0.0  ;;  %v184_v19 = vmax.f32 %v162_v10, 0.0  ;;  %v307_v20 = vadd.f32 %v669_v28, %v306_v6 }
  0xe9   :  { %v382_v21 = vmax.f32 %v358_v11, %v374_v12  ;;  %v357_v22 = vadd.f32 %v683_v40, %v342_v13  ;;  %v373_v23 = vadd.f32 %v683_v40, %v365_v14  ;;  %v177_v24 = vadd.f32 %v494_v15, %v669_v28  ;;  %v171_v25 = vpop.f32.mrf.mxu0  ;;  %v316_v26 = vpop.f32.mrf.mxu1 }
  0xea   :  { %v360_v27 = vadd.f32 %v683_v40, %v345_v17  ;;  %v368_v29 = vmul.f32 %v676_v33, %v330_v18  ;;  %v344_v30 = vmul.f32 %v676_v33, %v184_v19  ;;  %v329_v31 = vmax.f32 %v307_v20, 0.0 }
  0xeb   :  { %391 = vst.msk [vmem:[%s767_s6 + $0x18] sm:$0xff] %vm387_vm1, %v382_v21  ;;  %v381_v32 = vmax.f32 %v357_v22, %v373_v23  ;;  %v187_v34 = vmax.f32 %v177_v24, 0.0  ;;  %v322_v35 = vadd.f32 %v530_v16, %v669_v28  ;;  %v172_v36 = vadd.f32 %v669_v28, %v171_v25 }
  0xec   :  { %v376_v37 = vadd.f32 %v683_v40, %v368_v29  ;;  %v359_v38 = vadd.f32 %v683_v40, %v344_v30  ;;  %v367_v39 = vmul.f32 %v676_v33, %v329_v31  ;;  %v317_v41 = vadd.f32 %v669_v28, %v316_v26 }
  0xed   :  { %390 = vst.msk [vmem:[%s767_s6 + $0x10] sm:$0xff] %vm387_vm1, %v381_v32  ;;  %v347_v42 = vmul.f32 %v676_v33, %v187_v34  ;;  %v332_v43 = vmax.f32 %v322_v35, 0.0  ;;  %v186_v44 = vmax.f32 %v172_v36, 0.0 }
  0xee   :  { %v384_v45 = vmax.f32 %v360_v27, %v376_v37  ;;  %v375_v46 = vadd.f32 %v683_v40, %v367_v39  ;;  %v331_v47 = vmax.f32 %v317_v41, 0.0 }
  0xef   :  { %v362_v48 = vadd.f32 %v683_v40, %v347_v42  ;;  %v370_v49 = vmul.f32 %v676_v33, %v332_v43  ;;  %v346_v50 = vmul.f32 %v676_v33, %v186_v44 }
  0xf0   :  { %393 = vst.msk [vmem:[%s767_s6 + $0x28] sm:$0xff] %vm387_vm1, %v384_v45  ;;  %v383_v28 = vmax.f32 %v359_v38, %v375_v46  ;;  %v369_v51 = vmul.f32 %v676_v33, %v331_v47 }
  0xf1   :  { %v378_v52 = vadd.f32 %v683_v40, %v370_v49  ;;  %v361_v53 = vadd.f32 %v683_v40, %v346_v50 }
  0xf2   :  { %392 = vst.msk [vmem:[%s767_s6 + $0x20] sm:$0xff] %vm387_vm1, %v383_v28  ;;  %v377_v54 = vadd.f32 %v683_v40, %v369_v51 }
  0xf3   :  { %v386_v55 = vmax.f32 %v362_v48, %v378_v52 }
  0xf4   :  { %v385_v56 = vmax.f32 %v361_v53, %v377_v54 }
  0xf5   :  { %395 = vst.msk [vmem:[%s767_s6 + $0x38] sm:$0xff] %vm387_vm1, %v386_v55 }
  0xf6   :  { %394 = vst.msk [vmem:[%s767_s6 + $0x30] sm:$0xff] %vm387_vm1, %v385_v56 }

// kernel: morse_net_forward.13
= control target key start
LH: loop header
LB: loop body
LE: loop exit
PB: predicated region body
PF: predicated region fallthrough
CT: control target
= control target key end

     0   :  { %v559_v3 = vmov 0.0   ;;  %vm102_vm0 = vcmask 523264   ;;  %v72_v57 = vlaneseq  ;;  %s1016_s1 = inlined_call_operand.vmem [shape: f32[64,768], index: 1, kind: input, shape index: {}]   ;;  %s1017_s0 = inlined_call_operand.vmem [shape: f32[64,64], index: 0, kind: input, shape index: {}]   ;;  %s1018_s2 = inlined_call_operand.vmem [shape: f32[1,768], index: 2, kind: input, shape index: {}]   ;;  %s1019_s3 = inlined_call_operand.vmem [shape: f32[64,768], index: 3, kind: output, shape index: {}]  }
   0x1   :  { %v65_v0 = vld [vmem:[%s1016_s1 + $0x158] sm:$0xff]  ;;  %v64_v1 = vld [vmem:[%s1016_s1 + $0x150] sm:$0xff]  ;;  %v59_v2 = vld [vmem:[%s1016_s1 + $0x128] sm:$0xff]  ;;  %191 = vmatprep.mubr.f32.mxu0 %v559_v3  ;;  %215 = vmatprep.mubr.f32.mxu1 %v559_v3 }
   0x2   :  { %143 = vmatprep.subr.mxu0 %v65_v0  ;;  %542 = vmatprep.subr.mxu1 %v65_v0  ;;  %v58_v4 = vld [vmem:[%s1016_s1 + $0x120] sm:$0xff]  ;;  %v53_v5 = vld [vmem:[%s1016_s1 + $0xf8] sm:$0xff]  ;;  %v52_v6 = vld [vmem:[%s1016_s1 + $0xf0] sm:$0xff]  ;;  %v821_v58 = vshrl.u32 %v72_v57, 7 }
   0x3   :  { %144 = vmatpush1.msra.mxu0 %v64_v1  ;;  %550 = vmatpush1.msra.mxu1 %v64_v1  ;;  %v47_v7 = vld [vmem:[%s1016_s1 + $0xc8] sm:$0xff]  ;;  %v46_v8 = vld [vmem:[%s1016_s1 + $0xc0] sm:$0xff]  ;;  %v41_v9 = vld [vmem:[%s1016_s1 + $0x98] sm:$0xff] }
   0x4   :  { %145 = vmatprep.subr.mxu0 %v59_v2  ;;  %543 = vmatprep.subr.mxu1 %v59_v2  ;;  %v40_v10 = vld [vmem:[%s1016_s1 + $0x90] sm:$0xff]  ;;  %v35_v11 = vld [vmem:[%s1016_s1 + $0x68] sm:$0xff]  ;;  %v34_v12 = vld [vmem:[%s1016_s1 + $0x60] sm:$0xff]  ;;  %v74_v59 = vsub.s32 0, %v821_v58  ;;  %v78_v61 = vsub.s32 1, %v821_v58 }
   0x5   :  { %146 = vmatpush1.msra.mxu0 %v58_v4  ;;  %551 = vmatpush1.msra.mxu1 %v58_v4  ;;  %v29_v13 = vld [vmem:[%s1016_s1 + $0x38] sm:$0xff]  ;;  %v28_v14 = vld [vmem:[%s1016_s1 + $0x30] sm:$0xff]  ;;  %v23_v15 = vld [vmem:[%s1016_s1 + $0x8] sm:$0xff] }
   0x6   :  { %147 = vmatprep.subr.mxu0 %v53_v5  ;;  %544 = vmatprep.subr.mxu1 %v53_v5  ;;  %v22_v16 = vld [vmem:[%s1016_s1] sm:$0xff]  ;;  %v67_v19 = vld [vmem:[%s1016_s1 + $0x168] sm:$0xff]  ;;  %v69_v20 = vld [vmem:[%s1016_s1 + $0x178] sm:$0xff] }
   0x7   :  { %148 = vmatpush1.msra.mxu0 %v52_v6  ;;  %552 = vmatpush1.msra.mxu1 %v52_v6  ;;  %v633_v17 = vld [vmem:[%s1017_s0] sm:$0xff]  ;;  %v68_v22 = vld [vmem:[%s1016_s1 + $0x170] sm:$0xff]  ;;  %v61_v23 = vld [vmem:[%s1016_s1 + $0x138] sm:$0xff] }
   0x8   :  { %149 = vmatprep.subr.mxu0 %v47_v7  ;;  %545 = vmatprep.subr.mxu1 %v47_v7  ;;  %v638_v18 = vld [vmem:[%s1017_s0 + $0x20] sm:$0xff]  ;;  %v63_v24 = vld [vmem:[%s1016_s1 + $0x148] sm:$0xff]  ;;  %v60_v25 = vld [vmem:[%s1016_s1 + $0x130] sm:$0xff] }
   0x9   :  { %150 = vmatpush1.msra.mxu0 %v46_v8  ;;  %553 = vmatpush1.msra.mxu1 %v46_v8  ;;  %v66_v21 = vld [vmem:[%s1016_s1 + $0x160] sm:$0xff]  ;;  %v671_v27 = vld [vmem:[%s1017_s0 + $0x8] sm:$0xff]  ;;  %v57_v30 = vld [vmem:[%s1016_s1 + $0x118] sm:$0xff] }
   0xa   :  { %151 = vmatprep.subr.mxu0 %v41_v9  ;;  %546 = vmatprep.subr.mxu1 %v41_v9  ;;  %v62_v26 = vld [vmem:[%s1016_s1 + $0x140] sm:$0xff]  ;;  %v676_v28 = vld [vmem:[%s1017_s0 + $0x28] sm:$0xff]  ;;  %v56_v32 = vld [vmem:[%s1016_s1 + $0x110] sm:$0xff] }
   0xb   :  { %152 = vmatpush1.msra.mxu0 %v40_v10  ;;  %554 = vmatpush1.msra.mxu1 %v40_v10  ;;  %v55_v29 = vld [vmem:[%s1016_s1 + $0x108] sm:$0xff]  ;;  %v54_v31 = vld [vmem:[%s1016_s1 + $0x100] sm:$0xff]  ;;  %v49_v33 = vld [vmem:[%s1016_s1 + $0xd8] sm:$0xff] }
   0xc   :  { %153 = vmatprep.subr.mxu0 %v35_v11  ;;  %547 = vmatprep.subr.mxu1 %v35_v11  ;;  %v51_v34 = vld [vmem:[%s1016_s1 + $0xe8] sm:$0xff]  ;;  %v48_v35 = vld [vmem:[%s1016_s1 + $0xd0] sm:$0xff]  ;;  %v50_v36 = vld [vmem:[%s1016_s1 + $0xe0] sm:$0xff] }
   0xd   :  { %154 = vmatpush1.msra.mxu0 %v34_v12  ;;  %555 = vmatpush1.msra.mxu1 %v34_v12  ;;  %v16_v37 = vld [vmem:[%s1017_s0 + $0x10] sm:$0xff]  ;;  %v43_v39 = vld [vmem:[%s1016_s1 + $0xa8] sm:$0xff]  ;;  %v45_v40 = vld [vmem:[%s1016_s1 + $0xb8] sm:$0xff] }
   0xe   :  { %155 = vmatprep.subr.mxu0 %v29_v13  ;;  %548 = vmatprep.subr.mxu1 %v29_v13  ;;  %v714_v38 = vld [vmem:[%s1017_s0 + $0x30] sm:$0xff]  ;;  %v42_v41 = vld [vmem:[%s1016_s1 + $0xa0] sm:$0xff]  ;;  %v37_v43 = vld [vmem:[%s1016_s1 + $0x78] sm:$0xff] }
   0xf   :  { %156 = vmatpush1.msra.mxu0 %v28_v14  ;;  %556 = vmatpush1.msra.mxu1 %v28_v14  ;;  %v44_v42 = vld [vmem:[%s1016_s1 + $0xb0] sm:$0xff]  ;;  %v39_v44 = vld [vmem:[%s1016_s1 + $0x88] sm:$0xff]  ;;  %v38_v46 = vld [vmem:[%s1016_s1 + $0x80] sm:$0xff] }
  0x10   :  { %157 = vmatprep.subr.mxu0 %v23_v15  ;;  %549 = vmatprep.subr.mxu1 %v23_v15  ;;  %v36_v45 = vld [vmem:[%s1016_s1 + $0x70] sm:$0xff]  ;;  %v17_v47 = vld [vmem:[%s1017_s0 + $0x18] sm:$0xff]  ;;  %v31_v49 = vld [vmem:[%s1016_s1 + $0x48] sm:$0xff] }
  0x11   :  { %158 = vmatpush1.msra.mxu0 %v22_v16  ;;  %557 = vmatpush1.msra.mxu1 %v22_v16  ;;  %v21_v48 = vld [vmem:[%s1017_s0 + $0x38] sm:$0xff]  ;;  %v30_v51 = vld [vmem:[%s1016_s1 + $0x40] sm:$0xff]  ;;  %v32_v52 = vld [vmem:[%s1016_s1 + $0x50] sm:$0xff] }
  0x12   :  { %518 = vmatmul.mubr.msk.f32.vlgmr.msra.gmra.mxu0 %vm102_vm0, %v633_v17  ;;  %522 = vmatmul.mubr.msk.f32.vlgmr.msra.gmra.mxu1 %vm102_vm0, %v638_v18  ;;  %v33_v50 = vld [vmem:[%s1016_s1 + $0x58] sm:$0xff]  ;;  %v27_v54 = vld [vmem:[%s1016_s1 + $0x28] sm:$0xff]  ;;  %v24_v55 = vld [vmem:[%s1016_s1 + $0x10] sm:$0xff] }
  0x13   :  { %256 = vmatprep.subr.mxu1 %v67_v19  ;;  %369 = vmatprep.subr.mxu0 %v69_v20  ;;  %v25_v53 = vld [vmem:[%s1016_s1 + $0x18] sm:$0xff]  ;;  %v26_v56 = vld [vmem:[%s1016_s1 + $0x20] sm:$0xff] }
  0x14   :  { %257 = vmatpush1.msra.mxu1 %v66_v21  ;;  %370 = vmatpush1.msra.mxu0 %v68_v22  ;;  %v70_v60 = vld [vmem:[%s1018_s2] sm:$0x3f] }
  0x15   :  { %258 = vmatprep.subr.mxu1 %v61_v23  ;;  %371 = vmatprep.subr.mxu0 %v63_v24  ;;  %v75_v62 = vrot.slane %v70_v60, %v74_v59  ;;  %v79_v63 = vrot.slane %v70_v60, %v78_v61  ;;  %v82_v24 = vsub.s32 2, %v821_v58 }
  0x16   :  { %197 = vmatprep.mubr.f32.mxu0 %v559_v3  ;;  %221 = vmatprep.mubr.f32.mxu1 %v559_v3 }
  0x17   :  { %259 = vmatpush1.msra.mxu1 %v60_v25  ;;  %372 = vmatpush1.msra.mxu0 %v62_v26  ;;  %v90_v25 = vsub.s32 4, %v821_v58 }
  0x18   :  { %519 = vmatmul.mubr.msk.f32.gmra.mxu0 %vm102_vm0, %v671_v27  ;;  %523 = vmatmul.mubr.msk.f32.gmra.mxu1 %vm102_vm0, %v676_v28 }
  0x19   :  { %260 = vmatprep.subr.mxu1 %v55_v29  ;;  %373 = vmatprep.subr.mxu0 %v57_v30  ;;  %v86_v30 = vsub.s32 3, %v821_v58 }
  0x1a   :  { %261 = vmatpush1.msra.mxu1 %v54_v31  ;;  %374 = vmatpush1.msra.mxu0 %v56_v32  ;;  %v94_v31 = vsub.s32 5, %v821_v58 }
  0x1b   :  { %262 = vmatprep.subr.mxu1 %v49_v33  ;;  %375 = vmatprep.subr.mxu0 %v51_v34 }
  0x1c   :  { %203 = vmatprep.mubr.f32.mxu0 %v559_v3  ;;  %227 = vmatprep.mubr.f32.mxu1 %v559_v3 }
  0x1d   :  { %263 = vmatpush1.msra.mxu1 %v48_v35  ;;  %376 = vmatpush1.msra.mxu0 %v50_v36  ;;  %v874_v36 = vrot.slane %v70_v60, %v82_v24 }
  0x1e   :  { %520 = vmatmul.mubr.msk.f32.gmra.mxu0 %vm102_vm0, %v16_v37  ;;  %524 = vmatmul.mubr.msk.f32.gmra.mxu1 %vm102_vm0, %v714_v38 }
  0x1f   :  { %264 = vmatprep.subr.mxu1 %v43_v39  ;;  %377 = vmatprep.subr.mxu0 %v45_v40  ;;  %v886_v39 = vrot.slane %v70_v60, %v94_v31 }
  0x20   :  { %265 = vmatpush1.msra.mxu1 %v42_v41  ;;  %378 = vmatpush1.msra.mxu0 %v44_v42 }
  0x21   :  { %266 = vmatprep.subr.mxu1 %v37_v43  ;;  %379 = vmatprep.subr.mxu0 %v39_v44 }
  0x22   :  { %209 = vmatprep.mubr.f32.mxu0 %v559_v3  ;;  %233 = vmatprep.mubr.f32.mxu1 %v559_v3 }
  0x23   :  { %267 = vmatpush1.msra.mxu1 %v36_v45  ;;  %380 = vmatpush1.msra.mxu0 %v38_v46 }
  0x24   :  { %521 = vmatmul.mubr.msk.f32.gmra.mxu0 %vm102_vm0, %v17_v47  ;;  %525 = vmatmul.mubr.msk.f32.gmra.mxu1 %vm102_vm0, %v21_v48 }
  0x25   :  { %268 = vmatprep.subr.mxu1 %v31_v49  ;;  %381 = vmatprep.subr.mxu0 %v33_v50 }
  0x26   :  { %269 = vmatpush1.msra.mxu1 %v30_v51  ;;  %382 = vmatpush1.msra.mxu0 %v32_v52 }
  0x27   :  { %270 = vmatprep.subr.mxu1 %v25_v53  ;;  %383 = vmatprep.subr.mxu0 %v27_v54 }
  0x28   :  { %271 = vmatpush1.msra.mxu1 %v24_v55  ;;  %304 = vmatprep.mubr.f32.mxu1 %v559_v3 }
  0x29   :  { %384 = vmatpush1.msra.mxu0 %v26_v56  ;;  %417 = vmatprep.mubr.f32.mxu0 %v559_v3 }
  0x2a   :  { %526 = vmatmul.mubr.msk.f32.vlgmr.msra.gmra.mxu1 %vm102_vm0, %v633_v17  ;;  %534 = vmatmul.mubr.msk.f32.vlgmr.msra.gmra.mxu0 %vm102_vm0, %v633_v17 }
  0x2b   :  { %310 = vmatprep.mubr.f32.mxu1 %v559_v3  ;;  %423 = vmatprep.mubr.f32.mxu0 %v559_v3 }
  0x2e   :  { %527 = vmatmul.mubr.msk.f32.gmra.mxu1 %vm102_vm0, %v671_v27  ;;  %535 = vmatmul.mubr.msk.f32.gmra.mxu0 %vm102_vm0, %v671_v27 }
  0x2f   :  { %316 = vmatprep.mubr.f32.mxu1 %v559_v3  ;;  %429 = vmatprep.mubr.f32.mxu0 %v559_v3 }
  0x32   :  { %528 = vmatmul.mubr.msk.f32.gmra.mxu1 %vm102_vm0, %v16_v37  ;;  %536 = vmatmul.mubr.msk.f32.gmra.mxu0 %vm102_vm0, %v16_v37  ;;  %v876_v37 = vrot.slane %v70_v60, %v90_v25 }
  0x33   :  { %322 = vmatprep.mubr.f32.mxu1 %v559_v3  ;;  %435 = vmatprep.mubr.f32.mxu0 %v559_v3 }
  0x36   :  { %529 = vmatmul.mubr.msk.f32.gmra.mxu1 %vm102_vm0, %v17_v47  ;;  %537 = vmatmul.mubr.msk.f32.gmra.mxu0 %vm102_vm0, %v17_v47 }
  0x37   :  { %328 = vmatprep.mubr.f32.mxu1 %v559_v3  ;;  %441 = vmatprep.mubr.f32.mxu0 %v559_v3 }
  0x3a   :  { %530 = vmatmul.mubr.msk.f32.gmra.mxu1 %vm102_vm0, %v638_v18  ;;  %538 = vmatmul.mubr.msk.f32.gmra.mxu0 %vm102_vm0, %v638_v18 }
  0x3b   :  { %334 = vmatprep.mubr.f32.mxu1 %v559_v3  ;;  %447 = vmatprep.mubr.f32.mxu0 %v559_v3 }
  0x3e   :  { %531 = vmatmul.mubr.msk.f32.gmra.mxu1 %vm102_vm0, %v676_v28  ;;  %539 = vmatmul.mubr.msk.f32.gmra.mxu0 %vm102_vm0, %v676_v28 }
  0x3f   :  { %340 = vmatprep.mubr.f32.mxu1 %v559_v3  ;;  %453 = vmatprep.mubr.f32.mxu0 %v559_v3 }
  0x42   :  { %532 = vmatmul.mubr.msk.f32.gmra.mxu1 %vm102_vm0, %v714_v38  ;;  %540 = vmatmul.mubr.msk.f32.gmra.mxu0 %vm102_vm0, %v714_v38  ;;  %v884_v38 = vrot.slane %v70_v60, %v86_v30 }
  0x43   :  { %346 = vmatprep.mubr.f32.mxu1 %v559_v3  ;;  %459 = vmatprep.mubr.f32.mxu0 %v559_v3 }
  0x46   :  { %533 = vmatmul.mubr.msk.f32.gmra.mxu1 %vm102_vm0, %v21_v48  ;;  %541 = vmatmul.mubr.msk.f32.gmra.mxu0 %vm102_vm0, %v21_v48 }
  0xd2   :  { %v193_v0 = vpop.f32.mrf.mxu0  ;;  %v217_v1 = vpop.f32.mrf.mxu1 }
  0xd3   :  { %v194_v2 = vadd.f32 %v193_v0, %v75_v62  ;;  %v218_v3 = vadd.f32 %v217_v1, %v75_v62 }
  0xd4   :  { %v195_v4 = vpop.f32.mrf.mxu0  ;;  %v219_v5 = vpop.f32.mrf.mxu1 }
  0xd5   :  { %466 = vst [vmem:[%s1019_s3] sm:$0xff] %v194_v2  ;;  %490 = vst [vmem:[%s1019_s3 + $0xc0] sm:$0xff] %v218_v3  ;;  %v196_v6 = vadd.f32 %v195_v4, %v79_v63  ;;  %v220_v7 = vadd.f32 %v219_v5, %v79_v63 }
  0xd7   :  { %467 = vst [vmem:[%s1019_s3 + $0x8] sm:$0xff] %v196_v6  ;;  %491 = vst [vmem:[%s1019_s3 + $0xc8] sm:$0xff] %v220_v7 }
  0xd8   :  { %v199_v8 = vpop.f32.mrf.mxu0  ;;  %v223_v9 = vpop.f32.mrf.mxu1 }
  0xd9   :  { %v200_v10 = vadd.f32 %v199_v8, %v75_v62  ;;  %v224_v11 = vadd.f32 %v223_v9, %v75_v62 }
  0xda   :  { %v201_v12 = vpop.f32.mrf.mxu0  ;;  %v225_v13 = vpop.f32.mrf.mxu1 }
  0xdb   :  { %472 = vst [vmem:[%s1019_s3 + $0x30] sm:$0xff] %v200_v10  ;;  %496 = vst [vmem:[%s1019_s3 + $0xf0] sm:$0xff] %v224_v11  ;;  %v202_v14 = vadd.f32 %v201_v12, %v79_v63  ;;  %v226_v15 = vadd.f32 %v225_v13, %v79_v63 }
  0xdd   :  { %473 = vst [vmem:[%s1019_s3 + $0x38] sm:$0xff] %v202_v14  ;;  %497 = vst [vmem:[%s1019_s3 + $0xf8] sm:$0xff] %v226_v15 }
  0xde   :  { %v205_v16 = vpop.f32.mrf.mxu0  ;;  %v229_v17 = vpop.f32.mrf.mxu1 }
  0xdf   :  { %v206_v18 = vadd.f32 %v205_v16, %v75_v62  ;;  %v230_v19 = vadd.f32 %v229_v17, %v75_v62 }
  0xe0   :  { %v207_v20 = vpop.f32.mrf.mxu0  ;;  %v231_v21 = vpop.f32.mrf.mxu1 }
  0xe1   :  { %478 = vst [vmem:[%s1019_s3 + $0x60] sm:$0xff] %v206_v18  ;;  %502 = vst [vmem:[%s1019_s3 + $0x120] sm:$0xff] %v230_v19  ;;  %v208_v22 = vadd.f32 %v207_v20, %v79_v63  ;;  %v232_v23 = vadd.f32 %v231_v21, %v79_v63 }
  0xe3   :  { %479 = vst [vmem:[%s1019_s3 + $0x68] sm:$0xff] %v208_v22  ;;  %503 = vst [vmem:[%s1019_s3 + $0x128] sm:$0xff] %v232_v23 }
  0xe4   :  { %v211_v26 = vpop.f32.mrf.mxu0  ;;  %v235_v27 = vpop.f32.mrf.mxu1 }
  0xe5   :  { %v212_v28 = vadd.f32 %v211_v26, %v75_v62  ;;  %v236_v29 = vadd.f32 %v235_v27, %v75_v62 }
  0xe6   :  { %v213_v32 = vpop.f32.mrf.mxu0  ;;  %v237_v33 = vpop.f32.mrf.mxu1 }
  0xe7   :  { %484 = vst [vmem:[%s1019_s3 + $0x90] sm:$0xff] %v212_v28  ;;  %508 = vst [vmem:[%s1019_s3 + $0x150] sm:$0xff] %v236_v29  ;;  %v214_v34 = vadd.f32 %v213_v32, %v79_v63  ;;  %v238_v35 = vadd.f32 %v237_v33, %v79_v63 }
  0xe9   :  { %485 = vst [vmem:[%s1019_s3 + $0x98] sm:$0xff] %v214_v34  ;;  %509 = vst [vmem:[%s1019_s3 + $0x158] sm:$0xff] %v238_v35 }
  0xea   :  { %v306_v40 = vpop.f32.mrf.mxu1  ;;  %v419_v41 = vpop.f32.mrf.mxu0 }
  0xeb   :  { %v307_v42 = vadd.f32 %v306_v40, %v874_v36  ;;  %v420_v43 = vadd.f32 %v419_v41, %v876_v37 }
  0xec   :  { %v308_v44 = vpop.f32.mrf.mxu1  ;;  %v421_v45 = vpop.f32.mrf.mxu0 }
  0xed   :  { %468 = vst [vmem:[%s1019_s3 + $0x10] sm:$0xff] %v307_v42  ;;  %470 = vst [vmem:[%s1019_s3 + $0x20] sm:$0xff] %v420_v43  ;;  %v309_v46 = vadd.f32 %v308_v44, %v884_v38  ;;  %v422_v47 = vadd.f32 %v421_v45, %v886_v39 }
  0xee   :  { %v312_v48 = vpop.f32.mrf.mxu1  ;;  %v425_v49 = vpop.f32.mrf.mxu0 }
  0xef   :  { %469 = vst [vmem:[%s1019_s3 + $0x18] sm:$0xff] %v309_v46  ;;  %471 = vst [vmem:[%s1019_s3 + $0x28] sm:$0xff] %v422_v47  ;;  %v313_v50 = vadd.f32 %v312_v48, %v874_v36  ;;  %v426_v51 = vadd.f32 %v425_v49, %v876_v37 }
  0xf0   :  { %v314_v52 = vpop.f32.mrf.mxu1  ;;  %v427_v53 = vpop.f32.mrf.mxu0 }
  0xf1   :  { %474 = vst [vmem:[%s1019_s3 + $0x40] sm:$0xff] %v313_v50  ;;  %476 = vst [vmem:[%s1019_s3 + $0x50] sm:$0xff] %v426_v51  ;;  %v315_v54 = vadd.f32 %v314_v52, %v884_v38  ;;  %v428_v55 = vadd.f32 %v427_v53, %v886_v39 }
  0xf2   :  { %v318_v56 = vpop.f32.mrf.mxu1  ;;  %v431_v57 = vpop.f32.mrf.mxu0 }
  0xf3   :  { %475 = vst [vmem:[%s1019_s3 + $0x48] sm:$0xff] %v315_v54  ;;  %477 = vst [vmem:[%s1019_s3 + $0x58] sm:$0xff] %v428_v55  ;;  %v319_v58 = vadd.f32 %v318_v56, %v874_v36  ;;  %v432_v59 = vadd.f32 %v431_v57, %v876_v37 }
  0xf4   :  { %v320_v60 = vpop.f32.mrf.mxu1  ;;  %v433_v61 = vpop.f32.mrf.mxu0 }
  0xf5   :  { %480 = vst [vmem:[%s1019_s3 + $0x70] sm:$0xff] %v319_v58  ;;  %482 = vst [vmem:[%s1019_s3 + $0x80] sm:$0xff] %v432_v59  ;;  %v321_v62 = vadd.f32 %v320_v60, %v884_v38  ;;  %v434_v63 = vadd.f32 %v433_v61, %v886_v39 }
  0xf6   :  { %v324_v0 = vpop.f32.mrf.mxu1  ;;  %v437_v1 = vpop.f32.mrf.mxu0 }
  0xf7   :  { %481 = vst [vmem:[%s1019_s3 + $0x78] sm:$0xff] %v321_v62  ;;  %483 = vst [vmem:[%s1019_s3 + $0x88] sm:$0xff] %v434_v63  ;;  %v325_v2 = vadd.f32 %v324_v0, %v874_v36  ;;  %v438_v3 = vadd.f32 %v437_v1, %v876_v37 }
  0xf8   :  { %v326_v4 = vpop.f32.mrf.mxu1  ;;  %v439_v5 = vpop.f32.mrf.mxu0 }
  0xf9   :  { %486 = vst [vmem:[%s1019_s3 + $0xa0] sm:$0xff] %v325_v2  ;;  %488 = vst [vmem:[%s1019_s3 + $0xb0] sm:$0xff] %v438_v3  ;;  %v327_v6 = vadd.f32 %v326_v4, %v884_v38  ;;  %v440_v7 = vadd.f32 %v439_v5, %v886_v39 }
  0xfa   :  { %v330_v8 = vpop.f32.mrf.mxu1  ;;  %v443_v9 = vpop.f32.mrf.mxu0 }
  0xfb   :  { %487 = vst [vmem:[%s1019_s3 + $0xa8] sm:$0xff] %v327_v6  ;;  %489 = vst [vmem:[%s1019_s3 + $0xb8] sm:$0xff] %v440_v7  ;;  %v331_v10 = vadd.f32 %v330_v8, %v874_v36  ;;  %v444_v11 = vadd.f32 %v443_v9, %v876_v37 }
  0xfc   :  { %v332_v12 = vpop.f32.mrf.mxu1  ;;  %v445_v13 = vpop.f32.mrf.mxu0 }
  0xfd   :  { %492 = vst [vmem:[%s1019_s3 + $0xd0] sm:$0xff] %v331_v10  ;;  %494 = vst [vmem:[%s1019_s3 + $0xe0] sm:$0xff] %v444_v11  ;;  %v333_v14 = vadd.f32 %v332_v12, %v884_v38  ;;  %v446_v15 = vadd.f32 %v445_v13, %v886_v39 }
  0xfe   :  { %v336_v16 = vpop.f32.mrf.mxu1  ;;  %v449_v17 = vpop.f32.mrf.mxu0 }
  0xff   :  { %493 = vst [vmem:[%s1019_s3 + $0xd8] sm:$0xff] %v333_v14  ;;  %495 = vst [vmem:[%s1019_s3 + $0xe8] sm:$0xff] %v446_v15  ;;  %v337_v18 = vadd.f32 %v336_v16, %v874_v36  ;;  %v450_v19 = vadd.f32 %v449_v17, %v876_v37 }
 0x100   :  { %v338_v20 = vpop.f32.mrf.mxu1  ;;  %v451_v21 = vpop.f32.mrf.mxu0 }
 0x101   :  { %498 = vst [vmem:[%s1019_s3 + $0x100] sm:$0xff] %v337_v18  ;;  %500 = vst [vmem:[%s1019_s3 + $0x110] sm:$0xff] %v450_v19  ;;  %v339_v22 = vadd.f32 %v338_v20, %v884_v38  ;;  %v452_v23 = vadd.f32 %v451_v21, %v886_v39 }
 0x102   :  { %v342_v24 = vpop.f32.mrf.mxu1  ;;  %v455_v25 = vpop.f32.mrf.mxu0 }
 0x103   :  { %499 = vst [vmem:[%s1019_s3 + $0x108] sm:$0xff] %v339_v22  ;;  %501 = vst [vmem:[%s1019_s3 + $0x118] sm:$0xff] %v452_v23  ;;  %v343_v26 = vadd.f32 %v342_v24, %v874_v36  ;;  %v456_v27 = vadd.f32 %v455_v25, %v876_v37 }
 0x104   :  { %v344_v28 = vpop.f32.mrf.mxu1  ;;  %v457_v29 = vpop.f32.mrf.mxu0 }
 0x105   :  { %504 = vst [vmem:[%s1019_s3 + $0x130] sm:$0xff] %v343_v26  ;;  %506 = vst [vmem:[%s1019_s3 + $0x140] sm:$0xff] %v456_v27  ;;  %v345_v30 = vadd.f32 %v344_v28, %v884_v38  ;;  %v458_v31 = vadd.f32 %v457_v29, %v886_v39 }
 0x106   :  { %v348_v32 = vpop.f32.mrf.mxu1  ;;  %v461_v33 = vpop.f32.mrf.mxu0 }
 0x107   :  { %505 = vst [vmem:[%s1019_s3 + $0x138] sm:$0xff] %v345_v30  ;;  %507 = vst [vmem:[%s1019_s3 + $0x148] sm:$0xff] %v458_v31  ;;  %v349_v34 = vadd.f32 %v348_v32, %v874_v36  ;;  %v462_v35 = vadd.f32 %v461_v33, %v876_v37 }
 0x108   :  { %v350_v40 = vpop.f32.mrf.mxu1  ;;  %v463_v41 = vpop.f32.mrf.mxu0 }
 0x109   :  { %510 = vst [vmem:[%s1019_s3 + $0x160] sm:$0xff] %v349_v34  ;;  %512 = vst [vmem:[%s1019_s3 + $0x170] sm:$0xff] %v462_v35  ;;  %v351_v42 = vadd.f32 %v350_v40, %v884_v38  ;;  %v464_v43 = vadd.f32 %v463_v41, %v886_v39 }
 0x10b   :  { %511 = vst [vmem:[%s1019_s3 + $0x168] sm:$0xff] %v351_v42  ;;  %513 = vst [vmem:[%s1019_s3 + $0x178] sm:$0xff] %v464_v43 }

// kernel: morse_net_forward.15
= control target key start
LH: loop header
LB: loop body
LE: loop exit
PB: predicated region body
PF: predicated region fallthrough
CT: control target
= control target key end

     0   :  { %s1616_s1 = inlined_call_operand.vmem [shape: f32[256,768], index: 1, kind: input, shape index: {}]   ;;  %s1617_s0 = inlined_call_operand.vmem [shape: f32[64,256], index: 0, kind: input, shape index: {}]   ;;  %s1618_s2 = inlined_call_operand.vmem [shape: f32[1,768], index: 2, kind: input, shape index: {}]   ;;  %s1619_s3 = inlined_call_operand.vmem [shape: f32[64,768], index: 3, kind: output, shape index: {}]  }
   0x1   :  { %v121_v0 = vld [vmem:[%s1616_s1 + $0x2d8] sm:$0xff]  ;;  %v123_v1 = vld [vmem:[%s1616_s1 + $0x2e8] sm:$0xff]  ;;  %v120_v2 = vld [vmem:[%s1616_s1 + $0x2d0] sm:$0xff] }
   0x2   :  { %254 = vmatprep.subr.mxu0 %v121_v0  ;;  %367 = vmatprep.subr.mxu1 %v123_v1  ;;  %v122_v3 = vld [vmem:[%s1616_s1 + $0x2e0] sm:$0xff]  ;;  %v115_v4 = vld [vmem:[%s1616_s1 + $0x2a8] sm:$0xff]  ;;  %v117_v5 = vld [vmem:[%s1616_s1 + $0x2b8] sm:$0xff] }
   0x3   :  { %255 = vmatpush1.msra.mxu0 %v120_v2  ;;  %368 = vmatpush1.msra.mxu1 %v122_v3  ;;  %v114_v6 = vld [vmem:[%s1616_s1 + $0x2a0] sm:$0xff]  ;;  %v116_v7 = vld [vmem:[%s1616_s1 + $0x2b0] sm:$0xff]  ;;  %v109_v8 = vld [vmem:[%s1616_s1 + $0x278] sm:$0xff] }
   0x4   :  { %256 = vmatprep.subr.mxu0 %v115_v4  ;;  %369 = vmatprep.subr.mxu1 %v117_v5  ;;  %v111_v9 = vld [vmem:[%s1616_s1 + $0x288] sm:$0xff]  ;;  %v108_v10 = vld [vmem:[%s1616_s1 + $0x270] sm:$0xff]  ;;  %v110_v11 = vld [vmem:[%s1616_s1 + $0x280] sm:$0xff] }
   0x5   :  { %257 = vmatpush1.msra.mxu0 %v114_v6  ;;  %370 = vmatpush1.msra.mxu1 %v116_v7  ;;  %v103_v12 = vld [vmem:[%s1616_s1 + $0x248] sm:$0xff]  ;;  %v105_v13 = vld [vmem:[%s1616_s1 + $0x258] sm:$0xff]  ;;  %v102_v14 = vld [vmem:[%s1616_s1 + $0x240] sm:$0xff] }
   0x6   :  { %258 = vmatprep.subr.mxu0 %v109_v8  ;;  %371 = vmatprep.subr.mxu1 %v111_v9  ;;  %v104_v15 = vld [vmem:[%s1616_s1 + $0x250] sm:$0xff]  ;;  %v97_v16 = vld [vmem:[%s1616_s1 + $0x218] sm:$0xff]  ;;  %v99_v17 = vld [vmem:[%s1616_s1 + $0x228] sm:$0xff] }
   0x7   :  { %259 = vmatpush1.msra.mxu0 %v108_v10  ;;  %372 = vmatpush1.msra.mxu1 %v110_v11  ;;  %v96_v18 = vld [vmem:[%s1616_s1 + $0x210] sm:$0xff]  ;;  %v98_v19 = vld [vmem:[%s1616_s1 + $0x220] sm:$0xff]  ;;  %v91_v20 = vld [vmem:[%s1616_s1 + $0x1e8] sm:$0xff] }
   0x8   :  { %260 = vmatprep.subr.mxu0 %v103_v12  ;;  %373 = vmatprep.subr.mxu1 %v105_v13  ;;  %v93_v21 = vld [vmem:[%s1616_s1 + $0x1f8] sm:$0xff]  ;;  %v90_v22 = vld [vmem:[%s1616_s1 + $0x1e0] sm:$0xff]  ;;  %v92_v23 = vld [vmem:[%s1616_s1 + $0x1f0] sm:$0xff] }
   0x9   :  { %261 = vmatpush1.msra.mxu0 %v102_v14  ;;  %374 = vmatpush1.msra.mxu1 %v104_v15  ;;  %v85_v24 = vld [vmem:[%s1616_s1 + $0x1b8] sm:$0xff]  ;;  %v87_v25 = vld [vmem:[%s1616_s1 + $0x1c8] sm:$0xff]  ;;  %v84_v26 = vld [vmem:[%s1616_s1 + $0x1b0] sm:$0xff] }
   0xa   :  { %262 = vmatprep.subr.mxu0 %v97_v16  ;;  %375 = vmatprep.subr.mxu1 %v99_v17  ;;  %v86_v27 = vld [vmem:[%s1616_s1 + $0x1c0] sm:$0xff]  ;;  %v79_v28 = vld [vmem:[%s1616_s1 + $0x188] sm:$0xff]  ;;  %v81_v29 = vld [vmem:[%s1616_s1 + $0x198] sm:$0xff] }
   0xb   :  { %263 = vmatpush1.msra.mxu0 %v96_v18  ;;  %376 = vmatpush1.msra.mxu1 %v98_v19  ;;  %v78_v30 = vld [vmem:[%s1616_s1 + $0x180] sm:$0xff]  ;;  %v80_v31 = vld [vmem:[%s1616_s1 + $0x190] sm:$0xff]  ;;  %v73_v32 = vld [vmem:[%s1616_s1 + $0x158] sm:$0xff] }
   0xc   :  { %264 = vmatprep.subr.mxu0 %v91_v20  ;;  %377 = vmatprep.subr.mxu1 %v93_v21  ;;  %v75_v33 = vld [vmem:[%s1616_s1 + $0x168] sm:$0xff]  ;;  %v72_v34 = vld [vmem:[%s1616_s1 + $0x150] sm:$0xff]  ;;  %v74_v35 = vld [vmem:[%s1616_s1 + $0x160] sm:$0xff] }
   0xd   :  { %265 = vmatpush1.msra.mxu0 %v90_v22  ;;  %378 = vmatpush1.msra.mxu1 %v92_v23  ;;  %v67_v36 = vld [vmem:[%s1616_s1 + $0x128] sm:$0xff]  ;;  %v69_v37 = vld [vmem:[%s1616_s1 + $0x138] sm:$0xff]  ;;  %v66_v38 = vld [vmem:[%s1616_s1 + $0x120] sm:$0xff] }
   0xe   :  { %266 = vmatprep.subr.mxu0 %v85_v24  ;;  %379 = vmatprep.subr.mxu1 %v87_v25  ;;  %v68_v39 = vld [vmem:[%s1616_s1 + $0x130] sm:$0xff]  ;;  %v61_v40 = vld [vmem:[%s1616_s1 + $0xf8] sm:$0xff]  ;;  %v63_v41 = vld [vmem:[%s1616_s1 + $0x108] sm:$0xff] }
   0xf   :  { %267 = vmatpush1.msra.mxu0 %v84_v26  ;;  %380 = vmatpush1.msra.mxu1 %v86_v27  ;;  %v60_v42 = vld [vmem:[%s1616_s1 + $0xf0] sm:$0xff]  ;;  %v62_v43 = vld [vmem:[%s1616_s1 + $0x100] sm:$0xff]  ;;  %v55_v44 = vld [vmem:[%s1616_s1 + $0xc8] sm:$0xff] }
  0x10   :  { %268 = vmatprep.subr.mxu0 %v79_v28  ;;  %381 = vmatprep.subr.mxu1 %v81_v29  ;;  %v57_v45 = vld [vmem:[%s1616_s1 + $0xd8] sm:$0xff]  ;;  %v54_v46 = vld [vmem:[%s1616_s1 + $0xc0] sm:$0xff]  ;;  %v56_v47 = vld [vmem:[%s1616_s1 + $0xd0] sm:$0xff] }
  0x11   :  { %269 = vmatpush1.msra.mxu0 %v78_v30  ;;  %382 = vmatpush1.msra.mxu1 %v80_v31  ;;  %v49_v48 = vld [vmem:[%s1616_s1 + $0x98] sm:$0xff]  ;;  %v51_v49 = vld [vmem:[%s1616_s1 + $0xa8] sm:$0xff]  ;;  %v48_v50 = vld [vmem:[%s1616_s1 + $0x90] sm:$0xff] }
  0x12   :  { %270 = vmatprep.subr.mxu0 %v73_v32  ;;  %383 = vmatprep.subr.mxu1 %v75_v33  ;;  %v50_v51 = vld [vmem:[%s1616_s1 + $0xa0] sm:$0xff]  ;;  %v43_v52 = vld [vmem:[%s1616_s1 + $0x68] sm:$0xff]  ;;  %v45_v53 = vld [vmem:[%s1616_s1 + $0x78] sm:$0xff] }
  0x13   :  { %271 = vmatpush1.msra.mxu0 %v72_v34  ;;  %384 = vmatpush1.msra.mxu1 %v74_v35  ;;  %v42_v54 = vld [vmem:[%s1616_s1 + $0x60] sm:$0xff]  ;;  %v44_v55 = vld [vmem:[%s1616_s1 + $0x70] sm:$0xff]  ;;  %v37_v56 = vld [vmem:[%s1616_s1 + $0x38] sm:$0xff] }
  0x14   :  { %272 = vmatprep.subr.mxu0 %v67_v36  ;;  %385 = vmatprep.subr.mxu1 %v69_v37  ;;  %v39_v57 = vld [vmem:[%s1616_s1 + $0x48] sm:$0xff]  ;;  %v36_v58 = vld [vmem:[%s1616_s1 + $0x30] sm:$0xff]  ;;  %v38_v59 = vld [vmem:[%s1616_s1 + $0x40] sm:$0xff] }
  0x15   :  { %273 = vmatpush1.msra.mxu0 %v66_v38  ;;  %386 = vmatpush1.msra.mxu1 %v68_v39  ;;  %v31_v60 = vld [vmem:[%s1616_s1 + $0x8] sm:$0xff]  ;;  %v33_v61 = vld [vmem:[%s1616_s1 + $0x18] sm:$0xff]  ;;  %v30_v62 = vld [vmem:[%s1616_s1] sm:$0xff] }
  0x16   :  { %274 = vmatprep.subr.mxu0 %v61_v40  ;;  %387 = vmatprep.subr.mxu1 %v63_v41  ;;  %v32_v63 = vld [vmem:[%s1616_s1 + $0x10] sm:$0xff]  ;;  %v217_v0 = vld [vmem:[%s1616_s1 + $0x5d8] sm:$0xff]  ;;  %v219_v1 = vld [vmem:[%s1616_s1 + $0x5e8] sm:$0xff] }
  0x17   :  { %275 = vmatpush1.msra.mxu0 %v60_v42  ;;  %388 = vmatpush1.msra.mxu1 %v62_v43  ;;  %v216_v2 = vld [vmem:[%s1616_s1 + $0x5d0] sm:$0xff]  ;;  %v218_v3 = vld [vmem:[%s1616_s1 + $0x5e0] sm:$0xff]  ;;  %v211_v4 = vld [vmem:[%s1616_s1 + $0x5a8] sm:$0xff] }
  0x18   :  { %276 = vmatprep.subr.mxu0 %v55_v44  ;;  %389 = vmatprep.subr.mxu1 %v57_v45  ;;  %v213_v5 = vld [vmem:[%s1616_s1 + $0x5b8] sm:$0xff]  ;;  %v210_v6 = vld [vmem:[%s1616_s1 + $0x5a0] sm:$0xff]  ;;  %v212_v7 = vld [vmem:[%s1616_s1 + $0x5b0] sm:$0xff] }
  0x19   :  { %277 = vmatpush1.msra.mxu0 %v54_v46  ;;  %390 = vmatpush1.msra.mxu1 %v56_v47  ;;  %v205_v8 = vld [vmem:[%s1616_s1 + $0x578] sm:$0xff]  ;;  %v207_v9 = vld [vmem:[%s1616_s1 + $0x588] sm:$0xff]  ;;  %v204_v10 = vld [vmem:[%s1616_s1 + $0x570] sm:$0xff] }
  0x1a   :  { %278 = vmatprep.subr.mxu0 %v49_v48  ;;  %391 = vmatprep.subr.mxu1 %v51_v49  ;;  %v206_v11 = vld [vmem:[%s1616_s1 + $0x580] sm:$0xff]  ;;  %v199_v12 = vld [vmem:[%s1616_s1 + $0x548] sm:$0xff]  ;;  %v201_v13 = vld [vmem:[%s1616_s1 + $0x558] sm:$0xff] }
  0x1b   :  { %279 = vmatpush1.msra.mxu0 %v48_v50  ;;  %392 = vmatpush1.msra.mxu1 %v50_v51  ;;  %v198_v14 = vld [vmem:[%s1616_s1 + $0x540] sm:$0xff]  ;;  %v200_v15 = vld [vmem:[%s1616_s1 + $0x550] sm:$0xff]  ;;  %v193_v16 = vld [vmem:[%s1616_s1 + $0x518] sm:$0xff] }
  0x1c   :  { %280 = vmatprep.subr.mxu0 %v43_v52  ;;  %393 = vmatprep.subr.mxu1 %v45_v53  ;;  %v195_v17 = vld [vmem:[%s1616_s1 + $0x528] sm:$0xff]  ;;  %v192_v18 = vld [vmem:[%s1616_s1 + $0x510] sm:$0xff]  ;;  %v194_v19 = vld [vmem:[%s1616_s1 + $0x520] sm:$0xff] }
  0x1d   :  { %281 = vmatpush1.msra.mxu0 %v42_v54  ;;  %394 = vmatpush1.msra.mxu1 %v44_v55  ;;  %v187_v20 = vld [vmem:[%s1616_s1 + $0x4e8] sm:$0xff]  ;;  %v189_v21 = vld [vmem:[%s1616_s1 + $0x4f8] sm:$0xff]  ;;  %v186_v22 = vld [vmem:[%s1616_s1 + $0x4e0] sm:$0xff] }
  0x1e   :  { %282 = vmatprep.subr.mxu0 %v37_v56  ;;  %395 = vmatprep.subr.mxu1 %v39_v57  ;;  %v188_v23 = vld [vmem:[%s1616_s1 + $0x4f0] sm:$0xff]  ;;  %v181_v24 = vld [vmem:[%s1616_s1 + $0x4b8] sm:$0xff]  ;;  %v183_v25 = vld [vmem:[%s1616_s1 + $0x4c8] sm:$0xff] }
  0x1f   :  { %283 = vmatpush1.msra.mxu0 %v36_v58  ;;  %396 = vmatpush1.msra.mxu1 %v38_v59  ;;  %v180_v26 = vld [vmem:[%s1616_s1 + $0x4b0] sm:$0xff]  ;;  %v182_v27 = vld [vmem:[%s1616_s1 + $0x4c0] sm:$0xff]  ;;  %v175_v28 = vld [vmem:[%s1616_s1 + $0x488] sm:$0xff] }
  0x20   :  { %284 = vmatprep.subr.mxu0 %v31_v60  ;;  %397 = vmatprep.subr.mxu1 %v33_v61  ;;  %v177_v29 = vld [vmem:[%s1616_s1 + $0x498] sm:$0xff]  ;;  %v174_v30 = vld [vmem:[%s1616_s1 + $0x480] sm:$0xff]  ;;  %v176_v31 = vld [vmem:[%s1616_s1 + $0x490] sm:$0xff] }
  0x21   :  { %285 = vmatpush1.msra.mxu0 %v30_v62  ;;  %398 = vmatpush1.msra.mxu1 %v32_v63  ;;  %v169_v32 = vld [vmem:[%s1616_s1 + $0x458] sm:$0xff]  ;;  %v171_v33 = vld [vmem:[%s1616_s1 + $0x468] sm:$0xff]  ;;  %v168_v34 = vld [vmem:[%s1616_s1 + $0x450] sm:$0xff] }
  0x22   :  { %286 = vmatprep.subr.mxu0 %v217_v0  ;;  %399 = vmatprep.subr.mxu1 %v219_v1  ;;  %v170_v35 = vld [vmem:[%s1616_s1 + $0x460] sm:$0xff]  ;;  %v163_v36 = vld [vmem:[%s1616_s1 + $0x428] sm:$0xff]  ;;  %v165_v37 = vld [vmem:[%s1616_s1 + $0x438] sm:$0xff] }
  0x23   :  { %287 = vmatpush2.msra.mxu0 %v216_v2  ;;  %400 = vmatpush2.msra.mxu1 %v218_v3  ;;  %v162_v38 = vld [vmem:[%s1616_s1 + $0x420] sm:$0xff]  ;;  %v164_v39 = vld [vmem:[%s1616_s1 + $0x430] sm:$0xff]  ;;  %v157_v40 = vld [vmem:[%s1616_s1 + $0x3f8] sm:$0xff] }
  0x24   :  { %288 = vmatprep.subr.mxu0 %v211_v4  ;;  %401 = vmatprep.subr.mxu1 %v213_v5  ;;  %v159_v41 = vld [vmem:[%s1616_s1 + $0x408] sm:$0xff]  ;;  %v156_v42 = vld [vmem:[%s1616_s1 + $0x3f0] sm:$0xff]  ;;  %v158_v43 = vld [vmem:[%s1616_s1 + $0x400] sm:$0xff] }
  0x25   :  { %289 = vmatpush2.msra.mxu0 %v210_v6  ;;  %402 = vmatpush2.msra.mxu1 %v212_v7  ;;  %v151_v44 = vld [vmem:[%s1616_s1 + $0x3c8] sm:$0xff]  ;;  %v153_v45 = vld [vmem:[%s1616_s1 + $0x3d8] sm:$0xff]  ;;  %v150_v46 = vld [vmem:[%s1616_s1 + $0x3c0] sm:$0xff] }
  0x26   :  { %290 = vmatprep.subr.mxu0 %v205_v8  ;;  %403 = vmatprep.subr.mxu1 %v207_v9  ;;  %v152_v47 = vld [vmem:[%s1616_s1 + $0x3d0] sm:$0xff]  ;;  %v145_v48 = vld [vmem:[%s1616_s1 + $0x398] sm:$0xff]  ;;  %v147_v49 = vld [vmem:[%s1616_s1 + $0x3a8] sm:$0xff] }
  0x27   :  { %291 = vmatpush2.msra.mxu0 %v204_v10  ;;  %404 = vmatpush2.msra.mxu1 %v206_v11  ;;  %v144_v50 = vld [vmem:[%s1616_s1 + $0x390] sm:$0xff]  ;;  %v146_v51 = vld [vmem:[%s1616_s1 + $0x3a0] sm:$0xff]  ;;  %v139_v52 = vld [vmem:[%s1616_s1 + $0x368] sm:$0xff] }
  0x28   :  { %292 = vmatprep.subr.mxu0 %v199_v12  ;;  %405 = vmatprep.subr.mxu1 %v201_v13  ;;  %v141_v53 = vld [vmem:[%s1616_s1 + $0x378] sm:$0xff]  ;;  %v138_v54 = vld [vmem:[%s1616_s1 + $0x360] sm:$0xff]  ;;  %v140_v55 = vld [vmem:[%s1616_s1 + $0x370] sm:$0xff] }
  0x29   :  { %293 = vmatpush2.msra.mxu0 %v198_v14  ;;  %406 = vmatpush2.msra.mxu1 %v200_v15  ;;  %v133_v56 = vld [vmem:[%s1616_s1 + $0x338] sm:$0xff]  ;;  %v135_v57 = vld [vmem:[%s1616_s1 + $0x348] sm:$0xff]  ;;  %v132_v58 = vld [vmem:[%s1616_s1 + $0x330] sm:$0xff] }
  0x2a   :  { %294 = vmatprep.subr.mxu0 %v193_v16  ;;  %407 = vmatprep.subr.mxu1 %v195_v17  ;;  %v134_v59 = vld [vmem:[%s1616_s1 + $0x340] sm:$0xff]  ;;  %v127_v60 = vld [vmem:[%s1616_s1 + $0x308] sm:$0xff]  ;;  %v129_v61 = vld [vmem:[%s1616_s1 + $0x318] sm:$0xff] }
  0x2b   :  { %295 = vmatpush2.msra.mxu0 %v192_v18  ;;  %408 = vmatpush2.msra.mxu1 %v194_v19  ;;  %v126_v62 = vld [vmem:[%s1616_s1 + $0x300] sm:$0xff]  ;;  %v1113_v63 = vld [vmem:[%s1617_s0 + $0x8] sm:$0xff]  ;;  %v128_v0 = vld [vmem:[%s1616_s1 + $0x310] sm:$0xff] }
  0x2c   :  { %296 = vmatprep.subr.mxu0 %v187_v20  ;;  %409 = vmatprep.subr.mxu1 %v189_v21  ;;  %v1121_v1 = vld [vmem:[%s1617_s0] sm:$0xff]  ;;  %v125_v2 = vld [vmem:[%s1616_s1 + $0x2f8] sm:$0xff]  ;;  %v124_v3 = vld [vmem:[%s1616_s1 + $0x2f0] sm:$0xff] }
  0x2d   :  { %297 = vmatpush2.msra.mxu0 %v186_v22  ;;  %410 = vmatpush2.msra.mxu1 %v188_v23  ;;  %v119_v4 = vld [vmem:[%s1616_s1 + $0x2c8] sm:$0xff]  ;;  %v118_v5 = vld [vmem:[%s1616_s1 + $0x2c0] sm:$0xff]  ;;  %v113_v6 = vld [vmem:[%s1616_s1 + $0x298] sm:$0xff] }
  0x2e   :  { %298 = vmatprep.subr.mxu0 %v181_v24  ;;  %411 = vmatprep.subr.mxu1 %v183_v25  ;;  %v112_v7 = vld [vmem:[%s1616_s1 + $0x290] sm:$0xff]  ;;  %v107_v8 = vld [vmem:[%s1616_s1 + $0x268] sm:$0xff]  ;;  %v106_v9 = vld [vmem:[%s1616_s1 + $0x260] sm:$0xff] }
  0x2f   :  { %299 = vmatpush2.msra.mxu0 %v180_v26  ;;  %412 = vmatpush2.msra.mxu1 %v182_v27  ;;  %v101_v10 = vld [vmem:[%s1616_s1 + $0x238] sm:$0xff]  ;;  %v100_v11 = vld [vmem:[%s1616_s1 + $0x230] sm:$0xff]  ;;  %v95_v12 = vld [vmem:[%s1616_s1 + $0x208] sm:$0xff] }
  0x30   :  { %300 = vmatprep.subr.mxu0 %v175_v28  ;;  %413 = vmatprep.subr.mxu1 %v177_v29  ;;  %v94_v13 = vld [vmem:[%s1616_s1 + $0x200] sm:$0xff]  ;;  %v89_v14 = vld [vmem:[%s1616_s1 + $0x1d8] sm:$0xff]  ;;  %v88_v15 = vld [vmem:[%s1616_s1 + $0x1d0] sm:$0xff] }
  0x31   :  { %301 = vmatpush2.msra.mxu0 %v174_v30  ;;  %414 = vmatpush2.msra.mxu1 %v176_v31  ;;  %v83_v16 = vld [vmem:[%s1616_s1 + $0x1a8] sm:$0xff]  ;;  %v82_v17 = vld [vmem:[%s1616_s1 + $0x1a0] sm:$0xff]  ;;  %v77_v18 = vld [vmem:[%s1616_s1 + $0x178] sm:$0xff] }
  0x32   :  { %302 = vmatprep.subr.mxu0 %v169_v32  ;;  %415 = vmatprep.subr.mxu1 %v171_v33  ;;  %v76_v19 = vld [vmem:[%s1616_s1 + $0x170] sm:$0xff]  ;;  %v71_v20 = vld [vmem:[%s1616_s1 + $0x148] sm:$0xff]  ;;  %v70_v21 = vld [vmem:[%s1616_s1 + $0x140] sm:$0xff] }
  0x33   :  { %303 = vmatpush2.msra.mxu0 %v168_v34  ;;  %416 = vmatpush2.msra.mxu1 %v170_v35  ;;  %v65_v22 = vld [vmem:[%s1616_s1 + $0x118] sm:$0xff]  ;;  %v64_v23 = vld [vmem:[%s1616_s1 + $0x110] sm:$0xff]  ;;  %v59_v24 = vld [vmem:[%s1616_s1 + $0xe8] sm:$0xff] }
  0x34   :  { %304 = vmatprep.subr.mxu0 %v163_v36  ;;  %417 = vmatprep.subr.mxu1 %v165_v37  ;;  %v58_v25 = vld [vmem:[%s1616_s1 + $0xe0] sm:$0xff]  ;;  %v53_v26 = vld [vmem:[%s1616_s1 + $0xb8] sm:$0xff]  ;;  %v52_v27 = vld [vmem:[%s1616_s1 + $0xb0] sm:$0xff] }
  0x35   :  { %305 = vmatpush2.msra.mxu0 %v162_v38  ;;  %418 = vmatpush2.msra.mxu1 %v164_v39  ;;  %v47_v28 = vld [vmem:[%s1616_s1 + $0x88] sm:$0xff]  ;;  %v46_v29 = vld [vmem:[%s1616_s1 + $0x80] sm:$0xff]  ;;  %v41_v30 = vld [vmem:[%s1616_s1 + $0x58] sm:$0xff] }
  0x36   :  { %306 = vmatprep.subr.mxu0 %v157_v40  ;;  %419 = vmatprep.subr.mxu1 %v159_v41  ;;  %v40_v31 = vld [vmem:[%s1616_s1 + $0x50] sm:$0xff]  ;;  %v35_v32 = vld [vmem:[%s1616_s1 + $0x28] sm:$0xff]  ;;  %v34_v33 = vld [vmem:[%s1616_s1 + $0x20] sm:$0xff] }
  0x37   :  { %307 = vmatpush2.msra.mxu0 %v156_v42  ;;  %420 = vmatpush2.msra.mxu1 %v158_v43  ;;  %v221_v34 = vld [vmem:[%s1616_s1 + $0x5f8] sm:$0xff]  ;;  %v220_v36 = vld [vmem:[%s1616_s1 + $0x5f0] sm:$0xff]  ;;  %v215_v38 = vld [vmem:[%s1616_s1 + $0x5c8] sm:$0xff] }
  0x38   :  { %308 = vmatprep.subr.mxu0 %v151_v44  ;;  %421 = vmatprep.subr.mxu1 %v153_v45  ;;  %v1229_v35 = vld [vmem:[%s1617_s0 + $0x18] sm:$0xff]  ;;  %v1237_v37 = vld [vmem:[%s1617_s0 + $0x10] sm:$0xff]  ;;  %v214_v39 = vld [vmem:[%s1616_s1 + $0x5c0] sm:$0xff] }
  0x39   :  { %309 = vmatpush2.msra.mxu0 %v150_v46  ;;  %422 = vmatpush2.msra.mxu1 %v152_v47  ;;  %v209_v40 = vld [vmem:[%s1616_s1 + $0x598] sm:$0xff]  ;;  %v1255_v41 = vld [vmem:[%s1617_s0 + $0x28] sm:$0xff]  ;;  %v208_v42 = vld [vmem:[%s1616_s1 + $0x590] sm:$0xff] }
  0x3a   :  { %310 = vmatprep.subr.mxu0 %v145_v48  ;;  %423 = vmatprep.subr.mxu1 %v147_v49  ;;  %v1263_v43 = vld [vmem:[%s1617_s0 + $0x20] sm:$0xff]  ;;  %v203_v44 = vld [vmem:[%s1616_s1 + $0x568] sm:$0xff]  ;;  %v197_v46 = vld [vmem:[%s1616_s1 + $0x538] sm:$0xff] }
  0x3b   :  { %311 = vmatpush2.msra.mxu0 %v144_v50  ;;  %424 = vmatpush2.msra.mxu1 %v146_v51  ;;  %v202_v45 = vld [vmem:[%s1616_s1 + $0x560] sm:$0xff]  ;;  %v1281_v47 = vld [vmem:[%s1617_s0 + $0x38] sm:$0xff]  ;;  %v196_v48 = vld [vmem:[%s1616_s1 + $0x530] sm:$0xff] }
  0x3c   :  { %312 = vmatprep.subr.mxu0 %v139_v52  ;;  %425 = vmatprep.subr.mxu1 %v141_v53  ;;  %v1289_v49 = vld [vmem:[%s1617_s0 + $0x30] sm:$0xff]  ;;  %v191_v50 = vld [vmem:[%s1616_s1 + $0x508] sm:$0xff]  ;;  %v190_v51 = vld [vmem:[%s1616_s1 + $0x500] sm:$0xff] }
  0x3d   :  { %313 = vmatpush2.msra.mxu0 %v138_v54  ;;  %426 = vmatpush2.msra.mxu1 %v140_v55  ;;  %v185_v52 = vld [vmem:[%s1616_s1 + $0x4d8] sm:$0xff]  ;;  %v1307_v53 = vld [vmem:[%s1617_s0 + $0x48] sm:$0xff]  ;;  %v184_v54 = vld [vmem:[%s1616_s1 + $0x4d0] sm:$0xff] }
  0x3e   :  { %314 = vmatprep.subr.mxu0 %v133_v56  ;;  %427 = vmatprep.subr.mxu1 %v135_v57  ;;  %v1315_v55 = vld [vmem:[%s1617_s0 + $0x40] sm:$0xff]  ;;  %v179_v56 = vld [vmem:[%s1616_s1 + $0x4a8] sm:$0xff] }
  0x3f   :  { %315 = vmatpush2.msra.mxu0 %v132_v58  ;;  %428 = vmatpush2.msra.mxu1 %v134_v59  ;;  %v178_v57 = vld [vmem:[%s1616_s1 + $0x4a0] sm:$0xff]  ;;  %v173_v58 = vld [vmem:[%s1616_s1 + $0x478] sm:$0xff] }
  0x40   :  { %316 = vmatprep.subr.mxu0 %v127_v60  ;;  %429 = vmatprep.subr.mxu1 %v129_v61  ;;  %v1333_v59 = vld [vmem:[%s1617_s0 + $0x58] sm:$0xff]  ;;  %v172_v60 = vld [vmem:[%s1616_s1 + $0x470] sm:$0xff] }
  0x41   :  { %317 = vmatpush2.msra.mxu0 %v126_v62  ;;  %318 = vmatprep.mubr.f32.mxu0 %v1113_v63  ;;  %v1341_v61 = vld [vmem:[%s1617_s0 + $0x50] sm:$0xff]  ;;  %v167_v62 = vld [vmem:[%s1616_s1 + $0x448] sm:$0xff] }
  0x42   :  { %430 = vmatpush2.msra.mxu1 %v128_v0  ;;  %431 = vmatprep.mubr.f32.mxu1 %v1113_v63  ;;  %v166_v0 = vld [vmem:[%s1616_s1 + $0x440] sm:$0xff] }
  0x43   :  { %319 = vmatmul.mubr.f32.vlgmr.msra.gmra.mxu0 %v1121_v1  ;;  %432 = vmatmul.mubr.f32.vlgmr.msra.gmra.mxu1 %v1121_v1 }
  0x44   :  { %480 = vmatprep.subr.mxu0 %v125_v2  ;;  %645 = vmatprep.subr.mxu1 %v125_v2  ;;  %v161_v2 = vld [vmem:[%s1616_s1 + $0x418] sm:$0xff] }
  0x45   :  { %481 = vmatpush1.msra.mxu0 %v124_v3  ;;  %677 = vmatpush1.msra.mxu1 %v124_v3  ;;  %v27_v3 = vld [vmem:[%s1617_s0 + $0x68] sm:$0xff] }
  0x46   :  { %482 = vmatprep.subr.mxu0 %v119_v4  ;;  %646 = vmatprep.subr.mxu1 %v119_v4  ;;  %v160_v4 = vld [vmem:[%s1616_s1 + $0x410] sm:$0xff] }
  0x47   :  { %483 = vmatpush1.msra.mxu0 %v118_v5  ;;  %678 = vmatpush1.msra.mxu1 %v118_v5  ;;  %v26_v5 = vld [vmem:[%s1617_s0 + $0x60] sm:$0xff] }
  0x48   :  { %484 = vmatprep.subr.mxu0 %v113_v6  ;;  %647 = vmatprep.subr.mxu1 %v113_v6  ;;  %v155_v6 = vld [vmem:[%s1616_s1 + $0x3e8] sm:$0xff] }
  0x49   :  { %485 = vmatpush1.msra.mxu0 %v112_v7  ;;  %679 = vmatpush1.msra.mxu1 %v112_v7  ;;  %v154_v7 = vld [vmem:[%s1616_s1 + $0x3e0] sm:$0xff] }
  0x4a   :  { %486 = vmatprep.subr.mxu0 %v107_v8  ;;  %648 = vmatprep.subr.mxu1 %v107_v8  ;;  %v149_v8 = vld [vmem:[%s1616_s1 + $0x3b8] sm:$0xff] }
  0x4b   :  { %487 = vmatpush1.msra.mxu0 %v106_v9  ;;  %680 = vmatpush1.msra.mxu1 %v106_v9  ;;  %v29_v9 = vld [vmem:[%s1617_s0 + $0x78] sm:$0xff] }
  0x4c   :  { %488 = vmatprep.subr.mxu0 %v101_v10  ;;  %649 = vmatprep.subr.mxu1 %v101_v10  ;;  %v148_v10 = vld [vmem:[%s1616_s1 + $0x3b0] sm:$0xff] }
  0x4d   :  { %489 = vmatpush1.msra.mxu0 %v100_v11  ;;  %681 = vmatpush1.msra.mxu1 %v100_v11  ;;  %v28_v11 = vld [vmem:[%s1617_s0 + $0x70] sm:$0xff] }
  0x4e   :  { %490 = vmatprep.subr.mxu0 %v95_v12  ;;  %650 = vmatprep.subr.mxu1 %v95_v12  ;;  %v143_v12 = vld [vmem:[%s1616_s1 + $0x388] sm:$0xff] }
  0x4f   :  { %491 = vmatpush1.msra.mxu0 %v94_v13  ;;  %682 = vmatpush1.msra.mxu1 %v94_v13  ;;  %v142_v13 = vld [vmem:[%s1616_s1 + $0x380] sm:$0xff] }
  0x50   :  { %492 = vmatprep.subr.mxu0 %v89_v14  ;;  %651 = vmatprep.subr.mxu1 %v89_v14  ;;  %v137_v14 = vld [vmem:[%s1616_s1 + $0x358] sm:$0xff] }
  0x51   :  { %493 = vmatpush1.msra.mxu0 %v88_v15  ;;  %683 = vmatpush1.msra.mxu1 %v88_v15  ;;  %v136_v15 = vld [vmem:[%s1616_s1 + $0x350] sm:$0xff] }
  0x52   :  { %494 = vmatprep.subr.mxu0 %v83_v16  ;;  %652 = vmatprep.subr.mxu1 %v83_v16  ;;  %v131_v16 = vld [vmem:[%s1616_s1 + $0x328] sm:$0xff] }
  0x53   :  { %495 = vmatpush1.msra.mxu0 %v82_v17  ;;  %684 = vmatpush1.msra.mxu1 %v82_v17  ;;  %v130_v17 = vld [vmem:[%s1616_s1 + $0x320] sm:$0xff] }
  0x54   :  { %496 = vmatprep.subr.mxu0 %v77_v18  ;;  %653 = vmatprep.subr.mxu1 %v77_v18 }
  0x55   :  { %497 = vmatpush1.msra.mxu0 %v76_v19  ;;  %685 = vmatpush1.msra.mxu1 %v76_v19 }
  0x56   :  { %498 = vmatprep.subr.mxu0 %v71_v20  ;;  %654 = vmatprep.subr.mxu1 %v71_v20  ;;  %v1420_v20 = vld [vmem:[%s1618_s2] sm:$0x3f] }
  0x57   :  { %499 = vmatpush1.msra.mxu0 %v70_v21  ;;  %686 = vmatpush1.msra.mxu1 %v70_v21 }
  0x58   :  { %500 = vmatprep.subr.mxu0 %v65_v22  ;;  %655 = vmatprep.subr.mxu1 %v65_v22 }
  0x59   :  { %501 = vmatpush1.msra.mxu0 %v64_v23  ;;  %687 = vmatpush1.msra.mxu1 %v64_v23 }
  0x5a   :  { %502 = vmatprep.subr.mxu0 %v59_v24  ;;  %656 = vmatprep.subr.mxu1 %v59_v24 }
  0x5b   :  { %503 = vmatpush1.msra.mxu0 %v58_v25  ;;  %688 = vmatpush1.msra.mxu1 %v58_v25 }
  0x5c   :  { %504 = vmatprep.subr.mxu0 %v53_v26  ;;  %657 = vmatprep.subr.mxu1 %v53_v26 }
  0x5d   :  { %505 = vmatpush1.msra.mxu0 %v52_v27  ;;  %689 = vmatpush1.msra.mxu1 %v52_v27 }
  0x5e   :  { %506 = vmatprep.subr.mxu0 %v47_v28  ;;  %658 = vmatprep.subr.mxu1 %v47_v28 }
  0x5f   :  { %507 = vmatpush1.msra.mxu0 %v46_v29  ;;  %690 = vmatpush1.msra.mxu1 %v46_v29 }
  0x60   :  { %508 = vmatprep.subr.mxu0 %v41_v30  ;;  %659 = vmatprep.subr.mxu1 %v41_v30 }
  0x61   :  { %509 = vmatpush1.msra.mxu0 %v40_v31  ;;  %691 = vmatpush1.msra.mxu1 %v40_v31 }
  0x62   :  { %510 = vmatprep.subr.mxu0 %v35_v32  ;;  %660 = vmatprep.subr.mxu1 %v35_v32 }
  0x63   :  { %511 = vmatpush1.msra.mxu0 %v34_v33  ;;  %692 = vmatpush1.msra.mxu1 %v34_v33 }
  0x64   :  { %512 = vmatprep.subr.mxu0 %v221_v34  ;;  %661 = vmatprep.subr.mxu1 %v221_v34 }
  0x65   :  { %324 = vmatprep.mubr.f32.mxu0 %v1229_v35  ;;  %437 = vmatprep.mubr.f32.mxu1 %v1229_v35 }
  0x66   :  { %513 = vmatpush2.msra.mxu0 %v220_v36  ;;  %693 = vmatpush2.msra.mxu1 %v220_v36 }
  0x67   :  { %325 = vmatmul.mubr.f32.gmra.mxu0 %v1237_v37  ;;  %438 = vmatmul.mubr.f32.gmra.mxu1 %v1237_v37 }
  0x68   :  { %514 = vmatprep.subr.mxu0 %v215_v38  ;;  %662 = vmatprep.subr.mxu1 %v215_v38 }
  0x69   :  { %515 = vmatpush2.msra.mxu0 %v214_v39  ;;  %694 = vmatpush2.msra.mxu1 %v214_v39 }
  0x6a   :  { %516 = vmatprep.subr.mxu0 %v209_v40  ;;  %663 = vmatprep.subr.mxu1 %v209_v40 }
  0x6b   :  { %330 = vmatprep.mubr.f32.mxu0 %v1255_v41  ;;  %443 = vmatprep.mubr.f32.mxu1 %v1255_v41 }
  0x6c   :  { %517 = vmatpush2.msra.mxu0 %v208_v42  ;;  %695 = vmatpush2.msra.mxu1 %v208_v42 }
  0x6d   :  { %331 = vmatmul.mubr.f32.gmra.mxu0 %v1263_v43  ;;  %444 = vmatmul.mubr.f32.gmra.mxu1 %v1263_v43 }
  0x6e   :  { %518 = vmatprep.subr.mxu0 %v203_v44  ;;  %664 = vmatprep.subr.mxu1 %v203_v44 }
  0x6f   :  { %519 = vmatpush2.msra.mxu0 %v202_v45  ;;  %696 = vmatpush2.msra.mxu1 %v202_v45 }
  0x70   :  { %520 = vmatprep.subr.mxu0 %v197_v46  ;;  %665 = vmatprep.subr.mxu1 %v197_v46 }
  0x71   :  { %336 = vmatprep.mubr.f32.mxu0 %v1281_v47  ;;  %449 = vmatprep.mubr.f32.mxu1 %v1281_v47 }
  0x72   :  { %521 = vmatpush2.msra.mxu0 %v196_v48  ;;  %697 = vmatpush2.msra.mxu1 %v196_v48 }
  0x73   :  { %337 = vmatmul.mubr.f32.gmra.mxu0 %v1289_v49  ;;  %450 = vmatmul.mubr.f32.gmra.mxu1 %v1289_v49 }
  0x74   :  { %522 = vmatprep.subr.mxu0 %v191_v50  ;;  %666 = vmatprep.subr.mxu1 %v191_v50 }
  0x75   :  { %523 = vmatpush2.msra.mxu0 %v190_v51  ;;  %698 = vmatpush2.msra.mxu1 %v190_v51 }
  0x76   :  { %524 = vmatprep.subr.mxu0 %v185_v52  ;;  %667 = vmatprep.subr.mxu1 %v185_v52 }
  0x77   :  { %342 = vmatprep.mubr.f32.mxu0 %v1307_v53  ;;  %455 = vmatprep.mubr.f32.mxu1 %v1307_v53 }
  0x78   :  { %525 = vmatpush2.msra.mxu0 %v184_v54  ;;  %699 = vmatpush2.msra.mxu1 %v184_v54 }
  0x79   :  { %343 = vmatmul.mubr.f32.gmra.mxu0 %v1315_v55  ;;  %456 = vmatmul.mubr.f32.gmra.mxu1 %v1315_v55 }
  0x7a   :  { %526 = vmatprep.subr.mxu0 %v179_v56  ;;  %668 = vmatprep.subr.mxu1 %v179_v56 }
  0x7b   :  { %527 = vmatpush2.msra.mxu0 %v178_v57  ;;  %700 = vmatpush2.msra.mxu1 %v178_v57 }
  0x7c   :  { %528 = vmatprep.subr.mxu0 %v173_v58  ;;  %669 = vmatprep.subr.mxu1 %v173_v58 }
  0x7d   :  { %348 = vmatprep.mubr.f32.mxu0 %v1333_v59  ;;  %461 = vmatprep.mubr.f32.mxu1 %v1333_v59 }
  0x7e   :  { %529 = vmatpush2.msra.mxu0 %v172_v60  ;;  %701 = vmatpush2.msra.mxu1 %v172_v60 }
  0x7f   :  { %349 = vmatmul.mubr.f32.gmra.mxu0 %v1341_v61  ;;  %462 = vmatmul.mubr.f32.gmra.mxu1 %v1341_v61 }
  0x80   :  { %530 = vmatprep.subr.mxu0 %v167_v62  ;;  %670 = vmatprep.subr.mxu1 %v167_v62 }
  0x81   :  { %531 = vmatpush2.msra.mxu0 %v166_v0  ;;  %702 = vmatpush2.msra.mxu1 %v166_v0 }
  0x82   :  { %532 = vmatprep.subr.mxu0 %v161_v2  ;;  %671 = vmatprep.subr.mxu1 %v161_v2 }
  0x83   :  { %354 = vmatprep.mubr.f32.mxu0 %v27_v3  ;;  %467 = vmatprep.mubr.f32.mxu1 %v27_v3 }
  0x84   :  { %533 = vmatpush2.msra.mxu0 %v160_v4  ;;  %703 = vmatpush2.msra.mxu1 %v160_v4 }
  0x85   :  { %355 = vmatmul.mubr.f32.gmra.mxu0 %v26_v5  ;;  %468 = vmatmul.mubr.f32.gmra.mxu1 %v26_v5 }
  0x86   :  { %534 = vmatprep.subr.mxu0 %v155_v6  ;;  %672 = vmatprep.subr.mxu1 %v155_v6 }
  0x87   :  { %535 = vmatpush2.msra.mxu0 %v154_v7  ;;  %704 = vmatpush2.msra.mxu1 %v154_v7 }
  0x88   :  { %536 = vmatprep.subr.mxu0 %v149_v8  ;;  %673 = vmatprep.subr.mxu1 %v149_v8 }
  0x89   :  { %360 = vmatprep.mubr.f32.mxu0 %v29_v9  ;;  %473 = vmatprep.mubr.f32.mxu1 %v29_v9 }
  0x8a   :  { %537 = vmatpush2.msra.mxu0 %v148_v10  ;;  %705 = vmatpush2.msra.mxu1 %v148_v10 }
  0x8b   :  { %361 = vmatmul.mubr.f32.gmra.mxu0 %v28_v11  ;;  %474 = vmatmul.mubr.f32.gmra.mxu1 %v28_v11 }
  0x8c   :  { %538 = vmatprep.subr.mxu0 %v143_v12  ;;  %674 = vmatprep.subr.mxu1 %v143_v12 }
  0x8d   :  { %539 = vmatpush2.msra.mxu0 %v142_v13  ;;  %706 = vmatpush2.msra.mxu1 %v142_v13 }
  0x8e   :  { %540 = vmatprep.subr.mxu0 %v137_v14  ;;  %675 = vmatprep.subr.mxu1 %v137_v14 }
  0x8f   :  { %541 = vmatpush2.msra.mxu0 %v136_v15  ;;  %707 = vmatpush2.msra.mxu1 %v136_v15 }
  0x90   :  { %542 = vmatprep.subr.mxu0 %v131_v16  ;;  %676 = vmatprep.subr.mxu1 %v131_v16 }
  0x91   :  { %543 = vmatpush2.msra.mxu0 %v130_v17  ;;  %708 = vmatpush2.msra.mxu1 %v130_v17 }
  0x92   :  { %544 = vmatprep.mubr.f32.mxu0 %v1113_v63  ;;  %568 = vmatprep.mubr.f32.mxu1 %v1307_v53  ;;  %v224_v63 = vlaneseq }
  0x93   :  { %545 = vmatmul.mubr.f32.vlgmr.msra.gmra.mxu0 %v1121_v1  ;;  %569 = vmatmul.mubr.f32.vlgmr.msra.gmra.mxu1 %v1315_v55 }
  0x94   :  { %550 = vmatprep.mubr.f32.mxu0 %v1229_v35  ;;  %574 = vmatprep.mubr.f32.mxu1 %v1333_v59  ;;  %v1413_v1 = vshrl.u32 %v224_v63, 7 }
  0x96   :  { %v226_v18 = vsub.s32 0, %v1413_v1  ;;  %v234_v19 = vsub.s32 2, %v1413_v1  ;;  %v230_v21 = vsub.s32 1, %v1413_v1  ;;  %v238_v22 = vsub.s32 3, %v1413_v1 }
  0x97   :  { %551 = vmatmul.mubr.f32.gmra.mxu0 %v1237_v37  ;;  %575 = vmatmul.mubr.f32.gmra.mxu1 %v1341_v61 }
  0x98   :  { %556 = vmatprep.mubr.f32.mxu0 %v1255_v41  ;;  %580 = vmatprep.mubr.f32.mxu1 %v27_v3  ;;  %v1425_v23 = vrot.slane %v1420_v20, %v226_v18  ;;  %v1428_v24 = vrot.slane %v1420_v20, %v234_v19  ;;  %v1431_v25 = vrot.slane %v1420_v20, %v230_v21 }
  0x99   :  { %v1434_v26 = vrot.slane %v1420_v20, %v238_v22 }
  0x9b   :  { %557 = vmatmul.mubr.f32.gmra.mxu0 %v1263_v43  ;;  %581 = vmatmul.mubr.f32.gmra.mxu1 %v26_v5 }
  0x9c   :  { %562 = vmatprep.mubr.f32.mxu0 %v1281_v47  ;;  %586 = vmatprep.mubr.f32.mxu1 %v29_v9 }
  0x9f   :  { %563 = vmatmul.mubr.f32.gmra.mxu0 %v1289_v49  ;;  %587 = vmatmul.mubr.f32.gmra.mxu1 %v28_v11 }
 0x103   :  { %v320_v27 = vpop.f32.mrf.mxu0  ;;  %v433_v28 = vpop.f32.mrf.mxu1 }
 0x104   :  { %v321_v29 = vadd.f32 %v320_v27, %v1425_v23  ;;  %v434_v30 = vadd.f32 %v433_v28, %v1428_v24 }
 0x105   :  { %v322_v31 = vpop.f32.mrf.mxu0  ;;  %v435_v32 = vpop.f32.mrf.mxu1 }
 0x106   :  { %593 = vst [vmem:[%s1619_s3] sm:$0xff] %v321_v29  ;;  %595 = vst [vmem:[%s1619_s3 + $0x10] sm:$0xff] %v434_v30  ;;  %v323_v33 = vadd.f32 %v322_v31, %v1431_v25  ;;  %v436_v34 = vadd.f32 %v435_v32, %v1434_v26  ;;  %v242_v29 = vsub.s32 4, %v1413_v1 }
 0x108   :  { %594 = vst [vmem:[%s1619_s3 + $0x8] sm:$0xff] %v323_v33  ;;  %596 = vst [vmem:[%s1619_s3 + $0x18] sm:$0xff] %v436_v34 }
 0x127   :  { %v326_v35 = vpop.f32.mrf.mxu0  ;;  %v439_v36 = vpop.f32.mrf.mxu1 }
 0x128   :  { %v327_v37 = vadd.f32 %v326_v35, %v1425_v23  ;;  %v440_v38 = vadd.f32 %v439_v36, %v1428_v24 }
 0x129   :  { %v328_v39 = vpop.f32.mrf.mxu0  ;;  %v441_v40 = vpop.f32.mrf.mxu1 }
 0x12a   :  { %599 = vst [vmem:[%s1619_s3 + $0x30] sm:$0xff] %v327_v37  ;;  %601 = vst [vmem:[%s1619_s3 + $0x40] sm:$0xff] %v440_v38  ;;  %v329_v41 = vadd.f32 %v328_v39, %v1431_v25  ;;  %v442_v42 = vadd.f32 %v441_v40, %v1434_v26 }
 0x12c   :  { %600 = vst [vmem:[%s1619_s3 + $0x38] sm:$0xff] %v329_v41  ;;  %602 = vst [vmem:[%s1619_s3 + $0x48] sm:$0xff] %v442_v42 }
 0x12d   :  { %v332_v43 = vpop.f32.mrf.mxu0  ;;  %v445_v44 = vpop.f32.mrf.mxu1 }
 0x12e   :  { %v333_v45 = vadd.f32 %v332_v43, %v1425_v23  ;;  %v446_v46 = vadd.f32 %v445_v44, %v1428_v24 }
 0x12f   :  { %v334_v47 = vpop.f32.mrf.mxu0  ;;  %v447_v48 = vpop.f32.mrf.mxu1 }
 0x130   :  { %605 = vst [vmem:[%s1619_s3 + $0x60] sm:$0xff] %v333_v45  ;;  %607 = vst [vmem:[%s1619_s3 + $0x70] sm:$0xff] %v446_v46  ;;  %v335_v49 = vadd.f32 %v334_v47, %v1431_v25  ;;  %v448_v50 = vadd.f32 %v447_v48, %v1434_v26 }
 0x132   :  { %606 = vst [vmem:[%s1619_s3 + $0x68] sm:$0xff] %v335_v49  ;;  %608 = vst [vmem:[%s1619_s3 + $0x78] sm:$0xff] %v448_v50 }
 0x133   :  { %v338_v51 = vpop.f32.mrf.mxu0  ;;  %v451_v52 = vpop.f32.mrf.mxu1 }
 0x134   :  { %v339_v53 = vadd.f32 %v338_v51, %v1425_v23  ;;  %v452_v54 = vadd.f32 %v451_v52, %v1428_v24 }
 0x135   :  { %v340_v55 = vpop.f32.mrf.mxu0  ;;  %v453_v56 = vpop.f32.mrf.mxu1 }
 0x136   :  { %611 = vst [vmem:[%s1619_s3 + $0x90] sm:$0xff] %v339_v53  ;;  %613 = vst [vmem:[%s1619_s3 + $0xa0] sm:$0xff] %v452_v54  ;;  %v341_v57 = vadd.f32 %v340_v55, %v1431_v25  ;;  %v454_v58 = vadd.f32 %v453_v56, %v1434_v26 }
 0x138   :  { %612 = vst [vmem:[%s1619_s3 + $0x98] sm:$0xff] %v341_v57  ;;  %614 = vst [vmem:[%s1619_s3 + $0xa8] sm:$0xff] %v454_v58 }
 0x139   :  { %v344_v59 = vpop.f32.mrf.mxu0  ;;  %v457_v60 = vpop.f32.mrf.mxu1 }
 0x13a   :  { %v345_v61 = vadd.f32 %v344_v59, %v1425_v23  ;;  %v458_v62 = vadd.f32 %v457_v60, %v1428_v24 }
 0x13b   :  { %v346_v0 = vpop.f32.mrf.mxu0  ;;  %v459_v2 = vpop.f32.mrf.mxu1 }
 0x13c   :  { %617 = vst [vmem:[%s1619_s3 + $0xc0] sm:$0xff] %v345_v61  ;;  %619 = vst [vmem:[%s1619_s3 + $0xd0] sm:$0xff] %v458_v62  ;;  %v347_v3 = vadd.f32 %v346_v0, %v1431_v25  ;;  %v460_v4 = vadd.f32 %v459_v2, %v1434_v26 }
 0x13e   :  { %618 = vst [vmem:[%s1619_s3 + $0xc8] sm:$0xff] %v347_v3  ;;  %620 = vst [vmem:[%s1619_s3 + $0xd8] sm:$0xff] %v460_v4 }
 0x13f   :  { %v350_v5 = vpop.f32.mrf.mxu0  ;;  %v463_v6 = vpop.f32.mrf.mxu1 }
 0x140   :  { %v351_v7 = vadd.f32 %v350_v5, %v1425_v23  ;;  %v464_v8 = vadd.f32 %v463_v6, %v1428_v24 }
 0x141   :  { %v352_v9 = vpop.f32.mrf.mxu0  ;;  %v465_v10 = vpop.f32.mrf.mxu1 }
 0x142   :  { %623 = vst [vmem:[%s1619_s3 + $0xf0] sm:$0xff] %v351_v7  ;;  %625 = vst [vmem:[%s1619_s3 + $0x100] sm:$0xff] %v464_v8  ;;  %v353_v11 = vadd.f32 %v352_v9, %v1431_v25  ;;  %v466_v12 = vadd.f32 %v465_v10, %v1434_v26 }
 0x144   :  { %624 = vst [vmem:[%s1619_s3 + $0xf8] sm:$0xff] %v353_v11  ;;  %626 = vst [vmem:[%s1619_s3 + $0x108] sm:$0xff] %v466_v12 }
 0x145   :  { %v356_v13 = vpop.f32.mrf.mxu0  ;;  %v469_v14 = vpop.f32.mrf.mxu1 }
 0x146   :  { %v357_v15 = vadd.f32 %v356_v13, %v1425_v23  ;;  %v470_v16 = vadd.f32 %v469_v14, %v1428_v24 }
 0x147   :  { %v358_v17 = vpop.f32.mrf.mxu0  ;;  %v471_v63 = vpop.f32.mrf.mxu1 }
 0x148   :  { %629 = vst [vmem:[%s1619_s3 + $0x120] sm:$0xff] %v357_v15  ;;  %631 = vst [vmem:[%s1619_s3 + $0x130] sm:$0xff] %v470_v16  ;;  %v359_v18 = vadd.f32 %v358_v17, %v1431_v25  ;;  %v472_v19 = vadd.f32 %v471_v63, %v1434_v26 }
 0x14a   :  { %630 = vst [vmem:[%s1619_s3 + $0x128] sm:$0xff] %v359_v18  ;;  %632 = vst [vmem:[%s1619_s3 + $0x138] sm:$0xff] %v472_v19 }
 0x14b   :  { %v362_v21 = vpop.f32.mrf.mxu0  ;;  %v475_v22 = vpop.f32.mrf.mxu1 }
 0x14c   :  { %v363_v27 = vadd.f32 %v362_v21, %v1425_v23  ;;  %v476_v28 = vadd.f32 %v475_v22, %v1428_v24  ;;  %v246_v23 = vsub.s32 5, %v1413_v1  ;;  %v243_v24 = vrot.slane %v1420_v20, %v242_v29 }
 0x14d   :  { %v364_v30 = vpop.f32.mrf.mxu0  ;;  %v477_v31 = vpop.f32.mrf.mxu1 }
 0x14e   :  { %635 = vst [vmem:[%s1619_s3 + $0x150] sm:$0xff] %v363_v27  ;;  %637 = vst [vmem:[%s1619_s3 + $0x160] sm:$0xff] %v476_v28  ;;  %v365_v32 = vadd.f32 %v364_v30, %v1431_v25  ;;  %v478_v33 = vadd.f32 %v477_v31, %v1434_v26  ;;  %v247_v34 = vrot.slane %v1420_v20, %v246_v23 }
 0x150   :  { %636 = vst [vmem:[%s1619_s3 + $0x158] sm:$0xff] %v365_v32  ;;  %638 = vst [vmem:[%s1619_s3 + $0x168] sm:$0xff] %v478_v33 }
 0x153   :  { %v546_v35 = vpop.f32.mrf.mxu0  ;;  %v570_v36 = vpop.f32.mrf.mxu1 }
 0x154   :  { %v547_v37 = vadd.f32 %v546_v35, %v243_v24  ;;  %v571_v25 = vadd.f32 %v570_v36, %v243_v24 }
 0x155   :  { %v548_v38 = vpop.f32.mrf.mxu0  ;;  %v572_v26 = vpop.f32.mrf.mxu1 }
 0x156   :  { %597 = vst [vmem:[%s1619_s3 + $0x20] sm:$0xff] %v547_v37  ;;  %621 = vst [vmem:[%s1619_s3 + $0xe0] sm:$0xff] %v571_v25  ;;  %v549_v1 = vadd.f32 %v548_v38, %v247_v34  ;;  %v573_v39 = vadd.f32 %v572_v26, %v247_v34 }
 0x157   :  { %v552_v40 = vpop.f32.mrf.mxu0  ;;  %v576_v41 = vpop.f32.mrf.mxu1 }
 0x158   :  { %598 = vst [vmem:[%s1619_s3 + $0x28] sm:$0xff] %v549_v1  ;;  %622 = vst [vmem:[%s1619_s3 + $0xe8] sm:$0xff] %v573_v39  ;;  %v553_v20 = vadd.f32 %v552_v40, %v243_v24  ;;  %v577_v42 = vadd.f32 %v576_v41, %v243_v24 }
 0x159   :  { %v554_v43 = vpop.f32.mrf.mxu0  ;;  %v578_v44 = vpop.f32.mrf.mxu1 }
 0x15a   :  { %603 = vst [vmem:[%s1619_s3 + $0x50] sm:$0xff] %v553_v20  ;;  %627 = vst [vmem:[%s1619_s3 + $0x110] sm:$0xff] %v577_v42  ;;  %v555_v45 = vadd.f32 %v554_v43, %v247_v34  ;;  %v579_v46 = vadd.f32 %v578_v44, %v247_v34 }
 0x15b   :  { %v558_v47 = vpop.f32.mrf.mxu0  ;;  %v582_v48 = vpop.f32.mrf.mxu1 }
 0x15c   :  { %604 = vst [vmem:[%s1619_s3 + $0x58] sm:$0xff] %v555_v45  ;;  %628 = vst [vmem:[%s1619_s3 + $0x118] sm:$0xff] %v579_v46  ;;  %v559_v49 = vadd.f32 %v558_v47, %v243_v24  ;;  %v583_v50 = vadd.f32 %v582_v48, %v243_v24 }
 0x15d   :  { %v560_v51 = vpop.f32.mrf.mxu0  ;;  %v584_v52 = vpop.f32.mrf.mxu1 }
 0x15e   :  { %609 = vst [vmem:[%s1619_s3 + $0x80] sm:$0xff] %v559_v49  ;;  %633 = vst [vmem:[%s1619_s3 + $0x140] sm:$0xff] %v583_v50  ;;  %v561_v53 = vadd.f32 %v560_v51, %v247_v34  ;;  %v585_v54 = vadd.f32 %v584_v52, %v247_v34 }
 0x15f   :  { %v564_v55 = vpop.f32.mrf.mxu0  ;;  %v588_v56 = vpop.f32.mrf.mxu1 }
 0x160   :  { %610 = vst [vmem:[%s1619_s3 + $0x88] sm:$0xff] %v561_v53  ;;  %634 = vst [vmem:[%s1619_s3 + $0x148] sm:$0xff] %v585_v54  ;;  %v565_v57 = vadd.f32 %v564_v55, %v243_v24  ;;  %v589_v58 = vadd.f32 %v588_v56, %v243_v24 }
 0x161   :  { %v566_v59 = vpop.f32.mrf.mxu0  ;;  %v590_v60 = vpop.f32.mrf.mxu1 }
 0x162   :  { %615 = vst [vmem:[%s1619_s3 + $0xb0] sm:$0xff] %v565_v57  ;;  %639 = vst [vmem:[%s1619_s3 + $0x170] sm:$0xff] %v589_v58  ;;  %v567_v61 = vadd.f32 %v566_v59, %v247_v34  ;;  %v591_v62 = vadd.f32 %v590_v60, %v247_v34 }
 0x164   :  { %616 = vst [vmem:[%s1619_s3 + $0xb8] sm:$0xff] %v567_v61  ;;  %640 = vst [vmem:[%s1619_s3 + $0x178] sm:$0xff] %v591_v62 }

// kernel: morse_net_forward.17
= control target key start
LH: loop header
LB: loop body
LE: loop exit
PB: predicated region body
PF: predicated region fallthrough
CT: control target
= control target key end

     0   :  { %s654_s1 = inlined_call_operand.vmem [shape: f32[256,128], index: 1, kind: input, shape index: {}]   ;;  %s655_s0 = inlined_call_operand.vmem [shape: f32[64,256], index: 0, kind: input, shape index: {}]   ;;  %s656_s2 = inlined_call_operand.vmem [shape: f32[1,128], index: 2, kind: input, shape index: {}]   ;;  %s657_s3 = inlined_call_operand.vmem [shape: f32[64,128], index: 3, kind: output, shape index: {}]  }
   0x1   :  { %v61_v0 = vld [vmem:[%s654_s1 + $0xf8] sm:$0xff]  ;;  %v60_v2 = vld [vmem:[%s654_s1 + $0xf0] sm:$0xff]  ;;  %v59_v4 = vld [vmem:[%s654_s1 + $0xe8] sm:$0xff] }
   0x2   :  { %v45_v1 = vld [vmem:[%s654_s1 + $0x78] sm:$0xff]  ;;  %275 = vmatprep.subr.mxu0 %v61_v0  ;;  %331 = vmatprep.subr.mxu1 %v61_v0  ;;  %v44_v3 = vld [vmem:[%s654_s1 + $0x70] sm:$0xff]  ;;  %v43_v5 = vld [vmem:[%s654_s1 + $0x68] sm:$0xff] }
   0x3   :  { %276 = vmatpush3.msra.mxu0 %v45_v1  ;;  %347 = vmatpush3.msra.mxu1 %v45_v1  ;;  %v58_v6 = vld [vmem:[%s654_s1 + $0xe0] sm:$0xff]  ;;  %v57_v8 = vld [vmem:[%s654_s1 + $0xd8] sm:$0xff]  ;;  %v56_v10 = vld [vmem:[%s654_s1 + $0xd0] sm:$0xff] }
   0x4   :  { %277 = vmatprep.subr.mxu0 %v60_v2  ;;  %332 = vmatprep.subr.mxu1 %v60_v2  ;;  %v42_v7 = vld [vmem:[%s654_s1 + $0x60] sm:$0xff]  ;;  %v41_v9 = vld [vmem:[%s654_s1 + $0x58] sm:$0xff]  ;;  %v40_v11 = vld [vmem:[%s654_s1 + $0x50] sm:$0xff] }
   0x5   :  { %278 = vmatpush3.msra.mxu0 %v44_v3  ;;  %348 = vmatpush3.msra.mxu1 %v44_v3  ;;  %v55_v12 = vld [vmem:[%s654_s1 + $0xc8] sm:$0xff]  ;;  %v54_v14 = vld [vmem:[%s654_s1 + $0xc0] sm:$0xff]  ;;  %v53_v16 = vld [vmem:[%s654_s1 + $0xb8] sm:$0xff] }
   0x6   :  { %279 = vmatprep.subr.mxu0 %v59_v4  ;;  %333 = vmatprep.subr.mxu1 %v59_v4  ;;  %v39_v13 = vld [vmem:[%s654_s1 + $0x48] sm:$0xff]  ;;  %v38_v15 = vld [vmem:[%s654_s1 + $0x40] sm:$0xff]  ;;  %v37_v17 = vld [vmem:[%s654_s1 + $0x38] sm:$0xff] }
   0x7   :  { %280 = vmatpush3.msra.mxu0 %v43_v5  ;;  %349 = vmatpush3.msra.mxu1 %v43_v5  ;;  %v52_v18 = vld [vmem:[%s654_s1 + $0xb0] sm:$0xff]  ;;  %v51_v20 = vld [vmem:[%s654_s1 + $0xa8] sm:$0xff]  ;;  %v50_v22 = vld [vmem:[%s654_s1 + $0xa0] sm:$0xff] }
   0x8   :  { %281 = vmatprep.subr.mxu0 %v58_v6  ;;  %334 = vmatprep.subr.mxu1 %v58_v6  ;;  %v36_v19 = vld [vmem:[%s654_s1 + $0x30] sm:$0xff]  ;;  %v35_v21 = vld [vmem:[%s654_s1 + $0x28] sm:$0xff]  ;;  %v34_v23 = vld [vmem:[%s654_s1 + $0x20] sm:$0xff] }
   0x9   :  { %282 = vmatpush3.msra.mxu0 %v42_v7  ;;  %350 = vmatpush3.msra.mxu1 %v42_v7  ;;  %v49_v24 = vld [vmem:[%s654_s1 + $0x98] sm:$0xff]  ;;  %v48_v26 = vld [vmem:[%s654_s1 + $0x90] sm:$0xff]  ;;  %v47_v28 = vld [vmem:[%s654_s1 + $0x88] sm:$0xff] }
   0xa   :  { %283 = vmatprep.subr.mxu0 %v57_v8  ;;  %335 = vmatprep.subr.mxu1 %v57_v8  ;;  %v33_v25 = vld [vmem:[%s654_s1 + $0x18] sm:$0xff]  ;;  %v32_v27 = vld [vmem:[%s654_s1 + $0x10] sm:$0xff]  ;;  %v31_v29 = vld [vmem:[%s654_s1 + $0x8] sm:$0xff] }
   0xb   :  { %284 = vmatpush3.msra.mxu0 %v41_v9  ;;  %351 = vmatpush3.msra.mxu1 %v41_v9  ;;  %v46_v30 = vld [vmem:[%s654_s1 + $0x80] sm:$0xff]  ;;  %v15_v32 = vld [vmem:[%s655_s0 + $0x8] sm:$0xff]  ;;  %v17_v36 = vld [vmem:[%s655_s0 + $0x18] sm:$0xff] }
   0xc   :  { %285 = vmatprep.subr.mxu0 %v56_v10  ;;  %336 = vmatprep.subr.mxu1 %v56_v10  ;;  %v30_v31 = vld [vmem:[%s654_s1] sm:$0xff]  ;;  %v23_v33 = vld [vmem:[%s655_s0 + $0x48] sm:$0xff]  ;;  %v25_v37 = vld [vmem:[%s655_s0 + $0x58] sm:$0xff] }
   0xd   :  { %286 = vmatpush3.msra.mxu0 %v40_v11  ;;  %352 = vmatpush3.msra.mxu1 %v40_v11  ;;  %v14_v34 = vld [vmem:[%s655_s0] sm:$0xff]  ;;  %v16_v38 = vld [vmem:[%s655_s0 + $0x10] sm:$0xff]  ;;  %v19_v40 = vld [vmem:[%s655_s0 + $0x28] sm:$0xff] }
   0xe   :  { %287 = vmatprep.subr.mxu0 %v55_v12  ;;  %337 = vmatprep.subr.mxu1 %v55_v12  ;;  %v22_v35 = vld [vmem:[%s655_s0 + $0x40] sm:$0xff]  ;;  %v24_v39 = vld [vmem:[%s655_s0 + $0x50] sm:$0xff]  ;;  %v27_v41 = vld [vmem:[%s655_s0 + $0x68] sm:$0xff] }
   0xf   :  { %288 = vmatpush3.msra.mxu0 %v39_v13  ;;  %353 = vmatpush3.msra.mxu1 %v39_v13  ;;  %v18_v42 = vld [vmem:[%s655_s0 + $0x20] sm:$0xff]  ;;  %v21_v44 = vld [vmem:[%s655_s0 + $0x38] sm:$0xff]  ;;  %v20_v46 = vld [vmem:[%s655_s0 + $0x30] sm:$0xff] }
  0x10   :  { %289 = vmatprep.subr.mxu0 %v54_v14  ;;  %338 = vmatprep.subr.mxu1 %v54_v14  ;;  %v26_v43 = vld [vmem:[%s655_s0 + $0x60] sm:$0xff]  ;;  %v29_v45 = vld [vmem:[%s655_s0 + $0x78] sm:$0xff]  ;;  %v28_v47 = vld [vmem:[%s655_s0 + $0x70] sm:$0xff] }
  0x11   :  { %290 = vmatpush3.msra.mxu0 %v38_v15  ;;  %354 = vmatpush3.msra.mxu1 %v38_v15  ;;  %v274_v50 = vld [vmem:[%s656_s2] ss:$0 sm:$0xff] }
  0x12   :  { %291 = vmatprep.subr.mxu0 %v53_v16  ;;  %339 = vmatprep.subr.mxu1 %v53_v16 }
  0x13   :  { %292 = vmatpush3.msra.mxu0 %v37_v17  ;;  %355 = vmatpush3.msra.mxu1 %v37_v17 }
  0x14   :  { %293 = vmatprep.subr.mxu0 %v52_v18  ;;  %340 = vmatprep.subr.mxu1 %v52_v18 }
  0x15   :  { %294 = vmatpush3.msra.mxu0 %v36_v19  ;;  %356 = vmatpush3.msra.mxu1 %v36_v19 }
  0x16   :  { %295 = vmatprep.subr.mxu0 %v51_v20  ;;  %341 = vmatprep.subr.mxu1 %v51_v20 }
  0x17   :  { %296 = vmatpush3.msra.mxu0 %v35_v21  ;;  %357 = vmatpush3.msra.mxu1 %v35_v21 }
  0x18   :  { %297 = vmatprep.subr.mxu0 %v50_v22  ;;  %342 = vmatprep.subr.mxu1 %v50_v22 }
  0x19   :  { %298 = vmatpush3.msra.mxu0 %v34_v23  ;;  %358 = vmatpush3.msra.mxu1 %v34_v23 }
  0x1a   :  { %299 = vmatprep.subr.mxu0 %v49_v24  ;;  %343 = vmatprep.subr.mxu1 %v49_v24 }
  0x1b   :  { %300 = vmatpush3.msra.mxu0 %v33_v25  ;;  %359 = vmatpush3.msra.mxu1 %v33_v25 }
  0x1c   :  { %301 = vmatprep.subr.mxu0 %v48_v26  ;;  %344 = vmatprep.subr.mxu1 %v48_v26 }
  0x1d   :  { %302 = vmatpush3.msra.mxu0 %v32_v27  ;;  %360 = vmatpush3.msra.mxu1 %v32_v27 }
  0x1e   :  { %303 = vmatprep.subr.mxu0 %v47_v28  ;;  %345 = vmatprep.subr.mxu1 %v47_v28 }
  0x1f   :  { %304 = vmatpush3.msra.mxu0 %v31_v29  ;;  %361 = vmatpush3.msra.mxu1 %v31_v29 }
  0x20   :  { %305 = vmatprep.subr.mxu0 %v46_v30  ;;  %346 = vmatprep.subr.mxu1 %v46_v30 }
  0x21   :  { %306 = vmatpush3.msra.mxu0 %v30_v31  ;;  %362 = vmatpush3.msra.mxu1 %v30_v31 }
  0x22   :  { %133 = vmatprep.mubr.f32.mxu0 %v15_v32  ;;  %153 = vmatprep.mubr.f32.mxu1 %v23_v33 }
  0x23   :  { %134 = vmatmul.mubr.f32.vlgmr.msra.gmra.mxu0 %v14_v34  ;;  %154 = vmatmul.mubr.f32.vlgmr.msra.gmra.mxu1 %v22_v35 }
  0x24   :  { %138 = vmatprep.mubr.f32.mxu0 %v17_v36  ;;  %158 = vmatprep.mubr.f32.mxu1 %v25_v37 }
  0x27   :  { %139 = vmatmul.mubr.f32.gmra.mxu0 %v16_v38  ;;  %159 = vmatmul.mubr.f32.gmra.mxu1 %v24_v39 }
  0x28   :  { %143 = vmatprep.mubr.f32.mxu0 %v19_v40  ;;  %163 = vmatprep.mubr.f32.mxu1 %v27_v41 }
  0x2b   :  { %144 = vmatmul.mubr.f32.gmra.mxu0 %v18_v42  ;;  %164 = vmatmul.mubr.f32.gmra.mxu1 %v26_v43 }
  0x2c   :  { %148 = vmatprep.mubr.f32.mxu0 %v21_v44  ;;  %168 = vmatprep.mubr.f32.mxu1 %v29_v45 }
  0x2f   :  { %149 = vmatmul.mubr.f32.gmra.mxu0 %v20_v46  ;;  %169 = vmatmul.mubr.f32.gmra.mxu1 %v28_v47 }
  0xe3   :  { %v307_v48 = vpop.f32.mrf.mxu0  ;;  %v319_v49 = vpop.f32.mrf.mxu1 }
  0xe5   :  { %v308_v51 = vpop.f32.mrf.mxu0  ;;  %v320_v52 = vpop.f32.mrf.mxu1 }
  0xe6   :  { %v309_v53 = vadd.f32 %v308_v51, %v307_v48  ;;  %v321_v57 = vadd.f32 %v320_v52, %v319_v49 }
  0xe7   :  { %v310_v54 = vpop.f32.mrf.mxu0  ;;  %v322_v55 = vpop.f32.mrf.mxu1 }
  0xe8   :  { %v562_v56 = vadd.f32 %v309_v53, %v274_v50  ;;  %v565_v63 = vadd.f32 %v321_v57, %v274_v50 }
  0xe9   :  { %v311_v58 = vpop.f32.mrf.mxu0  ;;  %v323_v59 = vpop.f32.mrf.mxu1 }
  0xea   :  { %v324_v60 = vadd.f32 %v323_v59, %v322_v55  ;;  %174 = vmax.xlane.f32.xlu0 %v562_v56  ;;  %v312_v0 = vadd.f32 %v311_v58, %v310_v54 }
  0xeb   :  { %v313_v61 = vpop.f32.mrf.mxu0  ;;  %v325_v62 = vpop.f32.mrf.mxu1 }
  0xec   :  { %v567_v1 = vadd.f32 %v324_v60, %v274_v50  ;;  %v571_v8 = vadd.f32 %v312_v0, %v274_v50 }
  0xed   :  { %v314_v2 = vpop.f32.mrf.mxu0  ;;  %v326_v3 = vpop.f32.mrf.mxu1 }
  0xee   :  { %v315_v4 = vadd.f32 %v314_v2, %v313_v61  ;;  %184 = vmax.xlane.f32.xlu1 %v567_v1  ;;  %182 = vmax.xlane.f32.xlu0 %v565_v63  ;;  %v327_v5 = vadd.f32 %v326_v3, %v325_v62 }
  0xef   :  { %v316_v6 = vpop.f32.mrf.mxu0  ;;  %v328_v7 = vpop.f32.mrf.mxu1 }
  0xf0   :  { %v573_v9 = vadd.f32 %v315_v4, %v274_v50  ;;  %v575_v13 = vadd.f32 %v327_v5, %v274_v50 }
  0xf1   :  { %v317_v10 = vpop.f32.mrf.mxu0  ;;  %v329_v11 = vpop.f32.mrf.mxu1 }
  0xf2   :  { %v318_v12 = vadd.f32 %v317_v10, %v316_v6  ;;  %178 = vmax.xlane.f32.xlu1 %v573_v9  ;;  %176 = vmax.xlane.f32.xlu0 %v571_v8  ;;  %v330_v14 = vadd.f32 %v329_v11, %v328_v7 }
  0xf4   :  { %v579_v15 = vadd.f32 %v318_v12, %v274_v50  ;;  %v581_v16 = vadd.f32 %v330_v14, %v274_v50 }
  0xf6   :  { %180 = vmax.xlane.f32.xlu1 %v579_v15  ;;  %186 = vmax.xlane.f32.xlu0 %v575_v13 }
  0xfa   :  { %188 = vmax.xlane.f32.xlu1 %v581_v16 }
 0x173   :  { %v175_v17 = vpop.xlane.xlu0 %174 }
 0x174   :  { %v190_v18 = vsub.f32 %v562_v56, %v175_v17 }
 0x176   :  { %v198_v19 = vmul.f32 1.442695, %v190_v18 }
 0x177   :  { %v587_v20 = vpop.xlane.xlu1 %184  ;;  %v589_v21 = vpop.xlane.xlu0 %182 }
 0x178   :  { %363 = vpow2.f32 %v198_v19  ;;  %v194_v22 = vsub.f32 %v565_v63, %v589_v21  ;;  %v195_v26 = vsub.f32 %v567_v1, %v587_v20 }
 0x17a   :  { %v206_v23 = vmul.f32 1.442695, %v194_v22  ;;  %v208_v33 = vmul.f32 1.442695, %v195_v26 }
 0x17b   :  { %v593_v24 = vpop.xlane.xlu1 %178  ;;  %v595_v25 = vpop.xlane.xlu0 %176 }
 0x17c   :  { %v192_v27 = vsub.f32 %v573_v9, %v593_v24  ;;  %v191_v28 = vsub.f32 %v571_v8, %v595_v25  ;;  %365 = vpow2.f32 %v206_v23 }
 0x17e   :  { %v202_v29 = vmul.f32 1.442695, %v192_v27  ;;  %v200_v30 = vmul.f32 1.442695, %v191_v28 }
 0x17f   :  { %v603_v31 = vpop.xlane.xlu1 %180  ;;  %v605_v32 = vpop.xlane.xlu0 %186 }
 0x180   :  { %367 = vpow2.f32 %v202_v29  ;;  %v196_v34 = vsub.f32 %v575_v13, %v605_v32  ;;  %v193_v35 = vsub.f32 %v579_v15, %v603_v31 }
 0x181   :  { %369 = vpow2.f32 %v200_v30 }
 0x182   :  { %v210_v36 = vmul.f32 1.442695, %v196_v34  ;;  %371 = vpow2.f32 %v208_v33  ;;  %v204_v39 = vmul.f32 1.442695, %v193_v35 }
 0x183   :  { %v611_v37 = vpop.xlane.xlu1 %188 }
 0x184   :  { %373 = vpow2.f32 %v210_v36  ;;  %v197_v40 = vsub.f32 %v581_v16, %v611_v37 }
 0x185   :  { %v364_v38 = vpop.eup %363  ;;  %375 = vpow2.f32 %v204_v39 }
 0x186   :  { %214 = vadd.xlane.f32.xlu0 %v364_v38  ;;  %v212_v41 = vmul.f32 1.442695, %v197_v40 }
 0x188   :  { %377 = vpow2.f32 %v212_v41 }
 0x189   :  { %v366_v42 = vpop.eup %365 }
 0x18a   :  { %222 = vadd.xlane.f32.xlu0 %v366_v42 }
 0x18d   :  { %v368_v43 = vpop.eup %367 }
 0x18e   :  { %v370_v44 = vpop.eup %369  ;;  %218 = vadd.xlane.f32.xlu0 %v368_v43 }
 0x18f   :  { %216 = vadd.xlane.f32.xlu1 %v370_v44  ;;  %v372_v45 = vpop.eup %371 }
 0x191   :  { %v374_v46 = vpop.eup %373 }
 0x192   :  { %226 = vadd.xlane.f32.xlu0 %v374_v46  ;;  %v376_v47 = vpop.eup %375 }
 0x193   :  { %224 = vadd.xlane.f32.xlu1 %v372_v45 }
 0x195   :  { %v378_v48 = vpop.eup %377 }
 0x197   :  { %220 = vadd.xlane.f32.xlu1 %v376_v47 }
 0x19b   :  { %228 = vadd.xlane.f32.xlu1 %v378_v48 }
 0x20f   :  { %v215_v49 = vpop.xlane.xlu0 %214 }
 0x210   :  { %379 = vlog2.f32 %v215_v49 }
 0x213   :  { %v223_v50 = vpop.xlane.xlu0 %222 }
 0x214   :  { %381 = vlog2.f32 %v223_v50 }
 0x217   :  { %v219_v52 = vpop.xlane.xlu0 %218 }
 0x218   :  { %v217_v51 = vpop.xlane.xlu1 %216 }
 0x219   :  { %383 = vlog2.f32 %v217_v51 }
 0x21a   :  { %385 = vlog2.f32 %v219_v52 }
 0x21b   :  { %v227_v54 = vpop.xlane.xlu0 %226 }
 0x21c   :  { %v225_v53 = vpop.xlane.xlu1 %224 }
 0x21d   :  { %v380_v55 = vpop.eup %379  ;;  %387 = vlog2.f32 %v225_v53 }
 0x21e   :  { %v231_v57 = vmul.f32 0.6931472, %v380_v55  ;;  %389 = vlog2.f32 %v227_v54 }
 0x220   :  { %v246_v58 = vadd.f32 %v231_v57, %v175_v17  ;;  %v221_v59 = vpop.xlane.xlu1 %220 }
 0x221   :  { %391 = vlog2.f32 %v221_v59  ;;  %v382_v60 = vpop.eup %381 }
 0x222   :  { %v254_v61 = vsub.f32 %v562_v56, %v246_v58  ;;  %v239_v62 = vmul.f32 0.6931472, %v382_v60 }
 0x224   :  { %262 = vst [vmem:[%s657_s3] sm:$0xff] %v254_v61  ;;  %v229_v0 = vpop.xlane.xlu1 %228  ;;  %v250_v2 = vadd.f32 %v239_v62, %v589_v21 }
 0x225   :  { %393 = vlog2.f32 %v229_v0 }
 0x226   :  { %v384_v3 = vpop.eup %383  ;;  %v258_v5 = vsub.f32 %v565_v63, %v250_v2 }
 0x227   :  { %v386_v4 = vpop.eup %385  ;;  %v233_v6 = vmul.f32 0.6931472, %v384_v3 }
 0x228   :  { %v235_v7 = vmul.f32 0.6931472, %v386_v4  ;;  %266 = vst [vmem:[%s657_s3 + $0x20] sm:$0xff] %v258_v5 }
 0x229   :  { %v247_v56 = vadd.f32 %v233_v6, %v595_v25 }
 0x22a   :  { %v388_v10 = vpop.eup %387  ;;  %v248_v11 = vadd.f32 %v235_v7, %v593_v24 }
 0x22b   :  { %v390_v12 = vpop.eup %389  ;;  %v255_v14 = vsub.f32 %v571_v8, %v247_v56  ;;  %v241_v17 = vmul.f32 0.6931472, %v388_v10 }
 0x22c   :  { %v256_v18 = vsub.f32 %v573_v9, %v248_v11  ;;  %v243_v19 = vmul.f32 0.6931472, %v390_v12 }
 0x22d   :  { %263 = vst [vmem:[%s657_s3 + $0x8] sm:$0xff] %v255_v14  ;;  %v251_v63 = vadd.f32 %v241_v17, %v587_v20 }
 0x22e   :  { %v392_v21 = vpop.eup %391  ;;  %264 = vst [vmem:[%s657_s3 + $0x10] sm:$0xff] %v256_v18  ;;  %v252_v22 = vadd.f32 %v243_v19, %v605_v32 }
 0x22f   :  { %v259_v23 = vsub.f32 %v567_v1, %v251_v63  ;;  %v237_v8 = vmul.f32 0.6931472, %v392_v21 }
 0x230   :  { %v260_v24 = vsub.f32 %v575_v13, %v252_v22 }
 0x231   :  { %267 = vst [vmem:[%s657_s3 + $0x28] sm:$0xff] %v259_v23  ;;  %v249_v9 = vadd.f32 %v237_v8, %v603_v31 }
 0x232   :  { %v394_v25 = vpop.eup %393  ;;  %268 = vst [vmem:[%s657_s3 + $0x30] sm:$0xff] %v260_v24 }
 0x233   :  { %v257_v20 = vsub.f32 %v579_v15, %v249_v9  ;;  %v245_v26 = vmul.f32 0.6931472, %v394_v25 }
 0x235   :  { %265 = vst [vmem:[%s657_s3 + $0x18] sm:$0xff] %v257_v20  ;;  %v253_v1 = vadd.f32 %v245_v26, %v611_v37 }
 0x237   :  { %v261_v13 = vsub.f32 %v581_v16, %v253_v1 }
 0x239   :  { %269 = vst [vmem:[%s657_s3 + $0x38] sm:$0xff] %v261_v13 }

// kernel: morse_net_forward.14
= control target key start
LH: loop header
LB: loop body
LE: loop exit
PB: predicated region body
PF: predicated region fallthrough
CT: control target
= control target key end

     0   :  { %s6899_s12 = smov 0   ;;  %s6901_s13 = smov 0   ;;  %s8921_s0 = inlined_call_operand.vmem [shape: f32[2,32,768], index: 0, kind: input, shape index: {}]   ;;  %s8922_s1 = inlined_call_operand.vmem [shape: f32[2,128,384], index: 1, kind: input, shape index: {}]   ;;  %s8923_s2 = inlined_call_operand.vmem [shape: f32[2,1,384], index: 2, kind: input, shape index: {}]   ;;  %s8924_s3 = inlined_call_operand.vmem [shape: f32[2,32,256], index: 3, kind: output, shape index: {}]  }
   0x1   :  { %s6903_s14 = smov 0   ;;  %s6905_s15 = smov 0  }
   0x2   :  { %s6907_s16 = smov 0   ;;  %s6909_s17 = smov 0  }
   0x3   :  { %s6911_s18 = smov 0  }
   0x4 LB: > { %s22_s19 = sadd.s32 1, %s6865_s16  ;;  %s25_s20 = sadd.s32 1, %s6869_s17  ;;  %s6873_s18 = sphi %s6911_s18, %s13_s18   ;;  %s6869_s17 = sphi %s6909_s17, %s9200_s17   ;;  %s6865_s16 = sphi %s6907_s16, %s9199_s16   ;;  %s6861_s15 = sphi %s6905_s15, %s9198_s15   ;;  %s6857_s14 = sphi %s6903_s14, %s9197_s14   ;;  %s6853_s13 = sphi %s6901_s13, %s9196_s13   ;;  %s6849_s12 = sphi %s6899_s12, %s9195_s12  }
   0x5   : > { %p23_p0 = scmp.ge.s32.totalorder %s22_s19, 2  ;;  %s5419_s21 = sadd.s32 4294967295, %s6873_s18  }
   0x6   : > { %s5421_s22 = sshll.u32 %s6865_s16, 1  ;;  %p49_p2 = scmp.ne.s32.totalorder %s6853_s13, %s6849_s12 }
   0x7   : > { %s9202_s19 = smov (%p23_p0, %s22_s19), 0  ;;  %s9204_s20 = smov (!%p23_p0, %s25_s20), %s6869_s17 }
   0x8   : > { %s30_s23 = ssub.s32 1, %s5421_s22  ;;  %s5422_s24 = sshll.u32 %s9202_s19, 1 }
   0x9   : > { %p27_p1 = scmp.ge.s32.totalorder %s9204_s20, 2  ;;  %s31_s25 = smul.u32 %s6869_s17, %s30_s23 }
   0xa   : > { %s34_s26 = ssub.s32 1, %s5422_s24  ;;  %p50_p3 = scmp.eq.s32.totalorder %s6873_s18, 0 }
   0xb   : > { %s9206_s20 = smov (%p27_p1, %s9204_s20), 0  ;;  %s32_s27 = sadd.s32 %s6865_s16, %s31_s25 }
   0xc   : > { %s35_s28 = smul.u32 %s34_s26, %s9206_s20  ;;  %s38_s29 = ssub.s32 %s6869_s17, %s9206_s20 }
   0xd   : > { %p51_p4 = por %p50_p3, %p49_p2  ;;  %p141_p5 = scmp.eq.s32.totalorder %s5419_s21, 3 }
   0xe   : > { %s36_s30 = sadd.s32 %s35_s28, %s9202_s19  ;;  %s42_s7 = sadd.s32 1, %s6853_s13 }
   0xf   : > { %s37_s4 = ssub.s32 %s32_s27, %s36_s30  ;;  %p6953_p6 = por %p141_p5, %p49_p2 }
  0x10   : > { %s39_s6 = sor.u32 %s38_s29, %s37_s4  ;;  %p5426_p8 = scmp.ge.s32.totalorder %s6873_s18, 4 }
  0x11   : > { %p40_p7 = scmp.eq.s32.totalorder %s39_s6, 0 }
  0x12   : > { %163 = sbr.rel (%p5426_p8) target bundleno = 38 (0x26), region = 16 }
  0x13   : > { %s6959_s8 = scalar_select %p40_p7, %s6853_s13, %s42_s7  }
  0x17   : > { %166 = sbr.rel (!%p51_p4) target bundleno = 38 (0x26), region = 20  ;;  %s168_s9 = sand.u32 (%p51_p4), 1, %s6853_s13  }
  0x18   : > { %s176_s10 = smul.u32 (%p51_p4), 3, %s6869_s17 }
  0x19   : > { %s6434_s11 = smul.u32 (%p51_p4), 96, %s168_s9 }
  0x1a   : > { %s6435_s21 = smul.u32 (%p51_p4), 12, %s32_s27 }
  0x1b   : > { %s170_s28 = scalar_lea.vmem (%p51_p4), [#allocation3], %s6434_s11 }
  0x1c   : > { %s178_s22 = sadd.s32 %s6435_s21, %s176_s10 }
  0x1d   : > { %s5430_s23 = sshll.u32 %s178_s22, 3 }
  0x1e   : > { %s180_s26 = scalar_lea.vmem %s8921_s0, %s5430_s23 }
  0x1f   : > { %v193_v0 = vld [vmem:[%s180_s26] sm:$0xff]  ;;  %v195_v1 = vld [vmem:[%s180_s26 + $0x8] sm:$0xff]  ;;  %v197_v2 = vld [vmem:[%s180_s26 + $0x10] sm:$0xff] }
  0x20   : > { %194 = vst [vmem:[%s170_s28] sm:$0xff] %v193_v0  ;;  %196 = vst [vmem:[%s170_s28 + $0x8] sm:$0xff] %v195_v1  ;;  %v199_v3 = vld [vmem:[%s180_s26 + $0x30] sm:$0xff]  ;;  %v201_v4 = vld [vmem:[%s180_s26 + $0x38] sm:$0xff] }
  0x21   : > { %198 = vst [vmem:[%s170_s28 + $0x10] sm:$0xff] %v197_v2  ;;  %v203_v5 = vld [vmem:[%s180_s26 + $0x40] sm:$0xff]  ;;  %200 = vst [vmem:[%s170_s28 + $0x18] sm:$0xff] %v199_v3  ;;  %v207_v7 = vld [vmem:[%s180_s26 + $0xc8] sm:$0xff] }
  0x22   : > { %202 = vst [vmem:[%s170_s28 + $0x20] sm:$0xff] %v201_v4  ;;  %204 = vst [vmem:[%s170_s28 + $0x28] sm:$0xff] %v203_v5  ;;  %v205_v6 = vld [vmem:[%s180_s26 + $0xc0] sm:$0xff]  ;;  %v209_v8 = vld [vmem:[%s180_s26 + $0xd0] sm:$0xff] }
  0x23   : > { %206 = vst [vmem:[%s170_s28 + $0x30] sm:$0xff] %v205_v6  ;;  %208 = vst [vmem:[%s170_s28 + $0x38] sm:$0xff] %v207_v7  ;;  %v211_v9 = vld [vmem:[%s180_s26 + $0xf0] sm:$0xff]  ;;  %v213_v10 = vld [vmem:[%s180_s26 + $0xf8] sm:$0xff] }
  0x24   : > { %210 = vst [vmem:[%s170_s28 + $0x40] sm:$0xff] %v209_v8  ;;  %v215_v11 = vld [vmem:[%s180_s26 + $0x100] sm:$0xff]  ;;  %212 = vst [vmem:[%s170_s28 + $0x48] sm:$0xff] %v211_v9 }
  0x25   : > { %214 = vst [vmem:[%s170_s28 + $0x50] sm:$0xff] %v213_v10  ;;  %216 = vst [vmem:[%s170_s28 + $0x58] sm:$0xff] %v215_v11 }
  0x26 PF: > { %p5431_p9 = scmp.ge.s32.totalorder %s6873_s18, 1  ;;  %p236_p10 = scmp.lt.s32.totalorder %s6873_s18, 5 }
  0x28   : > { %p237_p11 = pnand %p5431_p9, %p236_p10 }
  0x2a   : > { %240 = sbr.rel (%p237_p11) target bundleno = 4809 (0x12c9), region = 51 }
  0x2f   : > { %s243_s27 = sand.u32 1, %s6849_s12   ;;  %p280_p12 = scmp.lt.s32.totalorder %s6861_s15, 1 }
  0x30   : > { %s6436_s29 = smul.u32 96, %s243_s27  ;;  %s5432_s30 = sshll.u32 %s243_s27, 5 }
  0x31   : > { %p294_p13 = scmp.eq.s32.totalorder %s6861_s15, 0  ;;  %s6985_s12 = scalar_lea.vmem [#allocation4], %s5432_s30 }
  0x32   : > { %s281_s4 = scalar_select %p280_p12, %s6861_s15, 1 }
  0x33   : > { %s6983_s24 = scalar_lea.vmem [#allocation3], %s6436_s29  ;;  %p5434_p0 = scmp.ne.s32.totalorder %s6857_s14, 0 }
  0x34   : > { %s6437_s6 = smul.u32 384, %s281_s4 }
  0x35   : > { %s6438_s7 = smul.u32 3, %s281_s4 }
  0x36   : > { %s6976_s11 = scalar_lea.vmem %s8922_s1, %s6437_s6  ;;  %298 = sbr.rel (%p5434_p0) target bundleno = 61 (0x3d), region = 59 }
  0x37   : > { %s6981_s23 = scalar_lea.vmem %s8923_s2, %s6438_s7 }
  0x3b   : > { %v6875_v12 = vmov 0.0  }
  0x3c   : > { %299 = vst [vmem:[#allocation2] sm:$0x3] %v6875_v12 }
  0x3d PF: > { %v6989_v13 = vld [vmem:[%s6976_s11 + $0x170] sm:$0xff]  ;;  %v6992_v14 = vld [vmem:[%s6976_s11 + $0x168] sm:$0xff]  ;;  %v6995_v15 = vld [vmem:[%s6976_s11 + $0x158] sm:$0xff]  ;;  %v8925_v17 = vmov 0.0   ;;  %vm6877_vm0 = vmmov 0   ;;  %v363_v63 = vlaneseq  ;;  %v8982_v11 = vmov 0 }
  0x3e   : > { %378 = vmatprep.subr.mxu0 %v6989_v13  ;;  %v6999_v16 = vld [vmem:[%s6976_s11 + $0x150] sm:$0xff]  ;;  %442 = vmatprep.mubr.f32.mxu0 %v8925_v17  ;;  %v7004_v18 = vld [vmem:[%s6976_s11 + $0x140] sm:$0xff]  ;;  %v7009_v19 = vld [vmem:[%s6976_s11 + $0x138] sm:$0xff]  ;;  %v6878_v1 = vmov 1966171168   ;;  %p5442_p1 = scmp.ne.s32.totalorder %s6861_s15, 0 }
  0x3f   : > { %379 = vmatpush1.msra.mxu0 %v6992_v14  ;;  %5874 = vmatprep.subr.mxu1 %v8925_v17  ;;  %v7015_v20 = vld [vmem:[%s6976_s11 + $0x128] sm:$0xff]  ;;  %v7019_v21 = vld [vmem:[%s6976_s11 + $0x120] sm:$0xff]  ;;  %v7023_v22 = vld [vmem:[%s6976_s11 + $0x110] sm:$0xff]  ;;  %v364_v0 = vshrl.u32 %v363_v63, 7  ;;  %v521_v2 = vunpack.c.l.s4 %v6878_v1  ;;  %s357_s25 = scalar_select %p294_p13, 1, 0 }
  0x40   : > { %380 = vmatprep.subr.mxu0 %v6995_v15  ;;  %5906 = vmatprep.mubr.msk.f32.mxu1 %vm6877_vm0, %v8925_v17  ;;  %v7027_v23 = vld [vmem:[%s6976_s11 + $0x108] sm:$0xff]  ;;  %v7031_v24 = vld [vmem:[%s6976_s11 + $0xf8] sm:$0xff]  ;;  %v7035_v25 = vld [vmem:[%s6976_s11 + $0xf0] sm:$0xff] }
  0x41   : > { %381 = vmatpush1.msra.mxu0 %v6999_v16  ;;  %v7039_v26 = vld [vmem:[%s6976_s11 + $0xe0] sm:$0xff]  ;;  %v7043_v27 = vld [vmem:[%s6976_s11 + $0xd8] sm:$0xff]  ;;  %v7053_v30 = vld [vmem:[%s6976_s11 + $0xc8] sm:$0xff]  ;;  %v365_v3 = vsub.s32 0, %v364_v0  ;;  %v522_v5 = vunpack.c.0.s8 %v521_v2  ;;  %v369_v6 = vsub.s32 1, %v364_v0  ;;  %v358_v7 = vstv %s357_s25 }
  0x42   : > { %382 = vmatprep.subr.mxu0 %v7004_v18  ;;  %v7046_v28 = vld [vmem:[%s6976_s11 + $0x178] sm:$0xff]  ;;  %v7049_v29 = vld [vmem:[%s6976_s11 + $0x160] sm:$0xff]  ;;  %v7062_v32 = vld [vmem:[%s6976_s11 + $0x148] sm:$0xff]  ;;  %vm7212_vm1 = vcmp.eq.s32.totalorder %v358_v7, 1 }
  0x43   : > { %383 = vmatpush1.msra.mxu0 %v7009_v19  ;;  %5875 = vmatpush3.msra.mxu1 %v7046_v28  ;;  %v7058_v31 = vld [vmem:[%s6976_s11 + $0xc0] sm:$0xff]  ;;  %v7066_v33 = vld [vmem:[%s6976_s11 + $0xb0] sm:$0xff]  ;;  %v7071_v34 = vld [vmem:[%s6976_s11 + $0xa8] sm:$0xff]  ;;  %v7208_v9 = vsub.s32 %v522_v5, %v364_v0  ;;  %v8983_v11 = vsel %vm7212_vm1, 4294967295, %v8982_v11 }
  0x44   : > { %384 = vmatprep.subr.mxu0 %v7015_v20  ;;  %5876 = vmatprep.subr.mxu1 %v8925_v17  ;;  %v7075_v35 = vld [vmem:[%s6976_s11 + $0x130] sm:$0xff]  ;;  %v7079_v36 = vld [vmem:[%s6976_s11 + $0x98] sm:$0xff]  ;;  %v7092_v39 = vld [vmem:[%s6976_s11 + $0x80] sm:$0xff]  ;;  %8984 = vst [vmem:[#allocation17_spill] sm:$0xff] %v8983_v11 }
  0x45   : > { %385 = vmatpush1.msra.mxu0 %v7019_v21  ;;  %5877 = vmatpush3.msra.mxu1 %v7049_v29  ;;  %v7084_v37 = vld [vmem:[%s6976_s11 + $0x90] sm:$0xff]  ;;  %v7088_v38 = vld [vmem:[%s6976_s11 + $0x118] sm:$0xff]  ;;  %v7101_v41 = vld [vmem:[%s6976_s11 + $0x100] sm:$0xff] }
  0x46   : > { %386 = vmatprep.subr.mxu0 %v7023_v22  ;;  %5878 = vmatprep.subr.mxu1 %v8925_v17  ;;  %v7097_v40 = vld [vmem:[%s6976_s11 + $0x78] sm:$0xff]  ;;  %v7105_v42 = vld [vmem:[%s6976_s11 + $0x68] sm:$0xff]  ;;  %v7110_v43 = vld [vmem:[%s6976_s11 + $0x60] sm:$0xff] }
  0x47   : > { %387 = vmatpush1.msra.mxu0 %v7027_v23  ;;  %5879 = vmatpush3.msra.mxu1 %v7062_v32  ;;  %v7114_v44 = vld [vmem:[%s6976_s11 + $0xe8] sm:$0xff]  ;;  %v7118_v45 = vld [vmem:[%s6976_s11 + $0x50] sm:$0xff]  ;;  %v7131_v48 = vld [vmem:[%s6976_s11 + $0x38] sm:$0xff] }
  0x48   : > { %388 = vmatprep.subr.mxu0 %v7031_v24  ;;  %5880 = vmatprep.subr.mxu1 %v8925_v17  ;;  %v7123_v46 = vld [vmem:[%s6976_s11 + $0x48] sm:$0xff]  ;;  %v7127_v47 = vld [vmem:[%s6976_s11 + $0xd0] sm:$0xff]  ;;  %8970 = vst [vmem:[#allocation5_spill] sm:$0xff] %v7131_v48  ;;  %v7140_v50 = vld [vmem:[%s6976_s11 + $0xb8] sm:$0xff] }
  0x49   : > { %389 = vmatpush1.msra.mxu0 %v7035_v25  ;;  %5881 = vmatpush3.msra.mxu1 %v7075_v35  ;;  %v7136_v49 = vld [vmem:[%s6976_s11 + $0x30] sm:$0xff]  ;;  %v7144_v51 = vld [vmem:[%s6976_s11 + $0x20] sm:$0xff]  ;;  %v7149_v52 = vld [vmem:[%s6976_s11 + $0x18] sm:$0xff] }
  0x4a   : > { %390 = vmatprep.subr.mxu0 %v7039_v26  ;;  %5882 = vmatprep.subr.mxu1 %v8925_v17  ;;  %8971 = vst [vmem:[#allocation6_spill] sm:$0xff] %v7136_v49  ;;  %8972 = vst [vmem:[#allocation7_spill] sm:$0xff] %v7144_v51  ;;  %v7153_v53 = vld [vmem:[%s6976_s11 + $0xa0] sm:$0xff]  ;;  %v7157_v54 = vld [vmem:[%s6976_s11 + $0x8] sm:$0xff] }
  0x4b   : > { %391 = vmatpush1.msra.mxu0 %v7043_v27  ;;  %5883 = vmatpush3.msra.mxu1 %v7088_v38  ;;  %8973 = vst [vmem:[#allocation8_spill] sm:$0xff] %v7149_v52  ;;  %8974 = vst [vmem:[#allocation9_spill] sm:$0xff] %v7157_v54  ;;  %v7162_v55 = vld [vmem:[%s6976_s11] sm:$0xff]  ;;  %v7166_v56 = vld [vmem:[%s6976_s11 + $0x88] sm:$0xff] }
  0x4c   : > { %392 = vmatprep.subr.mxu0 %v7053_v30  ;;  %5884 = vmatprep.subr.mxu1 %v8925_v17  ;;  %8975 = vst [vmem:[#allocation10_spill] sm:$0xff] %v7162_v55  ;;  %v7169_v57 = vld [vmem:[#allocation2] sm:$0x3]  ;;  %v7175_v58 = vld [vmem:[%s6976_s11 + $0x70] sm:$0xff]  ;;  %v7182_v59 = vld [vmem:[%s6976_s11 + $0x58] sm:$0xff] }
  0x4d   : > { %393 = vmatpush1.msra.mxu0 %v7058_v31  ;;  %5885 = vmatpush3.msra.mxu1 %v7101_v41  ;;  %8976 = vst [vmem:[#allocation11_spill] sm:$0xff] %v7182_v59  ;;  %v7187_v60 = vld [vmem:[%s6976_s11 + $0x40] sm:$0xff]  ;;  %v7192_v61 = vld [vmem:[%s6976_s11 + $0x28] sm:$0xff]  ;;  %v7197_v62 = vld [vmem:[%s6976_s11 + $0x10] sm:$0xff] }
  0x4e   : > { %394 = vmatprep.subr.mxu0 %v7066_v33  ;;  %5886 = vmatprep.subr.mxu1 %v8925_v17  ;;  %8977 = vst [vmem:[#allocation12_spill] sm:$0xff] %v7187_v60  ;;  %8978 = vst [vmem:[#allocation13_spill] sm:$0xff] %v7192_v61  ;;  %v348_v4 = vld [vmem:[%s6981_s23] sm:$0x7] }
  0x4f   : > { %395 = vmatpush1.msra.mxu0 %v7071_v34  ;;  %5887 = vmatpush3.msra.mxu1 %v7114_v44  ;;  %8979 = vst [vmem:[#allocation14_spill] sm:$0xff] %v7197_v62  ;;  %v7206_v8 = vrot.slane %v348_v4, %v365_v3  ;;  %v7210_v10 = vrot.slane %v348_v4, %v369_v6  ;;  %v350_v63 = vld [vmem:[%s6983_s24] ss:$8 sm:$0x7] }
  0x50   : > { %396 = vmatprep.subr.mxu0 %v7079_v36  ;;  %5888 = vmatprep.subr.mxu1 %v8925_v17  ;;  %v5436_v1 = vld [vmem:[%s6983_s24 + $0x1f] ss:$8 sm:$0x7] }
  0x51   : > { %397 = vmatpush1.msra.mxu0 %v7084_v37  ;;  %5889 = vmatpush3.msra.mxu1 %v7127_v47  ;;  %8980 = vst [vmem:[#allocation15_spill] sm:$0xff] %v7206_v8  ;;  %8981 = vst [vmem:[#allocation16_spill] sm:$0xff] %v7210_v10  ;;  %v5437_v2 = vld [vmem:[%s6983_s24 + $0x4f] ss:$8 sm:$0x7]  ;;  %v360_v5 = vsel %vm7212_vm1, %v350_v63, %v5436_v1 }
  0x52   : > { %398 = vmatprep.subr.mxu0 %v7092_v39  ;;  %5890 = vmatprep.subr.mxu1 %v8925_v17 }
  0x53   : > { %399 = vmatpush1.msra.mxu0 %v7097_v40  ;;  %5891 = vmatpush3.msra.mxu1 %v7140_v50 }
  0x54   : > { %400 = vmatprep.subr.mxu0 %v7105_v42  ;;  %5892 = vmatprep.subr.mxu1 %v8925_v17 }
  0x55   : > { %401 = vmatpush1.msra.mxu0 %v7110_v43  ;;  %5893 = vmatpush3.msra.mxu1 %v7153_v53 }
  0x56   : > { %402 = vmatprep.subr.mxu0 %v7118_v45  ;;  %5894 = vmatprep.subr.mxu1 %v8925_v17 }
  0x57   : > { %403 = vmatpush1.msra.mxu0 %v7123_v46  ;;  %5895 = vmatpush3.msra.mxu1 %v7166_v56 }
  0x58   : > { %404 = vmatprep.subr.mxu0 %v7131_v48  ;;  %5896 = vmatprep.subr.mxu1 %v8925_v17 }
  0x59   : > { %405 = vmatpush1.msra.mxu0 %v7136_v49  ;;  %5897 = vmatpush3.msra.mxu1 %v7175_v58 }
  0x5a   : > { %406 = vmatprep.subr.mxu0 %v7144_v51  ;;  %5898 = vmatprep.subr.mxu1 %v8925_v17 }
  0x5b   : > { %407 = vmatpush1.msra.mxu0 %v7149_v52  ;;  %5899 = vmatpush3.msra.mxu1 %v7182_v59 }
  0x5c   : > { %408 = vmatprep.subr.mxu0 %v7157_v54  ;;  %5900 = vmatprep.subr.mxu1 %v8925_v17 }
  0x5d   : > { %409 = vmatpush1.msra.mxu0 %v7162_v55  ;;  %5901 = vmatpush3.msra.mxu1 %v7187_v60  ;;  %v5435_v55 = vld [vmem:[%s6983_s24 + $0x30] ss:$8 sm:$0x7] }
  0x5e   : > { %443 = vmatmul.mubr.f32.vlgmr.msra.gmra.mxu0 %v7169_v57  ;;  %5902 = vmatprep.subr.mxu1 %v8925_v17  ;;  %v361_v52 = vsel %vm7212_vm1, %v5435_v55, %v5437_v2 }
  0x5f   : > { %5903 = vmatpush3.msra.mxu1 %v7192_v61  ;;  %v561_v1 = vrot.slane %v361_v52, 1 }
  0x60   : > { %5904 = vmatprep.subr.mxu1 %v8925_v17 }
  0x61   : > { %5905 = vmatpush3.msra.mxu1 %v7197_v62 }
  0x62   : > { %5907 = vmatmul.mubr.f32.vlgmr.msra.gmra.mxu1 %v7169_v57 }
 0x11e   : > { %v444_v12 = vpop.f32.mrf.mxu0 }
 0x11f   : > { %v445_v17 = vadd.f32 %v444_v12, %v7206_v8 }
 0x120   : > { %v446_v62 = vpop.f32.mrf.mxu0 }
 0x121   : > { %v526_v61 = vrot.slane %v445_v17, %v7208_v9  ;;  %v447_v3 = vadd.f32 %v446_v62, %v7210_v10  ;;  %v560_v17 = vrot.slane %v360_v5, 1 }
 0x122   : > { %v515_v10 = vpop.f32.mrf.mxu1 }
 0x123   : > { %v527_v6 = vcombine.high %v526_v61, %v526_v61  ;;  %v534_v7 = vrot.slane %v526_v61, %v7208_v9  ;;  %v571_v54 = vrot.slane %v447_v3, %v7208_v9 }
 0x124   : > { %v5908_v59 = vpop.f32.mrf.mxu1 }
 0x125   : > { %v541_v12 = vrot.slane %v527_v6, %v7208_v9  ;;  %v544_v8 = vadd.f32 %v534_v7, %v360_v5  ;;  %v572_v60 = vcombine.high %v571_v54, %v571_v54  ;;  %v579_v62 = vrot.slane %v571_v54, %v7208_v9 }
 0x126   : > { %v373_v6 = vsub.s32 2, %v364_v0 }
 0x127   : > { %v545_v51 = vadd.f32 %v541_v12, %v361_v52  ;;  %v5438_v49 = vmul.f32 -1.442695, %v544_v8  ;;  %v586_v61 = vrot.slane %v572_v60, %v7208_v9  ;;  %v589_v3 = vadd.f32 %v579_v62, %v560_v17 }
 0x128   : > { %v7232_v7 = vrot.slane %v348_v4, %v373_v6  ;;  %v649_v6 = vrot.slane %v7169_v57, %v7208_v9 }
 0x129   : > { %6499 = vpow2.f32 %v5438_v49  ;;  %v5439_v63 = vmul.f32 -1.442695, %v545_v51  ;;  %v590_v11 = vadd.f32 %v586_v61, %v561_v1  ;;  %v5440_v55 = vmul.f32 -1.442695, %v589_v3 }
 0x12a   : > { %v516_v49 = vadd.f32 %v515_v10, %v7232_v7  ;;  %v631_v3 = vrot.slane %v361_v52, 2 }
 0x12b   : > { %6501 = vpow2.f32 %v5439_v63  ;;  %v5441_v2 = vmul.f32 -1.442695, %v590_v11  ;;  %v630_v63 = vrot.slane %v360_v5, 2 }
 0x12c   : > { %6503 = vpow2.f32 %v5440_v55  ;;  %v610_v51 = vrot.slane %v516_v49, %v7208_v9 }
 0x12d   : > { %6505 = vpow2.f32 %v5441_v2 }
 0x12e   : > { %v611_v60 = vcombine.high %v610_v51, %v610_v51  ;;  %v618_v0 = vrot.slane %v610_v51, %v7208_v9 }
 0x130   : > { %v625_v4 = vrot.slane %v611_v60, %v7208_v9 }
 0x136   : > { %v6500_v8 = vpop.eup %6499 }
 0x137   : > { %v552_v12 = vadd.f32 1.0, %v6500_v8  ;;  %v650_v8 = vcombine.high %v649_v6, %v649_v6 }
 0x138   : > { %v6502_v54 = vpop.eup %6501 }
 0x139   : > { %v553_v48 = vadd.f32 1.0, %v6502_v54  ;;  %6507 = vrcp.f32 %v552_v12  ;;  %v6504_v59 = vpop.eup %6503  ;;  %v657_v54 = vrot.slane %v649_v6, %v7208_v9  ;;  %v664_v5 = vrot.slane %v650_v8, %v7208_v9 }
 0x13a   : > { %v6506_v17 = vpop.eup %6505  ;;  %v597_v62 = vadd.f32 1.0, %v6504_v59 }
 0x13b   : > { %6509 = vrcp.f32 %v553_v48  ;;  %v598_v11 = vadd.f32 1.0, %v6506_v17 }
 0x13c   : > { %6511 = vrcp.f32 %v597_v62 }
 0x13d   : > { %6513 = vrcp.f32 %v598_v11 }
 0x146   : > { %v6508_v1 = vpop.eup %6507 }
 0x147   : > { %v628_v61 = vmul.f32 %v6508_v1, %v618_v0 }
 0x148   : > { %v6510_v55 = vpop.eup %6509 }
 0x149   : > { %v629_v10 = vmul.f32 %v6510_v55, %v625_v4  ;;  %v634_v48 = vadd.f32 %v630_v63, %v628_v61  ;;  %v6512_v12 = vpop.eup %6511 }
 0x14a   : > { %v6514_v49 = vpop.eup %6513  ;;  %v638_v51 = vsub.f32 1.0, %v6512_v12  ;;  %v667_v52 = vmul.f32 %v6512_v12, %v657_v54 }
 0x14b   : > { %v635_v2 = vadd.f32 %v631_v3, %v629_v10  ;;  %6515 = vtanh.f32 %v634_v48  ;;  %v639_v60 = vsub.f32 1.0, %v6514_v49  ;;  %v668_v0 = vmul.f32 %v6514_v49, %v664_v5 }
 0x14d   : > { %6517 = vtanh.f32 %v635_v2 }
 0x158   : > { %v6516_v59 = vpop.eup %6515 }
 0x159   : > { %v640_v17 = vmul.f32 %v6516_v59, %v638_v51  ;;  %673 = sbr.rel (%p5442_p1) target bundleno = 352 (0x160), region = 63 }
 0x15a   : > { %v6518_v62 = vpop.eup %6517 }
 0x15b   : > { %v641_v11 = vmul.f32 %v6518_v62, %v639_v60  ;;  %v7242_v4 = vadd.f32 %v667_v52, %v640_v17 }
 0x15d   : > { %v7244_v63 = vadd.f32 %v668_v0, %v641_v11 }
 0x15e   : > { %674 = vst [vmem:[%s6985_s12] sm:$0x1] %v7242_v4 }
 0x15f   : > { %675 = vst [vmem:[%s6985_s12 + $0x10] sm:$0x1] %v7244_v63 }
 0x160 PF: > { %679 = sbr.rel (%p294_p13) target bundleno = 358 (0x166), region = 67 }
 0x165   : > { %680 = vst [vmem:[%s6985_s12 + $0xf] sm:$0x1] %v7242_v4  ;;  %681 = vst [vmem:[%s6985_s12 + $0x1f] sm:$0x1] %v7244_v63 }
 0x166 PF: > { %710 = vmatprep.subr.mxu0 %v6989_v13  ;;  %v8985_v57 = vmov 0.0   ;;  %v694_v1 = vcombine.low %v7242_v4, %v7244_v63  ;;  %v8986_v3 = vld [vmem:[#allocation5_spill] sm:$0xff]  ;;  %v8987_v55 = vld [vmem:[#allocation11_spill] sm:$0xff]  ;;  %v8988_v10 = vld [vmem:[#allocation6_spill] sm:$0xff] }
 0x167   : > { %774 = vmatprep.mubr.f32.mxu0 %v8985_v57  ;;  %711 = vmatpush1.msra.mxu0 %v6992_v14  ;;  %v8989_v48 = vld [vmem:[#allocation7_spill] sm:$0xff]  ;;  %v8990_v6 = vld [vmem:[#allocation12_spill] sm:$0xff]  ;;  %v8992_v12 = vld [vmem:[#allocation9_spill] sm:$0xff] }
 0x168   : > { %5909 = vmatprep.subr.mxu1 %v8985_v57  ;;  %712 = vmatprep.subr.mxu0 %v6995_v15  ;;  %v701_v61 = vrot.slane %v694_v1, %v7208_v9  ;;  %v8991_v8 = vld [vmem:[#allocation8_spill] sm:$0xff]  ;;  %v8993_v54 = vld [vmem:[#allocation13_spill] sm:$0xff]  ;;  %v8994_v49 = vld [vmem:[#allocation10_spill] sm:$0xff] }
 0x169   : > { %5910 = vmatpush3.msra.mxu1 %v7046_v28  ;;  %713 = vmatpush1.msra.mxu0 %v6999_v16  ;;  %v8995_v5 = vld [vmem:[#allocation14_spill] sm:$0xff]  ;;  %v8996_v60 = vld [vmem:[#allocation15_spill] sm:$0xff] }
 0x16a   : > { %5911 = vmatprep.subr.mxu1 %v8985_v57  ;;  %714 = vmatprep.subr.mxu0 %v7004_v18  ;;  %v708_v2 = vrot.slane %v701_v61, %v7208_v9  ;;  %v5444_v59 = vld [vmem:[%s6983_s24 + $0x1] ss:$8 sm:$0x7]  ;;  %v5446_v52 = vld [vmem:[%s6983_s24 + $0x1e] ss:$8 sm:$0x7] }
 0x16b   : > { %5912 = vmatpush3.msra.mxu1 %v7049_v29  ;;  %715 = vmatpush1.msra.mxu0 %v7009_v19  ;;  %v5445_v11 = vld [vmem:[%s6983_s24 + $0x31] ss:$8 sm:$0x7]  ;;  %v5447_v1 = vld [vmem:[%s6983_s24 + $0x4e] ss:$8 sm:$0x7] }
 0x16c   : > { %5913 = vmatprep.subr.mxu1 %v8985_v57  ;;  %716 = vmatprep.subr.mxu0 %v7015_v20 }
 0x16d   : > { %5914 = vmatpush3.msra.mxu1 %v7062_v32  ;;  %717 = vmatpush1.msra.mxu0 %v7019_v21 }
 0x16e   : > { %5915 = vmatprep.subr.mxu1 %v8985_v57  ;;  %718 = vmatprep.subr.mxu0 %v7023_v22 }
 0x16f   : > { %5916 = vmatpush3.msra.mxu1 %v7075_v35  ;;  %719 = vmatpush1.msra.mxu0 %v7027_v23 }
 0x170   : > { %5917 = vmatprep.subr.mxu1 %v8985_v57  ;;  %720 = vmatprep.subr.mxu0 %v7031_v24 }
 0x171   : > { %5918 = vmatpush3.msra.mxu1 %v7088_v38  ;;  %721 = vmatpush1.msra.mxu0 %v7035_v25 }
 0x172   : > { %5919 = vmatprep.subr.mxu1 %v8985_v57  ;;  %722 = vmatprep.subr.mxu0 %v7039_v26 }
 0x173   : > { %5920 = vmatpush3.msra.mxu1 %v7101_v41  ;;  %723 = vmatpush1.msra.mxu0 %v7043_v27 }
 0x174   : > { %5921 = vmatprep.subr.mxu1 %v8985_v57  ;;  %724 = vmatprep.subr.mxu0 %v7053_v30 }
 0x175   : > { %5922 = vmatpush3.msra.mxu1 %v7114_v44  ;;  %725 = vmatpush1.msra.mxu0 %v7058_v31 }
 0x176   : > { %5923 = vmatprep.subr.mxu1 %v8985_v57  ;;  %726 = vmatprep.subr.mxu0 %v7066_v33 }
 0x177   : > { %5924 = vmatpush3.msra.mxu1 %v7127_v47  ;;  %727 = vmatpush1.msra.mxu0 %v7071_v34 }
 0x178   : > { %5925 = vmatprep.subr.mxu1 %v8985_v57  ;;  %728 = vmatprep.subr.mxu0 %v7079_v36 }
 0x179   : > { %5926 = vmatpush3.msra.mxu1 %v7140_v50  ;;  %729 = vmatpush1.msra.mxu0 %v7084_v37 }
 0x17a   : > { %5927 = vmatprep.subr.mxu1 %v8985_v57  ;;  %730 = vmatprep.subr.mxu0 %v7092_v39 }
 0x17b   : > { %5928 = vmatpush3.msra.mxu1 %v7153_v53  ;;  %731 = vmatpush1.msra.mxu0 %v7097_v40 }
 0x17c   : > { %5929 = vmatprep.subr.mxu1 %v8985_v57  ;;  %732 = vmatprep.subr.mxu0 %v7105_v42 }
 0x17d   : > { %5930 = vmatpush3.msra.mxu1 %v7166_v56  ;;  %733 = vmatpush1.msra.mxu0 %v7110_v43 }
 0x17e   : > { %5931 = vmatprep.subr.mxu1 %v8985_v57  ;;  %734 = vmatprep.subr.mxu0 %v7118_v45 }
 0x17f   : > { %5932 = vmatpush3.msra.mxu1 %v7175_v58  ;;  %735 = vmatpush1.msra.mxu0 %v7123_v46 }
 0x180   : > { %5933 = vmatprep.subr.mxu1 %v8985_v57  ;;  %736 = vmatprep.subr.mxu0 %v8986_v3  ;;  %v8997_v3 = vld [vmem:[#allocation16_spill] sm:$0xff] }
 0x181   : > { %5934 = vmatpush3.msra.mxu1 %v8987_v55  ;;  %737 = vmatpush1.msra.mxu0 %v8988_v10 }
 0x182   : > { %5935 = vmatprep.subr.mxu1 %v8985_v57  ;;  %738 = vmatprep.subr.mxu0 %v8989_v48  ;;  %v690_v48 = vsel %vm7212_vm1, %v5444_v59, %v5446_v52 }
 0x183   : > { %5936 = vmatpush3.msra.mxu1 %v8990_v6  ;;  %739 = vmatpush1.msra.mxu0 %v8991_v8 }
 0x184   : > { %5937 = vmatprep.subr.mxu1 %v8985_v57  ;;  %740 = vmatprep.subr.mxu0 %v8992_v12  ;;  %v691_v12 = vsel %vm7212_vm1, %v5445_v11, %v5447_v1 }
 0x185   : > { %5938 = vmatpush3.msra.mxu1 %v8993_v54  ;;  %741 = vmatpush1.msra.mxu0 %v8994_v49  ;;  %v893_v52 = vrot.slane %v691_v12, 1 }
 0x186   : > { %5939 = vmatprep.subr.mxu1 %v8985_v57  ;;  %775 = vmatmul.mubr.f32.vlgmr.msra.gmra.mxu0 %v708_v2 }
 0x187   : > { %5940 = vmatpush3.msra.mxu1 %v8995_v5  ;;  %5941 = vmatprep.mubr.msk.f32.mxu1 %vm6877_vm0, %v8985_v57 }
 0x188   : > { %5942 = vmatmul.mubr.f32.vlgmr.msra.gmra.mxu1 %v708_v2 }
 0x246   : > { %v776_v51 = vpop.f32.mrf.mxu0 }
 0x247   : > { %v777_v17 = vadd.f32 %v776_v51, %v8996_v60 }
 0x248   : > { %v778_v62 = vpop.f32.mrf.mxu0  ;;  %v847_v0 = vpop.f32.mrf.mxu1 }
 0x249   : > { %v858_v61 = vrot.slane %v777_v17, %v7208_v9  ;;  %v779_v55 = vadd.f32 %v778_v62, %v8997_v3  ;;  %v892_v17 = vrot.slane %v690_v48, 1 }
 0x24a   : > { %v5943_v6 = vpop.f32.mrf.mxu1 }
 0x24b   : > { %v859_v8 = vcombine.high %v858_v61, %v858_v61  ;;  %v866_v57 = vrot.slane %v858_v61, %v7208_v9  ;;  %v903_v2 = vrot.slane %v779_v55, %v7208_v9 }
 0x24d   : > { %v873_v54 = vrot.slane %v859_v8, %v7208_v9  ;;  %v876_v49 = vadd.f32 %v866_v57, %v690_v48  ;;  %v904_v5 = vcombine.high %v903_v2, %v903_v2  ;;  %v911_v62 = vrot.slane %v903_v2, %v7208_v9 }
 0x24f   : > { %v877_v51 = vadd.f32 %v873_v54, %v691_v12  ;;  %v5448_v60 = vmul.f32 -1.442695, %v876_v49  ;;  %v918_v3 = vrot.slane %v904_v5, %v7208_v9  ;;  %v921_v61 = vadd.f32 %v911_v62, %v892_v17 }
 0x250   : > { %v848_v54 = vadd.f32 %v847_v0, %v7232_v7 }
 0x251   : > { %6519 = vpow2.f32 %v5448_v60  ;;  %v5449_v59 = vmul.f32 -1.442695, %v877_v51  ;;  %v922_v55 = vadd.f32 %v918_v3, %v893_v52  ;;  %v5450_v6 = vmul.f32 -1.442695, %v921_v61 }
 0x252   : > { %v942_v2 = vrot.slane %v848_v54, %v7208_v9  ;;  %v962_v52 = vrot.slane %v690_v48, 2 }
 0x253   : > { %6521 = vpow2.f32 %v5449_v59  ;;  %v5451_v10 = vmul.f32 -1.442695, %v922_v55  ;;  %v963_v55 = vrot.slane %v691_v12, 2 }
 0x254   : > { %6523 = vpow2.f32 %v5450_v6  ;;  %v943_v51 = vcombine.high %v942_v2, %v942_v2  ;;  %v950_v17 = vrot.slane %v942_v2, %v7208_v9 }
 0x255   : > { %6525 = vpow2.f32 %v5451_v10 }
 0x256   : > { %v957_v59 = vrot.slane %v943_v51, %v7208_v9 }
 0x25e   : > { %v6520_v11 = vpop.eup %6519 }
 0x25f   : > { %v884_v1 = vadd.f32 1.0, %v6520_v11 }
 0x260   : > { %v6522_v8 = vpop.eup %6521 }
 0x261   : > { %v885_v57 = vadd.f32 1.0, %v6522_v8  ;;  %6527 = vrcp.f32 %v884_v1  ;;  %v6524_v49 = vpop.eup %6523 }
 0x262   : > { %v6526_v5 = vpop.eup %6525  ;;  %v929_v60 = vadd.f32 1.0, %v6524_v49 }
 0x263   : > { %6529 = vrcp.f32 %v885_v57  ;;  %v930_v62 = vadd.f32 1.0, %v6526_v5 }
 0x264   : > { %6531 = vrcp.f32 %v929_v60 }
 0x265   : > { %6533 = vrcp.f32 %v930_v62 }
 0x26e   : > { %v6528_v3 = vpop.eup %6527 }
 0x26f   : > { %v960_v61 = vmul.f32 %v6528_v3, %v950_v17 }
 0x270   : > { %v6530_v6 = vpop.eup %6529 }
 0x271   : > { %v961_v0 = vmul.f32 %v6530_v6, %v957_v59  ;;  %v966_v10 = vadd.f32 %v962_v52, %v960_v61  ;;  %v6532_v1 = vpop.eup %6531 }
 0x272   : > { %v6534_v8 = vpop.eup %6533  ;;  %v970_v57 = vsub.f32 1.0, %v6532_v1  ;;  %v974_v49 = vmul.f32 %v6532_v1, %v7242_v4 }
 0x273   : > { %v967_v11 = vadd.f32 %v963_v55, %v961_v0  ;;  %6535 = vtanh.f32 %v966_v10  ;;  %v971_v2 = vsub.f32 1.0, %v6534_v8  ;;  %v975_v5 = vmul.f32 %v6534_v8, %v7244_v63 }
 0x275   : > { %6537 = vtanh.f32 %v967_v11 }
 0x280   : > { %v6536_v54 = vpop.eup %6535 }
 0x281   : > { %v972_v51 = vmul.f32 %v6536_v54, %v970_v57  ;;  %980 = sbr.rel (%p5442_p1) target bundleno = 648 (0x288), region = 71 }
 0x282   : > { %v6538_v48 = vpop.eup %6537 }
 0x283   : > { %v973_v60 = vmul.f32 %v6538_v48, %v971_v2  ;;  %v7352_v12 = vadd.f32 %v974_v49, %v972_v51 }
 0x285   : > { %v7354_v17 = vadd.f32 %v975_v5, %v973_v60 }
 0x286   : > { %981 = vst [vmem:[%s6985_s12 + $0x1] sm:$0x1] %v7352_v12 }
 0x287   : > { %982 = vst [vmem:[%s6985_s12 + $0x11] sm:$0x1] %v7354_v17 }
 0x288 PF: > { %985 = sbr.rel (%p294_p13) target bundleno = 654 (0x28e), region = 75 }
 0x28d   : > { %986 = vst [vmem:[%s6985_s12 + $0xe] sm:$0x1] %v7352_v12  ;;  %987 = vst [vmem:[%s6985_s12 + $0x1e] sm:$0x1] %v7354_v17 }
 0x28e PF: > { %1016 = vmatprep.subr.mxu0 %v6989_v13  ;;  %v8999_v4 = vmov 0.0   ;;  %v1000_v63 = vcombine.low %v7352_v12, %v7354_v17  ;;  %v9000_v59 = vld [vmem:[#allocation5_spill] sm:$0xff]  ;;  %v9001_v52 = vld [vmem:[#allocation11_spill] sm:$0xff]  ;;  %v9002_v3 = vld [vmem:[#allocation6_spill] sm:$0xff] }
 0x28f   : > { %1080 = vmatprep.mubr.f32.mxu0 %v8999_v4  ;;  %1017 = vmatpush1.msra.mxu0 %v6992_v14  ;;  %v9003_v61 = vld [vmem:[#allocation7_spill] sm:$0xff]  ;;  %v9004_v6 = vld [vmem:[#allocation12_spill] sm:$0xff]  ;;  %v9006_v10 = vld [vmem:[#allocation9_spill] sm:$0xff] }
 0x290   : > { %5944 = vmatprep.subr.mxu1 %v8999_v4  ;;  %1018 = vmatprep.subr.mxu0 %v6995_v15  ;;  %v1007_v62 = vrot.slane %v1000_v63, %v7208_v9  ;;  %v9005_v0 = vld [vmem:[#allocation8_spill] sm:$0xff]  ;;  %v9007_v11 = vld [vmem:[#allocation13_spill] sm:$0xff]  ;;  %v9008_v1 = vld [vmem:[#allocation10_spill] sm:$0xff] }
 0x291   : > { %5945 = vmatpush3.msra.mxu1 %v7046_v28  ;;  %1019 = vmatpush1.msra.mxu0 %v6999_v16  ;;  %v9009_v8 = vld [vmem:[#allocation14_spill] sm:$0xff]  ;;  %v9010_v49 = vld [vmem:[#allocation15_spill] sm:$0xff] }
 0x292   : > { %5946 = vmatprep.subr.mxu1 %v8999_v4  ;;  %1020 = vmatprep.subr.mxu0 %v7004_v18  ;;  %v1014_v55 = vrot.slane %v1007_v62, %v7208_v9  ;;  %v5454_v54 = vld [vmem:[%s6983_s24 + $0x2] ss:$8 sm:$0x7]  ;;  %v5456_v2 = vld [vmem:[%s6983_s24 + $0x1d] ss:$8 sm:$0x7] }
 0x293   : > { %5947 = vmatpush3.msra.mxu1 %v7049_v29  ;;  %1021 = vmatpush1.msra.mxu0 %v7009_v19  ;;  %v5455_v60 = vld [vmem:[%s6983_s24 + $0x32] ss:$8 sm:$0x7]  ;;  %v5457_v63 = vld [vmem:[%s6983_s24 + $0x4d] ss:$8 sm:$0x7] }
 0x294   : > { %5948 = vmatprep.subr.mxu1 %v8999_v4  ;;  %1022 = vmatprep.subr.mxu0 %v7015_v20 }
 0x295   : > { %5949 = vmatpush3.msra.mxu1 %v7062_v32  ;;  %1023 = vmatpush1.msra.mxu0 %v7019_v21 }
 0x296   : > { %5950 = vmatprep.subr.mxu1 %v8999_v4  ;;  %1024 = vmatprep.subr.mxu0 %v7023_v22 }
 0x297   : > { %5951 = vmatpush3.msra.mxu1 %v7075_v35  ;;  %1025 = vmatpush1.msra.mxu0 %v7027_v23 }
 0x298   : > { %5952 = vmatprep.subr.mxu1 %v8999_v4  ;;  %1026 = vmatprep.subr.mxu0 %v7031_v24 }
 0x299   : > { %5953 = vmatpush3.msra.mxu1 %v7088_v38  ;;  %1027 = vmatpush1.msra.mxu0 %v7035_v25 }
 0x29a   : > { %5954 = vmatprep.subr.mxu1 %v8999_v4  ;;  %1028 = vmatprep.subr.mxu0 %v7039_v26 }
 0x29b   : > { %5955 = vmatpush3.msra.mxu1 %v7101_v41  ;;  %1029 = vmatpush1.msra.mxu0 %v7043_v27 }
 0x29c   : > { %5956 = vmatprep.subr.mxu1 %v8999_v4  ;;  %1030 = vmatprep.subr.mxu0 %v7053_v30 }
 0x29d   : > { %5957 = vmatpush3.msra.mxu1 %v7114_v44  ;;  %1031 = vmatpush1.msra.mxu0 %v7058_v31 }
 0x29e   : > { %5958 = vmatprep.subr.mxu1 %v8999_v4  ;;  %1032 = vmatprep.subr.mxu0 %v7066_v33 }
 0x29f   : > { %5959 = vmatpush3.msra.mxu1 %v7127_v47  ;;  %1033 = vmatpush1.msra.mxu0 %v7071_v34 }
 0x2a0   : > { %5960 = vmatprep.subr.mxu1 %v8999_v4  ;;  %1034 = vmatprep.subr.mxu0 %v7079_v36 }
 0x2a1   : > { %5961 = vmatpush3.msra.mxu1 %v7140_v50  ;;  %1035 = vmatpush1.msra.mxu0 %v7084_v37 }
 0x2a2   : > { %5962 = vmatprep.subr.mxu1 %v8999_v4  ;;  %1036 = vmatprep.subr.mxu0 %v7092_v39 }
 0x2a3   : > { %5963 = vmatpush3.msra.mxu1 %v7153_v53  ;;  %1037 = vmatpush1.msra.mxu0 %v7097_v40 }
 0x2a4   : > { %5964 = vmatprep.subr.mxu1 %v8999_v4  ;;  %1038 = vmatprep.subr.mxu0 %v7105_v42 }
 0x2a5   : > { %5965 = vmatpush3.msra.mxu1 %v7166_v56  ;;  %1039 = vmatpush1.msra.mxu0 %v7110_v43 }
 0x2a6   : > { %5966 = vmatprep.subr.mxu1 %v8999_v4  ;;  %1040 = vmatprep.subr.mxu0 %v7118_v45 }
 0x2a7   : > { %5967 = vmatpush3.msra.mxu1 %v7175_v58  ;;  %1041 = vmatpush1.msra.mxu0 %v7123_v46 }
 0x2a8   : > { %5968 = vmatprep.subr.mxu1 %v8999_v4  ;;  %1042 = vmatprep.subr.mxu0 %v9000_v59  ;;  %v9011_v59 = vld [vmem:[#allocation16_spill] sm:$0xff] }
 0x2a9   : > { %5969 = vmatpush3.msra.mxu1 %v9001_v52  ;;  %1043 = vmatpush1.msra.mxu0 %v9002_v3 }
 0x2aa   : > { %5970 = vmatprep.subr.mxu1 %v8999_v4  ;;  %1044 = vmatprep.subr.mxu0 %v9003_v61  ;;  %v996_v61 = vsel %vm7212_vm1, %v5454_v54, %v5456_v2 }
 0x2ab   : > { %5971 = vmatpush3.msra.mxu1 %v9004_v6  ;;  %1045 = vmatpush1.msra.mxu0 %v9005_v0 }
 0x2ac   : > { %5972 = vmatprep.subr.mxu1 %v8999_v4  ;;  %1046 = vmatprep.subr.mxu0 %v9006_v10  ;;  %v997_v10 = vsel %vm7212_vm1, %v5455_v60, %v5457_v63 }
 0x2ad   : > { %5973 = vmatpush3.msra.mxu1 %v9007_v11  ;;  %1047 = vmatpush1.msra.mxu0 %v9008_v1  ;;  %v1199_v2 = vrot.slane %v997_v10, 1 }
 0x2ae   : > { %5974 = vmatprep.subr.mxu1 %v8999_v4  ;;  %1081 = vmatmul.mubr.f32.vlgmr.msra.gmra.mxu0 %v1014_v55 }
 0x2af   : > { %5975 = vmatpush3.msra.mxu1 %v9009_v8  ;;  %5976 = vmatprep.mubr.msk.f32.mxu1 %vm6877_vm0, %v8999_v4 }
 0x2b0   : > { %5977 = vmatmul.mubr.f32.vlgmr.msra.gmra.mxu1 %v1014_v55 }
 0x36e   : > { %v1082_v57 = vpop.f32.mrf.mxu0 }
 0x36f   : > { %v1083_v51 = vadd.f32 %v1082_v57, %v9010_v49 }
 0x370   : > { %v1084_v48 = vpop.f32.mrf.mxu0  ;;  %v1153_v5 = vpop.f32.mrf.mxu1 }
 0x371   : > { %v1164_v62 = vrot.slane %v1083_v51, %v7208_v9  ;;  %v1085_v52 = vadd.f32 %v1084_v48, %v9011_v59  ;;  %v1198_v51 = vrot.slane %v996_v61, 1 }
 0x372   : > { %v5978_v6 = vpop.f32.mrf.mxu1 }
 0x373   : > { %v1165_v0 = vcombine.high %v1164_v62, %v1164_v62  ;;  %v1172_v4 = vrot.slane %v1164_v62, %v7208_v9  ;;  %v1209_v55 = vrot.slane %v1085_v52, %v7208_v9 }
 0x375   : > { %v1179_v11 = vrot.slane %v1165_v0, %v7208_v9  ;;  %v1182_v1 = vadd.f32 %v1172_v4, %v996_v61  ;;  %v1210_v8 = vcombine.high %v1209_v55, %v1209_v55  ;;  %v1217_v48 = vrot.slane %v1209_v55, %v7208_v9 }
 0x377   : > { %v1183_v57 = vadd.f32 %v1179_v11, %v997_v10  ;;  %v5458_v49 = vmul.f32 -1.442695, %v1182_v1  ;;  %v1224_v59 = vrot.slane %v1210_v8, %v7208_v9  ;;  %v1227_v62 = vadd.f32 %v1217_v48, %v1198_v51 }
 0x378   : > { %v1154_v11 = vadd.f32 %v1153_v5, %v7232_v7 }
 0x379   : > { %6539 = vpow2.f32 %v5458_v49  ;;  %v5459_v54 = vmul.f32 -1.442695, %v1183_v57  ;;  %v1228_v52 = vadd.f32 %v1224_v59, %v1199_v2  ;;  %v5460_v6 = vmul.f32 -1.442695, %v1227_v62 }
 0x37a   : > { %v1248_v55 = vrot.slane %v1154_v11, %v7208_v9  ;;  %v1268_v2 = vrot.slane %v996_v61, 2 }
 0x37b   : > { %6541 = vpow2.f32 %v5459_v54  ;;  %v5461_v3 = vmul.f32 -1.442695, %v1228_v52  ;;  %v1269_v52 = vrot.slane %v997_v10, 2 }
 0x37c   : > { %6543 = vpow2.f32 %v5460_v6  ;;  %v1249_v57 = vcombine.high %v1248_v55, %v1248_v55  ;;  %v1256_v51 = vrot.slane %v1248_v55, %v7208_v9 }
 0x37d   : > { %6545 = vpow2.f32 %v5461_v3 }
 0x37e   : > { %v1263_v54 = vrot.slane %v1249_v57, %v7208_v9 }
 0x386   : > { %v6540_v60 = vpop.eup %6539 }
 0x387   : > { %v1190_v63 = vadd.f32 1.0, %v6540_v60 }
 0x388   : > { %v6542_v0 = vpop.eup %6541 }
 0x389   : > { %v1191_v4 = vadd.f32 1.0, %v6542_v0  ;;  %6547 = vrcp.f32 %v1190_v63  ;;  %v6544_v1 = vpop.eup %6543 }
 0x38a   : > { %v6546_v8 = vpop.eup %6545  ;;  %v1235_v49 = vadd.f32 1.0, %v6544_v1 }
 0x38b   : > { %6549 = vrcp.f32 %v1191_v4  ;;  %v1236_v48 = vadd.f32 1.0, %v6546_v8 }
 0x38c   : > { %6551 = vrcp.f32 %v1235_v49 }
 0x38d   : > { %6553 = vrcp.f32 %v1236_v48 }
 0x396   : > { %v6548_v59 = vpop.eup %6547 }
 0x397   : > { %v1266_v62 = vmul.f32 %v6548_v59, %v1256_v51 }
 0x398   : > { %v6550_v6 = vpop.eup %6549 }
 0x399   : > { %v1267_v5 = vmul.f32 %v6550_v6, %v1263_v54  ;;  %v1272_v3 = vadd.f32 %v1268_v2, %v1266_v62  ;;  %v6552_v63 = vpop.eup %6551 }
 0x39a   : > { %v6554_v0 = vpop.eup %6553  ;;  %v1276_v4 = vsub.f32 1.0, %v6552_v63  ;;  %v1280_v1 = vmul.f32 %v6552_v63, %v7352_v12 }
 0x39b   : > { %v1273_v60 = vadd.f32 %v1269_v52, %v1267_v5  ;;  %6555 = vtanh.f32 %v1272_v3  ;;  %v1277_v55 = vsub.f32 1.0, %v6554_v0  ;;  %v1281_v8 = vmul.f32 %v6554_v0, %v7354_v17 }
 0x39d   : > { %6557 = vtanh.f32 %v1273_v60 }
 0x3a8   : > { %v6556_v11 = vpop.eup %6555 }
 0x3a9   : > { %v1278_v57 = vmul.f32 %v6556_v11, %v1276_v4  ;;  %1286 = sbr.rel (%p5442_p1) target bundleno = 944 (0x3b0), region = 79 }
 0x3aa   : > { %v6558_v61 = vpop.eup %6557 }
 0x3ab   : > { %v1279_v49 = vmul.f32 %v6558_v61, %v1277_v55  ;;  %v7461_v10 = vadd.f32 %v1280_v1, %v1278_v57 }
 0x3ad   : > { %v7463_v51 = vadd.f32 %v1281_v8, %v1279_v49 }
 0x3ae   : > { %1287 = vst [vmem:[%s6985_s12 + $0x2] sm:$0x1] %v7461_v10 }
 0x3af   : > { %1288 = vst [vmem:[%s6985_s12 + $0x12] sm:$0x1] %v7463_v51 }
 0x3b0 PF: > { %1291 = sbr.rel (%p294_p13) target bundleno = 950 (0x3b6), region = 83 }
 0x3b5   : > { %1292 = vst [vmem:[%s6985_s12 + $0xd] sm:$0x1] %v7461_v10  ;;  %1293 = vst [vmem:[%s6985_s12 + $0x1d] sm:$0x1] %v7463_v51 }
 0x3b6 PF: > { %1322 = vmatprep.subr.mxu0 %v6989_v13  ;;  %v9013_v12 = vmov 0.0   ;;  %v1306_v17 = vcombine.low %v7461_v10, %v7463_v51  ;;  %v9014_v54 = vld [vmem:[#allocation5_spill] sm:$0xff]  ;;  %v9015_v2 = vld [vmem:[#allocation11_spill] sm:$0xff]  ;;  %v9016_v59 = vld [vmem:[#allocation6_spill] sm:$0xff] }
 0x3b7   : > { %1386 = vmatprep.mubr.f32.mxu0 %v9013_v12  ;;  %1323 = vmatpush1.msra.mxu0 %v6992_v14  ;;  %v9017_v62 = vld [vmem:[#allocation7_spill] sm:$0xff]  ;;  %v9018_v6 = vld [vmem:[#allocation12_spill] sm:$0xff]  ;;  %v9020_v3 = vld [vmem:[#allocation9_spill] sm:$0xff] }
 0x3b8   : > { %5979 = vmatprep.subr.mxu1 %v9013_v12  ;;  %1324 = vmatprep.subr.mxu0 %v6995_v15  ;;  %v1313_v48 = vrot.slane %v1306_v17, %v7208_v9  ;;  %v9019_v5 = vld [vmem:[#allocation8_spill] sm:$0xff]  ;;  %v9021_v60 = vld [vmem:[#allocation13_spill] sm:$0xff]  ;;  %v9022_v63 = vld [vmem:[#allocation10_spill] sm:$0xff] }
 0x3b9   : > { %5980 = vmatpush3.msra.mxu1 %v7046_v28  ;;  %1325 = vmatpush1.msra.mxu0 %v6999_v16  ;;  %v9023_v0 = vld [vmem:[#allocation14_spill] sm:$0xff]  ;;  %v9024_v1 = vld [vmem:[#allocation15_spill] sm:$0xff] }
 0x3ba   : > { %5981 = vmatprep.subr.mxu1 %v9013_v12  ;;  %1326 = vmatprep.subr.mxu0 %v7004_v18  ;;  %v1320_v52 = vrot.slane %v1313_v48, %v7208_v9  ;;  %v5464_v11 = vld [vmem:[%s6983_s24 + $0x3] ss:$8 sm:$0x7]  ;;  %v5466_v55 = vld [vmem:[%s6983_s24 + $0x1c] ss:$8 sm:$0x7] }
 0x3bb   : > { %5982 = vmatpush3.msra.mxu1 %v7049_v29  ;;  %1327 = vmatpush1.msra.mxu0 %v7009_v19  ;;  %v5465_v49 = vld [vmem:[%s6983_s24 + $0x33] ss:$8 sm:$0x7]  ;;  %v5467_v17 = vld [vmem:[%s6983_s24 + $0x4c] ss:$8 sm:$0x7] }
 0x3bc   : > { %5983 = vmatprep.subr.mxu1 %v9013_v12  ;;  %1328 = vmatprep.subr.mxu0 %v7015_v20 }
 0x3bd   : > { %5984 = vmatpush3.msra.mxu1 %v7062_v32  ;;  %1329 = vmatpush1.msra.mxu0 %v7019_v21 }
 0x3be   : > { %5985 = vmatprep.subr.mxu1 %v9013_v12  ;;  %1330 = vmatprep.subr.mxu0 %v7023_v22 }
 0x3bf   : > { %5986 = vmatpush3.msra.mxu1 %v7075_v35  ;;  %1331 = vmatpush1.msra.mxu0 %v7027_v23 }
 0x3c0   : > { %5987 = vmatprep.subr.mxu1 %v9013_v12  ;;  %1332 = vmatprep.subr.mxu0 %v7031_v24 }
 0x3c1   : > { %5988 = vmatpush3.msra.mxu1 %v7088_v38  ;;  %1333 = vmatpush1.msra.mxu0 %v7035_v25 }
 0x3c2   : > { %5989 = vmatprep.subr.mxu1 %v9013_v12  ;;  %1334 = vmatprep.subr.mxu0 %v7039_v26 }
 0x3c3   : > { %5990 = vmatpush3.msra.mxu1 %v7101_v41  ;;  %1335 = vmatpush1.msra.mxu0 %v7043_v27 }
 0x3c4   : > { %5991 = vmatprep.subr.mxu1 %v9013_v12  ;;  %1336 = vmatprep.subr.mxu0 %v7053_v30 }
 0x3c5   : > { %5992 = vmatpush3.msra.mxu1 %v7114_v44  ;;  %1337 = vmatpush1.msra.mxu0 %v7058_v31 }
 0x3c6   : > { %5993 = vmatprep.subr.mxu1 %v9013_v12  ;;  %1338 = vmatprep.subr.mxu0 %v7066_v33 }
 0x3c7   : > { %5994 = vmatpush3.msra.mxu1 %v7127_v47  ;;  %1339 = vmatpush1.msra.mxu0 %v7071_v34 }
 0x3c8   : > { %5995 = vmatprep.subr.mxu1 %v9013_v12  ;;  %1340 = vmatprep.subr.mxu0 %v7079_v36 }
 0x3c9   : > { %5996 = vmatpush3.msra.mxu1 %v7140_v50  ;;  %1341 = vmatpush1.msra.mxu0 %v7084_v37 }
 0x3ca   : > { %5997 = vmatprep.subr.mxu1 %v9013_v12  ;;  %1342 = vmatprep.subr.mxu0 %v7092_v39 }
 0x3cb   : > { %5998 = vmatpush3.msra.mxu1 %v7153_v53  ;;  %1343 = vmatpush1.msra.mxu0 %v7097_v40 }
 0x3cc   : > { %5999 = vmatprep.subr.mxu1 %v9013_v12  ;;  %1344 = vmatprep.subr.mxu0 %v7105_v42 }
 0x3cd   : > { %6000 = vmatpush3.msra.mxu1 %v7166_v56  ;;  %1345 = vmatpush1.msra.mxu0 %v7110_v43 }
 0x3ce   : > { %6001 = vmatprep.subr.mxu1 %v9013_v12  ;;  %1346 = vmatprep.subr.mxu0 %v7118_v45 }
 0x3cf   : > { %6002 = vmatpush3.msra.mxu1 %v7175_v58  ;;  %1347 = vmatpush1.msra.mxu0 %v7123_v46 }
 0x3d0   : > { %6003 = vmatprep.subr.mxu1 %v9013_v12  ;;  %1348 = vmatprep.subr.mxu0 %v9014_v54  ;;  %v9025_v54 = vld [vmem:[#allocation16_spill] sm:$0xff] }
 0x3d1   : > { %6004 = vmatpush3.msra.mxu1 %v9015_v2  ;;  %1349 = vmatpush1.msra.mxu0 %v9016_v59 }
 0x3d2   : > { %6005 = vmatprep.subr.mxu1 %v9013_v12  ;;  %1350 = vmatprep.subr.mxu0 %v9017_v62  ;;  %v1302_v62 = vsel %vm7212_vm1, %v5464_v11, %v5466_v55 }
 0x3d3   : > { %6006 = vmatpush3.msra.mxu1 %v9018_v6  ;;  %1351 = vmatpush1.msra.mxu0 %v9019_v5 }
 0x3d4   : > { %6007 = vmatprep.subr.mxu1 %v9013_v12  ;;  %1352 = vmatprep.subr.mxu0 %v9020_v3  ;;  %v1303_v3 = vsel %vm7212_vm1, %v5465_v49, %v5467_v17 }
 0x3d5   : > { %6008 = vmatpush3.msra.mxu1 %v9021_v60  ;;  %1353 = vmatpush1.msra.mxu0 %v9022_v63  ;;  %v1505_v55 = vrot.slane %v1303_v3, 1 }
 0x3d6   : > { %6009 = vmatprep.subr.mxu1 %v9013_v12  ;;  %1387 = vmatmul.mubr.f32.vlgmr.msra.gmra.mxu0 %v1320_v52 }
 0x3d7   : > { %6010 = vmatpush3.msra.mxu1 %v9023_v0  ;;  %6011 = vmatprep.mubr.msk.f32.mxu1 %vm6877_vm0, %v9013_v12 }
 0x3d8   : > { %6012 = vmatmul.mubr.f32.vlgmr.msra.gmra.mxu1 %v1320_v52 }
 0x496   : > { %v1388_v4 = vpop.f32.mrf.mxu0 }
 0x497   : > { %v1389_v57 = vadd.f32 %v1388_v4, %v9024_v1 }
 0x498   : > { %v1390_v61 = vpop.f32.mrf.mxu0  ;;  %v1459_v8 = vpop.f32.mrf.mxu1 }
 0x499   : > { %v1470_v48 = vrot.slane %v1389_v57, %v7208_v9  ;;  %v1391_v2 = vadd.f32 %v1390_v61, %v9025_v54  ;;  %v1504_v57 = vrot.slane %v1302_v62, 1 }
 0x49a   : > { %v6013_v6 = vpop.f32.mrf.mxu1 }
 0x49b   : > { %v1471_v5 = vcombine.high %v1470_v48, %v1470_v48  ;;  %v1478_v12 = vrot.slane %v1470_v48, %v7208_v9  ;;  %v1515_v52 = vrot.slane %v1391_v2, %v7208_v9 }
 0x49d   : > { %v1485_v60 = vrot.slane %v1471_v5, %v7208_v9  ;;  %v1488_v63 = vadd.f32 %v1478_v12, %v1302_v62  ;;  %v1516_v0 = vcombine.high %v1515_v52, %v1515_v52  ;;  %v1523_v61 = vrot.slane %v1515_v52, %v7208_v9 }
 0x49f   : > { %v1489_v4 = vadd.f32 %v1485_v60, %v1303_v3  ;;  %v5468_v1 = vmul.f32 -1.442695, %v1488_v63  ;;  %v1530_v54 = vrot.slane %v1516_v0, %v7208_v9  ;;  %v1533_v48 = vadd.f32 %v1523_v61, %v1504_v57 }
 0x4a0   : > { %v1460_v60 = vadd.f32 %v1459_v8, %v7232_v7 }
 0x4a1   : > { %6559 = vpow2.f32 %v5468_v1  ;;  %v5469_v11 = vmul.f32 -1.442695, %v1489_v4  ;;  %v1534_v2 = vadd.f32 %v1530_v54, %v1505_v55  ;;  %v5470_v6 = vmul.f32 -1.442695, %v1533_v48 }
 0x4a2   : > { %v1554_v52 = vrot.slane %v1460_v60, %v7208_v9  ;;  %v1574_v55 = vrot.slane %v1302_v62, 2 }
 0x4a3   : > { %6561 = vpow2.f32 %v5469_v11  ;;  %v5471_v59 = vmul.f32 -1.442695, %v1534_v2  ;;  %v1575_v2 = vrot.slane %v1303_v3, 2 }
 0x4a4   : > { %6563 = vpow2.f32 %v5470_v6  ;;  %v1555_v4 = vcombine.high %v1554_v52, %v1554_v52  ;;  %v1562_v57 = vrot.slane %v1554_v52, %v7208_v9 }
 0x4a5   : > { %6565 = vpow2.f32 %v5471_v59 }
 0x4a6   : > { %v1569_v11 = vrot.slane %v1555_v4, %v7208_v9 }
 0x4ae   : > { %v6560_v49 = vpop.eup %6559 }
 0x4af   : > { %v1496_v17 = vadd.f32 1.0, %v6560_v49 }
 0x4b0   : > { %v6562_v5 = vpop.eup %6561 }
 0x4b1   : > { %v1497_v12 = vadd.f32 1.0, %v6562_v5  ;;  %6567 = vrcp.f32 %v1496_v17  ;;  %v6564_v63 = vpop.eup %6563 }
 0x4b2   : > { %v6566_v0 = vpop.eup %6565  ;;  %v1541_v1 = vadd.f32 1.0, %v6564_v63 }
 0x4b3   : > { %6569 = vrcp.f32 %v1497_v12  ;;  %v1542_v61 = vadd.f32 1.0, %v6566_v0 }
 0x4b4   : > { %6571 = vrcp.f32 %v1541_v1 }
 0x4b5   : > { %6573 = vrcp.f32 %v1542_v61 }
 0x4be   : > { %v6568_v54 = vpop.eup %6567 }
 0x4bf   : > { %v1572_v48 = vmul.f32 %v6568_v54, %v1562_v57 }
 0x4c0   : > { %v6570_v6 = vpop.eup %6569 }
 0x4c1   : > { %v1573_v8 = vmul.f32 %v6570_v6, %v1569_v11  ;;  %v1578_v59 = vadd.f32 %v1574_v55, %v1572_v48  ;;  %v6572_v17 = vpop.eup %6571 }
 0x4c2   : > { %v6574_v5 = vpop.eup %6573  ;;  %v1582_v12 = vsub.f32 1.0, %v6572_v17  ;;  %v1586_v63 = vmul.f32 %v6572_v17, %v7461_v10 }
 0x4c3   : > { %v1579_v49 = vadd.f32 %v1575_v2, %v1573_v8  ;;  %6575 = vtanh.f32 %v1578_v59  ;;  %v1583_v52 = vsub.f32 1.0, %v6574_v5  ;;  %v1587_v0 = vmul.f32 %v6574_v5, %v7463_v51 }
 0x4c5   : > { %6577 = vtanh.f32 %v1579_v49 }
 0x4d0   : > { %v6576_v60 = vpop.eup %6575 }
 0x4d1   : > { %v1584_v4 = vmul.f32 %v6576_v60, %v1582_v12  ;;  %1592 = sbr.rel (%p5442_p1) target bundleno = 1240 (0x4d8), region = 87 }
 0x4d2   : > { %v6578_v62 = vpop.eup %6577 }
 0x4d3   : > { %v1585_v1 = vmul.f32 %v6578_v62, %v1583_v52  ;;  %v7570_v3 = vadd.f32 %v1586_v63, %v1584_v4 }
 0x4d5   : > { %v7572_v57 = vadd.f32 %v1587_v0, %v1585_v1 }
 0x4d6   : > { %1593 = vst [vmem:[%s6985_s12 + $0x3] sm:$0x1] %v7570_v3 }
 0x4d7   : > { %1594 = vst [vmem:[%s6985_s12 + $0x13] sm:$0x1] %v7572_v57 }
 0x4d8 PF: > { %1597 = sbr.rel (%p294_p13) target bundleno = 1246 (0x4de), region = 91 }
 0x4dd   : > { %1598 = vst [vmem:[%s6985_s12 + $0xc] sm:$0x1] %v7570_v3  ;;  %1599 = vst [vmem:[%s6985_s12 + $0x1c] sm:$0x1] %v7572_v57 }
 0x4de PF: > { %1628 = vmatprep.subr.mxu0 %v6989_v13  ;;  %v9027_v10 = vmov 0.0   ;;  %v1612_v51 = vcombine.low %v7570_v3, %v7572_v57  ;;  %v9028_v11 = vld [vmem:[#allocation5_spill] sm:$0xff]  ;;  %v9029_v55 = vld [vmem:[#allocation11_spill] sm:$0xff]  ;;  %v9030_v54 = vld [vmem:[#allocation6_spill] sm:$0xff] }
 0x4df   : > { %1692 = vmatprep.mubr.f32.mxu0 %v9027_v10  ;;  %1629 = vmatpush1.msra.mxu0 %v6992_v14  ;;  %v9031_v48 = vld [vmem:[#allocation7_spill] sm:$0xff]  ;;  %v9032_v6 = vld [vmem:[#allocation12_spill] sm:$0xff]  ;;  %v9034_v59 = vld [vmem:[#allocation9_spill] sm:$0xff] }
 0x4e0   : > { %6014 = vmatprep.subr.mxu1 %v9027_v10  ;;  %1630 = vmatprep.subr.mxu0 %v6995_v15  ;;  %v1619_v61 = vrot.slane %v1612_v51, %v7208_v9  ;;  %v9033_v8 = vld [vmem:[#allocation8_spill] sm:$0xff]  ;;  %v9035_v49 = vld [vmem:[#allocation13_spill] sm:$0xff]  ;;  %v9036_v17 = vld [vmem:[#allocation10_spill] sm:$0xff] }
 0x4e1   : > { %6015 = vmatpush3.msra.mxu1 %v7046_v28  ;;  %1631 = vmatpush1.msra.mxu0 %v6999_v16  ;;  %v9037_v5 = vld [vmem:[#allocation14_spill] sm:$0xff]  ;;  %v9038_v63 = vld [vmem:[#allocation15_spill] sm:$0xff] }
 0x4e2   : > { %6016 = vmatprep.subr.mxu1 %v9027_v10  ;;  %1632 = vmatprep.subr.mxu0 %v7004_v18  ;;  %v1626_v2 = vrot.slane %v1619_v61, %v7208_v9  ;;  %v5474_v60 = vld [vmem:[%s6983_s24 + $0x4] ss:$8 sm:$0x7]  ;;  %v5476_v52 = vld [vmem:[%s6983_s24 + $0x1b] ss:$8 sm:$0x7] }
 0x4e3   : > { %6017 = vmatpush3.msra.mxu1 %v7049_v29  ;;  %1633 = vmatpush1.msra.mxu0 %v7009_v19  ;;  %v5475_v1 = vld [vmem:[%s6983_s24 + $0x34] ss:$8 sm:$0x7]  ;;  %v5477_v51 = vld [vmem:[%s6983_s24 + $0x4b] ss:$8 sm:$0x7] }
 0x4e4   : > { %6018 = vmatprep.subr.mxu1 %v9027_v10  ;;  %1634 = vmatprep.subr.mxu0 %v7015_v20 }
 0x4e5   : > { %6019 = vmatpush3.msra.mxu1 %v7062_v32  ;;  %1635 = vmatpush1.msra.mxu0 %v7019_v21 }
 0x4e6   : > { %6020 = vmatprep.subr.mxu1 %v9027_v10  ;;  %1636 = vmatprep.subr.mxu0 %v7023_v22 }
 0x4e7   : > { %6021 = vmatpush3.msra.mxu1 %v7075_v35  ;;  %1637 = vmatpush1.msra.mxu0 %v7027_v23 }
 0x4e8   : > { %6022 = vmatprep.subr.mxu1 %v9027_v10  ;;  %1638 = vmatprep.subr.mxu0 %v7031_v24 }
 0x4e9   : > { %6023 = vmatpush3.msra.mxu1 %v7088_v38  ;;  %1639 = vmatpush1.msra.mxu0 %v7035_v25 }
 0x4ea   : > { %6024 = vmatprep.subr.mxu1 %v9027_v10  ;;  %1640 = vmatprep.subr.mxu0 %v7039_v26 }
 0x4eb   : > { %6025 = vmatpush3.msra.mxu1 %v7101_v41  ;;  %1641 = vmatpush1.msra.mxu0 %v7043_v27 }
 0x4ec   : > { %6026 = vmatprep.subr.mxu1 %v9027_v10  ;;  %1642 = vmatprep.subr.mxu0 %v7053_v30 }
 0x4ed   : > { %6027 = vmatpush3.msra.mxu1 %v7114_v44  ;;  %1643 = vmatpush1.msra.mxu0 %v7058_v31 }
 0x4ee   : > { %6028 = vmatprep.subr.mxu1 %v9027_v10  ;;  %1644 = vmatprep.subr.mxu0 %v7066_v33 }
 0x4ef   : > { %6029 = vmatpush3.msra.mxu1 %v7127_v47  ;;  %1645 = vmatpush1.msra.mxu0 %v7071_v34 }
 0x4f0   : > { %6030 = vmatprep.subr.mxu1 %v9027_v10  ;;  %1646 = vmatprep.subr.mxu0 %v7079_v36 }
 0x4f1   : > { %6031 = vmatpush3.msra.mxu1 %v7140_v50  ;;  %1647 = vmatpush1.msra.mxu0 %v7084_v37 }
 0x4f2   : > { %6032 = vmatprep.subr.mxu1 %v9027_v10  ;;  %1648 = vmatprep.subr.mxu0 %v7092_v39 }
 0x4f3   : > { %6033 = vmatpush3.msra.mxu1 %v7153_v53  ;;  %1649 = vmatpush1.msra.mxu0 %v7097_v40 }
 0x4f4   : > { %6034 = vmatprep.subr.mxu1 %v9027_v10  ;;  %1650 = vmatprep.subr.mxu0 %v7105_v42 }
 0x4f5   : > { %6035 = vmatpush3.msra.mxu1 %v7166_v56  ;;  %1651 = vmatpush1.msra.mxu0 %v7110_v43 }
 0x4f6   : > { %6036 = vmatprep.subr.mxu1 %v9027_v10  ;;  %1652 = vmatprep.subr.mxu0 %v7118_v45 }
 0x4f7   : > { %6037 = vmatpush3.msra.mxu1 %v7175_v58  ;;  %1653 = vmatpush1.msra.mxu0 %v7123_v46 }
 0x4f8   : > { %6038 = vmatprep.subr.mxu1 %v9027_v10  ;;  %1654 = vmatprep.subr.mxu0 %v9028_v11  ;;  %v9039_v11 = vld [vmem:[#allocation16_spill] sm:$0xff] }
 0x4f9   : > { %6039 = vmatpush3.msra.mxu1 %v9029_v55  ;;  %1655 = vmatpush1.msra.mxu0 %v9030_v54 }
 0x4fa   : > { %6040 = vmatprep.subr.mxu1 %v9027_v10  ;;  %1656 = vmatprep.subr.mxu0 %v9031_v48  ;;  %v1608_v48 = vsel %vm7212_vm1, %v5474_v60, %v5476_v52 }
 0x4fb   : > { %6041 = vmatpush3.msra.mxu1 %v9032_v6  ;;  %1657 = vmatpush1.msra.mxu0 %v9033_v8 }
 0x4fc   : > { %6042 = vmatprep.subr.mxu1 %v9027_v10  ;;  %1658 = vmatprep.subr.mxu0 %v9034_v59  ;;  %v1609_v59 = vsel %vm7212_vm1, %v5475_v1, %v5477_v51 }
 0x4fd   : > { %6043 = vmatpush3.msra.mxu1 %v9035_v49  ;;  %1659 = vmatpush1.msra.mxu0 %v9036_v17  ;;  %v1811_v52 = vrot.slane %v1609_v59, 1 }
 0x4fe   : > { %6044 = vmatprep.subr.mxu1 %v9027_v10  ;;  %1693 = vmatmul.mubr.f32.vlgmr.msra.gmra.mxu0 %v1626_v2 }
 0x4ff   : > { %6045 = vmatpush3.msra.mxu1 %v9037_v5  ;;  %6046 = vmatprep.mubr.msk.f32.mxu1 %vm6877_vm0, %v9027_v10 }
 0x500   : > { %6047 = vmatmul.mubr.f32.vlgmr.msra.gmra.mxu1 %v1626_v2 }
 0x5be   : > { %v1694_v12 = vpop.f32.mrf.mxu0 }
 0x5bf   : > { %v1695_v4 = vadd.f32 %v1694_v12, %v9038_v63 }
 0x5c0   : > { %v1696_v62 = vpop.f32.mrf.mxu0  ;;  %v1765_v0 = vpop.f32.mrf.mxu1 }
 0x5c1   : > { %v1776_v61 = vrot.slane %v1695_v4, %v7208_v9  ;;  %v1697_v55 = vadd.f32 %v1696_v62, %v9039_v11  ;;  %v1810_v4 = vrot.slane %v1608_v48, 1 }
 0x5c2   : > { %v6048_v6 = vpop.f32.mrf.mxu1 }
 0x5c3   : > { %v1777_v8 = vcombine.high %v1776_v61, %v1776_v61  ;;  %v1784_v10 = vrot.slane %v1776_v61, %v7208_v9  ;;  %v1821_v2 = vrot.slane %v1697_v55, %v7208_v9 }
 0x5c5   : > { %v1791_v49 = vrot.slane %v1777_v8, %v7208_v9  ;;  %v1794_v17 = vadd.f32 %v1784_v10, %v1608_v48  ;;  %v1822_v5 = vcombine.high %v1821_v2, %v1821_v2  ;;  %v1829_v62 = vrot.slane %v1821_v2, %v7208_v9 }
 0x5c7   : > { %v1795_v12 = vadd.f32 %v1791_v49, %v1609_v59  ;;  %v5478_v63 = vmul.f32 -1.442695, %v1794_v17  ;;  %v1836_v11 = vrot.slane %v1822_v5, %v7208_v9  ;;  %v1839_v61 = vadd.f32 %v1829_v62, %v1810_v4 }
 0x5c8   : > { %v1766_v49 = vadd.f32 %v1765_v0, %v7232_v7 }
 0x5c9   : > { %6579 = vpow2.f32 %v5478_v63  ;;  %v5479_v60 = vmul.f32 -1.442695, %v1795_v12  ;;  %v1840_v55 = vadd.f32 %v1836_v11, %v1811_v52  ;;  %v5480_v6 = vmul.f32 -1.442695, %v1839_v61 }
 0x5ca   : > { %v1860_v2 = vrot.slane %v1766_v49, %v7208_v9  ;;  %v1880_v52 = vrot.slane %v1608_v48, 2 }
 0x5cb   : > { %6581 = vpow2.f32 %v5479_v60  ;;  %v5481_v54 = vmul.f32 -1.442695, %v1840_v55  ;;  %v1881_v55 = vrot.slane %v1609_v59, 2 }
 0x5cc   : > { %6583 = vpow2.f32 %v5480_v6  ;;  %v1861_v12 = vcombine.high %v1860_v2, %v1860_v2  ;;  %v1868_v4 = vrot.slane %v1860_v2, %v7208_v9 }
 0x5cd   : > { %6585 = vpow2.f32 %v5481_v54 }
 0x5ce   : > { %v1875_v60 = vrot.slane %v1861_v12, %v7208_v9 }
 0x5d6   : > { %v6580_v1 = vpop.eup %6579 }
 0x5d7   : > { %v1802_v51 = vadd.f32 1.0, %v6580_v1 }
 0x5d8   : > { %v6582_v8 = vpop.eup %6581 }
 0x5d9   : > { %v1803_v10 = vadd.f32 1.0, %v6582_v8  ;;  %6587 = vrcp.f32 %v1802_v51  ;;  %v6584_v17 = vpop.eup %6583 }
 0x5da   : > { %v6586_v5 = vpop.eup %6585  ;;  %v1847_v63 = vadd.f32 1.0, %v6584_v17 }
 0x5db   : > { %6589 = vrcp.f32 %v1803_v10  ;;  %v1848_v62 = vadd.f32 1.0, %v6586_v5 }
 0x5dc   : > { %6591 = vrcp.f32 %v1847_v63 }
 0x5dd   : > { %6593 = vrcp.f32 %v1848_v62 }
 0x5e6   : > { %v6588_v11 = vpop.eup %6587 }
 0x5e7   : > { %v1878_v61 = vmul.f32 %v6588_v11, %v1868_v4 }
 0x5e8   : > { %v6590_v6 = vpop.eup %6589 }
 0x5e9   : > { %v1879_v0 = vmul.f32 %v6590_v6, %v1875_v60  ;;  %v1884_v54 = vadd.f32 %v1880_v52, %v1878_v61  ;;  %v6592_v51 = vpop.eup %6591 }
 0x5ea   : > { %v6594_v8 = vpop.eup %6593  ;;  %v1888_v10 = vsub.f32 1.0, %v6592_v51  ;;  %v1892_v17 = vmul.f32 %v6592_v51, %v7570_v3 }
 0x5eb   : > { %v1885_v1 = vadd.f32 %v1881_v55, %v1879_v0  ;;  %6595 = vtanh.f32 %v1884_v54  ;;  %v1889_v2 = vsub.f32 1.0, %v6594_v8  ;;  %v1893_v5 = vmul.f32 %v6594_v8, %v7572_v57 }
 0x5ed   : > { %6597 = vtanh.f32 %v1885_v1 }
 0x5f8   : > { %v6596_v49 = vpop.eup %6595 }
 0x5f9   : > { %v1890_v12 = vmul.f32 %v6596_v49, %v1888_v10  ;;  %1898 = sbr.rel (%p5442_p1) target bundleno = 1536 (0x600), region = 95 }
 0x5fa   : > { %v6598_v48 = vpop.eup %6597 }
 0x5fb   : > { %v1891_v63 = vmul.f32 %v6598_v48, %v1889_v2  ;;  %v7679_v59 = vadd.f32 %v1892_v17, %v1890_v12 }
 0x5fd   : > { %v7681_v4 = vadd.f32 %v1893_v5, %v1891_v63 }
 0x5fe   : > { %1899 = vst [vmem:[%s6985_s12 + $0x4] sm:$0x1] %v7679_v59 }
 0x5ff   : > { %1900 = vst [vmem:[%s6985_s12 + $0x14] sm:$0x1] %v7681_v4 }
 0x600 PF: > { %1903 = sbr.rel (%p294_p13) target bundleno = 1542 (0x606), region = 99 }
 0x605   : > { %1904 = vst [vmem:[%s6985_s12 + $0xb] sm:$0x1] %v7679_v59  ;;  %1905 = vst [vmem:[%s6985_s12 + $0x1b] sm:$0x1] %v7681_v4 }
 0x606 PF: > { %1934 = vmatprep.subr.mxu0 %v6989_v13  ;;  %v9041_v3 = vmov 0.0   ;;  %v1918_v57 = vcombine.low %v7679_v59, %v7681_v4  ;;  %v9042_v60 = vld [vmem:[#allocation5_spill] sm:$0xff]  ;;  %v9043_v52 = vld [vmem:[#allocation11_spill] sm:$0xff]  ;;  %v9044_v11 = vld [vmem:[#allocation6_spill] sm:$0xff] }
 0x607   : > { %1998 = vmatprep.mubr.f32.mxu0 %v9041_v3  ;;  %1935 = vmatpush1.msra.mxu0 %v6992_v14  ;;  %v9045_v61 = vld [vmem:[#allocation7_spill] sm:$0xff]  ;;  %v9046_v6 = vld [vmem:[#allocation12_spill] sm:$0xff]  ;;  %v9048_v54 = vld [vmem:[#allocation9_spill] sm:$0xff] }
 0x608   : > { %6049 = vmatprep.subr.mxu1 %v9041_v3  ;;  %1936 = vmatprep.subr.mxu0 %v6995_v15  ;;  %v1925_v62 = vrot.slane %v1918_v57, %v7208_v9  ;;  %v9047_v0 = vld [vmem:[#allocation8_spill] sm:$0xff]  ;;  %v9049_v1 = vld [vmem:[#allocation13_spill] sm:$0xff]  ;;  %v9050_v51 = vld [vmem:[#allocation10_spill] sm:$0xff] }
 0x609   : > { %6050 = vmatpush3.msra.mxu1 %v7046_v28  ;;  %1937 = vmatpush1.msra.mxu0 %v6999_v16  ;;  %v9051_v8 = vld [vmem:[#allocation14_spill] sm:$0xff]  ;;  %v9052_v17 = vld [vmem:[#allocation15_spill] sm:$0xff] }
 0x60a   : > { %6051 = vmatprep.subr.mxu1 %v9041_v3  ;;  %1938 = vmatprep.subr.mxu0 %v7004_v18  ;;  %v1932_v55 = vrot.slane %v1925_v62, %v7208_v9  ;;  %v5484_v49 = vld [vmem:[%s6983_s24 + $0x5] ss:$8 sm:$0x7]  ;;  %v5486_v2 = vld [vmem:[%s6983_s24 + $0x1a] ss:$8 sm:$0x7] }
 0x60b   : > { %6052 = vmatpush3.msra.mxu1 %v7049_v29  ;;  %1939 = vmatpush1.msra.mxu0 %v7009_v19  ;;  %v5485_v63 = vld [vmem:[%s6983_s24 + $0x35] ss:$8 sm:$0x7]  ;;  %v5487_v57 = vld [vmem:[%s6983_s24 + $0x4a] ss:$8 sm:$0x7] }
 0x60c   : > { %6053 = vmatprep.subr.mxu1 %v9041_v3  ;;  %1940 = vmatprep.subr.mxu0 %v7015_v20 }
 0x60d   : > { %6054 = vmatpush3.msra.mxu1 %v7062_v32  ;;  %1941 = vmatpush1.msra.mxu0 %v7019_v21 }
 0x60e   : > { %6055 = vmatprep.subr.mxu1 %v9041_v3  ;;  %1942 = vmatprep.subr.mxu0 %v7023_v22 }
 0x60f   : > { %6056 = vmatpush3.msra.mxu1 %v7075_v35  ;;  %1943 = vmatpush1.msra.mxu0 %v7027_v23 }
 0x610   : > { %6057 = vmatprep.subr.mxu1 %v9041_v3  ;;  %1944 = vmatprep.subr.mxu0 %v7031_v24 }
 0x611   : > { %6058 = vmatpush3.msra.mxu1 %v7088_v38  ;;  %1945 = vmatpush1.msra.mxu0 %v7035_v25 }
 0x612   : > { %6059 = vmatprep.subr.mxu1 %v9041_v3  ;;  %1946 = vmatprep.subr.mxu0 %v7039_v26 }
 0x613   : > { %6060 = vmatpush3.msra.mxu1 %v7101_v41  ;;  %1947 = vmatpush1.msra.mxu0 %v7043_v27 }
 0x614   : > { %6061 = vmatprep.subr.mxu1 %v9041_v3  ;;  %1948 = vmatprep.subr.mxu0 %v7053_v30 }
 0x615   : > { %6062 = vmatpush3.msra.mxu1 %v7114_v44  ;;  %1949 = vmatpush1.msra.mxu0 %v7058_v31 }
 0x616   : > { %6063 = vmatprep.subr.mxu1 %v9041_v3  ;;  %1950 = vmatprep.subr.mxu0 %v7066_v33 }
 0x617   : > { %6064 = vmatpush3.msra.mxu1 %v7127_v47  ;;  %1951 = vmatpush1.msra.mxu0 %v7071_v34 }
 0x618   : > { %6065 = vmatprep.subr.mxu1 %v9041_v3  ;;  %1952 = vmatprep.subr.mxu0 %v7079_v36 }
 0x619   : > { %6066 = vmatpush3.msra.mxu1 %v7140_v50  ;;  %1953 = vmatpush1.msra.mxu0 %v7084_v37 }
 0x61a   : > { %6067 = vmatprep.subr.mxu1 %v9041_v3  ;;  %1954 = vmatprep.subr.mxu0 %v7092_v39 }
 0x61b   : > { %6068 = vmatpush3.msra.mxu1 %v7153_v53  ;;  %1955 = vmatpush1.msra.mxu0 %v7097_v40 }
 0x61c   : > { %6069 = vmatprep.subr.mxu1 %v9041_v3  ;;  %1956 = vmatprep.subr.mxu0 %v7105_v42 }
 0x61d   : > { %6070 = vmatpush3.msra.mxu1 %v7166_v56  ;;  %1957 = vmatpush1.msra.mxu0 %v7110_v43 }
 0x61e   : > { %6071 = vmatprep.subr.mxu1 %v9041_v3  ;;  %1958 = vmatprep.subr.mxu0 %v7118_v45 }
 0x61f   : > { %6072 = vmatpush3.msra.mxu1 %v7175_v58  ;;  %1959 = vmatpush1.msra.mxu0 %v7123_v46 }
 0x620   : > { %6073 = vmatprep.subr.mxu1 %v9041_v3  ;;  %1960 = vmatprep.subr.mxu0 %v9042_v60  ;;  %v9053_v60 = vld [vmem:[#allocation16_spill] sm:$0xff] }
 0x621   : > { %6074 = vmatpush3.msra.mxu1 %v9043_v52  ;;  %1961 = vmatpush1.msra.mxu0 %v9044_v11 }
 0x622   : > { %6075 = vmatprep.subr.mxu1 %v9041_v3  ;;  %1962 = vmatprep.subr.mxu0 %v9045_v61  ;;  %v1914_v61 = vsel %vm7212_vm1, %v5484_v49, %v5486_v2 }
 0x623   : > { %6076 = vmatpush3.msra.mxu1 %v9046_v6  ;;  %1963 = vmatpush1.msra.mxu0 %v9047_v0 }
 0x624   : > { %6077 = vmatprep.subr.mxu1 %v9041_v3  ;;  %1964 = vmatprep.subr.mxu0 %v9048_v54  ;;  %v1915_v54 = vsel %vm7212_vm1, %v5485_v63, %v5487_v57 }
 0x625   : > { %6078 = vmatpush3.msra.mxu1 %v9049_v1  ;;  %1965 = vmatpush1.msra.mxu0 %v9050_v51  ;;  %v2117_v2 = vrot.slane %v1915_v54, 1 }
 0x626   : > { %6079 = vmatprep.subr.mxu1 %v9041_v3  ;;  %1999 = vmatmul.mubr.f32.vlgmr.msra.gmra.mxu0 %v1932_v55 }
 0x627   : > { %6080 = vmatpush3.msra.mxu1 %v9051_v8  ;;  %6081 = vmatprep.mubr.msk.f32.mxu1 %vm6877_vm0, %v9041_v3 }
 0x628   : > { %6082 = vmatmul.mubr.f32.vlgmr.msra.gmra.mxu1 %v1932_v55 }
 0x6e6   : > { %v2000_v10 = vpop.f32.mrf.mxu0 }
 0x6e7   : > { %v2001_v12 = vadd.f32 %v2000_v10, %v9052_v17 }
 0x6e8   : > { %v2002_v48 = vpop.f32.mrf.mxu0  ;;  %v2071_v5 = vpop.f32.mrf.mxu1 }
 0x6e9   : > { %v2082_v62 = vrot.slane %v2001_v12, %v7208_v9  ;;  %v2003_v52 = vadd.f32 %v2002_v48, %v9053_v60  ;;  %v2116_v12 = vrot.slane %v1914_v61, 1 }
 0x6ea   : > { %v6083_v6 = vpop.f32.mrf.mxu1 }
 0x6eb   : > { %v2083_v0 = vcombine.high %v2082_v62, %v2082_v62  ;;  %v2090_v3 = vrot.slane %v2082_v62, %v7208_v9  ;;  %v2127_v55 = vrot.slane %v2003_v52, %v7208_v9 }
 0x6ed   : > { %v2097_v1 = vrot.slane %v2083_v0, %v7208_v9  ;;  %v2100_v51 = vadd.f32 %v2090_v3, %v1914_v61  ;;  %v2128_v8 = vcombine.high %v2127_v55, %v2127_v55  ;;  %v2135_v48 = vrot.slane %v2127_v55, %v7208_v9 }
 0x6ef   : > { %v2101_v10 = vadd.f32 %v2097_v1, %v1915_v54  ;;  %v5488_v17 = vmul.f32 -1.442695, %v2100_v51  ;;  %v2142_v60 = vrot.slane %v2128_v8, %v7208_v9  ;;  %v2145_v62 = vadd.f32 %v2135_v48, %v2116_v12 }
 0x6f0   : > { %v2072_v1 = vadd.f32 %v2071_v5, %v7232_v7 }
 0x6f1   : > { %6599 = vpow2.f32 %v5488_v17  ;;  %v5489_v49 = vmul.f32 -1.442695, %v2101_v10  ;;  %v2146_v52 = vadd.f32 %v2142_v60, %v2117_v2  ;;  %v5490_v6 = vmul.f32 -1.442695, %v2145_v62 }
 0x6f2   : > { %v2166_v55 = vrot.slane %v2072_v1, %v7208_v9  ;;  %v2186_v2 = vrot.slane %v1914_v61, 2 }
 0x6f3   : > { %6601 = vpow2.f32 %v5489_v49  ;;  %v5491_v11 = vmul.f32 -1.442695, %v2146_v52  ;;  %v2187_v52 = vrot.slane %v1915_v54, 2 }
 0x6f4   : > { %6603 = vpow2.f32 %v5490_v6  ;;  %v2167_v10 = vcombine.high %v2166_v55, %v2166_v55  ;;  %v2174_v12 = vrot.slane %v2166_v55, %v7208_v9 }
 0x6f5   : > { %6605 = vpow2.f32 %v5491_v11 }
 0x6f6   : > { %v2181_v49 = vrot.slane %v2167_v10, %v7208_v9 }
 0x6fe   : > { %v6600_v63 = vpop.eup %6599 }
 0x6ff   : > { %v2108_v57 = vadd.f32 1.0, %v6600_v63 }
 0x700   : > { %v6602_v0 = vpop.eup %6601 }
 0x701   : > { %v2109_v3 = vadd.f32 1.0, %v6602_v0  ;;  %6607 = vrcp.f32 %v2108_v57  ;;  %v6604_v51 = vpop.eup %6603 }
 0x702   : > { %v6606_v8 = vpop.eup %6605  ;;  %v2153_v17 = vadd.f32 1.0, %v6604_v51 }
 0x703   : > { %6609 = vrcp.f32 %v2109_v3  ;;  %v2154_v48 = vadd.f32 1.0, %v6606_v8 }
 0x704   : > { %6611 = vrcp.f32 %v2153_v17 }
 0x705   : > { %6613 = vrcp.f32 %v2154_v48 }
 0x70e   : > { %v6608_v60 = vpop.eup %6607 }
 0x70f   : > { %v2184_v62 = vmul.f32 %v6608_v60, %v2174_v12 }
 0x710   : > { %v6610_v6 = vpop.eup %6609 }
 0x711   : > { %v2185_v5 = vmul.f32 %v6610_v6, %v2181_v49  ;;  %v2190_v11 = vadd.f32 %v2186_v2, %v2184_v62  ;;  %v6612_v57 = vpop.eup %6611 }
 0x712   : > { %v6614_v0 = vpop.eup %6613  ;;  %v2194_v3 = vsub.f32 1.0, %v6612_v57  ;;  %v2198_v51 = vmul.f32 %v6612_v57, %v7679_v59 }
 0x713   : > { %v2191_v63 = vadd.f32 %v2187_v52, %v2185_v5  ;;  %6615 = vtanh.f32 %v2190_v11  ;;  %v2195_v55 = vsub.f32 1.0, %v6614_v0  ;;  %v2199_v8 = vmul.f32 %v6614_v0, %v7681_v4 }
 0x715   : > { %6617 = vtanh.f32 %v2191_v63 }
 0x720   : > { %v6616_v1 = vpop.eup %6615 }
 0x721   : > { %v2196_v10 = vmul.f32 %v6616_v1, %v2194_v3  ;;  %2204 = sbr.rel (%p5442_p1) target bundleno = 1832 (0x728), region = 103 }
 0x722   : > { %v6618_v61 = vpop.eup %6617 }
 0x723   : > { %v2197_v17 = vmul.f32 %v6618_v61, %v2195_v55  ;;  %v7788_v54 = vadd.f32 %v2198_v51, %v2196_v10 }
 0x725   : > { %v7790_v12 = vadd.f32 %v2199_v8, %v2197_v17 }
 0x726   : > { %2205 = vst [vmem:[%s6985_s12 + $0x5] sm:$0x1] %v7788_v54 }
 0x727   : > { %2206 = vst [vmem:[%s6985_s12 + $0x15] sm:$0x1] %v7790_v12 }
 0x728 PF: > { %2209 = sbr.rel (%p294_p13) target bundleno = 1838 (0x72e), region = 107 }
 0x72d   : > { %2210 = vst [vmem:[%s6985_s12 + $0xa] sm:$0x1] %v7788_v54  ;;  %2211 = vst [vmem:[%s6985_s12 + $0x1a] sm:$0x1] %v7790_v12 }
 0x72e PF: > { %2240 = vmatprep.subr.mxu0 %v6989_v13  ;;  %v9055_v59 = vmov 0.0   ;;  %v2224_v4 = vcombine.low %v7788_v54, %v7790_v12  ;;  %v9056_v49 = vld [vmem:[#allocation5_spill] sm:$0xff]  ;;  %v9057_v2 = vld [vmem:[#allocation11_spill] sm:$0xff]  ;;  %v9058_v60 = vld [vmem:[#allocation6_spill] sm:$0xff] }
 0x72f   : > { %2304 = vmatprep.mubr.f32.mxu0 %v9055_v59  ;;  %2241 = vmatpush1.msra.mxu0 %v6992_v14  ;;  %v9059_v62 = vld [vmem:[#allocation7_spill] sm:$0xff]  ;;  %v9060_v6 = vld [vmem:[#allocation12_spill] sm:$0xff]  ;;  %v9062_v11 = vld [vmem:[#allocation9_spill] sm:$0xff] }
 0x730   : > { %6084 = vmatprep.subr.mxu1 %v9055_v59  ;;  %2242 = vmatprep.subr.mxu0 %v6995_v15  ;;  %v2231_v48 = vrot.slane %v2224_v4, %v7208_v9  ;;  %v9061_v5 = vld [vmem:[#allocation8_spill] sm:$0xff]  ;;  %v9063_v63 = vld [vmem:[#allocation13_spill] sm:$0xff]  ;;  %v9064_v57 = vld [vmem:[#allocation10_spill] sm:$0xff] }
 0x731   : > { %6085 = vmatpush3.msra.mxu1 %v7046_v28  ;;  %2243 = vmatpush1.msra.mxu0 %v6999_v16  ;;  %v9065_v0 = vld [vmem:[#allocation14_spill] sm:$0xff]  ;;  %v9066_v51 = vld [vmem:[#allocation15_spill] sm:$0xff] }
 0x732   : > { %6086 = vmatprep.subr.mxu1 %v9055_v59  ;;  %2244 = vmatprep.subr.mxu0 %v7004_v18  ;;  %v2238_v52 = vrot.slane %v2231_v48, %v7208_v9  ;;  %v5494_v1 = vld [vmem:[%s6983_s24 + $0x6] ss:$8 sm:$0x7]  ;;  %v5496_v55 = vld [vmem:[%s6983_s24 + $0x19] ss:$8 sm:$0x7] }
 0x733   : > { %6087 = vmatpush3.msra.mxu1 %v7049_v29  ;;  %2245 = vmatpush1.msra.mxu0 %v7009_v19  ;;  %v5495_v17 = vld [vmem:[%s6983_s24 + $0x36] ss:$8 sm:$0x7]  ;;  %v5497_v4 = vld [vmem:[%s6983_s24 + $0x49] ss:$8 sm:$0x7] }
 0x734   : > { %6088 = vmatprep.subr.mxu1 %v9055_v59  ;;  %2246 = vmatprep.subr.mxu0 %v7015_v20 }
 0x735   : > { %6089 = vmatpush3.msra.mxu1 %v7062_v32  ;;  %2247 = vmatpush1.msra.mxu0 %v7019_v21 }
 0x736   : > { %6090 = vmatprep.subr.mxu1 %v9055_v59  ;;  %2248 = vmatprep.subr.mxu0 %v7023_v22 }
 0x737   : > { %6091 = vmatpush3.msra.mxu1 %v7075_v35  ;;  %2249 = vmatpush1.msra.mxu0 %v7027_v23 }
 0x738   : > { %6092 = vmatprep.subr.mxu1 %v9055_v59  ;;  %2250 = vmatprep.subr.mxu0 %v7031_v24 }
 0x739   : > { %6093 = vmatpush3.msra.mxu1 %v7088_v38  ;;  %2251 = vmatpush1.msra.mxu0 %v7035_v25 }
 0x73a   : > { %6094 = vmatprep.subr.mxu1 %v9055_v59  ;;  %2252 = vmatprep.subr.mxu0 %v7039_v26 }
 0x73b   : > { %6095 = vmatpush3.msra.mxu1 %v7101_v41  ;;  %2253 = vmatpush1.msra.mxu0 %v7043_v27 }
 0x73c   : > { %6096 = vmatprep.subr.mxu1 %v9055_v59  ;;  %2254 = vmatprep.subr.mxu0 %v7053_v30 }
 0x73d   : > { %6097 = vmatpush3.msra.mxu1 %v7114_v44  ;;  %2255 = vmatpush1.msra.mxu0 %v7058_v31 }
 0x73e   : > { %6098 = vmatprep.subr.mxu1 %v9055_v59  ;;  %2256 = vmatprep.subr.mxu0 %v7066_v33 }
 0x73f   : > { %6099 = vmatpush3.msra.mxu1 %v7127_v47  ;;  %2257 = vmatpush1.msra.mxu0 %v7071_v34 }
 0x740   : > { %6100 = vmatprep.subr.mxu1 %v9055_v59  ;;  %2258 = vmatprep.subr.mxu0 %v7079_v36 }
 0x741   : > { %6101 = vmatpush3.msra.mxu1 %v7140_v50  ;;  %2259 = vmatpush1.msra.mxu0 %v7084_v37 }
 0x742   : > { %6102 = vmatprep.subr.mxu1 %v9055_v59  ;;  %2260 = vmatprep.subr.mxu0 %v7092_v39 }
 0x743   : > { %6103 = vmatpush3.msra.mxu1 %v7153_v53  ;;  %2261 = vmatpush1.msra.mxu0 %v7097_v40 }
 0x744   : > { %6104 = vmatprep.subr.mxu1 %v9055_v59  ;;  %2262 = vmatprep.subr.mxu0 %v7105_v42 }
 0x745   : > { %6105 = vmatpush3.msra.mxu1 %v7166_v56  ;;  %2263 = vmatpush1.msra.mxu0 %v7110_v43 }
 0x746   : > { %6106 = vmatprep.subr.mxu1 %v9055_v59  ;;  %2264 = vmatprep.subr.mxu0 %v7118_v45 }
 0x747   : > { %6107 = vmatpush3.msra.mxu1 %v7175_v58  ;;  %2265 = vmatpush1.msra.mxu0 %v7123_v46 }
 0x748   : > { %6108 = vmatprep.subr.mxu1 %v9055_v59  ;;  %2266 = vmatprep.subr.mxu0 %v9056_v49  ;;  %v9067_v49 = vld [vmem:[#allocation16_spill] sm:$0xff] }
 0x749   : > { %6109 = vmatpush3.msra.mxu1 %v9057_v2  ;;  %2267 = vmatpush1.msra.mxu0 %v9058_v60 }
 0x74a   : > { %6110 = vmatprep.subr.mxu1 %v9055_v59  ;;  %2268 = vmatprep.subr.mxu0 %v9059_v62  ;;  %v2220_v62 = vsel %vm7212_vm1, %v5494_v1, %v5496_v55 }
 0x74b   : > { %6111 = vmatpush3.msra.mxu1 %v9060_v6  ;;  %2269 = vmatpush1.msra.mxu0 %v9061_v5 }
 0x74c   : > { %6112 = vmatprep.subr.mxu1 %v9055_v59  ;;  %2270 = vmatprep.subr.mxu0 %v9062_v11  ;;  %v2221_v11 = vsel %vm7212_vm1, %v5495_v17, %v5497_v4 }
 0x74d   : > { %6113 = vmatpush3.msra.mxu1 %v9063_v63  ;;  %2271 = vmatpush1.msra.mxu0 %v9064_v57  ;;  %v2423_v55 = vrot.slane %v2221_v11, 1 }
 0x74e   : > { %6114 = vmatprep.subr.mxu1 %v9055_v59  ;;  %2305 = vmatmul.mubr.f32.vlgmr.msra.gmra.mxu0 %v2238_v52 }
 0x74f   : > { %6115 = vmatpush3.msra.mxu1 %v9065_v0  ;;  %6116 = vmatprep.mubr.msk.f32.mxu1 %vm6877_vm0, %v9055_v59 }
 0x750   : > { %6117 = vmatmul.mubr.f32.vlgmr.msra.gmra.mxu1 %v2238_v52 }
 0x80e   : > { %v2306_v3 = vpop.f32.mrf.mxu0 }
 0x80f   : > { %v2307_v10 = vadd.f32 %v2306_v3, %v9066_v51 }
 0x810   : > { %v2308_v61 = vpop.f32.mrf.mxu0  ;;  %v2377_v8 = vpop.f32.mrf.mxu1 }
 0x811   : > { %v2388_v48 = vrot.slane %v2307_v10, %v7208_v9  ;;  %v2309_v2 = vadd.f32 %v2308_v61, %v9067_v49  ;;  %v2422_v10 = vrot.slane %v2220_v62, 1 }
 0x812   : > { %v6118_v6 = vpop.f32.mrf.mxu1 }
 0x813   : > { %v2389_v5 = vcombine.high %v2388_v48, %v2388_v48  ;;  %v2396_v59 = vrot.slane %v2388_v48, %v7208_v9  ;;  %v2433_v52 = vrot.slane %v2309_v2, %v7208_v9 }
 0x815   : > { %v2403_v63 = vrot.slane %v2389_v5, %v7208_v9  ;;  %v2406_v57 = vadd.f32 %v2396_v59, %v2220_v62  ;;  %v2434_v0 = vcombine.high %v2433_v52, %v2433_v52  ;;  %v2441_v61 = vrot.slane %v2433_v52, %v7208_v9 }
 0x817   : > { %v2407_v3 = vadd.f32 %v2403_v63, %v2221_v11  ;;  %v5498_v51 = vmul.f32 -1.442695, %v2406_v57  ;;  %v2448_v49 = vrot.slane %v2434_v0, %v7208_v9  ;;  %v2451_v48 = vadd.f32 %v2441_v61, %v2422_v10 }
 0x818   : > { %v2378_v63 = vadd.f32 %v2377_v8, %v7232_v7 }
 0x819   : > { %6619 = vpow2.f32 %v5498_v51  ;;  %v5499_v1 = vmul.f32 -1.442695, %v2407_v3  ;;  %v2452_v2 = vadd.f32 %v2448_v49, %v2423_v55  ;;  %v5500_v6 = vmul.f32 -1.442695, %v2451_v48 }
 0x81a   : > { %v2472_v52 = vrot.slane %v2378_v63, %v7208_v9  ;;  %v2492_v55 = vrot.slane %v2220_v62, 2 }
 0x81b   : > { %6621 = vpow2.f32 %v5499_v1  ;;  %v5501_v60 = vmul.f32 -1.442695, %v2452_v2  ;;  %v2493_v2 = vrot.slane %v2221_v11, 2 }
 0x81c   : > { %6623 = vpow2.f32 %v5500_v6  ;;  %v2473_v3 = vcombine.high %v2472_v52, %v2472_v52  ;;  %v2480_v10 = vrot.slane %v2472_v52, %v7208_v9 }
 0x81d   : > { %6625 = vpow2.f32 %v5501_v60 }
 0x81e   : > { %v2487_v1 = vrot.slane %v2473_v3, %v7208_v9 }
 0x826   : > { %v6620_v17 = vpop.eup %6619 }
 0x827   : > { %v2414_v4 = vadd.f32 1.0, %v6620_v17 }
 0x828   : > { %v6622_v5 = vpop.eup %6621 }
 0x829   : > { %v2415_v59 = vadd.f32 1.0, %v6622_v5  ;;  %6627 = vrcp.f32 %v2414_v4  ;;  %v6624_v57 = vpop.eup %6623 }
 0x82a   : > { %v6626_v0 = vpop.eup %6625  ;;  %v2459_v51 = vadd.f32 1.0, %v6624_v57 }
 0x82b   : > { %6629 = vrcp.f32 %v2415_v59  ;;  %v2460_v61 = vadd.f32 1.0, %v6626_v0 }
 0x82c   : > { %6631 = vrcp.f32 %v2459_v51 }
 0x82d   : > { %6633 = vrcp.f32 %v2460_v61 }
 0x836   : > { %v6628_v49 = vpop.eup %6627 }
 0x837   : > { %v2490_v48 = vmul.f32 %v6628_v49, %v2480_v10 }
 0x838   : > { %v6630_v6 = vpop.eup %6629 }
 0x839   : > { %v2491_v8 = vmul.f32 %v6630_v6, %v2487_v1  ;;  %v2496_v60 = vadd.f32 %v2492_v55, %v2490_v48  ;;  %v6632_v4 = vpop.eup %6631 }
 0x83a   : > { %v6634_v5 = vpop.eup %6633  ;;  %v2500_v59 = vsub.f32 1.0, %v6632_v4  ;;  %v2504_v57 = vmul.f32 %v6632_v4, %v7788_v54 }
 0x83b   : > { %v2497_v17 = vadd.f32 %v2493_v2, %v2491_v8  ;;  %6635 = vtanh.f32 %v2496_v60  ;;  %v2501_v52 = vsub.f32 1.0, %v6634_v5  ;;  %v2505_v0 = vmul.f32 %v6634_v5, %v7790_v12 }
 0x83d   : > { %6637 = vtanh.f32 %v2497_v17 }
 0x848   : > { %v6636_v63 = vpop.eup %6635 }
 0x849   : > { %v2502_v3 = vmul.f32 %v6636_v63, %v2500_v59  ;;  %2510 = sbr.rel (%p5442_p1) target bundleno = 2128 (0x850), region = 111 }
 0x84a   : > { %v6638_v62 = vpop.eup %6637 }
 0x84b   : > { %v2503_v51 = vmul.f32 %v6638_v62, %v2501_v52  ;;  %v7897_v11 = vadd.f32 %v2504_v57, %v2502_v3 }
 0x84d   : > { %v7899_v10 = vadd.f32 %v2505_v0, %v2503_v51 }
 0x84e   : > { %2511 = vst [vmem:[%s6985_s12 + $0x6] sm:$0x1] %v7897_v11 }
 0x84f   : > { %2512 = vst [vmem:[%s6985_s12 + $0x16] sm:$0x1] %v7899_v10 }
 0x850 PF: > { %2515 = sbr.rel (%p294_p13) target bundleno = 2134 (0x856), region = 115 }
 0x855   : > { %2516 = vst [vmem:[%s6985_s12 + $0x9] sm:$0x1] %v7897_v11  ;;  %2517 = vst [vmem:[%s6985_s12 + $0x19] sm:$0x1] %v7899_v10 }
 0x856 PF: > { %2546 = vmatprep.subr.mxu0 %v6989_v13  ;;  %v9069_v54 = vmov 0.0   ;;  %v2530_v12 = vcombine.low %v7897_v11, %v7899_v10  ;;  %v9070_v1 = vld [vmem:[#allocation5_spill] sm:$0xff]  ;;  %v9071_v55 = vld [vmem:[#allocation11_spill] sm:$0xff]  ;;  %v9072_v49 = vld [vmem:[#allocation6_spill] sm:$0xff] }
 0x857   : > { %2610 = vmatprep.mubr.f32.mxu0 %v9069_v54  ;;  %2547 = vmatpush1.msra.mxu0 %v6992_v14  ;;  %v9073_v48 = vld [vmem:[#allocation7_spill] sm:$0xff]  ;;  %v9074_v6 = vld [vmem:[#allocation12_spill] sm:$0xff]  ;;  %v9076_v60 = vld [vmem:[#allocation9_spill] sm:$0xff] }
 0x858   : > { %6119 = vmatprep.subr.mxu1 %v9069_v54  ;;  %2548 = vmatprep.subr.mxu0 %v6995_v15  ;;  %v2537_v61 = vrot.slane %v2530_v12, %v7208_v9  ;;  %v9075_v8 = vld [vmem:[#allocation8_spill] sm:$0xff]  ;;  %v9077_v17 = vld [vmem:[#allocation13_spill] sm:$0xff]  ;;  %v9078_v4 = vld [vmem:[#allocation10_spill] sm:$0xff] }
 0x859   : > { %6120 = vmatpush3.msra.mxu1 %v7046_v28  ;;  %2549 = vmatpush1.msra.mxu0 %v6999_v16  ;;  %v9079_v5 = vld [vmem:[#allocation14_spill] sm:$0xff]  ;;  %v9080_v57 = vld [vmem:[#allocation15_spill] sm:$0xff] }
 0x85a   : > { %6121 = vmatprep.subr.mxu1 %v9069_v54  ;;  %2550 = vmatprep.subr.mxu0 %v7004_v18  ;;  %v2544_v2 = vrot.slane %v2537_v61, %v7208_v9  ;;  %v5504_v63 = vld [vmem:[%s6983_s24 + $0x7] ss:$8 sm:$0x7]  ;;  %v5506_v52 = vld [vmem:[%s6983_s24 + $0x18] ss:$8 sm:$0x7] }
 0x85b   : > { %6122 = vmatpush3.msra.mxu1 %v7049_v29  ;;  %2551 = vmatpush1.msra.mxu0 %v7009_v19  ;;  %v5505_v51 = vld [vmem:[%s6983_s24 + $0x37] ss:$8 sm:$0x7]  ;;  %v5507_v12 = vld [vmem:[%s6983_s24 + $0x48] ss:$8 sm:$0x7] }
 0x85c   : > { %6123 = vmatprep.subr.mxu1 %v9069_v54  ;;  %2552 = vmatprep.subr.mxu0 %v7015_v20 }
 0x85d   : > { %6124 = vmatpush3.msra.mxu1 %v7062_v32  ;;  %2553 = vmatpush1.msra.mxu0 %v7019_v21 }
 0x85e   : > { %6125 = vmatprep.subr.mxu1 %v9069_v54  ;;  %2554 = vmatprep.subr.mxu0 %v7023_v22 }
 0x85f   : > { %6126 = vmatpush3.msra.mxu1 %v7075_v35  ;;  %2555 = vmatpush1.msra.mxu0 %v7027_v23 }
 0x860   : > { %6127 = vmatprep.subr.mxu1 %v9069_v54  ;;  %2556 = vmatprep.subr.mxu0 %v7031_v24 }
 0x861   : > { %6128 = vmatpush3.msra.mxu1 %v7088_v38  ;;  %2557 = vmatpush1.msra.mxu0 %v7035_v25 }
 0x862   : > { %6129 = vmatprep.subr.mxu1 %v9069_v54  ;;  %2558 = vmatprep.subr.mxu0 %v7039_v26 }
 0x863   : > { %6130 = vmatpush3.msra.mxu1 %v7101_v41  ;;  %2559 = vmatpush1.msra.mxu0 %v7043_v27 }
 0x864   : > { %6131 = vmatprep.subr.mxu1 %v9069_v54  ;;  %2560 = vmatprep.subr.mxu0 %v7053_v30 }
 0x865   : > { %6132 = vmatpush3.msra.mxu1 %v7114_v44  ;;  %2561 = vmatpush1.msra.mxu0 %v7058_v31 }
 0x866   : > { %6133 = vmatprep.subr.mxu1 %v9069_v54  ;;  %2562 = vmatprep.subr.mxu0 %v7066_v33 }
 0x867   : > { %6134 = vmatpush3.msra.mxu1 %v7127_v47  ;;  %2563 = vmatpush1.msra.mxu0 %v7071_v34 }
 0x868   : > { %6135 = vmatprep.subr.mxu1 %v9069_v54  ;;  %2564 = vmatprep.subr.mxu0 %v7079_v36 }
 0x869   : > { %6136 = vmatpush3.msra.mxu1 %v7140_v50  ;;  %2565 = vmatpush1.msra.mxu0 %v7084_v37 }
 0x86a   : > { %6137 = vmatprep.subr.mxu1 %v9069_v54  ;;  %2566 = vmatprep.subr.mxu0 %v7092_v39 }
 0x86b   : > { %6138 = vmatpush3.msra.mxu1 %v7153_v53  ;;  %2567 = vmatpush1.msra.mxu0 %v7097_v40 }
 0x86c   : > { %6139 = vmatprep.subr.mxu1 %v9069_v54  ;;  %2568 = vmatprep.subr.mxu0 %v7105_v42 }
 0x86d   : > { %6140 = vmatpush3.msra.mxu1 %v7166_v56  ;;  %2569 = vmatpush1.msra.mxu0 %v7110_v43 }
 0x86e   : > { %6141 = vmatprep.subr.mxu1 %v9069_v54  ;;  %2570 = vmatprep.subr.mxu0 %v7118_v45 }
 0x86f   : > { %6142 = vmatpush3.msra.mxu1 %v7175_v58  ;;  %2571 = vmatpush1.msra.mxu0 %v7123_v46 }
 0x870   : > { %6143 = vmatprep.subr.mxu1 %v9069_v54  ;;  %2572 = vmatprep.subr.mxu0 %v9070_v1  ;;  %v9081_v1 = vld [vmem:[#allocation16_spill] sm:$0xff] }
 0x871   : > { %6144 = vmatpush3.msra.mxu1 %v9071_v55  ;;  %2573 = vmatpush1.msra.mxu0 %v9072_v49 }
 0x872   : > { %6145 = vmatprep.subr.mxu1 %v9069_v54  ;;  %2574 = vmatprep.subr.mxu0 %v9073_v48  ;;  %v2526_v48 = vsel %vm7212_vm1, %v5504_v63, %v5506_v52 }
 0x873   : > { %6146 = vmatpush3.msra.mxu1 %v9074_v6  ;;  %2575 = vmatpush1.msra.mxu0 %v9075_v8 }
 0x874   : > { %6147 = vmatprep.subr.mxu1 %v9069_v54  ;;  %2576 = vmatprep.subr.mxu0 %v9076_v60  ;;  %v2527_v60 = vsel %vm7212_vm1, %v5505_v51, %v5507_v12 }
 0x875   : > { %6148 = vmatpush3.msra.mxu1 %v9077_v17  ;;  %2577 = vmatpush1.msra.mxu0 %v9078_v4  ;;  %v2729_v52 = vrot.slane %v2527_v60, 1 }
 0x876   : > { %6149 = vmatprep.subr.mxu1 %v9069_v54  ;;  %2611 = vmatmul.mubr.f32.vlgmr.msra.gmra.mxu0 %v2544_v2 }
 0x877   : > { %6150 = vmatpush3.msra.mxu1 %v9079_v5  ;;  %6151 = vmatprep.mubr.msk.f32.mxu1 %vm6877_vm0, %v9069_v54 }
 0x878   : > { %6152 = vmatmul.mubr.f32.vlgmr.msra.gmra.mxu1 %v2544_v2 }
 0x936   : > { %v2612_v59 = vpop.f32.mrf.mxu0 }
 0x937   : > { %v2613_v3 = vadd.f32 %v2612_v59, %v9080_v57 }
 0x938   : > { %v2614_v62 = vpop.f32.mrf.mxu0  ;;  %v2683_v0 = vpop.f32.mrf.mxu1 }
 0x939   : > { %v2694_v61 = vrot.slane %v2613_v3, %v7208_v9  ;;  %v2615_v55 = vadd.f32 %v2614_v62, %v9081_v1  ;;  %v2728_v3 = vrot.slane %v2526_v48, 1 }
 0x93a   : > { %v6153_v6 = vpop.f32.mrf.mxu1 }
 0x93b   : > { %v2695_v8 = vcombine.high %v2694_v61, %v2694_v61  ;;  %v2702_v54 = vrot.slane %v2694_v61, %v7208_v9  ;;  %v2739_v2 = vrot.slane %v2615_v55, %v7208_v9 }
 0x93d   : > { %v2709_v17 = vrot.slane %v2695_v8, %v7208_v9  ;;  %v2712_v4 = vadd.f32 %v2702_v54, %v2526_v48  ;;  %v2740_v5 = vcombine.high %v2739_v2, %v2739_v2  ;;  %v2747_v62 = vrot.slane %v2739_v2, %v7208_v9 }
 0x93f   : > { %v2713_v59 = vadd.f32 %v2709_v17, %v2527_v60  ;;  %v5508_v57 = vmul.f32 -1.442695, %v2712_v4  ;;  %v2754_v1 = vrot.slane %v2740_v5, %v7208_v9  ;;  %v2757_v61 = vadd.f32 %v2747_v62, %v2728_v3 }
 0x940   : > { %v2684_v17 = vadd.f32 %v2683_v0, %v7232_v7 }
 0x941   : > { %6639 = vpow2.f32 %v5508_v57  ;;  %v5509_v63 = vmul.f32 -1.442695, %v2713_v59  ;;  %v2758_v55 = vadd.f32 %v2754_v1, %v2729_v52  ;;  %v5510_v6 = vmul.f32 -1.442695, %v2757_v61 }
 0x942   : > { %v2778_v2 = vrot.slane %v2684_v17, %v7208_v9  ;;  %v2798_v52 = vrot.slane %v2526_v48, 2 }
 0x943   : > { %6641 = vpow2.f32 %v5509_v63  ;;  %v5511_v49 = vmul.f32 -1.442695, %v2758_v55  ;;  %v2799_v55 = vrot.slane %v2527_v60, 2 }
 0x944   : > { %6643 = vpow2.f32 %v5510_v6  ;;  %v2779_v59 = vcombine.high %v2778_v2, %v2778_v2  ;;  %v2786_v3 = vrot.slane %v2778_v2, %v7208_v9 }
 0x945   : > { %6645 = vpow2.f32 %v5511_v49 }
 0x946   : > { %v2793_v63 = vrot.slane %v2779_v59, %v7208_v9 }
 0x94e   : > { %v6640_v51 = vpop.eup %6639 }
 0x94f   : > { %v2720_v12 = vadd.f32 1.0, %v6640_v51 }
 0x950   : > { %v6642_v8 = vpop.eup %6641 }
 0x951   : > { %v2721_v54 = vadd.f32 1.0, %v6642_v8  ;;  %6647 = vrcp.f32 %v2720_v12  ;;  %v6644_v4 = vpop.eup %6643 }
 0x952   : > { %v6646_v5 = vpop.eup %6645  ;;  %v2765_v57 = vadd.f32 1.0, %v6644_v4 }
 0x953   : > { %6649 = vrcp.f32 %v2721_v54  ;;  %v2766_v62 = vadd.f32 1.0, %v6646_v5 }
 0x954   : > { %6651 = vrcp.f32 %v2765_v57 }
 0x955   : > { %6653 = vrcp.f32 %v2766_v62 }
 0x95e   : > { %v6648_v1 = vpop.eup %6647 }
 0x95f   : > { %v2796_v61 = vmul.f32 %v6648_v1, %v2786_v3 }
 0x960   : > { %v6650_v6 = vpop.eup %6649 }
 0x961   : > { %v2797_v0 = vmul.f32 %v6650_v6, %v2793_v63  ;;  %v2802_v49 = vadd.f32 %v2798_v52, %v2796_v61  ;;  %v6652_v12 = vpop.eup %6651 }
 0x962   : > { %v6654_v8 = vpop.eup %6653  ;;  %v2806_v54 = vsub.f32 1.0, %v6652_v12  ;;  %v2810_v4 = vmul.f32 %v6652_v12, %v7897_v11 }
 0x963   : > { %v2803_v51 = vadd.f32 %v2799_v55, %v2797_v0  ;;  %6655 = vtanh.f32 %v2802_v49  ;;  %v2807_v2 = vsub.f32 1.0, %v6654_v8  ;;  %v2811_v5 = vmul.f32 %v6654_v8, %v7899_v10 }
 0x965   : > { %6657 = vtanh.f32 %v2803_v51 }
 0x970   : > { %v6656_v17 = vpop.eup %6655 }
 0x971   : > { %v2808_v59 = vmul.f32 %v6656_v17, %v2806_v54  ;;  %2816 = sbr.rel (%p5442_p1) target bundleno = 2424 (0x978), region = 119 }
 0x972   : > { %v6658_v48 = vpop.eup %6657 }
 0x973   : > { %v2809_v57 = vmul.f32 %v6658_v48, %v2807_v2  ;;  %v8006_v60 = vadd.f32 %v2810_v4, %v2808_v59 }
 0x975   : > { %v8008_v3 = vadd.f32 %v2811_v5, %v2809_v57 }
 0x976   : > { %2817 = vst [vmem:[%s6985_s12 + $0x7] sm:$0x1] %v8006_v60 }
 0x977   : > { %2818 = vst [vmem:[%s6985_s12 + $0x17] sm:$0x1] %v8008_v3 }
 0x978 PF: > { %2821 = sbr.rel (%p294_p13) target bundleno = 2430 (0x97e), region = 123 }
 0x97d   : > { %2822 = vst [vmem:[%s6985_s12 + $0x8] sm:$0x1] %v8006_v60  ;;  %2823 = vst [vmem:[%s6985_s12 + $0x18] sm:$0x1] %v8008_v3 }
 0x97e PF: > { %2848 = vmatprep.subr.mxu0 %v6989_v13  ;;  %v9083_v11 = vmov 0.0   ;;  %v2832_v10 = vcombine.low %v8006_v60, %v8008_v3  ;;  %v9084_v63 = vld [vmem:[#allocation5_spill] sm:$0xff]  ;;  %v9085_v52 = vld [vmem:[#allocation11_spill] sm:$0xff]  ;;  %v9086_v1 = vld [vmem:[#allocation6_spill] sm:$0xff] }
 0x97f   : > { %2912 = vmatprep.mubr.f32.mxu0 %v9083_v11  ;;  %2849 = vmatpush1.msra.mxu0 %v6992_v14  ;;  %v9087_v61 = vld [vmem:[#allocation7_spill] sm:$0xff]  ;;  %v9088_v6 = vld [vmem:[#allocation12_spill] sm:$0xff]  ;;  %v9090_v49 = vld [vmem:[#allocation9_spill] sm:$0xff] }
 0x980   : > { %6154 = vmatprep.subr.mxu1 %v9083_v11  ;;  %2850 = vmatprep.subr.mxu0 %v6995_v15  ;;  %v2839_v62 = vrot.slane %v2832_v10, %v7208_v9  ;;  %v9089_v0 = vld [vmem:[#allocation8_spill] sm:$0xff]  ;;  %v9091_v51 = vld [vmem:[#allocation13_spill] sm:$0xff]  ;;  %v9092_v12 = vld [vmem:[#allocation10_spill] sm:$0xff] }
 0x981   : > { %6155 = vmatpush3.msra.mxu1 %v7046_v28  ;;  %2851 = vmatpush1.msra.mxu0 %v6999_v16  ;;  %v9093_v8 = vld [vmem:[#allocation14_spill] sm:$0xff]  ;;  %v9094_v4 = vld [vmem:[#allocation15_spill] sm:$0xff] }
 0x982   : > { %6156 = vmatprep.subr.mxu1 %v9083_v11  ;;  %2852 = vmatprep.subr.mxu0 %v7004_v18  ;;  %v2846_v55 = vrot.slane %v2839_v62, %v7208_v9  ;;  %v5514_v17 = vld [vmem:[%s6983_s24 + $0x18] ss:$8 sm:$0x7]  ;;  %v5516_v2 = vld [vmem:[%s6983_s24 + $0x7] ss:$8 sm:$0x7] }
 0x983   : > { %6157 = vmatpush3.msra.mxu1 %v7049_v29  ;;  %2853 = vmatpush1.msra.mxu0 %v7009_v19  ;;  %v5515_v57 = vld [vmem:[%s6983_s24 + $0x48] ss:$8 sm:$0x7]  ;;  %v5517_v10 = vld [vmem:[%s6983_s24 + $0x37] ss:$8 sm:$0x7] }
 0x984   : > { %6158 = vmatprep.subr.mxu1 %v9083_v11  ;;  %2854 = vmatprep.subr.mxu0 %v7015_v20 }
 0x985   : > { %6159 = vmatpush3.msra.mxu1 %v7062_v32  ;;  %2855 = vmatpush1.msra.mxu0 %v7019_v21 }
 0x986   : > { %6160 = vmatprep.subr.mxu1 %v9083_v11  ;;  %2856 = vmatprep.subr.mxu0 %v7023_v22 }
 0x987   : > { %6161 = vmatpush3.msra.mxu1 %v7075_v35  ;;  %2857 = vmatpush1.msra.mxu0 %v7027_v23 }
 0x988   : > { %6162 = vmatprep.subr.mxu1 %v9083_v11  ;;  %2858 = vmatprep.subr.mxu0 %v7031_v24 }
 0x989   : > { %6163 = vmatpush3.msra.mxu1 %v7088_v38  ;;  %2859 = vmatpush1.msra.mxu0 %v7035_v25 }
 0x98a   : > { %6164 = vmatprep.subr.mxu1 %v9083_v11  ;;  %2860 = vmatprep.subr.mxu0 %v7039_v26 }
 0x98b   : > { %6165 = vmatpush3.msra.mxu1 %v7101_v41  ;;  %2861 = vmatpush1.msra.mxu0 %v7043_v27 }
 0x98c   : > { %6166 = vmatprep.subr.mxu1 %v9083_v11  ;;  %2862 = vmatprep.subr.mxu0 %v7053_v30 }
 0x98d   : > { %6167 = vmatpush3.msra.mxu1 %v7114_v44  ;;  %2863 = vmatpush1.msra.mxu0 %v7058_v31 }
 0x98e   : > { %6168 = vmatprep.subr.mxu1 %v9083_v11  ;;  %2864 = vmatprep.subr.mxu0 %v7066_v33 }
 0x98f   : > { %6169 = vmatpush3.msra.mxu1 %v7127_v47  ;;  %2865 = vmatpush1.msra.mxu0 %v7071_v34 }
 0x990   : > { %6170 = vmatprep.subr.mxu1 %v9083_v11  ;;  %2866 = vmatprep.subr.mxu0 %v7079_v36 }
 0x991   : > { %6171 = vmatpush3.msra.mxu1 %v7140_v50  ;;  %2867 = vmatpush1.msra.mxu0 %v7084_v37 }
 0x992   : > { %6172 = vmatprep.subr.mxu1 %v9083_v11  ;;  %2868 = vmatprep.subr.mxu0 %v7092_v39 }
 0x993   : > { %6173 = vmatpush3.msra.mxu1 %v7153_v53  ;;  %2869 = vmatpush1.msra.mxu0 %v7097_v40 }
 0x994   : > { %6174 = vmatprep.subr.mxu1 %v9083_v11  ;;  %2870 = vmatprep.subr.mxu0 %v7105_v42 }
 0x995   : > { %6175 = vmatpush3.msra.mxu1 %v7166_v56  ;;  %2871 = vmatpush1.msra.mxu0 %v7110_v43 }
 0x996   : > { %6176 = vmatprep.subr.mxu1 %v9083_v11  ;;  %2872 = vmatprep.subr.mxu0 %v7118_v45 }
 0x997   : > { %6177 = vmatpush3.msra.mxu1 %v7175_v58  ;;  %2873 = vmatpush1.msra.mxu0 %v7123_v46 }
 0x998   : > { %6178 = vmatprep.subr.mxu1 %v9083_v11  ;;  %2874 = vmatprep.subr.mxu0 %v9084_v63  ;;  %v9095_v63 = vld [vmem:[#allocation16_spill] sm:$0xff] }
 0x999   : > { %6179 = vmatpush3.msra.mxu1 %v9085_v52  ;;  %2875 = vmatpush1.msra.mxu0 %v9086_v1 }
 0x99a   : > { %6180 = vmatprep.subr.mxu1 %v9083_v11  ;;  %2876 = vmatprep.subr.mxu0 %v9087_v61  ;;  %v2828_v61 = vsel %vm7212_vm1, %v5514_v17, %v5516_v2 }
 0x99b   : > { %6181 = vmatpush3.msra.mxu1 %v9088_v6  ;;  %2877 = vmatpush1.msra.mxu0 %v9089_v0 }
 0x99c   : > { %6182 = vmatprep.subr.mxu1 %v9083_v11  ;;  %2878 = vmatprep.subr.mxu0 %v9090_v49  ;;  %v2829_v49 = vsel %vm7212_vm1, %v5515_v57, %v5517_v10 }
 0x99d   : > { %6183 = vmatpush3.msra.mxu1 %v9091_v51  ;;  %2879 = vmatpush1.msra.mxu0 %v9092_v12  ;;  %v3031_v2 = vrot.slane %v2829_v49, 1 }
 0x99e   : > { %6184 = vmatprep.subr.mxu1 %v9083_v11  ;;  %2913 = vmatmul.mubr.f32.vlgmr.msra.gmra.mxu0 %v2846_v55 }
 0x99f   : > { %6185 = vmatpush3.msra.mxu1 %v9093_v8  ;;  %6186 = vmatprep.mubr.msk.f32.mxu1 %vm6877_vm0, %v9083_v11 }
 0x9a0   : > { %6187 = vmatmul.mubr.f32.vlgmr.msra.gmra.mxu1 %v2846_v55 }
 0xa5e   : > { %v2914_v54 = vpop.f32.mrf.mxu0 }
 0xa5f   : > { %v2915_v59 = vadd.f32 %v2914_v54, %v9094_v4 }
 0xa60   : > { %v2916_v48 = vpop.f32.mrf.mxu0  ;;  %v2985_v5 = vpop.f32.mrf.mxu1 }
 0xa61   : > { %v2996_v62 = vrot.slane %v2915_v59, %v7208_v9  ;;  %v2917_v52 = vadd.f32 %v2916_v48, %v9095_v63  ;;  %v3030_v59 = vrot.slane %v2828_v61, 1 }
 0xa62   : > { %v6188_v6 = vpop.f32.mrf.mxu1 }
 0xa63   : > { %v2997_v0 = vcombine.high %v2996_v62, %v2996_v62  ;;  %v3004_v11 = vrot.slane %v2996_v62, %v7208_v9  ;;  %v3041_v55 = vrot.slane %v2917_v52, %v7208_v9 }
 0xa65   : > { %v3011_v51 = vrot.slane %v2997_v0, %v7208_v9  ;;  %v3014_v12 = vadd.f32 %v3004_v11, %v2828_v61  ;;  %v3042_v8 = vcombine.high %v3041_v55, %v3041_v55  ;;  %v3049_v48 = vrot.slane %v3041_v55, %v7208_v9 }
 0xa67   : > { %v3015_v54 = vadd.f32 %v3011_v51, %v2829_v49  ;;  %v5518_v4 = vmul.f32 -1.442695, %v3014_v12  ;;  %v3056_v63 = vrot.slane %v3042_v8, %v7208_v9  ;;  %v3059_v62 = vadd.f32 %v3049_v48, %v3030_v59 }
 0xa68   : > { %v2986_v51 = vadd.f32 %v2985_v5, %v7232_v7 }
 0xa69   : > { %6659 = vpow2.f32 %v5518_v4  ;;  %v5519_v17 = vmul.f32 -1.442695, %v3015_v54  ;;  %v3060_v52 = vadd.f32 %v3056_v63, %v3031_v2  ;;  %v5520_v6 = vmul.f32 -1.442695, %v3059_v62 }
 0xa6a   : > { %v3080_v55 = vrot.slane %v2986_v51, %v7208_v9  ;;  %v3100_v2 = vrot.slane %v2828_v61, 2 }
 0xa6b   : > { %6661 = vpow2.f32 %v5519_v17  ;;  %v5521_v1 = vmul.f32 -1.442695, %v3060_v52  ;;  %v3101_v52 = vrot.slane %v2829_v49, 2 }
 0xa6c   : > { %6663 = vpow2.f32 %v5520_v6  ;;  %v3081_v54 = vcombine.high %v3080_v55, %v3080_v55  ;;  %v3088_v59 = vrot.slane %v3080_v55, %v7208_v9 }
 0xa6d   : > { %6665 = vpow2.f32 %v5521_v1 }
 0xa6e   : > { %v3095_v17 = vrot.slane %v3081_v54, %v7208_v9 }
 0xa76   : > { %v6660_v57 = vpop.eup %6659 }
 0xa77   : > { %v3022_v10 = vadd.f32 1.0, %v6660_v57 }
 0xa78   : > { %v6662_v0 = vpop.eup %6661 }
 0xa79   : > { %v3023_v11 = vadd.f32 1.0, %v6662_v0  ;;  %6667 = vrcp.f32 %v3022_v10  ;;  %v6664_v12 = vpop.eup %6663 }
 0xa7a   : > { %v6666_v8 = vpop.eup %6665  ;;  %v3067_v4 = vadd.f32 1.0, %v6664_v12 }
 0xa7b   : > { %6669 = vrcp.f32 %v3023_v11  ;;  %v3068_v48 = vadd.f32 1.0, %v6666_v8 }
 0xa7c   : > { %6671 = vrcp.f32 %v3067_v4 }
 0xa7d   : > { %6673 = vrcp.f32 %v3068_v48 }
 0xa86   : > { %v6668_v63 = vpop.eup %6667 }
 0xa87   : > { %v3098_v62 = vmul.f32 %v6668_v63, %v3088_v59 }
 0xa88   : > { %v6670_v6 = vpop.eup %6669 }
 0xa89   : > { %v3099_v5 = vmul.f32 %v6670_v6, %v3095_v17  ;;  %v3104_v1 = vadd.f32 %v3100_v2, %v3098_v62  ;;  %v6672_v10 = vpop.eup %6671 }
 0xa8a   : > { %v6674_v0 = vpop.eup %6673  ;;  %v3108_v11 = vsub.f32 1.0, %v6672_v10  ;;  %v3112_v12 = vmul.f32 %v6672_v10, %v8006_v60 }
 0xa8b   : > { %v3105_v57 = vadd.f32 %v3101_v52, %v3099_v5  ;;  %6675 = vtanh.f32 %v3104_v1  ;;  %v3109_v55 = vsub.f32 1.0, %v6674_v0  ;;  %v3113_v8 = vmul.f32 %v6674_v0, %v8008_v3 }
 0xa8d   : > { %6677 = vtanh.f32 %v3105_v57 }
 0xa98   : > { %v6676_v51 = vpop.eup %6675 }
 0xa99   : > { %v3110_v54 = vmul.f32 %v6676_v51, %v3108_v11  ;;  %3118 = sbr.rel (%p5442_p1) target bundleno = 2720 (0xaa0), region = 127 }
 0xa9a   : > { %v6678_v61 = vpop.eup %6677 }
 0xa9b   : > { %v3111_v4 = vmul.f32 %v6678_v61, %v3109_v55  ;;  %v8115_v49 = vadd.f32 %v3112_v12, %v3110_v54 }
 0xa9d   : > { %v8117_v59 = vadd.f32 %v3113_v8, %v3111_v4 }
 0xa9e   : > { %3119 = vst [vmem:[%s6985_s12 + $0x8] sm:$0x1] %v8115_v49 }
 0xa9f   : > { %3120 = vst [vmem:[%s6985_s12 + $0x18] sm:$0x1] %v8117_v59 }
 0xaa0 PF: > { %3123 = sbr.rel (%p294_p13) target bundleno = 2726 (0xaa6), region = 131 }
 0xaa5   : > { %3124 = vst [vmem:[%s6985_s12 + $0x7] sm:$0x1] %v8115_v49  ;;  %3125 = vst [vmem:[%s6985_s12 + $0x17] sm:$0x1] %v8117_v59 }
 0xaa6 PF: > { %3150 = vmatprep.subr.mxu0 %v6989_v13  ;;  %v9097_v60 = vmov 0.0   ;;  %v3134_v3 = vcombine.low %v8115_v49, %v8117_v59  ;;  %v9098_v17 = vld [vmem:[#allocation5_spill] sm:$0xff]  ;;  %v9099_v2 = vld [vmem:[#allocation11_spill] sm:$0xff]  ;;  %v9100_v63 = vld [vmem:[#allocation6_spill] sm:$0xff] }
 0xaa7   : > { %3214 = vmatprep.mubr.f32.mxu0 %v9097_v60  ;;  %3151 = vmatpush1.msra.mxu0 %v6992_v14  ;;  %v9101_v62 = vld [vmem:[#allocation7_spill] sm:$0xff]  ;;  %v9102_v6 = vld [vmem:[#allocation12_spill] sm:$0xff]  ;;  %v9104_v1 = vld [vmem:[#allocation9_spill] sm:$0xff] }
 0xaa8   : > { %6189 = vmatprep.subr.mxu1 %v9097_v60  ;;  %3152 = vmatprep.subr.mxu0 %v6995_v15  ;;  %v3141_v48 = vrot.slane %v3134_v3, %v7208_v9  ;;  %v9103_v5 = vld [vmem:[#allocation8_spill] sm:$0xff]  ;;  %v9105_v57 = vld [vmem:[#allocation13_spill] sm:$0xff]  ;;  %v9106_v10 = vld [vmem:[#allocation10_spill] sm:$0xff] }
 0xaa9   : > { %6190 = vmatpush3.msra.mxu1 %v7046_v28  ;;  %3153 = vmatpush1.msra.mxu0 %v6999_v16  ;;  %v9107_v0 = vld [vmem:[#allocation14_spill] sm:$0xff]  ;;  %v9108_v12 = vld [vmem:[#allocation15_spill] sm:$0xff] }
 0xaaa   : > { %6191 = vmatprep.subr.mxu1 %v9097_v60  ;;  %3154 = vmatprep.subr.mxu0 %v7004_v18  ;;  %v3148_v52 = vrot.slane %v3141_v48, %v7208_v9  ;;  %v5524_v51 = vld [vmem:[%s6983_s24 + $0x19] ss:$8 sm:$0x7]  ;;  %v5526_v55 = vld [vmem:[%s6983_s24 + $0x6] ss:$8 sm:$0x7] }
 0xaab   : > { %6192 = vmatpush3.msra.mxu1 %v7049_v29  ;;  %3155 = vmatpush1.msra.mxu0 %v7009_v19  ;;  %v5525_v4 = vld [vmem:[%s6983_s24 + $0x49] ss:$8 sm:$0x7]  ;;  %v5527_v3 = vld [vmem:[%s6983_s24 + $0x36] ss:$8 sm:$0x7] }
 0xaac   : > { %6193 = vmatprep.subr.mxu1 %v9097_v60  ;;  %3156 = vmatprep.subr.mxu0 %v7015_v20 }
 0xaad   : > { %6194 = vmatpush3.msra.mxu1 %v7062_v32  ;;  %3157 = vmatpush1.msra.mxu0 %v7019_v21 }
 0xaae   : > { %6195 = vmatprep.subr.mxu1 %v9097_v60  ;;  %3158 = vmatprep.subr.mxu0 %v7023_v22 }
 0xaaf   : > { %6196 = vmatpush3.msra.mxu1 %v7075_v35  ;;  %3159 = vmatpush1.msra.mxu0 %v7027_v23 }
 0xab0   : > { %6197 = vmatprep.subr.mxu1 %v9097_v60  ;;  %3160 = vmatprep.subr.mxu0 %v7031_v24 }
 0xab1   : > { %6198 = vmatpush3.msra.mxu1 %v7088_v38  ;;  %3161 = vmatpush1.msra.mxu0 %v7035_v25 }
 0xab2   : > { %6199 = vmatprep.subr.mxu1 %v9097_v60  ;;  %3162 = vmatprep.subr.mxu0 %v7039_v26 }
 0xab3   : > { %6200 = vmatpush3.msra.mxu1 %v7101_v41  ;;  %3163 = vmatpush1.msra.mxu0 %v7043_v27 }
 0xab4   : > { %6201 = vmatprep.subr.mxu1 %v9097_v60  ;;  %3164 = vmatprep.subr.mxu0 %v7053_v30 }
 0xab5   : > { %6202 = vmatpush3.msra.mxu1 %v7114_v44  ;;  %3165 = vmatpush1.msra.mxu0 %v7058_v31 }
 0xab6   : > { %6203 = vmatprep.subr.mxu1 %v9097_v60  ;;  %3166 = vmatprep.subr.mxu0 %v7066_v33 }
 0xab7   : > { %6204 = vmatpush3.msra.mxu1 %v7127_v47  ;;  %3167 = vmatpush1.msra.mxu0 %v7071_v34 }
 0xab8   : > { %6205 = vmatprep.subr.mxu1 %v9097_v60  ;;  %3168 = vmatprep.subr.mxu0 %v7079_v36 }
 0xab9   : > { %6206 = vmatpush3.msra.mxu1 %v7140_v50  ;;  %3169 = vmatpush1.msra.mxu0 %v7084_v37 }
 0xaba   : > { %6207 = vmatprep.subr.mxu1 %v9097_v60  ;;  %3170 = vmatprep.subr.mxu0 %v7092_v39 }
 0xabb   : > { %6208 = vmatpush3.msra.mxu1 %v7153_v53  ;;  %3171 = vmatpush1.msra.mxu0 %v7097_v40 }
 0xabc   : > { %6209 = vmatprep.subr.mxu1 %v9097_v60  ;;  %3172 = vmatprep.subr.mxu0 %v7105_v42 }
 0xabd   : > { %6210 = vmatpush3.msra.mxu1 %v7166_v56  ;;  %3173 = vmatpush1.msra.mxu0 %v7110_v43 }
 0xabe   : > { %6211 = vmatprep.subr.mxu1 %v9097_v60  ;;  %3174 = vmatprep.subr.mxu0 %v7118_v45 }
 0xabf   : > { %6212 = vmatpush3.msra.mxu1 %v7175_v58  ;;  %3175 = vmatpush1.msra.mxu0 %v7123_v46 }
 0xac0   : > { %6213 = vmatprep.subr.mxu1 %v9097_v60  ;;  %3176 = vmatprep.subr.mxu0 %v9098_v17  ;;  %v9109_v17 = vld [vmem:[#allocation16_spill] sm:$0xff] }
 0xac1   : > { %6214 = vmatpush3.msra.mxu1 %v9099_v2  ;;  %3177 = vmatpush1.msra.mxu0 %v9100_v63 }
 0xac2   : > { %6215 = vmatprep.subr.mxu1 %v9097_v60  ;;  %3178 = vmatprep.subr.mxu0 %v9101_v62  ;;  %v3130_v62 = vsel %vm7212_vm1, %v5524_v51, %v5526_v55 }
 0xac3   : > { %6216 = vmatpush3.msra.mxu1 %v9102_v6  ;;  %3179 = vmatpush1.msra.mxu0 %v9103_v5 }
 0xac4   : > { %6217 = vmatprep.subr.mxu1 %v9097_v60  ;;  %3180 = vmatprep.subr.mxu0 %v9104_v1  ;;  %v3131_v1 = vsel %vm7212_vm1, %v5525_v4, %v5527_v3 }
 0xac5   : > { %6218 = vmatpush3.msra.mxu1 %v9105_v57  ;;  %3181 = vmatpush1.msra.mxu0 %v9106_v10  ;;  %v3333_v55 = vrot.slane %v3131_v1, 1 }
 0xac6   : > { %6219 = vmatprep.subr.mxu1 %v9097_v60  ;;  %3215 = vmatmul.mubr.f32.vlgmr.msra.gmra.mxu0 %v3148_v52 }
 0xac7   : > { %6220 = vmatpush3.msra.mxu1 %v9107_v0  ;;  %6221 = vmatprep.mubr.msk.f32.mxu1 %vm6877_vm0, %v9097_v60 }
 0xac8   : > { %6222 = vmatmul.mubr.f32.vlgmr.msra.gmra.mxu1 %v3148_v52 }
 0xb86   : > { %v3216_v11 = vpop.f32.mrf.mxu0 }
 0xb87   : > { %v3217_v54 = vadd.f32 %v3216_v11, %v9108_v12 }
 0xb88   : > { %v3218_v61 = vpop.f32.mrf.mxu0  ;;  %v3287_v8 = vpop.f32.mrf.mxu1 }
 0xb89   : > { %v3298_v48 = vrot.slane %v3217_v54, %v7208_v9  ;;  %v3219_v2 = vadd.f32 %v3218_v61, %v9109_v17  ;;  %v3332_v54 = vrot.slane %v3130_v62, 1 }
 0xb8a   : > { %v6223_v6 = vpop.f32.mrf.mxu1 }
 0xb8b   : > { %v3299_v5 = vcombine.high %v3298_v48, %v3298_v48  ;;  %v3306_v60 = vrot.slane %v3298_v48, %v7208_v9  ;;  %v3343_v52 = vrot.slane %v3219_v2, %v7208_v9 }
 0xb8d   : > { %v3313_v57 = vrot.slane %v3299_v5, %v7208_v9  ;;  %v3316_v10 = vadd.f32 %v3306_v60, %v3130_v62  ;;  %v3344_v0 = vcombine.high %v3343_v52, %v3343_v52  ;;  %v3351_v61 = vrot.slane %v3343_v52, %v7208_v9 }
 0xb8f   : > { %v3317_v11 = vadd.f32 %v3313_v57, %v3131_v1  ;;  %v5528_v12 = vmul.f32 -1.442695, %v3316_v10  ;;  %v3358_v17 = vrot.slane %v3344_v0, %v7208_v9  ;;  %v3361_v48 = vadd.f32 %v3351_v61, %v3332_v54 }
 0xb90   : > { %v3288_v57 = vadd.f32 %v3287_v8, %v7232_v7 }
 0xb91   : > { %6679 = vpow2.f32 %v5528_v12  ;;  %v5529_v51 = vmul.f32 -1.442695, %v3317_v11  ;;  %v3362_v2 = vadd.f32 %v3358_v17, %v3333_v55  ;;  %v5530_v6 = vmul.f32 -1.442695, %v3361_v48 }
 0xb92   : > { %v3382_v52 = vrot.slane %v3288_v57, %v7208_v9  ;;  %v3402_v55 = vrot.slane %v3130_v62, 2 }
 0xb93   : > { %6681 = vpow2.f32 %v5529_v51  ;;  %v5531_v63 = vmul.f32 -1.442695, %v3362_v2  ;;  %v3403_v2 = vrot.slane %v3131_v1, 2 }
 0xb94   : > { %6683 = vpow2.f32 %v5530_v6  ;;  %v3383_v11 = vcombine.high %v3382_v52, %v3382_v52  ;;  %v3390_v54 = vrot.slane %v3382_v52, %v7208_v9 }
 0xb95   : > { %6685 = vpow2.f32 %v5531_v63 }
 0xb96   : > { %v3397_v51 = vrot.slane %v3383_v11, %v7208_v9 }
 0xb9e   : > { %v6680_v4 = vpop.eup %6679 }
 0xb9f   : > { %v3324_v3 = vadd.f32 1.0, %v6680_v4 }
 0xba0   : > { %v6682_v5 = vpop.eup %6681 }
 0xba1   : > { %v3325_v60 = vadd.f32 1.0, %v6682_v5  ;;  %6687 = vrcp.f32 %v3324_v3  ;;  %v6684_v10 = vpop.eup %6683 }
 0xba2   : > { %v6686_v0 = vpop.eup %6685  ;;  %v3369_v12 = vadd.f32 1.0, %v6684_v10 }
 0xba3   : > { %6689 = vrcp.f32 %v3325_v60  ;;  %v3370_v61 = vadd.f32 1.0, %v6686_v0 }
 0xba4   : > { %6691 = vrcp.f32 %v3369_v12 }
 0xba5   : > { %6693 = vrcp.f32 %v3370_v61 }
 0xbae   : > { %v6688_v17 = vpop.eup %6687 }
 0xbaf   : > { %v3400_v48 = vmul.f32 %v6688_v17, %v3390_v54 }
 0xbb0   : > { %v6690_v6 = vpop.eup %6689 }
 0xbb1   : > { %v3401_v8 = vmul.f32 %v6690_v6, %v3397_v51  ;;  %v3406_v63 = vadd.f32 %v3402_v55, %v3400_v48  ;;  %v6692_v3 = vpop.eup %6691 }
 0xbb2   : > { %v6694_v5 = vpop.eup %6693  ;;  %v3410_v60 = vsub.f32 1.0, %v6692_v3  ;;  %v3414_v10 = vmul.f32 %v6692_v3, %v8115_v49 }
 0xbb3   : > { %v3407_v4 = vadd.f32 %v3403_v2, %v3401_v8  ;;  %6695 = vtanh.f32 %v3406_v63  ;;  %v3411_v52 = vsub.f32 1.0, %v6694_v5  ;;  %v3415_v0 = vmul.f32 %v6694_v5, %v8117_v59 }
 0xbb5   : > { %6697 = vtanh.f32 %v3407_v4 }
 0xbc0   : > { %v6696_v57 = vpop.eup %6695 }
 0xbc1   : > { %v3412_v11 = vmul.f32 %v6696_v57, %v3410_v60  ;;  %3420 = sbr.rel (%p5442_p1) target bundleno = 3016 (0xbc8), region = 135 }
 0xbc2   : > { %v6698_v62 = vpop.eup %6697 }
 0xbc3   : > { %v3413_v12 = vmul.f32 %v6698_v62, %v3411_v52  ;;  %v8224_v1 = vadd.f32 %v3414_v10, %v3412_v11 }
 0xbc5   : > { %v8226_v54 = vadd.f32 %v3415_v0, %v3413_v12 }
 0xbc6   : > { %3421 = vst [vmem:[%s6985_s12 + $0x9] sm:$0x1] %v8224_v1 }
 0xbc7   : > { %3422 = vst [vmem:[%s6985_s12 + $0x19] sm:$0x1] %v8226_v54 }
 0xbc8 PF: > { %3425 = sbr.rel (%p294_p13) target bundleno = 3022 (0xbce), region = 139 }
 0xbcd   : > { %3426 = vst [vmem:[%s6985_s12 + $0x6] sm:$0x1] %v8224_v1  ;;  %3427 = vst [vmem:[%s6985_s12 + $0x16] sm:$0x1] %v8226_v54 }
 0xbce PF: > { %3452 = vmatprep.subr.mxu0 %v6989_v13  ;;  %v9111_v49 = vmov 0.0   ;;  %v3436_v59 = vcombine.low %v8224_v1, %v8226_v54  ;;  %v9112_v51 = vld [vmem:[#allocation5_spill] sm:$0xff]  ;;  %v9113_v55 = vld [vmem:[#allocation11_spill] sm:$0xff]  ;;  %v9114_v17 = vld [vmem:[#allocation6_spill] sm:$0xff] }
 0xbcf   : > { %3516 = vmatprep.mubr.f32.mxu0 %v9111_v49  ;;  %3453 = vmatpush1.msra.mxu0 %v6992_v14  ;;  %v9115_v48 = vld [vmem:[#allocation7_spill] sm:$0xff]  ;;  %v9116_v6 = vld [vmem:[#allocation12_spill] sm:$0xff]  ;;  %v9118_v63 = vld [vmem:[#allocation9_spill] sm:$0xff] }
 0xbd0   : > { %6224 = vmatprep.subr.mxu1 %v9111_v49  ;;  %3454 = vmatprep.subr.mxu0 %v6995_v15  ;;  %v3443_v61 = vrot.slane %v3436_v59, %v7208_v9  ;;  %v9117_v8 = vld [vmem:[#allocation8_spill] sm:$0xff]  ;;  %v9119_v4 = vld [vmem:[#allocation13_spill] sm:$0xff]  ;;  %v9120_v3 = vld [vmem:[#allocation10_spill] sm:$0xff] }
 0xbd1   : > { %6225 = vmatpush3.msra.mxu1 %v7046_v28  ;;  %3455 = vmatpush1.msra.mxu0 %v6999_v16  ;;  %v9121_v5 = vld [vmem:[#allocation14_spill] sm:$0xff]  ;;  %v9122_v10 = vld [vmem:[#allocation15_spill] sm:$0xff] }
 0xbd2   : > { %6226 = vmatprep.subr.mxu1 %v9111_v49  ;;  %3456 = vmatprep.subr.mxu0 %v7004_v18  ;;  %v3450_v2 = vrot.slane %v3443_v61, %v7208_v9  ;;  %v5534_v57 = vld [vmem:[%s6983_s24 + $0x1a] ss:$8 sm:$0x7]  ;;  %v5536_v52 = vld [vmem:[%s6983_s24 + $0x5] ss:$8 sm:$0x7] }
 0xbd3   : > { %6227 = vmatpush3.msra.mxu1 %v7049_v29  ;;  %3457 = vmatpush1.msra.mxu0 %v7009_v19  ;;  %v5535_v12 = vld [vmem:[%s6983_s24 + $0x4a] ss:$8 sm:$0x7]  ;;  %v5537_v59 = vld [vmem:[%s6983_s24 + $0x35] ss:$8 sm:$0x7] }
 0xbd4   : > { %6228 = vmatprep.subr.mxu1 %v9111_v49  ;;  %3458 = vmatprep.subr.mxu0 %v7015_v20 }
 0xbd5   : > { %6229 = vmatpush3.msra.mxu1 %v7062_v32  ;;  %3459 = vmatpush1.msra.mxu0 %v7019_v21 }
 0xbd6   : > { %6230 = vmatprep.subr.mxu1 %v9111_v49  ;;  %3460 = vmatprep.subr.mxu0 %v7023_v22 }
 0xbd7   : > { %6231 = vmatpush3.msra.mxu1 %v7075_v35  ;;  %3461 = vmatpush1.msra.mxu0 %v7027_v23 }
 0xbd8   : > { %6232 = vmatprep.subr.mxu1 %v9111_v49  ;;  %3462 = vmatprep.subr.mxu0 %v7031_v24 }
 0xbd9   : > { %6233 = vmatpush3.msra.mxu1 %v7088_v38  ;;  %3463 = vmatpush1.msra.mxu0 %v7035_v25 }
 0xbda   : > { %6234 = vmatprep.subr.mxu1 %v9111_v49  ;;  %3464 = vmatprep.subr.mxu0 %v7039_v26 }
 0xbdb   : > { %6235 = vmatpush3.msra.mxu1 %v7101_v41  ;;  %3465 = vmatpush1.msra.mxu0 %v7043_v27 }
 0xbdc   : > { %6236 = vmatprep.subr.mxu1 %v9111_v49  ;;  %3466 = vmatprep.subr.mxu0 %v7053_v30 }
 0xbdd   : > { %6237 = vmatpush3.msra.mxu1 %v7114_v44  ;;  %3467 = vmatpush1.msra.mxu0 %v7058_v31 }
 0xbde   : > { %6238 = vmatprep.subr.mxu1 %v9111_v49  ;;  %3468 = vmatprep.subr.mxu0 %v7066_v33 }
 0xbdf   : > { %6239 = vmatpush3.msra.mxu1 %v7127_v47  ;;  %3469 = vmatpush1.msra.mxu0 %v7071_v34 }
 0xbe0   : > { %6240 = vmatprep.subr.mxu1 %v9111_v49  ;;  %3470 = vmatprep.subr.mxu0 %v7079_v36 }
 0xbe1   : > { %6241 = vmatpush3.msra.mxu1 %v7140_v50  ;;  %3471 = vmatpush1.msra.mxu0 %v7084_v37 }
 0xbe2   : > { %6242 = vmatprep.subr.mxu1 %v9111_v49  ;;  %3472 = vmatprep.subr.mxu0 %v7092_v39 }
 0xbe3   : > { %6243 = vmatpush3.msra.mxu1 %v7153_v53  ;;  %3473 = vmatpush1.msra.mxu0 %v7097_v40 }
 0xbe4   : > { %6244 = vmatprep.subr.mxu1 %v9111_v49  ;;  %3474 = vmatprep.subr.mxu0 %v7105_v42 }
 0xbe5   : > { %6245 = vmatpush3.msra.mxu1 %v7166_v56  ;;  %3475 = vmatpush1.msra.mxu0 %v7110_v43 }
 0xbe6   : > { %6246 = vmatprep.subr.mxu1 %v9111_v49  ;;  %3476 = vmatprep.subr.mxu0 %v7118_v45 }
 0xbe7   : > { %6247 = vmatpush3.msra.mxu1 %v7175_v58  ;;  %3477 = vmatpush1.msra.mxu0 %v7123_v46 }
 0xbe8   : > { %6248 = vmatprep.subr.mxu1 %v9111_v49  ;;  %3478 = vmatprep.subr.mxu0 %v9112_v51  ;;  %v9123_v51 = vld [vmem:[#allocation16_spill] sm:$0xff] }
 0xbe9   : > { %6249 = vmatpush3.msra.mxu1 %v9113_v55  ;;  %3479 = vmatpush1.msra.mxu0 %v9114_v17 }
 0xbea   : > { %6250 = vmatprep.subr.mxu1 %v9111_v49  ;;  %3480 = vmatprep.subr.mxu0 %v9115_v48  ;;  %v3432_v48 = vsel %vm7212_vm1, %v5534_v57, %v5536_v52 }
 0xbeb   : > { %6251 = vmatpush3.msra.mxu1 %v9116_v6  ;;  %3481 = vmatpush1.msra.mxu0 %v9117_v8 }
 0xbec   : > { %6252 = vmatprep.subr.mxu1 %v9111_v49  ;;  %3482 = vmatprep.subr.mxu0 %v9118_v63  ;;  %v3433_v63 = vsel %vm7212_vm1, %v5535_v12, %v5537_v59 }
 0xbed   : > { %6253 = vmatpush3.msra.mxu1 %v9119_v4  ;;  %3483 = vmatpush1.msra.mxu0 %v9120_v3  ;;  %v3635_v52 = vrot.slane %v3433_v63, 1 }
 0xbee   : > { %6254 = vmatprep.subr.mxu1 %v9111_v49  ;;  %3517 = vmatmul.mubr.f32.vlgmr.msra.gmra.mxu0 %v3450_v2 }
 0xbef   : > { %6255 = vmatpush3.msra.mxu1 %v9121_v5  ;;  %6256 = vmatprep.mubr.msk.f32.mxu1 %vm6877_vm0, %v9111_v49 }
 0xbf0   : > { %6257 = vmatmul.mubr.f32.vlgmr.msra.gmra.mxu1 %v3450_v2 }
 0xcae   : > { %v3518_v60 = vpop.f32.mrf.mxu0 }
 0xcaf   : > { %v3519_v11 = vadd.f32 %v3518_v60, %v9122_v10 }
 0xcb0   : > { %v3520_v62 = vpop.f32.mrf.mxu0  ;;  %v3589_v0 = vpop.f32.mrf.mxu1 }
 0xcb1   : > { %v3600_v61 = vrot.slane %v3519_v11, %v7208_v9  ;;  %v3521_v55 = vadd.f32 %v3520_v62, %v9123_v51  ;;  %v3634_v11 = vrot.slane %v3432_v48, 1 }
 0xcb2   : > { %v6258_v6 = vpop.f32.mrf.mxu1 }
 0xcb3   : > { %v3601_v8 = vcombine.high %v3600_v61, %v3600_v61  ;;  %v3608_v49 = vrot.slane %v3600_v61, %v7208_v9  ;;  %v3645_v2 = vrot.slane %v3521_v55, %v7208_v9 }
 0xcb5   : > { %v3615_v4 = vrot.slane %v3601_v8, %v7208_v9  ;;  %v3618_v3 = vadd.f32 %v3608_v49, %v3432_v48  ;;  %v3646_v5 = vcombine.high %v3645_v2, %v3645_v2  ;;  %v3653_v62 = vrot.slane %v3645_v2, %v7208_v9 }
 0xcb7   : > { %v3619_v60 = vadd.f32 %v3615_v4, %v3433_v63  ;;  %v5538_v10 = vmul.f32 -1.442695, %v3618_v3  ;;  %v3660_v51 = vrot.slane %v3646_v5, %v7208_v9  ;;  %v3663_v61 = vadd.f32 %v3653_v62, %v3634_v11 }
 0xcb8   : > { %v3590_v4 = vadd.f32 %v3589_v0, %v7232_v7 }
 0xcb9   : > { %6699 = vpow2.f32 %v5538_v10  ;;  %v5539_v57 = vmul.f32 -1.442695, %v3619_v60  ;;  %v3664_v55 = vadd.f32 %v3660_v51, %v3635_v52  ;;  %v5540_v6 = vmul.f32 -1.442695, %v3663_v61 }
 0xcba   : > { %v3684_v2 = vrot.slane %v3590_v4, %v7208_v9  ;;  %v3704_v52 = vrot.slane %v3432_v48, 2 }
 0xcbb   : > { %6701 = vpow2.f32 %v5539_v57  ;;  %v5541_v17 = vmul.f32 -1.442695, %v3664_v55  ;;  %v3705_v55 = vrot.slane %v3433_v63, 2 }
 0xcbc   : > { %6703 = vpow2.f32 %v5540_v6  ;;  %v3685_v60 = vcombine.high %v3684_v2, %v3684_v2  ;;  %v3692_v11 = vrot.slane %v3684_v2, %v7208_v9 }
 0xcbd   : > { %6705 = vpow2.f32 %v5541_v17 }
 0xcbe   : > { %v3699_v57 = vrot.slane %v3685_v60, %v7208_v9 }
 0xcc6   : > { %v6700_v12 = vpop.eup %6699 }
 0xcc7   : > { %v3626_v59 = vadd.f32 1.0, %v6700_v12 }
 0xcc8   : > { %v6702_v8 = vpop.eup %6701 }
 0xcc9   : > { %v3627_v49 = vadd.f32 1.0, %v6702_v8  ;;  %6707 = vrcp.f32 %v3626_v59  ;;  %v6704_v3 = vpop.eup %6703 }
 0xcca   : > { %v6706_v5 = vpop.eup %6705  ;;  %v3671_v10 = vadd.f32 1.0, %v6704_v3 }
 0xccb   : > { %6709 = vrcp.f32 %v3627_v49  ;;  %v3672_v62 = vadd.f32 1.0, %v6706_v5 }
 0xccc   : > { %6711 = vrcp.f32 %v3671_v10 }
 0xccd   : > { %6713 = vrcp.f32 %v3672_v62 }
 0xcd6   : > { %v6708_v51 = vpop.eup %6707 }
 0xcd7   : > { %v3702_v61 = vmul.f32 %v6708_v51, %v3692_v11 }
 0xcd8   : > { %v6710_v6 = vpop.eup %6709 }
 0xcd9   : > { %v3703_v0 = vmul.f32 %v6710_v6, %v3699_v57  ;;  %v3708_v17 = vadd.f32 %v3704_v52, %v3702_v61  ;;  %v6712_v59 = vpop.eup %6711 }
 0xcda   : > { %v6714_v8 = vpop.eup %6713  ;;  %v3712_v49 = vsub.f32 1.0, %v6712_v59  ;;  %v3716_v3 = vmul.f32 %v6712_v59, %v8224_v1 }
 0xcdb   : > { %v3709_v12 = vadd.f32 %v3705_v55, %v3703_v0  ;;  %6715 = vtanh.f32 %v3708_v17  ;;  %v3713_v2 = vsub.f32 1.0, %v6714_v8  ;;  %v3717_v5 = vmul.f32 %v6714_v8, %v8226_v54 }
 0xcdd   : > { %6717 = vtanh.f32 %v3709_v12 }
 0xce8   : > { %v6716_v4 = vpop.eup %6715 }
 0xce9   : > { %v3714_v60 = vmul.f32 %v6716_v4, %v3712_v49  ;;  %3722 = sbr.rel (%p5442_p1) target bundleno = 3312 (0xcf0), region = 143 }
 0xcea   : > { %v6718_v48 = vpop.eup %6717 }
 0xceb   : > { %v3715_v10 = vmul.f32 %v6718_v48, %v3713_v2  ;;  %v8333_v63 = vadd.f32 %v3716_v3, %v3714_v60 }
 0xced   : > { %v8335_v11 = vadd.f32 %v3717_v5, %v3715_v10 }
 0xcee   : > { %3723 = vst [vmem:[%s6985_s12 + $0xa] sm:$0x1] %v8333_v63 }
 0xcef   : > { %3724 = vst [vmem:[%s6985_s12 + $0x1a] sm:$0x1] %v8335_v11 }
 0xcf0 PF: > { %3727 = sbr.rel (%p294_p13) target bundleno = 3318 (0xcf6), region = 147 }
 0xcf5   : > { %3728 = vst [vmem:[%s6985_s12 + $0x5] sm:$0x1] %v8333_v63  ;;  %3729 = vst [vmem:[%s6985_s12 + $0x15] sm:$0x1] %v8335_v11 }
 0xcf6 PF: > { %3754 = vmatprep.subr.mxu0 %v6989_v13  ;;  %v9125_v1 = vmov 0.0   ;;  %v3738_v54 = vcombine.low %v8333_v63, %v8335_v11  ;;  %v9126_v57 = vld [vmem:[#allocation5_spill] sm:$0xff]  ;;  %v9127_v52 = vld [vmem:[#allocation11_spill] sm:$0xff]  ;;  %v9128_v51 = vld [vmem:[#allocation6_spill] sm:$0xff] }
 0xcf7   : > { %3818 = vmatprep.mubr.f32.mxu0 %v9125_v1  ;;  %3755 = vmatpush1.msra.mxu0 %v6992_v14  ;;  %v9129_v61 = vld [vmem:[#allocation7_spill] sm:$0xff]  ;;  %v9130_v6 = vld [vmem:[#allocation12_spill] sm:$0xff]  ;;  %v9132_v17 = vld [vmem:[#allocation9_spill] sm:$0xff] }
 0xcf8   : > { %6259 = vmatprep.subr.mxu1 %v9125_v1  ;;  %3756 = vmatprep.subr.mxu0 %v6995_v15  ;;  %v3745_v62 = vrot.slane %v3738_v54, %v7208_v9  ;;  %v9131_v0 = vld [vmem:[#allocation8_spill] sm:$0xff]  ;;  %v9133_v12 = vld [vmem:[#allocation13_spill] sm:$0xff]  ;;  %v9134_v59 = vld [vmem:[#allocation10_spill] sm:$0xff] }
 0xcf9   : > { %6260 = vmatpush3.msra.mxu1 %v7046_v28  ;;  %3757 = vmatpush1.msra.mxu0 %v6999_v16  ;;  %v9135_v8 = vld [vmem:[#allocation14_spill] sm:$0xff]  ;;  %v9136_v3 = vld [vmem:[#allocation15_spill] sm:$0xff] }
 0xcfa   : > { %6261 = vmatprep.subr.mxu1 %v9125_v1  ;;  %3758 = vmatprep.subr.mxu0 %v7004_v18  ;;  %v3752_v55 = vrot.slane %v3745_v62, %v7208_v9  ;;  %v5544_v4 = vld [vmem:[%s6983_s24 + $0x1b] ss:$8 sm:$0x7]  ;;  %v5546_v2 = vld [vmem:[%s6983_s24 + $0x4] ss:$8 sm:$0x7] }
 0xcfb   : > { %6262 = vmatpush3.msra.mxu1 %v7049_v29  ;;  %3759 = vmatpush1.msra.mxu0 %v7009_v19  ;;  %v5545_v10 = vld [vmem:[%s6983_s24 + $0x4b] ss:$8 sm:$0x7]  ;;  %v5547_v54 = vld [vmem:[%s6983_s24 + $0x34] ss:$8 sm:$0x7] }
 0xcfc   : > { %6263 = vmatprep.subr.mxu1 %v9125_v1  ;;  %3760 = vmatprep.subr.mxu0 %v7015_v20 }
 0xcfd   : > { %6264 = vmatpush3.msra.mxu1 %v7062_v32  ;;  %3761 = vmatpush1.msra.mxu0 %v7019_v21 }
 0xcfe   : > { %6265 = vmatprep.subr.mxu1 %v9125_v1  ;;  %3762 = vmatprep.subr.mxu0 %v7023_v22 }
 0xcff   : > { %6266 = vmatpush3.msra.mxu1 %v7075_v35  ;;  %3763 = vmatpush1.msra.mxu0 %v7027_v23 }
 0xd00   : > { %6267 = vmatprep.subr.mxu1 %v9125_v1  ;;  %3764 = vmatprep.subr.mxu0 %v7031_v24 }
 0xd01   : > { %6268 = vmatpush3.msra.mxu1 %v7088_v38  ;;  %3765 = vmatpush1.msra.mxu0 %v7035_v25 }
 0xd02   : > { %6269 = vmatprep.subr.mxu1 %v9125_v1  ;;  %3766 = vmatprep.subr.mxu0 %v7039_v26 }
 0xd03   : > { %6270 = vmatpush3.msra.mxu1 %v7101_v41  ;;  %3767 = vmatpush1.msra.mxu0 %v7043_v27 }
 0xd04   : > { %6271 = vmatprep.subr.mxu1 %v9125_v1  ;;  %3768 = vmatprep.subr.mxu0 %v7053_v30 }
 0xd05   : > { %6272 = vmatpush3.msra.mxu1 %v7114_v44  ;;  %3769 = vmatpush1.msra.mxu0 %v7058_v31 }
 0xd06   : > { %6273 = vmatprep.subr.mxu1 %v9125_v1  ;;  %3770 = vmatprep.subr.mxu0 %v7066_v33 }
 0xd07   : > { %6274 = vmatpush3.msra.mxu1 %v7127_v47  ;;  %3771 = vmatpush1.msra.mxu0 %v7071_v34 }
 0xd08   : > { %6275 = vmatprep.subr.mxu1 %v9125_v1  ;;  %3772 = vmatprep.subr.mxu0 %v7079_v36 }
 0xd09   : > { %6276 = vmatpush3.msra.mxu1 %v7140_v50  ;;  %3773 = vmatpush1.msra.mxu0 %v7084_v37 }
 0xd0a   : > { %6277 = vmatprep.subr.mxu1 %v9125_v1  ;;  %3774 = vmatprep.subr.mxu0 %v7092_v39 }
 0xd0b   : > { %6278 = vmatpush3.msra.mxu1 %v7153_v53  ;;  %3775 = vmatpush1.msra.mxu0 %v7097_v40 }
 0xd0c   : > { %6279 = vmatprep.subr.mxu1 %v9125_v1  ;;  %3776 = vmatprep.subr.mxu0 %v7105_v42 }
 0xd0d   : > { %6280 = vmatpush3.msra.mxu1 %v7166_v56  ;;  %3777 = vmatpush1.msra.mxu0 %v7110_v43 }
 0xd0e   : > { %6281 = vmatprep.subr.mxu1 %v9125_v1  ;;  %3778 = vmatprep.subr.mxu0 %v7118_v45 }
 0xd0f   : > { %6282 = vmatpush3.msra.mxu1 %v7175_v58  ;;  %3779 = vmatpush1.msra.mxu0 %v7123_v46 }
 0xd10   : > { %6283 = vmatprep.subr.mxu1 %v9125_v1  ;;  %3780 = vmatprep.subr.mxu0 %v9126_v57  ;;  %v9137_v57 = vld [vmem:[#allocation16_spill] sm:$0xff] }
 0xd11   : > { %6284 = vmatpush3.msra.mxu1 %v9127_v52  ;;  %3781 = vmatpush1.msra.mxu0 %v9128_v51 }
 0xd12   : > { %6285 = vmatprep.subr.mxu1 %v9125_v1  ;;  %3782 = vmatprep.subr.mxu0 %v9129_v61  ;;  %v3734_v61 = vsel %vm7212_vm1, %v5544_v4, %v5546_v2 }
 0xd13   : > { %6286 = vmatpush3.msra.mxu1 %v9130_v6  ;;  %3783 = vmatpush1.msra.mxu0 %v9131_v0 }
 0xd14   : > { %6287 = vmatprep.subr.mxu1 %v9125_v1  ;;  %3784 = vmatprep.subr.mxu0 %v9132_v17  ;;  %v3735_v17 = vsel %vm7212_vm1, %v5545_v10, %v5547_v54 }
 0xd15   : > { %6288 = vmatpush3.msra.mxu1 %v9133_v12  ;;  %3785 = vmatpush1.msra.mxu0 %v9134_v59  ;;  %v3937_v2 = vrot.slane %v3735_v17, 1 }
 0xd16   : > { %6289 = vmatprep.subr.mxu1 %v9125_v1  ;;  %3819 = vmatmul.mubr.f32.vlgmr.msra.gmra.mxu0 %v3752_v55 }
 0xd17   : > { %6290 = vmatpush3.msra.mxu1 %v9135_v8  ;;  %6291 = vmatprep.mubr.msk.f32.mxu1 %vm6877_vm0, %v9125_v1 }
 0xd18   : > { %6292 = vmatmul.mubr.f32.vlgmr.msra.gmra.mxu1 %v3752_v55 }
 0xdd6   : > { %v3820_v49 = vpop.f32.mrf.mxu0 }
 0xdd7   : > { %v3821_v60 = vadd.f32 %v3820_v49, %v9136_v3 }
 0xdd8   : > { %v3822_v48 = vpop.f32.mrf.mxu0  ;;  %v3891_v5 = vpop.f32.mrf.mxu1 }
 0xdd9   : > { %v3902_v62 = vrot.slane %v3821_v60, %v7208_v9  ;;  %v3823_v52 = vadd.f32 %v3822_v48, %v9137_v57  ;;  %v3936_v60 = vrot.slane %v3734_v61, 1 }
 0xdda   : > { %v6293_v6 = vpop.f32.mrf.mxu1 }
 0xddb   : > { %v3903_v0 = vcombine.high %v3902_v62, %v3902_v62  ;;  %v3910_v1 = vrot.slane %v3902_v62, %v7208_v9  ;;  %v3947_v55 = vrot.slane %v3823_v52, %v7208_v9 }
 0xddd   : > { %v3917_v12 = vrot.slane %v3903_v0, %v7208_v9  ;;  %v3920_v59 = vadd.f32 %v3910_v1, %v3734_v61  ;;  %v3948_v8 = vcombine.high %v3947_v55, %v3947_v55  ;;  %v3955_v48 = vrot.slane %v3947_v55, %v7208_v9 }
 0xddf   : > { %v3921_v49 = vadd.f32 %v3917_v12, %v3735_v17  ;;  %v5548_v3 = vmul.f32 -1.442695, %v3920_v59  ;;  %v3962_v57 = vrot.slane %v3948_v8, %v7208_v9  ;;  %v3965_v62 = vadd.f32 %v3955_v48, %v3936_v60 }
 0xde0   : > { %v3892_v12 = vadd.f32 %v3891_v5, %v7232_v7 }
 0xde1   : > { %6719 = vpow2.f32 %v5548_v3  ;;  %v5549_v4 = vmul.f32 -1.442695, %v3921_v49  ;;  %v3966_v52 = vadd.f32 %v3962_v57, %v3937_v2  ;;  %v5550_v6 = vmul.f32 -1.442695, %v3965_v62 }
 0xde2   : > { %v3986_v55 = vrot.slane %v3892_v12, %v7208_v9  ;;  %v4006_v2 = vrot.slane %v3734_v61, 2 }
 0xde3   : > { %6721 = vpow2.f32 %v5549_v4  ;;  %v5551_v51 = vmul.f32 -1.442695, %v3966_v52  ;;  %v4007_v52 = vrot.slane %v3735_v17, 2 }
 0xde4   : > { %6723 = vpow2.f32 %v5550_v6  ;;  %v3987_v49 = vcombine.high %v3986_v55, %v3986_v55  ;;  %v3994_v60 = vrot.slane %v3986_v55, %v7208_v9 }
 0xde5   : > { %6725 = vpow2.f32 %v5551_v51 }
 0xde6   : > { %v4001_v4 = vrot.slane %v3987_v49, %v7208_v9 }
 0xdee   : > { %v6720_v10 = vpop.eup %6719 }
 0xdef   : > { %v3928_v54 = vadd.f32 1.0, %v6720_v10 }
 0xdf0   : > { %v6722_v0 = vpop.eup %6721 }
 0xdf1   : > { %v3929_v1 = vadd.f32 1.0, %v6722_v0  ;;  %6727 = vrcp.f32 %v3928_v54  ;;  %v6724_v59 = vpop.eup %6723 }
 0xdf2   : > { %v6726_v8 = vpop.eup %6725  ;;  %v3973_v3 = vadd.f32 1.0, %v6724_v59 }
 0xdf3   : > { %6729 = vrcp.f32 %v3929_v1  ;;  %v3974_v48 = vadd.f32 1.0, %v6726_v8 }
 0xdf4   : > { %6731 = vrcp.f32 %v3973_v3 }
 0xdf5   : > { %6733 = vrcp.f32 %v3974_v48 }
 0xdfe   : > { %v6728_v57 = vpop.eup %6727 }
 0xdff   : > { %v4004_v62 = vmul.f32 %v6728_v57, %v3994_v60 }
 0xe00   : > { %v6730_v6 = vpop.eup %6729 }
 0xe01   : > { %v4005_v5 = vmul.f32 %v6730_v6, %v4001_v4  ;;  %v4010_v51 = vadd.f32 %v4006_v2, %v4004_v62  ;;  %v6732_v54 = vpop.eup %6731 }
 0xe02   : > { %v6734_v0 = vpop.eup %6733  ;;  %v4014_v1 = vsub.f32 1.0, %v6732_v54  ;;  %v4018_v59 = vmul.f32 %v6732_v54, %v8333_v63 }
 0xe03   : > { %v4011_v10 = vadd.f32 %v4007_v52, %v4005_v5  ;;  %6735 = vtanh.f32 %v4010_v51  ;;  %v4015_v55 = vsub.f32 1.0, %v6734_v0  ;;  %v4019_v8 = vmul.f32 %v6734_v0, %v8335_v11 }
 0xe05   : > { %6737 = vtanh.f32 %v4011_v10 }
 0xe10   : > { %v6736_v12 = vpop.eup %6735 }
 0xe11   : > { %v4016_v49 = vmul.f32 %v6736_v12, %v4014_v1  ;;  %4024 = sbr.rel (%p5442_p1) target bundleno = 3608 (0xe18), region = 151 }
 0xe12   : > { %v6738_v61 = vpop.eup %6737 }
 0xe13   : > { %v4017_v3 = vmul.f32 %v6738_v61, %v4015_v55  ;;  %v8442_v17 = vadd.f32 %v4018_v59, %v4016_v49 }
 0xe15   : > { %v8444_v60 = vadd.f32 %v4019_v8, %v4017_v3 }
 0xe16   : > { %4025 = vst [vmem:[%s6985_s12 + $0xb] sm:$0x1] %v8442_v17 }
 0xe17   : > { %4026 = vst [vmem:[%s6985_s12 + $0x1b] sm:$0x1] %v8444_v60 }
 0xe18 PF: > { %4029 = sbr.rel (%p294_p13) target bundleno = 3614 (0xe1e), region = 155 }
 0xe1d   : > { %4030 = vst [vmem:[%s6985_s12 + $0x4] sm:$0x1] %v8442_v17  ;;  %4031 = vst [vmem:[%s6985_s12 + $0x14] sm:$0x1] %v8444_v60 }
 0xe1e PF: > { %4056 = vmatprep.subr.mxu0 %v6989_v13  ;;  %v9139_v63 = vmov 0.0   ;;  %v4040_v11 = vcombine.low %v8442_v17, %v8444_v60  ;;  %v9140_v4 = vld [vmem:[#allocation5_spill] sm:$0xff]  ;;  %v9141_v2 = vld [vmem:[#allocation11_spill] sm:$0xff]  ;;  %v9142_v57 = vld [vmem:[#allocation6_spill] sm:$0xff] }
 0xe1f   : > { %4120 = vmatprep.mubr.f32.mxu0 %v9139_v63  ;;  %4057 = vmatpush1.msra.mxu0 %v6992_v14  ;;  %v9143_v62 = vld [vmem:[#allocation7_spill] sm:$0xff]  ;;  %v9144_v6 = vld [vmem:[#allocation12_spill] sm:$0xff]  ;;  %v9146_v51 = vld [vmem:[#allocation9_spill] sm:$0xff] }
 0xe20   : > { %6294 = vmatprep.subr.mxu1 %v9139_v63  ;;  %4058 = vmatprep.subr.mxu0 %v6995_v15  ;;  %v4047_v48 = vrot.slane %v4040_v11, %v7208_v9  ;;  %v9145_v5 = vld [vmem:[#allocation8_spill] sm:$0xff]  ;;  %v9147_v10 = vld [vmem:[#allocation13_spill] sm:$0xff]  ;;  %v9148_v54 = vld [vmem:[#allocation10_spill] sm:$0xff] }
 0xe21   : > { %6295 = vmatpush3.msra.mxu1 %v7046_v28  ;;  %4059 = vmatpush1.msra.mxu0 %v6999_v16  ;;  %v9149_v0 = vld [vmem:[#allocation14_spill] sm:$0xff]  ;;  %v9150_v59 = vld [vmem:[#allocation15_spill] sm:$0xff] }
 0xe22   : > { %6296 = vmatprep.subr.mxu1 %v9139_v63  ;;  %4060 = vmatprep.subr.mxu0 %v7004_v18  ;;  %v4054_v52 = vrot.slane %v4047_v48, %v7208_v9  ;;  %v5554_v12 = vld [vmem:[%s6983_s24 + $0x1c] ss:$8 sm:$0x7]  ;;  %v5556_v55 = vld [vmem:[%s6983_s24 + $0x3] ss:$8 sm:$0x7] }
 0xe23   : > { %6297 = vmatpush3.msra.mxu1 %v7049_v29  ;;  %4061 = vmatpush1.msra.mxu0 %v7009_v19  ;;  %v5555_v3 = vld [vmem:[%s6983_s24 + $0x4c] ss:$8 sm:$0x7]  ;;  %v5557_v11 = vld [vmem:[%s6983_s24 + $0x33] ss:$8 sm:$0x7] }
 0xe24   : > { %6298 = vmatprep.subr.mxu1 %v9139_v63  ;;  %4062 = vmatprep.subr.mxu0 %v7015_v20 }
 0xe25   : > { %6299 = vmatpush3.msra.mxu1 %v7062_v32  ;;  %4063 = vmatpush1.msra.mxu0 %v7019_v21 }
 0xe26   : > { %6300 = vmatprep.subr.mxu1 %v9139_v63  ;;  %4064 = vmatprep.subr.mxu0 %v7023_v22 }
 0xe27   : > { %6301 = vmatpush3.msra.mxu1 %v7075_v35  ;;  %4065 = vmatpush1.msra.mxu0 %v7027_v23 }
 0xe28   : > { %6302 = vmatprep.subr.mxu1 %v9139_v63  ;;  %4066 = vmatprep.subr.mxu0 %v7031_v24 }
 0xe29   : > { %6303 = vmatpush3.msra.mxu1 %v7088_v38  ;;  %4067 = vmatpush1.msra.mxu0 %v7035_v25 }
 0xe2a   : > { %6304 = vmatprep.subr.mxu1 %v9139_v63  ;;  %4068 = vmatprep.subr.mxu0 %v7039_v26 }
 0xe2b   : > { %6305 = vmatpush3.msra.mxu1 %v7101_v41  ;;  %4069 = vmatpush1.msra.mxu0 %v7043_v27 }
 0xe2c   : > { %6306 = vmatprep.subr.mxu1 %v9139_v63  ;;  %4070 = vmatprep.subr.mxu0 %v7053_v30 }
 0xe2d   : > { %6307 = vmatpush3.msra.mxu1 %v7114_v44  ;;  %4071 = vmatpush1.msra.mxu0 %v7058_v31 }
 0xe2e   : > { %6308 = vmatprep.subr.mxu1 %v9139_v63  ;;  %4072 = vmatprep.subr.mxu0 %v7066_v33 }
 0xe2f   : > { %6309 = vmatpush3.msra.mxu1 %v7127_v47  ;;  %4073 = vmatpush1.msra.mxu0 %v7071_v34 }
 0xe30   : > { %6310 = vmatprep.subr.mxu1 %v9139_v63  ;;  %4074 = vmatprep.subr.mxu0 %v7079_v36 }
 0xe31   : > { %6311 = vmatpush3.msra.mxu1 %v7140_v50  ;;  %4075 = vmatpush1.msra.mxu0 %v7084_v37 }
 0xe32   : > { %6312 = vmatprep.subr.mxu1 %v9139_v63  ;;  %4076 = vmatprep.subr.mxu0 %v7092_v39 }
 0xe33   : > { %6313 = vmatpush3.msra.mxu1 %v7153_v53  ;;  %4077 = vmatpush1.msra.mxu0 %v7097_v40 }
 0xe34   : > { %6314 = vmatprep.subr.mxu1 %v9139_v63  ;;  %4078 = vmatprep.subr.mxu0 %v7105_v42 }
 0xe35   : > { %6315 = vmatpush3.msra.mxu1 %v7166_v56  ;;  %4079 = vmatpush1.msra.mxu0 %v7110_v43 }
 0xe36   : > { %6316 = vmatprep.subr.mxu1 %v9139_v63  ;;  %4080 = vmatprep.subr.mxu0 %v7118_v45 }
 0xe37   : > { %6317 = vmatpush3.msra.mxu1 %v7175_v58  ;;  %4081 = vmatpush1.msra.mxu0 %v7123_v46 }
 0xe38   : > { %6318 = vmatprep.subr.mxu1 %v9139_v63  ;;  %4082 = vmatprep.subr.mxu0 %v9140_v4  ;;  %v9151_v4 = vld [vmem:[#allocation16_spill] sm:$0xff] }
 0xe39   : > { %6319 = vmatpush3.msra.mxu1 %v9141_v2  ;;  %4083 = vmatpush1.msra.mxu0 %v9142_v57 }
 0xe3a   : > { %6320 = vmatprep.subr.mxu1 %v9139_v63  ;;  %4084 = vmatprep.subr.mxu0 %v9143_v62  ;;  %v4036_v62 = vsel %vm7212_vm1, %v5554_v12, %v5556_v55 }
 0xe3b   : > { %6321 = vmatpush3.msra.mxu1 %v9144_v6  ;;  %4085 = vmatpush1.msra.mxu0 %v9145_v5 }
 0xe3c   : > { %6322 = vmatprep.subr.mxu1 %v9139_v63  ;;  %4086 = vmatprep.subr.mxu0 %v9146_v51  ;;  %v4037_v51 = vsel %vm7212_vm1, %v5555_v3, %v5557_v11 }
 0xe3d   : > { %6323 = vmatpush3.msra.mxu1 %v9147_v10  ;;  %4087 = vmatpush1.msra.mxu0 %v9148_v54  ;;  %v4239_v55 = vrot.slane %v4037_v51, 1 }
 0xe3e   : > { %6324 = vmatprep.subr.mxu1 %v9139_v63  ;;  %4121 = vmatmul.mubr.f32.vlgmr.msra.gmra.mxu0 %v4054_v52 }
 0xe3f   : > { %6325 = vmatpush3.msra.mxu1 %v9149_v0  ;;  %6326 = vmatprep.mubr.msk.f32.mxu1 %vm6877_vm0, %v9139_v63 }
 0xe40   : > { %6327 = vmatmul.mubr.f32.vlgmr.msra.gmra.mxu1 %v4054_v52 }
 0xefe   : > { %v4122_v1 = vpop.f32.mrf.mxu0 }
 0xeff   : > { %v4123_v49 = vadd.f32 %v4122_v1, %v9150_v59 }
 0xf00   : > { %v4124_v61 = vpop.f32.mrf.mxu0  ;;  %v4193_v8 = vpop.f32.mrf.mxu1 }
 0xf01   : > { %v4204_v48 = vrot.slane %v4123_v49, %v7208_v9  ;;  %v4125_v2 = vadd.f32 %v4124_v61, %v9151_v4  ;;  %v4238_v49 = vrot.slane %v4036_v62, 1 }
 0xf02   : > { %v6328_v6 = vpop.f32.mrf.mxu1 }
 0xf03   : > { %v4205_v5 = vcombine.high %v4204_v48, %v4204_v48  ;;  %v4212_v63 = vrot.slane %v4204_v48, %v7208_v9  ;;  %v4249_v52 = vrot.slane %v4125_v2, %v7208_v9 }
 0xf05   : > { %v4219_v10 = vrot.slane %v4205_v5, %v7208_v9  ;;  %v4222_v54 = vadd.f32 %v4212_v63, %v4036_v62  ;;  %v4250_v0 = vcombine.high %v4249_v52, %v4249_v52  ;;  %v4257_v61 = vrot.slane %v4249_v52, %v7208_v9 }
 0xf07   : > { %v4223_v1 = vadd.f32 %v4219_v10, %v4037_v51  ;;  %v5558_v59 = vmul.f32 -1.442695, %v4222_v54  ;;  %v4264_v4 = vrot.slane %v4250_v0, %v7208_v9  ;;  %v4267_v48 = vadd.f32 %v4257_v61, %v4238_v49 }
 0xf08   : > { %v4194_v10 = vadd.f32 %v4193_v8, %v7232_v7 }
 0xf09   : > { %6739 = vpow2.f32 %v5558_v59  ;;  %v5559_v12 = vmul.f32 -1.442695, %v4223_v1  ;;  %v4268_v2 = vadd.f32 %v4264_v4, %v4239_v55  ;;  %v5560_v6 = vmul.f32 -1.442695, %v4267_v48 }
 0xf0a   : > { %v4288_v52 = vrot.slane %v4194_v10, %v7208_v9  ;;  %v4308_v55 = vrot.slane %v4036_v62, 2 }
 0xf0b   : > { %6741 = vpow2.f32 %v5559_v12  ;;  %v5561_v57 = vmul.f32 -1.442695, %v4268_v2  ;;  %v4309_v2 = vrot.slane %v4037_v51, 2 }
 0xf0c   : > { %6743 = vpow2.f32 %v5560_v6  ;;  %v4289_v1 = vcombine.high %v4288_v52, %v4288_v52  ;;  %v4296_v49 = vrot.slane %v4288_v52, %v7208_v9 }
 0xf0d   : > { %6745 = vpow2.f32 %v5561_v57 }
 0xf0e   : > { %v4303_v12 = vrot.slane %v4289_v1, %v7208_v9 }
 0xf16   : > { %v6740_v3 = vpop.eup %6739 }
 0xf17   : > { %v4230_v11 = vadd.f32 1.0, %v6740_v3 }
 0xf18   : > { %v6742_v5 = vpop.eup %6741 }
 0xf19   : > { %v4231_v63 = vadd.f32 1.0, %v6742_v5  ;;  %6747 = vrcp.f32 %v4230_v11  ;;  %v6744_v54 = vpop.eup %6743 }
 0xf1a   : > { %v6746_v0 = vpop.eup %6745  ;;  %v4275_v59 = vadd.f32 1.0, %v6744_v54 }
 0xf1b   : > { %6749 = vrcp.f32 %v4231_v63  ;;  %v4276_v61 = vadd.f32 1.0, %v6746_v0 }
 0xf1c   : > { %6751 = vrcp.f32 %v4275_v59 }
 0xf1d   : > { %6753 = vrcp.f32 %v4276_v61 }
 0xf26   : > { %v6748_v4 = vpop.eup %6747 }
 0xf27   : > { %v4306_v48 = vmul.f32 %v6748_v4, %v4296_v49 }
 0xf28   : > { %v6750_v6 = vpop.eup %6749 }
 0xf29   : > { %v4307_v8 = vmul.f32 %v6750_v6, %v4303_v12  ;;  %v4312_v57 = vadd.f32 %v4308_v55, %v4306_v48  ;;  %v6752_v11 = vpop.eup %6751 }
 0xf2a   : > { %v6754_v5 = vpop.eup %6753  ;;  %v4316_v63 = vsub.f32 1.0, %v6752_v11  ;;  %v4320_v54 = vmul.f32 %v6752_v11, %v8442_v17 }
 0xf2b   : > { %v4313_v3 = vadd.f32 %v4309_v2, %v4307_v8  ;;  %6755 = vtanh.f32 %v4312_v57  ;;  %v4317_v52 = vsub.f32 1.0, %v6754_v5  ;;  %v4321_v0 = vmul.f32 %v6754_v5, %v8444_v60 }
 0xf2d   : > { %6757 = vtanh.f32 %v4313_v3 }
 0xf38   : > { %v6756_v10 = vpop.eup %6755 }
 0xf39   : > { %v4318_v1 = vmul.f32 %v6756_v10, %v4316_v63  ;;  %4326 = sbr.rel (%p5442_p1) target bundleno = 3904 (0xf40), region = 159 }
 0xf3a   : > { %v6758_v62 = vpop.eup %6757 }
 0xf3b   : > { %v4319_v59 = vmul.f32 %v6758_v62, %v4317_v52  ;;  %v8551_v51 = vadd.f32 %v4320_v54, %v4318_v1 }
 0xf3d   : > { %v8553_v49 = vadd.f32 %v4321_v0, %v4319_v59 }
 0xf3e   : > { %4327 = vst [vmem:[%s6985_s12 + $0xc] sm:$0x1] %v8551_v51 }
 0xf3f   : > { %4328 = vst [vmem:[%s6985_s12 + $0x1c] sm:$0x1] %v8553_v49 }
 0xf40 PF: > { %4331 = sbr.rel (%p294_p13) target bundleno = 3910 (0xf46), region = 163 }
 0xf45   : > { %4332 = vst [vmem:[%s6985_s12 + $0x3] sm:$0x1] %v8551_v51  ;;  %4333 = vst [vmem:[%s6985_s12 + $0x13] sm:$0x1] %v8553_v49 }
 0xf46 PF: > { %4358 = vmatprep.subr.mxu0 %v6989_v13  ;;  %v9153_v17 = vmov 0.0   ;;  %v4342_v60 = vcombine.low %v8551_v51, %v8553_v49  ;;  %v9154_v12 = vld [vmem:[#allocation5_spill] sm:$0xff]  ;;  %v9155_v55 = vld [vmem:[#allocation11_spill] sm:$0xff]  ;;  %v9156_v4 = vld [vmem:[#allocation6_spill] sm:$0xff] }
 0xf47   : > { %4422 = vmatprep.mubr.f32.mxu0 %v9153_v17  ;;  %4359 = vmatpush1.msra.mxu0 %v6992_v14  ;;  %v9157_v48 = vld [vmem:[#allocation7_spill] sm:$0xff]  ;;  %v9158_v6 = vld [vmem:[#allocation12_spill] sm:$0xff]  ;;  %v9160_v57 = vld [vmem:[#allocation9_spill] sm:$0xff] }
 0xf48   : > { %6329 = vmatprep.subr.mxu1 %v9153_v17  ;;  %4360 = vmatprep.subr.mxu0 %v6995_v15  ;;  %v4349_v61 = vrot.slane %v4342_v60, %v7208_v9  ;;  %v9159_v8 = vld [vmem:[#allocation8_spill] sm:$0xff]  ;;  %v9161_v3 = vld [vmem:[#allocation13_spill] sm:$0xff]  ;;  %v9162_v11 = vld [vmem:[#allocation10_spill] sm:$0xff] }
 0xf49   : > { %6330 = vmatpush3.msra.mxu1 %v7046_v28  ;;  %4361 = vmatpush1.msra.mxu0 %v6999_v16  ;;  %v9163_v5 = vld [vmem:[#allocation14_spill] sm:$0xff]  ;;  %v9164_v54 = vld [vmem:[#allocation15_spill] sm:$0xff] }
 0xf4a   : > { %6331 = vmatprep.subr.mxu1 %v9153_v17  ;;  %4362 = vmatprep.subr.mxu0 %v7004_v18  ;;  %v4356_v2 = vrot.slane %v4349_v61, %v7208_v9  ;;  %v5564_v10 = vld [vmem:[%s6983_s24 + $0x1d] ss:$8 sm:$0x7]  ;;  %v5566_v52 = vld [vmem:[%s6983_s24 + $0x2] ss:$8 sm:$0x7] }
 0xf4b   : > { %6332 = vmatpush3.msra.mxu1 %v7049_v29  ;;  %4363 = vmatpush1.msra.mxu0 %v7009_v19  ;;  %v5565_v59 = vld [vmem:[%s6983_s24 + $0x4d] ss:$8 sm:$0x7]  ;;  %v5567_v60 = vld [vmem:[%s6983_s24 + $0x32] ss:$8 sm:$0x7] }
 0xf4c   : > { %6333 = vmatprep.subr.mxu1 %v9153_v17  ;;  %4364 = vmatprep.subr.mxu0 %v7015_v20 }
 0xf4d   : > { %6334 = vmatpush3.msra.mxu1 %v7062_v32  ;;  %4365 = vmatpush1.msra.mxu0 %v7019_v21 }
 0xf4e   : > { %6335 = vmatprep.subr.mxu1 %v9153_v17  ;;  %4366 = vmatprep.subr.mxu0 %v7023_v22 }
 0xf4f   : > { %6336 = vmatpush3.msra.mxu1 %v7075_v35  ;;  %4367 = vmatpush1.msra.mxu0 %v7027_v23 }
 0xf50   : > { %6337 = vmatprep.subr.mxu1 %v9153_v17  ;;  %4368 = vmatprep.subr.mxu0 %v7031_v24 }
 0xf51   : > { %6338 = vmatpush3.msra.mxu1 %v7088_v38  ;;  %4369 = vmatpush1.msra.mxu0 %v7035_v25 }
 0xf52   : > { %6339 = vmatprep.subr.mxu1 %v9153_v17  ;;  %4370 = vmatprep.subr.mxu0 %v7039_v26 }
 0xf53   : > { %6340 = vmatpush3.msra.mxu1 %v7101_v41  ;;  %4371 = vmatpush1.msra.mxu0 %v7043_v27 }
 0xf54   : > { %6341 = vmatprep.subr.mxu1 %v9153_v17  ;;  %4372 = vmatprep.subr.mxu0 %v7053_v30 }
 0xf55   : > { %6342 = vmatpush3.msra.mxu1 %v7114_v44  ;;  %4373 = vmatpush1.msra.mxu0 %v7058_v31 }
 0xf56   : > { %6343 = vmatprep.subr.mxu1 %v9153_v17  ;;  %4374 = vmatprep.subr.mxu0 %v7066_v33 }
 0xf57   : > { %6344 = vmatpush3.msra.mxu1 %v7127_v47  ;;  %4375 = vmatpush1.msra.mxu0 %v7071_v34 }
 0xf58   : > { %6345 = vmatprep.subr.mxu1 %v9153_v17  ;;  %4376 = vmatprep.subr.mxu0 %v7079_v36 }
 0xf59   : > { %6346 = vmatpush3.msra.mxu1 %v7140_v50  ;;  %4377 = vmatpush1.msra.mxu0 %v7084_v37 }
 0xf5a   : > { %6347 = vmatprep.subr.mxu1 %v9153_v17  ;;  %4378 = vmatprep.subr.mxu0 %v7092_v39 }
 0xf5b   : > { %6348 = vmatpush3.msra.mxu1 %v7153_v53  ;;  %4379 = vmatpush1.msra.mxu0 %v7097_v40 }
 0xf5c   : > { %6349 = vmatprep.subr.mxu1 %v9153_v17  ;;  %4380 = vmatprep.subr.mxu0 %v7105_v42 }
 0xf5d   : > { %6350 = vmatpush3.msra.mxu1 %v7166_v56  ;;  %4381 = vmatpush1.msra.mxu0 %v7110_v43 }
 0xf5e   : > { %6351 = vmatprep.subr.mxu1 %v9153_v17  ;;  %4382 = vmatprep.subr.mxu0 %v7118_v45 }
 0xf5f   : > { %6352 = vmatpush3.msra.mxu1 %v7175_v58  ;;  %4383 = vmatpush1.msra.mxu0 %v7123_v46 }
 0xf60   : > { %6353 = vmatprep.subr.mxu1 %v9153_v17  ;;  %4384 = vmatprep.subr.mxu0 %v9154_v12  ;;  %v9165_v12 = vld [vmem:[#allocation16_spill] sm:$0xff] }
 0xf61   : > { %6354 = vmatpush3.msra.mxu1 %v9155_v55  ;;  %4385 = vmatpush1.msra.mxu0 %v9156_v4 }
 0xf62   : > { %6355 = vmatprep.subr.mxu1 %v9153_v17  ;;  %4386 = vmatprep.subr.mxu0 %v9157_v48  ;;  %v4338_v48 = vsel %vm7212_vm1, %v5564_v10, %v5566_v52 }
 0xf63   : > { %6356 = vmatpush3.msra.mxu1 %v9158_v6  ;;  %4387 = vmatpush1.msra.mxu0 %v9159_v8 }
 0xf64   : > { %6357 = vmatprep.subr.mxu1 %v9153_v17  ;;  %4388 = vmatprep.subr.mxu0 %v9160_v57  ;;  %v4339_v57 = vsel %vm7212_vm1, %v5565_v59, %v5567_v60 }
 0xf65   : > { %6358 = vmatpush3.msra.mxu1 %v9161_v3  ;;  %4389 = vmatpush1.msra.mxu0 %v9162_v11  ;;  %v4541_v52 = vrot.slane %v4339_v57, 1 }
 0xf66   : > { %6359 = vmatprep.subr.mxu1 %v9153_v17  ;;  %4423 = vmatmul.mubr.f32.vlgmr.msra.gmra.mxu0 %v4356_v2 }
 0xf67   : > { %6360 = vmatpush3.msra.mxu1 %v9163_v5  ;;  %6361 = vmatprep.mubr.msk.f32.mxu1 %vm6877_vm0, %v9153_v17 }
 0xf68   : > { %6362 = vmatmul.mubr.f32.vlgmr.msra.gmra.mxu1 %v4356_v2 }
0x1026   : > { %v4424_v63 = vpop.f32.mrf.mxu0 }
0x1027   : > { %v4425_v1 = vadd.f32 %v4424_v63, %v9164_v54 }
0x1028   : > { %v4426_v62 = vpop.f32.mrf.mxu0  ;;  %v4495_v0 = vpop.f32.mrf.mxu1 }
0x1029   : > { %v4506_v61 = vrot.slane %v4425_v1, %v7208_v9  ;;  %v4427_v55 = vadd.f32 %v4426_v62, %v9165_v12  ;;  %v4540_v1 = vrot.slane %v4338_v48, 1 }
0x102a   : > { %v6363_v6 = vpop.f32.mrf.mxu1 }
0x102b   : > { %v4507_v8 = vcombine.high %v4506_v61, %v4506_v61  ;;  %v4514_v17 = vrot.slane %v4506_v61, %v7208_v9  ;;  %v4551_v2 = vrot.slane %v4427_v55, %v7208_v9 }
0x102d   : > { %v4521_v3 = vrot.slane %v4507_v8, %v7208_v9  ;;  %v4524_v11 = vadd.f32 %v4514_v17, %v4338_v48  ;;  %v4552_v5 = vcombine.high %v4551_v2, %v4551_v2  ;;  %v4559_v62 = vrot.slane %v4551_v2, %v7208_v9 }
0x102f   : > { %v4525_v63 = vadd.f32 %v4521_v3, %v4339_v57  ;;  %v5568_v54 = vmul.f32 -1.442695, %v4524_v11  ;;  %v4566_v12 = vrot.slane %v4552_v5, %v7208_v9  ;;  %v4569_v61 = vadd.f32 %v4559_v62, %v4540_v1 }
0x1030   : > { %v4496_v3 = vadd.f32 %v4495_v0, %v7232_v7 }
0x1031   : > { %6759 = vpow2.f32 %v5568_v54  ;;  %v5569_v10 = vmul.f32 -1.442695, %v4525_v63  ;;  %v4570_v55 = vadd.f32 %v4566_v12, %v4541_v52  ;;  %v5570_v6 = vmul.f32 -1.442695, %v4569_v61 }
0x1032   : > { %v4590_v2 = vrot.slane %v4496_v3, %v7208_v9  ;;  %v4610_v52 = vrot.slane %v4338_v48, 2 }
0x1033   : > { %6761 = vpow2.f32 %v5569_v10  ;;  %v5571_v4 = vmul.f32 -1.442695, %v4570_v55  ;;  %v4611_v55 = vrot.slane %v4339_v57, 2 }
0x1034   : > { %6763 = vpow2.f32 %v5570_v6  ;;  %v4591_v63 = vcombine.high %v4590_v2, %v4590_v2  ;;  %v4598_v1 = vrot.slane %v4590_v2, %v7208_v9 }
0x1035   : > { %6765 = vpow2.f32 %v5571_v4 }
0x1036   : > { %v4605_v10 = vrot.slane %v4591_v63, %v7208_v9 }
0x103e   : > { %v6760_v59 = vpop.eup %6759 }
0x103f   : > { %v4532_v60 = vadd.f32 1.0, %v6760_v59 }
0x1040   : > { %v6762_v8 = vpop.eup %6761 }
0x1041   : > { %v4533_v17 = vadd.f32 1.0, %v6762_v8  ;;  %6767 = vrcp.f32 %v4532_v60  ;;  %v6764_v11 = vpop.eup %6763 }
0x1042   : > { %v6766_v5 = vpop.eup %6765  ;;  %v4577_v54 = vadd.f32 1.0, %v6764_v11 }
0x1043   : > { %6769 = vrcp.f32 %v4533_v17  ;;  %v4578_v62 = vadd.f32 1.0, %v6766_v5 }
0x1044   : > { %6771 = vrcp.f32 %v4577_v54 }
0x1045   : > { %6773 = vrcp.f32 %v4578_v62 }
0x104e   : > { %v6768_v12 = vpop.eup %6767 }
0x104f   : > { %v4608_v61 = vmul.f32 %v6768_v12, %v4598_v1 }
0x1050   : > { %v6770_v6 = vpop.eup %6769 }
0x1051   : > { %v4609_v0 = vmul.f32 %v6770_v6, %v4605_v10  ;;  %v4614_v4 = vadd.f32 %v4610_v52, %v4608_v61  ;;  %v6772_v60 = vpop.eup %6771 }
0x1052   : > { %v6774_v8 = vpop.eup %6773  ;;  %v4618_v17 = vsub.f32 1.0, %v6772_v60  ;;  %v4622_v11 = vmul.f32 %v6772_v60, %v8551_v51 }
0x1053   : > { %v4615_v59 = vadd.f32 %v4611_v55, %v4609_v0  ;;  %6775 = vtanh.f32 %v4614_v4  ;;  %v4619_v2 = vsub.f32 1.0, %v6774_v8  ;;  %v4623_v5 = vmul.f32 %v6774_v8, %v8553_v49 }
0x1055   : > { %6777 = vtanh.f32 %v4615_v59 }
0x1060   : > { %v6776_v3 = vpop.eup %6775 }
0x1061   : > { %v4620_v63 = vmul.f32 %v6776_v3, %v4618_v17  ;;  %4628 = sbr.rel (%p5442_p1) target bundleno = 4200 (0x1068), region = 167 }
0x1062   : > { %v6778_v48 = vpop.eup %6777 }
0x1063   : > { %v4621_v54 = vmul.f32 %v6778_v48, %v4619_v2  ;;  %v8660_v57 = vadd.f32 %v4622_v11, %v4620_v63 }
0x1065   : > { %v8662_v1 = vadd.f32 %v4623_v5, %v4621_v54 }
0x1066   : > { %4629 = vst [vmem:[%s6985_s12 + $0xd] sm:$0x1] %v8660_v57 }
0x1067   : > { %4630 = vst [vmem:[%s6985_s12 + $0x1d] sm:$0x1] %v8662_v1 }
0x1068 PF: > { %4633 = sbr.rel (%p294_p13) target bundleno = 4206 (0x106e), region = 171 }
0x106d   : > { %4634 = vst [vmem:[%s6985_s12 + $0x2] sm:$0x1] %v8660_v57  ;;  %4635 = vst [vmem:[%s6985_s12 + $0x12] sm:$0x1] %v8662_v1 }
0x106e PF: > { %4660 = vmatprep.subr.mxu0 %v6989_v13  ;;  %v9167_v51 = vmov 0.0   ;;  %v4644_v49 = vcombine.low %v8660_v57, %v8662_v1  ;;  %v9168_v10 = vld [vmem:[#allocation5_spill] sm:$0xff]  ;;  %v9169_v52 = vld [vmem:[#allocation11_spill] sm:$0xff]  ;;  %v9170_v12 = vld [vmem:[#allocation6_spill] sm:$0xff] }
0x106f   : > { %4724 = vmatprep.mubr.f32.mxu0 %v9167_v51  ;;  %4661 = vmatpush1.msra.mxu0 %v6992_v14  ;;  %v9171_v61 = vld [vmem:[#allocation7_spill] sm:$0xff]  ;;  %v9172_v6 = vld [vmem:[#allocation12_spill] sm:$0xff]  ;;  %v9174_v4 = vld [vmem:[#allocation9_spill] sm:$0xff] }
0x1070   : > { %6364 = vmatprep.subr.mxu1 %v9167_v51  ;;  %4662 = vmatprep.subr.mxu0 %v6995_v15  ;;  %v4651_v62 = vrot.slane %v4644_v49, %v7208_v9  ;;  %v9173_v0 = vld [vmem:[#allocation8_spill] sm:$0xff]  ;;  %v9175_v59 = vld [vmem:[#allocation13_spill] sm:$0xff]  ;;  %v9176_v60 = vld [vmem:[#allocation10_spill] sm:$0xff] }
0x1071   : > { %6365 = vmatpush3.msra.mxu1 %v7046_v28  ;;  %4663 = vmatpush1.msra.mxu0 %v6999_v16  ;;  %v9177_v8 = vld [vmem:[#allocation14_spill] sm:$0xff]  ;;  %v9178_v11 = vld [vmem:[#allocation15_spill] sm:$0xff] }
0x1072   : > { %6366 = vmatprep.subr.mxu1 %v9167_v51  ;;  %4664 = vmatprep.subr.mxu0 %v7004_v18  ;;  %v4658_v55 = vrot.slane %v4651_v62, %v7208_v9  ;;  %v5574_v3 = vld [vmem:[%s6983_s24 + $0x1e] ss:$8 sm:$0x7]  ;;  %v5576_v2 = vld [vmem:[%s6983_s24 + $0x1] ss:$8 sm:$0x7] }
0x1073   : > { %6367 = vmatpush3.msra.mxu1 %v7049_v29  ;;  %4665 = vmatpush1.msra.mxu0 %v7009_v19  ;;  %v5575_v54 = vld [vmem:[%s6983_s24 + $0x4e] ss:$8 sm:$0x7]  ;;  %v5577_v49 = vld [vmem:[%s6983_s24 + $0x31] ss:$8 sm:$0x7] }
0x1074   : > { %6368 = vmatprep.subr.mxu1 %v9167_v51  ;;  %4666 = vmatprep.subr.mxu0 %v7015_v20 }
0x1075   : > { %6369 = vmatpush3.msra.mxu1 %v7062_v32  ;;  %4667 = vmatpush1.msra.mxu0 %v7019_v21 }
0x1076   : > { %6370 = vmatprep.subr.mxu1 %v9167_v51  ;;  %4668 = vmatprep.subr.mxu0 %v7023_v22 }
0x1077   : > { %6371 = vmatpush3.msra.mxu1 %v7075_v35  ;;  %4669 = vmatpush1.msra.mxu0 %v7027_v23 }
0x1078   : > { %6372 = vmatprep.subr.mxu1 %v9167_v51  ;;  %4670 = vmatprep.subr.mxu0 %v7031_v24 }
0x1079   : > { %6373 = vmatpush3.msra.mxu1 %v7088_v38  ;;  %4671 = vmatpush1.msra.mxu0 %v7035_v25 }
0x107a   : > { %6374 = vmatprep.subr.mxu1 %v9167_v51  ;;  %4672 = vmatprep.subr.mxu0 %v7039_v26 }
0x107b   : > { %6375 = vmatpush3.msra.mxu1 %v7101_v41  ;;  %4673 = vmatpush1.msra.mxu0 %v7043_v27 }
0x107c   : > { %6376 = vmatprep.subr.mxu1 %v9167_v51  ;;  %4674 = vmatprep.subr.mxu0 %v7053_v30 }
0x107d   : > { %6377 = vmatpush3.msra.mxu1 %v7114_v44  ;;  %4675 = vmatpush1.msra.mxu0 %v7058_v31 }
0x107e   : > { %6378 = vmatprep.subr.mxu1 %v9167_v51  ;;  %4676 = vmatprep.subr.mxu0 %v7066_v33 }
0x107f   : > { %6379 = vmatpush3.msra.mxu1 %v7127_v47  ;;  %4677 = vmatpush1.msra.mxu0 %v7071_v34 }
0x1080   : > { %6380 = vmatprep.subr.mxu1 %v9167_v51  ;;  %4678 = vmatprep.subr.mxu0 %v7079_v36 }
0x1081   : > { %6381 = vmatpush3.msra.mxu1 %v7140_v50  ;;  %4679 = vmatpush1.msra.mxu0 %v7084_v37 }
0x1082   : > { %6382 = vmatprep.subr.mxu1 %v9167_v51  ;;  %4680 = vmatprep.subr.mxu0 %v7092_v39 }
0x1083   : > { %6383 = vmatpush3.msra.mxu1 %v7153_v53  ;;  %4681 = vmatpush1.msra.mxu0 %v7097_v40 }
0x1084   : > { %6384 = vmatprep.subr.mxu1 %v9167_v51  ;;  %4682 = vmatprep.subr.mxu0 %v7105_v42 }
0x1085   : > { %6385 = vmatpush3.msra.mxu1 %v7166_v56  ;;  %4683 = vmatpush1.msra.mxu0 %v7110_v43 }
0x1086   : > { %6386 = vmatprep.subr.mxu1 %v9167_v51  ;;  %4684 = vmatprep.subr.mxu0 %v7118_v45 }
0x1087   : > { %6387 = vmatpush3.msra.mxu1 %v7175_v58  ;;  %4685 = vmatpush1.msra.mxu0 %v7123_v46 }
0x1088   : > { %6388 = vmatprep.subr.mxu1 %v9167_v51  ;;  %4686 = vmatprep.subr.mxu0 %v9168_v10  ;;  %v9179_v10 = vld [vmem:[#allocation16_spill] sm:$0xff] }
0x1089   : > { %6389 = vmatpush3.msra.mxu1 %v9169_v52  ;;  %4687 = vmatpush1.msra.mxu0 %v9170_v12 }
0x108a   : > { %6390 = vmatprep.subr.mxu1 %v9167_v51  ;;  %4688 = vmatprep.subr.mxu0 %v9171_v61  ;;  %v4640_v61 = vsel %vm7212_vm1, %v5574_v3, %v5576_v2 }
0x108b   : > { %6391 = vmatpush3.msra.mxu1 %v9172_v6  ;;  %4689 = vmatpush1.msra.mxu0 %v9173_v0 }
0x108c   : > { %6392 = vmatprep.subr.mxu1 %v9167_v51  ;;  %4690 = vmatprep.subr.mxu0 %v9174_v4  ;;  %v4641_v4 = vsel %vm7212_vm1, %v5575_v54, %v5577_v49 }
0x108d   : > { %6393 = vmatpush3.msra.mxu1 %v9175_v59  ;;  %4691 = vmatpush1.msra.mxu0 %v9176_v60  ;;  %v4843_v2 = vrot.slane %v4641_v4, 1 }
0x108e   : > { %6394 = vmatprep.subr.mxu1 %v9167_v51  ;;  %4725 = vmatmul.mubr.f32.vlgmr.msra.gmra.mxu0 %v4658_v55 }
0x108f   : > { %6395 = vmatpush3.msra.mxu1 %v9177_v8  ;;  %6396 = vmatprep.mubr.msk.f32.mxu1 %vm6877_vm0, %v9167_v51 }
0x1090   : > { %6397 = vmatmul.mubr.f32.vlgmr.msra.gmra.mxu1 %v4658_v55 }
0x114e   : > { %v4726_v17 = vpop.f32.mrf.mxu0 }
0x114f   : > { %v4727_v63 = vadd.f32 %v4726_v17, %v9178_v11 }
0x1150   : > { %v4728_v48 = vpop.f32.mrf.mxu0  ;;  %v4797_v5 = vpop.f32.mrf.mxu1 }
0x1151   : > { %v4808_v62 = vrot.slane %v4727_v63, %v7208_v9  ;;  %v4729_v52 = vadd.f32 %v4728_v48, %v9179_v10  ;;  %v4842_v63 = vrot.slane %v4640_v61, 1 }
0x1152   : > { %v6398_v6 = vpop.f32.mrf.mxu1 }
0x1153   : > { %v4809_v0 = vcombine.high %v4808_v62, %v4808_v62  ;;  %v4816_v51 = vrot.slane %v4808_v62, %v7208_v9  ;;  %v4853_v55 = vrot.slane %v4729_v52, %v7208_v9 }
0x1155   : > { %v4823_v59 = vrot.slane %v4809_v0, %v7208_v9  ;;  %v4826_v60 = vadd.f32 %v4816_v51, %v4640_v61  ;;  %v4854_v8 = vcombine.high %v4853_v55, %v4853_v55  ;;  %v4861_v48 = vrot.slane %v4853_v55, %v7208_v9 }
0x1157   : > { %v4827_v17 = vadd.f32 %v4823_v59, %v4641_v4  ;;  %v5578_v11 = vmul.f32 -1.442695, %v4826_v60  ;;  %v4868_v10 = vrot.slane %v4854_v8, %v7208_v9  ;;  %v4871_v62 = vadd.f32 %v4861_v48, %v4842_v63 }
0x1158   : > { %v4798_v59 = vadd.f32 %v4797_v5, %v7232_v7 }
0x1159   : > { %6779 = vpow2.f32 %v5578_v11  ;;  %v5579_v3 = vmul.f32 -1.442695, %v4827_v17  ;;  %v4872_v52 = vadd.f32 %v4868_v10, %v4843_v2  ;;  %v5580_v6 = vmul.f32 -1.442695, %v4871_v62 }
0x115a   : > { %v4892_v55 = vrot.slane %v4798_v59, %v7208_v9  ;;  %v4912_v2 = vrot.slane %v4640_v61, 2 }
0x115b   : > { %6781 = vpow2.f32 %v5579_v3  ;;  %v5581_v12 = vmul.f32 -1.442695, %v4872_v52  ;;  %v4913_v52 = vrot.slane %v4641_v4, 2 }
0x115c   : > { %6783 = vpow2.f32 %v5580_v6  ;;  %v4893_v17 = vcombine.high %v4892_v55, %v4892_v55  ;;  %v4900_v63 = vrot.slane %v4892_v55, %v7208_v9 }
0x115d   : > { %6785 = vpow2.f32 %v5581_v12 }
0x115e   : > { %v4907_v3 = vrot.slane %v4893_v17, %v7208_v9 }
0x1166   : > { %v6780_v54 = vpop.eup %6779 }
0x1167   : > { %v4834_v49 = vadd.f32 1.0, %v6780_v54 }
0x1168   : > { %v6782_v0 = vpop.eup %6781 }
0x1169   : > { %v4835_v51 = vadd.f32 1.0, %v6782_v0  ;;  %6787 = vrcp.f32 %v4834_v49  ;;  %v6784_v60 = vpop.eup %6783 }
0x116a   : > { %v6786_v8 = vpop.eup %6785  ;;  %v4879_v11 = vadd.f32 1.0, %v6784_v60 }
0x116b   : > { %6789 = vrcp.f32 %v4835_v51  ;;  %v4880_v48 = vadd.f32 1.0, %v6786_v8 }
0x116c   : > { %6791 = vrcp.f32 %v4879_v11 }
0x116d   : > { %6793 = vrcp.f32 %v4880_v48 }
0x1176   : > { %v6788_v10 = vpop.eup %6787 }
0x1177   : > { %v4910_v62 = vmul.f32 %v6788_v10, %v4900_v63 }
0x1178   : > { %v6790_v6 = vpop.eup %6789 }
0x1179   : > { %v4911_v5 = vmul.f32 %v6790_v6, %v4907_v3  ;;  %v4916_v12 = vadd.f32 %v4912_v2, %v4910_v62  ;;  %v6792_v49 = vpop.eup %6791 }
0x117a   : > { %v6794_v0 = vpop.eup %6793  ;;  %v4920_v51 = vsub.f32 1.0, %v6792_v49  ;;  %v4924_v60 = vmul.f32 %v6792_v49, %v8660_v57 }
0x117b   : > { %v4917_v54 = vadd.f32 %v4913_v52, %v4911_v5  ;;  %6795 = vtanh.f32 %v4916_v12  ;;  %v4921_v55 = vsub.f32 1.0, %v6794_v0  ;;  %v4925_v8 = vmul.f32 %v6794_v0, %v8662_v1 }
0x117d   : > { %6797 = vtanh.f32 %v4917_v54 }
0x1188   : > { %v6796_v59 = vpop.eup %6795 }
0x1189   : > { %v4922_v17 = vmul.f32 %v6796_v59, %v4920_v51  ;;  %4930 = sbr.rel (%p5442_p1) target bundleno = 4496 (0x1190), region = 175 }
0x118a   : > { %v6798_v61 = vpop.eup %6797 }
0x118b   : > { %v4923_v11 = vmul.f32 %v6798_v61, %v4921_v55  ;;  %v8769_v4 = vadd.f32 %v4924_v60, %v4922_v17 }
0x118d   : > { %v8771_v63 = vadd.f32 %v4925_v8, %v4923_v11 }
0x118e   : > { %4931 = vst [vmem:[%s6985_s12 + $0xe] sm:$0x1] %v8769_v4 }
0x118f   : > { %4932 = vst [vmem:[%s6985_s12 + $0x1e] sm:$0x1] %v8771_v63 }
0x1190 PF: > { %4935 = sbr.rel (%p294_p13) target bundleno = 4502 (0x1196), region = 179 }
0x1195   : > { %4936 = vst [vmem:[%s6985_s12 + $0x1] sm:$0x1] %v8769_v4  ;;  %4937 = vst [vmem:[%s6985_s12 + $0x11] sm:$0x1] %v8771_v63 }
0x1196 PF: > { %4962 = vmatprep.subr.mxu0 %v6989_v13  ;;  %v9181_v57 = vmov 0.0   ;;  %v4946_v13 = vcombine.low %v8769_v4, %v8771_v63 }
0x1197   : > { %5026 = vmatprep.mubr.f32.mxu0 %v9181_v57  ;;  %4963 = vmatpush1.msra.mxu0 %v6992_v14 }
0x1198   : > { %6399 = vmatprep.subr.mxu1 %v9181_v57  ;;  %4964 = vmatprep.subr.mxu0 %v6995_v15  ;;  %v4953_v14 = vrot.slane %v4946_v13, %v7208_v9  ;;  %v9182_v15 = vld [vmem:[#allocation5_spill] sm:$0xff] }
0x1199   : > { %6400 = vmatpush3.msra.mxu1 %v7046_v28  ;;  %4965 = vmatpush1.msra.mxu0 %v6999_v16  ;;  %v9183_v16 = vld [vmem:[#allocation11_spill] sm:$0xff]  ;;  %v5584_v28 = vld [vmem:[%s6983_s24 + $0x1f] ss:$8 sm:$0x7] }
0x119a   : > { %6401 = vmatprep.subr.mxu1 %v9181_v57  ;;  %4966 = vmatprep.subr.mxu0 %v7004_v18  ;;  %v9184_v18 = vld [vmem:[#allocation6_spill] sm:$0xff] }
0x119b   : > { %6402 = vmatpush3.msra.mxu1 %v7049_v29  ;;  %4967 = vmatpush1.msra.mxu0 %v7009_v19  ;;  %v9185_v19 = vld [vmem:[#allocation7_spill] sm:$0xff] }
0x119c   : > { %6403 = vmatprep.subr.mxu1 %v9181_v57  ;;  %4968 = vmatprep.subr.mxu0 %v7015_v20  ;;  %v4960_v20 = vrot.slane %v4953_v14, %v7208_v9  ;;  %v4940_v29 = vld [vmem:[%s6983_s24] ss:$8 sm:$0x7] }
0x119d   : > { %6404 = vmatpush3.msra.mxu1 %v7062_v32  ;;  %4969 = vmatpush1.msra.mxu0 %v7019_v21  ;;  %v9186_v21 = vld [vmem:[#allocation12_spill] sm:$0xff] }
0x119e   : > { %6405 = vmatprep.subr.mxu1 %v9181_v57  ;;  %4970 = vmatprep.subr.mxu0 %v7023_v22  ;;  %v9187_v22 = vld [vmem:[#allocation8_spill] sm:$0xff] }
0x119f   : > { %6406 = vmatpush3.msra.mxu1 %v7075_v35  ;;  %4971 = vmatpush1.msra.mxu0 %v7027_v23  ;;  %v9188_v23 = vld [vmem:[#allocation9_spill] sm:$0xff] }
0x11a0   : > { %6407 = vmatprep.subr.mxu1 %v9181_v57  ;;  %4972 = vmatprep.subr.mxu0 %v7031_v24  ;;  %v9189_v24 = vld [vmem:[#allocation13_spill] sm:$0xff] }
0x11a1   : > { %6408 = vmatpush3.msra.mxu1 %v7088_v38  ;;  %4973 = vmatpush1.msra.mxu0 %v7035_v25  ;;  %v9190_v25 = vld [vmem:[#allocation10_spill] sm:$0xff]  ;;  %v5586_v35 = vld [vmem:[%s6983_s24 + $0x30] ss:$8 sm:$0x7] }
0x11a2   : > { %6409 = vmatprep.subr.mxu1 %v9181_v57  ;;  %4974 = vmatprep.subr.mxu0 %v7039_v26  ;;  %v9191_v26 = vld [vmem:[#allocation14_spill] sm:$0xff] }
0x11a3   : > { %6410 = vmatpush3.msra.mxu1 %v7101_v41  ;;  %4975 = vmatpush1.msra.mxu0 %v7043_v27 }
0x11a4   : > { %6411 = vmatprep.subr.mxu1 %v9181_v57  ;;  %4976 = vmatprep.subr.mxu0 %v7053_v30  ;;  %v9192_v30 = vld [vmem:[#allocation15_spill] sm:$0xff] }
0x11a5   : > { %6412 = vmatpush3.msra.mxu1 %v7114_v44  ;;  %4977 = vmatpush1.msra.mxu0 %v7058_v31 }
0x11a6   : > { %6413 = vmatprep.subr.mxu1 %v9181_v57  ;;  %4978 = vmatprep.subr.mxu0 %v7066_v33 }
0x11a7   : > { %6414 = vmatpush3.msra.mxu1 %v7127_v47  ;;  %4979 = vmatpush1.msra.mxu0 %v7071_v34  ;;  %v5585_v34 = vld [vmem:[%s6983_s24 + $0x4f] ss:$8 sm:$0x7] }
0x11a8   : > { %6415 = vmatprep.subr.mxu1 %v9181_v57  ;;  %4980 = vmatprep.subr.mxu0 %v7079_v36 }
0x11a9   : > { %6416 = vmatpush3.msra.mxu1 %v7140_v50  ;;  %4981 = vmatpush1.msra.mxu0 %v7084_v37  ;;  %v9193_v37 = vld [vmem:[#allocation16_spill] sm:$0xff] }
0x11aa   : > { %6417 = vmatprep.subr.mxu1 %v9181_v57  ;;  %4982 = vmatprep.subr.mxu0 %v7092_v39 }
0x11ab   : > { %6418 = vmatpush3.msra.mxu1 %v7153_v53  ;;  %4983 = vmatpush1.msra.mxu0 %v7097_v40  ;;  %v4942_v40 = vsel %vm7212_vm1, %v5584_v28, %v4940_v29 }
0x11ac   : > { %6419 = vmatprep.subr.mxu1 %v9181_v57  ;;  %4984 = vmatprep.subr.mxu0 %v7105_v42 }
0x11ad   : > { %6420 = vmatpush3.msra.mxu1 %v7166_v56  ;;  %4985 = vmatpush1.msra.mxu0 %v7110_v43 }
0x11ae   : > { %6421 = vmatprep.subr.mxu1 %v9181_v57  ;;  %4986 = vmatprep.subr.mxu0 %v7118_v45  ;;  %v4943_v45 = vsel %vm7212_vm1, %v5585_v34, %v5586_v35 }
0x11af   : > { %6422 = vmatpush3.msra.mxu1 %v7175_v58  ;;  %4987 = vmatpush1.msra.mxu0 %v7123_v46  ;;  %v5144_v58 = vrot.slane %v4942_v40, 1  ;;  %v5145_v3 = vrot.slane %v4943_v45, 1 }
0x11b0   : > { %6423 = vmatprep.subr.mxu1 %v9181_v57  ;;  %4988 = vmatprep.subr.mxu0 %v9182_v15  ;;  %v5215_v15 = vrot.slane %v4943_v45, 2 }
0x11b1   : > { %6424 = vmatpush3.msra.mxu1 %v9183_v16  ;;  %4989 = vmatpush1.msra.mxu0 %v9184_v18 }
0x11b2   : > { %6425 = vmatprep.subr.mxu1 %v9181_v57  ;;  %4990 = vmatprep.subr.mxu0 %v9185_v19 }
0x11b3   : > { %6426 = vmatpush3.msra.mxu1 %v9186_v21  ;;  %4991 = vmatpush1.msra.mxu0 %v9187_v22 }
0x11b4   : > { %6427 = vmatprep.subr.mxu1 %v9181_v57  ;;  %4992 = vmatprep.subr.mxu0 %v9188_v23 }
0x11b5   : > { %6428 = vmatpush3.msra.mxu1 %v9189_v24  ;;  %4993 = vmatpush1.msra.mxu0 %v9190_v25 }
0x11b6   : > { %6429 = vmatprep.subr.mxu1 %v9181_v57  ;;  %5027 = vmatmul.mubr.f32.vlgmr.msra.gmra.mxu0 %v4960_v20 }
0x11b7   : > { %6430 = vmatpush3.msra.mxu1 %v9191_v26  ;;  %6431 = vmatprep.mubr.msk.f32.mxu1 %vm6877_vm0, %v9181_v57  ;;  %v5214_v57 = vrot.slane %v4942_v40, 2 }
0x11b8   : > { %6432 = vmatmul.mubr.f32.vlgmr.msra.gmra.mxu1 %v4960_v20 }
0x1276   : > { %v5028_v27 = vpop.f32.mrf.mxu0 }
0x1277   : > { %v5029_v31 = vadd.f32 %v5028_v27, %v9192_v30 }
0x1278   : > { %v5030_v32 = vpop.f32.mrf.mxu0  ;;  %v5099_v33 = vpop.f32.mrf.mxu1 }
0x1279   : > { %v5110_v36 = vrot.slane %v5029_v31, %v7208_v9  ;;  %v5031_v38 = vadd.f32 %v5030_v32, %v9193_v37  ;;  %v5100_v0 = vadd.f32 %v5099_v33, %v7232_v7 }
0x127a   : > { %v6433_v41 = vpop.f32.mrf.mxu1 }
0x127b   : > { %v5111_v42 = vcombine.high %v5110_v36, %v5110_v36  ;;  %v5118_v43 = vrot.slane %v5110_v36, %v7208_v9  ;;  %v5155_v44 = vrot.slane %v5031_v38, %v7208_v9  ;;  %v5194_v51 = vrot.slane %v5100_v0, %v7208_v9 }
0x127d   : > { %v5125_v46 = vrot.slane %v5111_v42, %v7208_v9  ;;  %v5128_v47 = vadd.f32 %v5118_v43, %v4942_v40  ;;  %v5156_v50 = vcombine.high %v5155_v44, %v5155_v44  ;;  %v5163_v1 = vrot.slane %v5155_v44, %v7208_v9 }
0x127e   : > { %v5195_v55 = vcombine.high %v5194_v51, %v5194_v51  ;;  %v5202_v61 = vrot.slane %v5194_v51, %v7208_v9 }
0x127f   : > { %v5129_v53 = vadd.f32 %v5125_v46, %v4943_v45  ;;  %v5587_v56 = vmul.f32 -1.442695, %v5128_v47  ;;  %v5170_v2 = vrot.slane %v5156_v50, %v7208_v9  ;;  %v5173_v10 = vadd.f32 %v5163_v1, %v5144_v58 }
0x1280   : > { %v5209_v11 = vrot.slane %v5195_v55, %v7208_v9 }
0x1281   : > { %6799 = vpow2.f32 %v5587_v56  ;;  %v5588_v48 = vmul.f32 -1.442695, %v5129_v53  ;;  %v5174_v62 = vadd.f32 %v5170_v2, %v5145_v3  ;;  %v5589_v52 = vmul.f32 -1.442695, %v5173_v10 }
0x1283   : > { %6801 = vpow2.f32 %v5588_v48  ;;  %v5590_v6 = vmul.f32 -1.442695, %v5174_v62 }
0x1284   : > { %6803 = vpow2.f32 %v5589_v52 }
0x1285   : > { %6805 = vpow2.f32 %v5590_v6 }
0x128e   : > { %v6800_v5 = vpop.eup %6799 }
0x128f   : > { %v5136_v12 = vadd.f32 1.0, %v6800_v5 }
0x1290   : > { %v6802_v54 = vpop.eup %6801 }
0x1291   : > { %v5137_v49 = vadd.f32 1.0, %v6802_v54  ;;  %6807 = vrcp.f32 %v5136_v12  ;;  %v6804_v59 = vpop.eup %6803 }
0x1292   : > { %v6806_v60 = vpop.eup %6805  ;;  %v5181_v17 = vadd.f32 1.0, %v6804_v59 }
0x1293   : > { %6809 = vrcp.f32 %v5137_v49  ;;  %v5182_v8 = vadd.f32 1.0, %v6806_v60 }
0x1294   : > { %6811 = vrcp.f32 %v5181_v17 }
0x1295   : > { %6813 = vrcp.f32 %v5182_v8 }
0x129e   : > { %v6808_v13 = vpop.eup %6807 }
0x129f   : > { %v5212_v14 = vmul.f32 %v6808_v13, %v5202_v61 }
0x12a0   : > { %v6810_v16 = vpop.eup %6809 }
0x12a1   : > { %v5213_v7 = vmul.f32 %v6810_v16, %v5209_v11  ;;  %v5218_v18 = vadd.f32 %v5214_v57, %v5212_v14  ;;  %v6812_v20 = vpop.eup %6811 }
0x12a2   : > { %v6814_v21 = vpop.eup %6813  ;;  %v5222_v22 = vsub.f32 1.0, %v6812_v20  ;;  %v5226_v25 = vmul.f32 %v6812_v20, %v8769_v4 }
0x12a3   : > { %v5219_v19 = vadd.f32 %v5215_v15, %v5213_v7  ;;  %6815 = vtanh.f32 %v5218_v18  ;;  %v5223_v24 = vsub.f32 1.0, %v6814_v21  ;;  %v5227_v28 = vmul.f32 %v6814_v21, %v8771_v63 }
0x12a5   : > { %6817 = vtanh.f32 %v5219_v19 }
0x12b0   : > { %v6816_v23 = vpop.eup %6815 }
0x12b1   : > { %v5224_v26 = vmul.f32 %v6816_v23, %v5222_v22  ;;  %5232 = sbr.rel (%p5442_p1) target bundleno = 4792 (0x12b8), region = 183 }
0x12b2   : > { %v6818_v27 = vpop.eup %6817 }
0x12b3   : > { %v5225_v29 = vmul.f32 %v6818_v27, %v5223_v24  ;;  %v5228_v30 = vadd.f32 %v5226_v25, %v5224_v26 }
0x12b5   : > { %v5229_v31 = vadd.f32 %v5227_v28, %v5225_v29 }
0x12b6   : > { %5233 = vst [vmem:[%s6985_s12 + $0xf] sm:$0x1] %v5228_v30 }
0x12b7   : > { %5234 = vst [vmem:[%s6985_s12 + $0x1f] sm:$0x1] %v5229_v31 }
0x12b8 PF: > { %5237 = sbr.rel (%p294_p13) target bundleno = 4798 (0x12be), region = 187 }
0x12bd   : > { %5238 = vst [vmem:[%s6985_s12] sm:$0x1] %v5228_v30  ;;  %5239 = vst [vmem:[%s6985_s12 + $0x10] sm:$0x1] %v5229_v31 }
0x12be PF: > { %v5242_v4 = vcombine.low %v5228_v30, %v5229_v31  ;;  %5265 = sbr.rel (!%p6953_p6) target bundleno = 4809 (0x12c9), region = 191  ;;  %s5595_s26 = sshll.u32 (%p6953_p6), %s6857_s14, 1 }
0x12bf   : > { %s5267_s28 = ssub.s32 (%p6953_p6), 1, %s5595_s26  ;;  %v5315_v34 = vld [vmem:[%s6985_s12 + $0x18] sm:$0xff] (%p6953_p6) }
0x12c0   : > { %v5249_v63 = vrot.slane %v5242_v4, %v7208_v9  ;;  %s5268_s27 = smul.u32 (%p6953_p6), %s6861_s15, %s5267_s28  ;;  %v5311_v9 = vld [vmem:[%s6985_s12 + $0x8] sm:$0xff] (%p6953_p6) }
0x12c2   : > { %5593 = vst.sshfl [vmem:[#allocation2] sm:$0x5 pattern:$0x73625140] %v5249_v63  ;;  %s5269_s29 = sadd.s32 (%p6953_p6), %s6857_s14, %s5268_s27 }
0x12c3   : > { %s5601_s30 = sshll.u32 %s5269_s29, 2 }
0x12c4   : > { %v5309_v32 = vld [vmem:[%s6985_s12] sm:$0xff]  ;;  %s5272_s4 = sadd.s32 %s6861_s15, %s5601_s30  ;;  %v5313_v33 = vld [vmem:[%s6985_s12 + $0x10] sm:$0xff] }
0x12c5   : > { %s5598_s5 = sshll.u32 %s5272_s4, 3 }
0x12c6   : > { %s5274_s9 = scalar_lea.vmem %s8924_s3, %s5598_s5 }
0x12c7   : > { %5310 = vst [vmem:[%s5274_s9] sm:$0xff] %v5309_v32  ;;  %5312 = vst [vmem:[%s5274_s9 + $0x10] sm:$0xff] %v5311_v9 }
0x12c8   : > { %5314 = vst [vmem:[%s5274_s9 + $0x40] sm:$0xff] %v5313_v33  ;;  %5316 = vst [vmem:[%s5274_s9 + $0x50] sm:$0xff] %v5315_v34 }
0x12c9 PF: > { %s13_s18 = sadd.s32 1, %s6873_s18   ;;  %s9195_s12 = smov %s6853_s13 }
0x12ca   : > { %p10_p2 = scmp.ge.s32.totalorder %s13_s18, 6   ;;  %s9196_s13 = smov %s6959_s8 }
0x12cb   : > { %s9197_s14 = smov %s6865_s16  ;;  %s9198_s15 = smov %s6869_s17 }
0x12cc   : > { %s9199_s16 = smov %s9202_s19  ;;  %s9200_s17 = smov %s9206_s20 }
0x12cd   :  { %12 = sbr.rel (!%p10_p2) target bundleno = 4 (0x4), region = 297 }

</bundles_post_ra>
